<compile_context>
chip_gen: v7x
topology: tpu7x:2x2x1
jax: 0.10.0
libtpu: 0.0.40
codegen_flags: <defaults>
</compile_context>

<pallas_src>
import numpy as np

import jax
import jax.numpy as jnp
from jax import lax
from jax.experimental import pallas as pl
from jax.experimental.pallas import tpu as pltpu

EPS = 1e-5
NEG_SLOPE = 0.2
LANE = 128
_PREC = lax.Precision.HIGHEST  # DEFAULT fails the 1e-4 fidelity budget


# ----------------------------------------------------------------------------
# Fused Pallas kernel (entire network, single invocation, VMEM resident)
# ----------------------------------------------------------------------------
def _build_kernel(cfgs, wf_off, apply_sigmoid, n_batch):
    n_layers = len(cfgs)

    def kernel(x_ref, const_ref, o_ref, lhs_scr, stats_scr, *act_scrs):
        # Zero the activation scratches once: spatial padding rows must read as
        # zeros; interiors are overwritten below.  stats rows 2..7 stay zero.
        stats_scr[...] = jnp.zeros_like(stats_scr)
        for a in act_scrs:
            a[...] = jnp.zeros_like(a)

        src = x_ref  # layer-1 input slab (pre-padded by the wrapper)
        for li, cfg in enumerate(cfgs):
            k, s, hp, ho = cfg["k"], cfg["s"], cfg["hp"], cfg["ho"]
            m = n_batch * ho
            kk = k * LANE

            # Gather the k kernel-row slabs per batch element with strided
            # sublane reads and lay them side by side (128-lane blocks) in the
            # LHS scratch -> exactly one MXU dot per layer.
            for b in range(n_batch):
                for i in range(k):
                    start = b * hp + i
                    sl = pl.ds(start, ho, stride=s) if s > 1 else pl.ds(start, ho)
                    lhs_scr[b * ho:(b + 1) * ho, i * LANE:(i + 1) * LANE] = src[sl, :]

            lhs = lhs_scr[0:m, 0:kk]
            rhs = const_ref[cfg["rhs_off"]:cfg["rhs_off"] + kk, :]
            y = jnp.dot(lhs, rhs, preferred_element_type=jnp.float32,
                        precision=_PREC)                              # (m, 128)

            if cfg["has_bn"]:
                # One-pass BN stats; both stat rows go through the tiled
                # identity group-sum/broadcast matrix in a single dot.
                inv_m = 1.0 / cfg["m_total"]
                stats_scr[0:1, :] = jnp.sum(y, axis=0, keepdims=True)
                stats_scr[1:2, :] = jnp.sum(y * y, axis=0, keepdims=True)
                p_bn = const_ref[cfg["pbn_off"]:cfg["pbn_off"] + LANE, :]
                stats = jnp.dot(stats_scr[...], p_bn,
                                preferred_element_type=jnp.float32,
                                precision=_PREC)                      # (8, 128)
                mean_bc = stats[0:1, :] * inv_m
                msq_bc = stats[1:2, :] * inv_m
                var_bc = jnp.maximum(msq_bc - mean_bc * mean_bc, 0.0)
                gb = const_ref[cfg["gb_off"]:cfg["gb_off"] + 8, :]
                scale = gb[0:1, :] * lax.rsqrt(var_bc + EPS)
                shift = gb[1:2, :] - mean_bc * scale
                y = y * scale + shift                                 # fused FMA

            y = jnp.where(y >= 0, y, NEG_SLOPE * y)                   # LeakyReLU(0.2)

            if li + 1 < n_layers:
                # Write into the next layer's zero-padded activation scratch.
                nxt = cfgs[li + 1]
                dst = act_scrs[li]
                for b in range(n_batch):
                    r0 = b * nxt["hp"] + nxt["p"]
                    dst[r0:r0 + ho, :] = y[b * ho:(b + 1) * ho, :]
                src = dst
            else:
                # Last conv has Ho=Wo=1, so y is (N, 128) with nz valid lanes.
                # Final Linear(nz, 1, bias=False) on the VPU (+ sigmoid).
                wf = const_ref[wf_off:wf_off + 1, :]
                logit = jnp.sum(y * wf, axis=1, keepdims=True)        # (N, 1)
                if apply_sigmoid:
                    logit = 1.0 / (1.0 + jnp.exp(-logit))
                o_ref[...] = logit

    return kernel


# ----------------------------------------------------------------------------
# Wrapper: one-time layout / weight plumbing (host-side numpy, constants only)
# ----------------------------------------------------------------------------
def _fold_rhs(w_np, win, cin, wo, cout, k, s, p):
    """rhs[i*LANE + w*cin + ci, c*cout + co] = W[co, ci, i, j], j = w - s*c + p."""
    rhs = np.zeros((k, LANE, LANE), np.float32)
    for j in range(k):
        for c in range(wo):
            w_in = s * c + j - p
            if 0 <= w_in < win:
                for i in range(k):
                    rhs[i, w_in * cin:(w_in + 1) * cin,
                        c * cout:(c + 1) * cout] = w_np[:, :, i, j].T
    return rhs.reshape(k * LANE, LANE)


def disc_ecal_forward(x_nchw, params, gan_type="GAN"):
    """Forward pass of DiscEcal. x_nchw: (N, nc, H, W) float32 -> (N, 1)."""
    # TODO(synk): nn.BatchNorm2d running_mean/running_var side-state is not
    # updated; normalization itself uses batch statistics (training-mode fwd).
    N, nc, H, W = x_nchw.shape
    layer_defs = [  # (weight, gamma, beta, k, stride, pad)
        ("w1", "g1", "b1", 2, 2, 1),
        ("w2", "g2", "b2", 4, 2, 1),
        ("w3", "g3", "b3", 4, 2, 1),
        ("w4", None, None, 4, 1, 0),
    ]

    const_blocks, cfgs = [], []
    row_off = 0
    hin, win, cin = H, W, nc
    for (wk, gk, bk, k, s, p) in layer_defs:
        w_np = np.asarray(params[wk], np.float32)          # (Cout, Cin, k, k)
        cout = w_np.shape[0]
        ho = (hin + 2 * p - k) // s + 1
        wo = (win + 2 * p - k) // s + 1
        assert win * cin <= LANE and wo * cout <= LANE, "lane overflow"

        cfg = dict(k=k, s=s, p=p, hp=hin + 2 * p, ho=ho,
                   rhs_off=row_off, has_bn=gk is not None, m_total=N * ho * wo)
        const_blocks.append(_fold_rhs(w_np, win, cin, wo, cout, k, s, p))
        row_off += k * LANE

        if gk is not None:
            pbn = np.zeros((LANE, LANE), np.float32)
            pbn[:wo * cout, :wo * cout] = np.tile(np.eye(cout, dtype=np.float32),
                                                  (wo, wo))
            cfg["pbn_off"] = row_off
            const_blocks.append(pbn)
            row_off += LANE
            gb = np.zeros((8, LANE), np.float32)
            gb[0, :wo * cout] = np.tile(np.asarray(params[gk], np.float32), wo)
            gb[1, :wo * cout] = np.tile(np.asarray(params[bk], np.float32), wo)
            cfg["gb_off"] = row_off
            const_blocks.append(gb)
            row_off += 8

        cfgs.append(cfg)
        hin, win, cin = ho, wo, cout

    assert hin == 1 and win == 1, "final conv must collapse to 1x1 for Linear(nz,1)"

    wf_np = np.asarray(params["wf"], np.float32).reshape(-1)
    wfb = np.zeros((8, LANE), np.float32)
    wfb[0, :wf_np.shape[0]] = wf_np
    wf_off = row_off
    const_blocks.append(wfb)
    row_off += 8

    const_slab = jnp.asarray(np.concatenate(const_blocks, axis=0))   # (R, 128)

    # Input: NCHW -> per-batch (H+2p, 128) slab; spatial rows zero-padded,
    # lanes laid out as w*nc + c and zero-padded to 128.
    p1 = layer_defs[0][5]
    hp0 = H + 2 * p1
    x_nhwc = jnp.transpose(x_nchw.astype(jnp.float32), (0, 2, 3, 1)).reshape(N, H, W * nc)
    x_pad = jnp.zeros((N, hp0, LANE), jnp.float32).at[:, p1:p1 + H, :W * nc].set(x_nhwc)
    x_pad = x_pad.reshape(N * hp0, LANE)

    max_m = N * max(c["ho"] for c in cfgs)
    max_kk = max(c["k"] for c in cfgs) * LANE
    scratch_shapes = [pltpu.VMEM((max_m, max_kk), jnp.float32),       # layer LHS
                      pltpu.VMEM((8, LANE), jnp.float32)]             # BN stats
    scratch_shapes += [pltpu.VMEM((N * c["hp"], LANE), jnp.float32)   # act buffers
                       for c in cfgs[1:]]

    kernel = _build_kernel(cfgs, wf_off, apply_sigmoid=(gan_type == "GAN"),
                           n_batch=N)
    vmem = pl.BlockSpec(memory_space=pltpu.MemorySpace.VMEM)
    # TODO(synk): for large batches a "parallel" batch-tile grid axis (to use
    # the v7x second TensorCore) needs a two-pass BN (cross-tile stat
    # reduction); at N=2 the single gridless invocation is launch-latency bound.
    return pl.pallas_call(
        kernel,
        out_shape=jax.ShapeDtypeStruct((N, 1), jnp.float32),
        in_specs=[vmem, vmem],
        out_specs=vmem,
        scratch_shapes=scratch_shapes,
    )(x_pad, const_slab)


# ----------------------------------------------------------------------------
# Pure-JAX reference (mirrors the PyTorch forward) for the correctness check.
# ----------------------------------------------------------------------------
def _reference(x_nchw, params, gan_type="GAN"):
    def conv(x, w, s, p):
        return lax.conv_general_dilated(
            x, w, window_strides=(s, s), padding=[(p, p), (p, p)],
            dimension_numbers=("NCHW", "OIHW", "NCHW"), precision=_PREC)

    def bn(x, g, b):
        mean = x.mean(axis=(0, 2, 3), keepdims=True)
        var = ((x - mean) ** 2).mean(axis=(0, 2, 3), keepdims=True)
        return (x - mean) * lax.rsqrt(var + EPS) * g.reshape(1, -1, 1, 1) \
            + b.reshape(1, -1, 1, 1)

    def lrelu(x):
        return jnp.where(x >= 0, x, NEG_SLOPE * x)

    h = lrelu(bn(conv(x_nchw, params["w1"], 2, 1), params["g1"], params["b1"]))
    h = lrelu(bn(conv(h, params["w2"], 2, 1), params["g2"], params["b2"]))
    h = lrelu(bn(conv(h, params["w3"], 2, 1), params["g3"], params["b3"]))
    h = lrelu(conv(h, params["w4"], 1, 0))
    h = h.reshape(h.shape[0], -1)
    out = jnp.dot(h, params["wf"].T, precision=_PREC)
    if gan_type == "GAN":
        out = jax.nn.sigmoid(out)
    return out


# ----------------------------------------------------------------------------
if __name__ == "__main__":
    # problem.nc = 1, problem.nf = 4, problem.nz = 8, batch = 2, spatial = 30
    nc, nf, nz = 1, 4, 8
    N, H, W = 2, 30, 30

    key = jax.random.PRNGKey(0)
    ks = jax.random.split(key, 11)
    params = {
        "w1": 0.1 * jax.random.normal(ks[0], (nf, nc, 2, 2), jnp.float32),
        "g1": 1.0 + 0.1 * jax.random.normal(ks[1], (nf,), jnp.float32),
        "b1": 0.1 * jax.random.normal(ks[2], (nf,), jnp.float32),
        "w2": 0.1 * jax.random.normal(ks[3], (nf * 2, nf, 4, 4), jnp.float32),
        "g2": 1.0 + 0.1 * jax.random.normal(ks[4], (nf * 2,), jnp.float32),
        "b2": 0.1 * jax.random.normal(ks[5], (nf * 2,), jnp.float32),
        "w3": 0.1 * jax.random.normal(ks[6], (nf * 4, nf * 2, 4, 4), jnp.float32),
        "g3": 1.0 + 0.1 * jax.random.normal(ks[7], (nf * 4,), jnp.float32),
        "b3": 0.1 * jax.random.normal(ks[8], (nf * 4,), jnp.float32),
        "w4": 0.1 * jax.random.normal(ks[9], (nz, nf * 4, 4, 4), jnp.float32),
        "wf": 0.1 * jax.random.normal(ks[10], (1, nz), jnp.float32),
    }
    x = jax.random.normal(jax.random.PRNGKey(1), (N, nc, H, W), jnp.float32)

    out = jax.block_until_ready(disc_ecal_forward(x, params, gan_type="GAN"))
    ref = jax.block_until_ready(_reference(x, params, gan_type="GAN"))

    assert out.shape == (N, 1), out.shape
    assert jnp.allclose(out, ref, rtol=1e-4, atol=1e-4), (out, ref)
    print("KERNEL_OK")
</pallas_src>

<mosaic_0001>
module attributes {stable_mosaic.version = 11 : i64} {
  func.func @kernel(%arg0: memref<64x128xf32, #tpu.memory_space<vmem>>, %arg1: memref<2208x128xf32, #tpu.memory_space<vmem>>, %arg2: memref<2x1xf32, #tpu.memory_space<vmem>>, %arg3: memref<32x512xf32, #tpu.memory_space<vmem>>, %arg4: memref<8x128xf32, #tpu.memory_space<vmem>>, %arg5: memref<36x128xf32, #tpu.memory_space<vmem>>, %arg6: memref<20x128xf32, #tpu.memory_space<vmem>>, %arg7: memref<8x128xf32, #tpu.memory_space<vmem>>) attributes {dimension_semantics = [], scalar_prefetch = 0 : i64, scratch_operands = 5 : i64, tpu.core_type = #tpu.core_type<tc>} {
    %cst = arith.constant 0.000000e+00 : f32
    %0 = vector.broadcast %cst : f32 to vector<8x128xf32>
    %c0 = arith.constant 0 : index
    %c0_0 = arith.constant 0 : index
    %1 = vector.load %arg4[%c0, %c0_0] : memref<8x128xf32, #tpu.memory_space<vmem>>, vector<8x128xf32>
    tpu.vector_store %arg4[%c0, %c0_0], %0 {strides = array<i32>} : memref<8x128xf32, #tpu.memory_space<vmem>>, vector<8x128xf32>,
    %cst_1 = arith.constant 0.000000e+00 : f32
    %2 = vector.broadcast %cst_1 : f32 to vector<36x128xf32>
    %c0_2 = arith.constant 0 : index
    %c0_3 = arith.constant 0 : index
    %3 = vector.load %arg5[%c0_2, %c0_3] : memref<36x128xf32, #tpu.memory_space<vmem>>, vector<36x128xf32>
    tpu.vector_store %arg5[%c0_2, %c0_3], %2 {strides = array<i32>} : memref<36x128xf32, #tpu.memory_space<vmem>>, vector<36x128xf32>,
    %cst_4 = arith.constant 0.000000e+00 : f32
    %4 = vector.broadcast %cst_4 : f32 to vector<20x128xf32>
    %c0_5 = arith.constant 0 : index
    %c0_6 = arith.constant 0 : index
    %5 = vector.load %arg6[%c0_5, %c0_6] : memref<20x128xf32, #tpu.memory_space<vmem>>, vector<20x128xf32>
    tpu.vector_store %arg6[%c0_5, %c0_6], %4 {strides = array<i32>} : memref<20x128xf32, #tpu.memory_space<vmem>>, vector<20x128xf32>,
    %cst_7 = arith.constant 0.000000e+00 : f32
    %6 = vector.broadcast %cst_7 : f32 to vector<8x128xf32>
    %c0_8 = arith.constant 0 : index
    %c0_9 = arith.constant 0 : index
    %7 = vector.load %arg7[%c0_8, %c0_9] : memref<8x128xf32, #tpu.memory_space<vmem>>, vector<8x128xf32>
    tpu.vector_store %arg7[%c0_8, %c0_9], %6 {strides = array<i32>} : memref<8x128xf32, #tpu.memory_space<vmem>>, vector<8x128xf32>,
    %c0_10 = arith.constant 0 : index
    %c0_11 = arith.constant 0 : index
    %8 = tpu.strided_load %arg0[%c0_10, %c0_11] {strides = array<i32: 2, 1>} : memref<64x128xf32, #tpu.memory_space<vmem>>, vector<16x128xf32>
    %c0_12 = arith.constant 0 : index
    %c0_13 = arith.constant 0 : index
    %9 = vector.load %arg3[%c0_12, %c0_13] : memref<32x512xf32, #tpu.memory_space<vmem>>, vector<16x128xf32>
    tpu.vector_store %arg3[%c0_12, %c0_13], %8 {strides = array<i32>} : memref<32x512xf32, #tpu.memory_space<vmem>>, vector<16x128xf32>,
    %c1 = arith.constant 1 : index
    %c0_14 = arith.constant 0 : index
    %10 = tpu.strided_load %arg0[%c1, %c0_14] {strides = array<i32: 2, 1>} : memref<64x128xf32, #tpu.memory_space<vmem>>, vector<16x128xf32>
    %c0_15 = arith.constant 0 : index
    %c128 = arith.constant 128 : index
    %11 = vector.load %arg3[%c0_15, %c128] : memref<32x512xf32, #tpu.memory_space<vmem>>, vector<16x128xf32>
    tpu.vector_store %arg3[%c0_15, %c128], %10 {strides = array<i32>} : memref<32x512xf32, #tpu.memory_space<vmem>>, vector<16x128xf32>,
    %c32 = arith.constant 32 : index
    %c0_16 = arith.constant 0 : index
    %12 = tpu.strided_load %arg0[%c32, %c0_16] {strides = array<i32: 2, 1>} : memref<64x128xf32, #tpu.memory_space<vmem>>, vector<16x128xf32>
    %c16 = arith.constant 16 : index
    %c0_17 = arith.constant 0 : index
    %13 = vector.load %arg3[%c16, %c0_17] : memref<32x512xf32, #tpu.memory_space<vmem>>, vector<16x128xf32>
    tpu.vector_store %arg3[%c16, %c0_17], %12 {strides = array<i32>} : memref<32x512xf32, #tpu.memory_space<vmem>>, vector<16x128xf32>,
    %c33 = arith.constant 33 : index
    %c0_18 = arith.constant 0 : index
    %14 = tpu.strided_load %arg0[%c33, %c0_18] {strides = array<i32: 2, 1>} : memref<64x128xf32, #tpu.memory_space<vmem>>, vector<16x128xf32>
    %c16_19 = arith.constant 16 : index
    %c128_20 = arith.constant 128 : index
    %15 = vector.load %arg3[%c16_19, %c128_20] : memref<32x512xf32, #tpu.memory_space<vmem>>, vector<16x128xf32>
    tpu.vector_store %arg3[%c16_19, %c128_20], %14 {strides = array<i32>} : memref<32x512xf32, #tpu.memory_space<vmem>>, vector<16x128xf32>,
    %c0_21 = arith.constant 0 : index
    %c0_22 = arith.constant 0 : index
    %16 = vector.load %arg3[%c0_21, %c0_22] : memref<32x512xf32, #tpu.memory_space<vmem>>, vector<32x256xf32>
    %c0_23 = arith.constant 0 : index
    %c0_24 = arith.constant 0 : index
    %17 = vector.load %arg1[%c0_23, %c0_24] : memref<2208x128xf32, #tpu.memory_space<vmem>>, vector<256x128xf32>
    %cst_25 = arith.constant dense<0.000000e+00> : vector<32x128xf32>
    %18 = tpu.matmul %16, %17, %cst_25 {dimension_numbers = #tpu.dot_dimension_numbers<[1], [0], [0], [1], [0, 0, 1, 1], [], []>, precision = #tpu.contract_precision<fp32>} : vector<32x256xf32>, vector<256x128xf32>, vector<32x128xf32> -> vector<32x128xf32>
    %cst_26 = arith.constant dense<0.000000e+00> : vector<128xf32>
    %19 = vector.multi_reduction <add>, %18, %cst_26 [0] : vector<32x128xf32> to vector<128xf32>
    %20 = vector.shape_cast %19 : vector<128xf32> to vector<1x128xf32>
    %c0_27 = arith.constant 0 : index
    %c0_28 = arith.constant 0 : index
    %21 = vector.load %arg4[%c0_27, %c0_28] : memref<8x128xf32, #tpu.memory_space<vmem>>, vector<1x128xf32>
    tpu.vector_store %arg4[%c0_27, %c0_28], %20 {strides = array<i32>} : memref<8x128xf32, #tpu.memory_space<vmem>>, vector<1x128xf32>,
    %22 = arith.mulf %18, %18 : vector<32x128xf32>
    %cst_29 = arith.constant dense<0.000000e+00> : vector<128xf32>
    %23 = vector.multi_reduction <add>, %22, %cst_29 [0] : vector<32x128xf32> to vector<128xf32>
    %24 = vector.shape_cast %23 : vector<128xf32> to vector<1x128xf32>
    %c1_30 = arith.constant 1 : index
    %c0_31 = arith.constant 0 : index
    %25 = vector.load %arg4[%c1_30, %c0_31] : memref<8x128xf32, #tpu.memory_space<vmem>>, vector<1x128xf32>
    tpu.vector_store %arg4[%c1_30, %c0_31], %24 {strides = array<i32>} : memref<8x128xf32, #tpu.memory_space<vmem>>, vector<1x128xf32>,
    %c256 = arith.constant 256 : index
    %c0_32 = arith.constant 0 : index
    %26 = vector.load %arg1[%c256, %c0_32] : memref<2208x128xf32, #tpu.memory_space<vmem>>, vector<128x128xf32>
    %c0_33 = arith.constant 0 : index
    %c0_34 = arith.constant 0 : index
    %27 = vector.load %arg4[%c0_33, %c0_34] : memref<8x128xf32, #tpu.memory_space<vmem>>, vector<8x128xf32>
    %cst_35 = arith.constant dense<0.000000e+00> : vector<8x128xf32>
    %28 = tpu.matmul %27, %26, %cst_35 {dimension_numbers = #tpu.dot_dimension_numbers<[1], [0], [0], [1], [0, 0, 1, 1], [], []>, precision = #tpu.contract_precision<fp32>} : vector<8x128xf32>, vector<128x128xf32>, vector<8x128xf32> -> vector<8x128xf32>
    %29 = vector.extract_strided_slice %28 {offsets = [0, 0], sizes = [1, 128], strides = [1, 1]} : vector<8x128xf32> to vector<1x128xf32>
    %cst_36 = arith.constant 0.001953125 : f32
    %30 = vector.broadcast %cst_36 : f32 to vector<1x128xf32>
    %31 = arith.mulf %29, %30 : vector<1x128xf32>
    %32 = vector.extract_strided_slice %28 {offsets = [1, 0], sizes = [1, 128], strides = [1, 1]} : vector<8x128xf32> to vector<1x128xf32>
    %cst_37 = arith.constant 0.001953125 : f32
    %33 = vector.broadcast %cst_37 : f32 to vector<1x128xf32>
    %34 = arith.mulf %32, %33 : vector<1x128xf32>
    %35 = arith.mulf %31, %31 : vector<1x128xf32>
    %36 = arith.subf %34, %35 : vector<1x128xf32>
    %cst_38 = arith.constant 0.000000e+00 : f32
    %37 = vector.broadcast %cst_38 : f32 to vector<1x128xf32>
    %38 = arith.maximumf %36, %37 : vector<1x128xf32>
    %c384 = arith.constant 384 : index
    %c0_39 = arith.constant 0 : index
    %39 = vector.load %arg1[%c384, %c0_39] : memref<2208x128xf32, #tpu.memory_space<vmem>>, vector<8x128xf32>
    %40 = vector.extract_strided_slice %39 {offsets = [0, 0], sizes = [1, 128], strides = [1, 1]} : vector<8x128xf32> to vector<1x128xf32>
    %cst_40 = arith.constant 9.99999974E-6 : f32
    %41 = vector.broadcast %cst_40 : f32 to vector<1x128xf32>
    %42 = arith.addf %38, %41 : vector<1x128xf32>
    %43 = math.rsqrt %42 : vector<1x128xf32>
    %44 = arith.mulf %40, %43 : vector<1x128xf32>
    %45 = vector.extract_strided_slice %39 {offsets = [1, 0], sizes = [1, 128], strides = [1, 1]} : vector<8x128xf32> to vector<1x128xf32>
    %46 = arith.mulf %31, %44 : vector<1x128xf32>
    %47 = arith.subf %45, %46 : vector<1x128xf32>
    %48 = vector.broadcast %44 : vector<1x128xf32> to vector<32x128xf32>
    %49 = arith.mulf %18, %48 : vector<32x128xf32>
    %50 = vector.broadcast %47 : vector<1x128xf32> to vector<32x128xf32>
    %51 = arith.addf %49, %50 : vector<32x128xf32>
    %cst_41 = arith.constant 0.000000e+00 : f32
    %52 = vector.broadcast %cst_41 : f32 to vector<32x128xf32>
    %53 = arith.cmpf oge, %51, %52 : vector<32x128xf32>
    %cst_42 = arith.constant 2.000000e-01 : f32
    %54 = vector.broadcast %cst_42 : f32 to vector<32x128xf32>
    %55 = arith.mulf %54, %51 : vector<32x128xf32>
    %56 = arith.select %53, %51, %55 : vector<32x128xi1>, vector<32x128xf32>
    %57 = vector.extract_strided_slice %56 {offsets = [0, 0], sizes = [16, 128], strides = [1, 1]} : vector<32x128xf32> to vector<16x128xf32>
    %c1_43 = arith.constant 1 : index
    %c0_44 = arith.constant 0 : index
    %58 = vector.load %arg5[%c1_43, %c0_44] : memref<36x128xf32, #tpu.memory_space<vmem>>, vector<16x128xf32>
    tpu.vector_store %arg5[%c1_43, %c0_44], %57 {strides = array<i32>} : memref<36x128xf32, #tpu.memory_space<vmem>>, vector<16x128xf32>,
    %59 = vector.extract_strided_slice %56 {offsets = [16, 0], sizes = [16, 128], strides = [1, 1]} : vector<32x128xf32> to vector<16x128xf32>
    %c19 = arith.constant 19 : index
    %c0_45 = arith.constant 0 : index
    %60 = vector.load %arg5[%c19, %c0_45] : memref<36x128xf32, #tpu.memory_space<vmem>>, vector<16x128xf32>
    tpu.vector_store %arg5[%c19, %c0_45], %59 {strides = array<i32>} : memref<36x128xf32, #tpu.memory_space<vmem>>, vector<16x128xf32>,
    %c0_46 = arith.constant 0 : index
    %c0_47 = arith.constant 0 : index
    %61 = tpu.strided_load %arg5[%c0_46, %c0_47] {strides = array<i32: 2, 1>} : memref<36x128xf32, #tpu.memory_space<vmem>>, vector<8x128xf32>
    %c0_48 = arith.constant 0 : index
    %c0_49 = arith.constant 0 : index
    %62 = vector.load %arg3[%c0_48, %c0_49] : memref<32x512xf32, #tpu.memory_space<vmem>>, vector<8x128xf32>
    tpu.vector_store %arg3[%c0_48, %c0_49], %61 {strides = array<i32>} : memref<32x512xf32, #tpu.memory_space<vmem>>, vector<8x128xf32>,
    %c1_50 = arith.constant 1 : index
    %c0_51 = arith.constant 0 : index
    %63 = tpu.strided_load %arg5[%c1_50, %c0_51] {strides = array<i32: 2, 1>} : memref<36x128xf32, #tpu.memory_space<vmem>>, vector<8x128xf32>
    %c0_52 = arith.constant 0 : index
    %c128_53 = arith.constant 128 : index
    %64 = vector.load %arg3[%c0_52, %c128_53] : memref<32x512xf32, #tpu.memory_space<vmem>>, vector<8x128xf32>
    tpu.vector_store %arg3[%c0_52, %c128_53], %63 {strides = array<i32>} : memref<32x512xf32, #tpu.memory_space<vmem>>, vector<8x128xf32>,
    %c2 = arith.constant 2 : index
    %c0_54 = arith.constant 0 : index
    %65 = tpu.strided_load %arg5[%c2, %c0_54] {strides = array<i32: 2, 1>} : memref<36x128xf32, #tpu.memory_space<vmem>>, vector<8x128xf32>
    %c0_55 = arith.constant 0 : index
    %c256_56 = arith.constant 256 : index
    %66 = vector.load %arg3[%c0_55, %c256_56] : memref<32x512xf32, #tpu.memory_space<vmem>>, vector<8x128xf32>
    tpu.vector_store %arg3[%c0_55, %c256_56], %65 {strides = array<i32>} : memref<32x512xf32, #tpu.memory_space<vmem>>, vector<8x128xf32>,
    %c3 = arith.constant 3 : index
    %c0_57 = arith.constant 0 : index
    %67 = tpu.strided_load %arg5[%c3, %c0_57] {strides = array<i32: 2, 1>} : memref<36x128xf32, #tpu.memory_space<vmem>>, vector<8x128xf32>
    %c0_58 = arith.constant 0 : index
    %c384_59 = arith.constant 384 : index
    %68 = vector.load %arg3[%c0_58, %c384_59] : memref<32x512xf32, #tpu.memory_space<vmem>>, vector<8x128xf32>
    tpu.vector_store %arg3[%c0_58, %c384_59], %67 {strides = array<i32>} : memref<32x512xf32, #tpu.memory_space<vmem>>, vector<8x128xf32>,
    %c18 = arith.constant 18 : index
    %c0_60 = arith.constant 0 : index
    %69 = tpu.strided_load %arg5[%c18, %c0_60] {strides = array<i32: 2, 1>} : memref<36x128xf32, #tpu.memory_space<vmem>>, vector<8x128xf32>
    %c8 = arith.constant 8 : index
    %c0_61 = arith.constant 0 : index
    %70 = vector.load %arg3[%c8, %c0_61] : memref<32x512xf32, #tpu.memory_space<vmem>>, vector<8x128xf32>
    tpu.vector_store %arg3[%c8, %c0_61], %69 {strides = array<i32>} : memref<32x512xf32, #tpu.memory_space<vmem>>, vector<8x128xf32>,
    %c19_62 = arith.constant 19 : index
    %c0_63 = arith.constant 0 : index
    %71 = tpu.strided_load %arg5[%c19_62, %c0_63] {strides = array<i32: 2, 1>} : memref<36x128xf32, #tpu.memory_space<vmem>>, vector<8x128xf32>
    %c8_64 = arith.constant 8 : index
    %c128_65 = arith.constant 128 : index
    %72 = vector.load %arg3[%c8_64, %c128_65] : memref<32x512xf32, #tpu.memory_space<vmem>>, vector<8x128xf32>
    tpu.vector_store %arg3[%c8_64, %c128_65], %71 {strides = array<i32>} : memref<32x512xf32, #tpu.memory_space<vmem>>, vector<8x128xf32>,
    %c20 = arith.constant 20 : index
    %c0_66 = arith.constant 0 : index
    %73 = tpu.strided_load %arg5[%c20, %c0_66] {strides = array<i32: 2, 1>} : memref<36x128xf32, #tpu.memory_space<vmem>>, vector<8x128xf32>
    %c8_67 = arith.constant 8 : index
    %c256_68 = arith.constant 256 : index
    %74 = vector.load %arg3[%c8_67, %c256_68] : memref<32x512xf32, #tpu.memory_space<vmem>>, vector<8x128xf32>
    tpu.vector_store %arg3[%c8_67, %c256_68], %73 {strides = array<i32>} : memref<32x512xf32, #tpu.memory_space<vmem>>, vector<8x128xf32>,
    %c21 = arith.constant 21 : index
    %c0_69 = arith.constant 0 : index
    %75 = tpu.strided_load %arg5[%c21, %c0_69] {strides = array<i32: 2, 1>} : memref<36x128xf32, #tpu.memory_space<vmem>>, vector<8x128xf32>
    %c8_70 = arith.constant 8 : index
    %c384_71 = arith.constant 384 : index
    %76 = vector.load %arg3[%c8_70, %c384_71] : memref<32x512xf32, #tpu.memory_space<vmem>>, vector<8x128xf32>
    tpu.vector_store %arg3[%c8_70, %c384_71], %75 {strides = array<i32>} : memref<32x512xf32, #tpu.memory_space<vmem>>, vector<8x128xf32>,
    %c0_72 = arith.constant 0 : index
    %c0_73 = arith.constant 0 : index
    %77 = vector.load %arg3[%c0_72, %c0_73] : memref<32x512xf32, #tpu.memory_space<vmem>>, vector<16x512xf32>
    %c392 = arith.constant 392 : index
    %c0_74 = arith.constant 0 : index
    %78 = vector.load %arg1[%c392, %c0_74] : memref<2208x128xf32, #tpu.memory_space<vmem>>, vector<512x128xf32>
    %cst_75 = arith.constant dense<0.000000e+00> : vector<16x128xf32>
    %79 = tpu.matmul %77, %78, %cst_75 {dimension_numbers = #tpu.dot_dimension_numbers<[1], [0], [0], [1], [0, 0, 1, 1], [], []>, precision = #tpu.contract_precision<fp32>} : vector<16x512xf32>, vector<512x128xf32>, vector<16x128xf32> -> vector<16x128xf32>
    %cst_76 = arith.constant dense<0.000000e+00> : vector<128xf32>
    %80 = vector.multi_reduction <add>, %79, %cst_76 [0] : vector<16x128xf32> to vector<128xf32>
    %81 = vector.shape_cast %80 : vector<128xf32> to vector<1x128xf32>
    %c0_77 = arith.constant 0 : index
    %c0_78 = arith.constant 0 : index
    %82 = vector.load %arg4[%c0_77, %c0_78] : memref<8x128xf32, #tpu.memory_space<vmem>>, vector<1x128xf32>
    tpu.vector_store %arg4[%c0_77, %c0_78], %81 {strides = array<i32>} : memref<8x128xf32, #tpu.memory_space<vmem>>, vector<1x128xf32>,
    %83 = arith.mulf %79, %79 : vector<16x128xf32>
    %cst_79 = arith.constant dense<0.000000e+00> : vector<128xf32>
    %84 = vector.multi_reduction <add>, %83, %cst_79 [0] : vector<16x128xf32> to vector<128xf32>
    %85 = vector.shape_cast %84 : vector<128xf32> to vector<1x128xf32>
    %c1_80 = arith.constant 1 : index
    %c0_81 = arith.constant 0 : index
    %86 = vector.load %arg4[%c1_80, %c0_81] : memref<8x128xf32, #tpu.memory_space<vmem>>, vector<1x128xf32>
    tpu.vector_store %arg4[%c1_80, %c0_81], %85 {strides = array<i32>} : memref<8x128xf32, #tpu.memory_space<vmem>>, vector<1x128xf32>,
    %c904 = arith.constant 904 : index
    %c0_82 = arith.constant 0 : index
    %87 = vector.load %arg1[%c904, %c0_82] : memref<2208x128xf32, #tpu.memory_space<vmem>>, vector<128x128xf32>
    %c0_83 = arith.constant 0 : index
    %c0_84 = arith.constant 0 : index
    %88 = vector.load %arg4[%c0_83, %c0_84] : memref<8x128xf32, #tpu.memory_space<vmem>>, vector<8x128xf32>
    %cst_85 = arith.constant dense<0.000000e+00> : vector<8x128xf32>
    %89 = tpu.matmul %88, %87, %cst_85 {dimension_numbers = #tpu.dot_dimension_numbers<[1], [0], [0], [1], [0, 0, 1, 1], [], []>, precision = #tpu.contract_precision<fp32>} : vector<8x128xf32>, vector<128x128xf32>, vector<8x128xf32> -> vector<8x128xf32>
    %90 = vector.extract_strided_slice %89 {offsets = [0, 0], sizes = [1, 128], strides = [1, 1]} : vector<8x128xf32> to vector<1x128xf32>
    %cst_86 = arith.constant 7.812500e-03 : f32
    %91 = vector.broadcast %cst_86 : f32 to vector<1x128xf32>
    %92 = arith.mulf %90, %91 : vector<1x128xf32>
    %93 = vector.extract_strided_slice %89 {offsets = [1, 0], sizes = [1, 128], strides = [1, 1]} : vector<8x128xf32> to vector<1x128xf32>
    %cst_87 = arith.constant 7.812500e-03 : f32
    %94 = vector.broadcast %cst_87 : f32 to vector<1x128xf32>
    %95 = arith.mulf %93, %94 : vector<1x128xf32>
    %96 = arith.mulf %92, %92 : vector<1x128xf32>
    %97 = arith.subf %95, %96 : vector<1x128xf32>
    %cst_88 = arith.constant 0.000000e+00 : f32
    %98 = vector.broadcast %cst_88 : f32 to vector<1x128xf32>
    %99 = arith.maximumf %97, %98 : vector<1x128xf32>
    %c1032 = arith.constant 1032 : index
    %c0_89 = arith.constant 0 : index
    %100 = vector.load %arg1[%c1032, %c0_89] : memref<2208x128xf32, #tpu.memory_space<vmem>>, vector<8x128xf32>
    %101 = vector.extract_strided_slice %100 {offsets = [0, 0], sizes = [1, 128], strides = [1, 1]} : vector<8x128xf32> to vector<1x128xf32>
    %cst_90 = arith.constant 9.99999974E-6 : f32
    %102 = vector.broadcast %cst_90 : f32 to vector<1x128xf32>
    %103 = arith.addf %99, %102 : vector<1x128xf32>
    %104 = math.rsqrt %103 : vector<1x128xf32>
    %105 = arith.mulf %101, %104 : vector<1x128xf32>
    %106 = vector.extract_strided_slice %100 {offsets = [1, 0], sizes = [1, 128], strides = [1, 1]} : vector<8x128xf32> to vector<1x128xf32>
    %107 = arith.mulf %92, %105 : vector<1x128xf32>
    %108 = arith.subf %106, %107 : vector<1x128xf32>
    %109 = vector.broadcast %105 : vector<1x128xf32> to vector<16x128xf32>
    %110 = arith.mulf %79, %109 : vector<16x128xf32>
    %111 = vector.broadcast %108 : vector<1x128xf32> to vector<16x128xf32>
    %112 = arith.addf %110, %111 : vector<16x128xf32>
    %cst_91 = arith.constant 0.000000e+00 : f32
    %113 = vector.broadcast %cst_91 : f32 to vector<16x128xf32>
    %114 = arith.cmpf oge, %112, %113 : vector<16x128xf32>
    %cst_92 = arith.constant 2.000000e-01 : f32
    %115 = vector.broadcast %cst_92 : f32 to vector<16x128xf32>
    %116 = arith.mulf %115, %112 : vector<16x128xf32>
    %117 = arith.select %114, %112, %116 : vector<16x128xi1>, vector<16x128xf32>
    %118 = vector.extract_strided_slice %117 {offsets = [0, 0], sizes = [8, 128], strides = [1, 1]} : vector<16x128xf32> to vector<8x128xf32>
    %c1_93 = arith.constant 1 : index
    %c0_94 = arith.constant 0 : index
    %119 = vector.load %arg6[%c1_93, %c0_94] : memref<20x128xf32, #tpu.memory_space<vmem>>, vector<8x128xf32>
    tpu.vector_store %arg6[%c1_93, %c0_94], %118 {strides = array<i32>} : memref<20x128xf32, #tpu.memory_space<vmem>>, vector<8x128xf32>,
    %120 = vector.extract_strided_slice %117 {offsets = [8, 0], sizes = [8, 128], strides = [1, 1]} : vector<16x128xf32> to vector<8x128xf32>
    %c11 = arith.constant 11 : index
    %c0_95 = arith.constant 0 : index
    %121 = vector.load %arg6[%c11, %c0_95] : memref<20x128xf32, #tpu.memory_space<vmem>>, vector<8x128xf32>
    tpu.vector_store %arg6[%c11, %c0_95], %120 {strides = array<i32>} : memref<20x128xf32, #tpu.memory_space<vmem>>, vector<8x128xf32>,
    %c0_96 = arith.constant 0 : index
    %c0_97 = arith.constant 0 : index
    %122 = tpu.strided_load %arg6[%c0_96, %c0_97] {strides = array<i32: 2, 1>} : memref<20x128xf32, #tpu.memory_space<vmem>>, vector<4x128xf32>
    %c0_98 = arith.constant 0 : index
    %c0_99 = arith.constant 0 : index
    %123 = vector.load %arg3[%c0_98, %c0_99] : memref<32x512xf32, #tpu.memory_space<vmem>>, vector<4x128xf32>
    tpu.vector_store %arg3[%c0_98, %c0_99], %122 {strides = array<i32>} : memref<32x512xf32, #tpu.memory_space<vmem>>, vector<4x128xf32>,
    %c1_100 = arith.constant 1 : index
    %c0_101 = arith.constant 0 : index
    %124 = tpu.strided_load %arg6[%c1_100, %c0_101] {strides = array<i32: 2, 1>} : memref<20x128xf32, #tpu.memory_space<vmem>>, vector<4x128xf32>
    %c0_102 = arith.constant 0 : index
    %c128_103 = arith.constant 128 : index
    %125 = vector.load %arg3[%c0_102, %c128_103] : memref<32x512xf32, #tpu.memory_space<vmem>>, vector<4x128xf32>
    tpu.vector_store %arg3[%c0_102, %c128_103], %124 {strides = array<i32>} : memref<32x512xf32, #tpu.memory_space<vmem>>, vector<4x128xf32>,
    %c2_104 = arith.constant 2 : index
    %c0_105 = arith.constant 0 : index
    %126 = tpu.strided_load %arg6[%c2_104, %c0_105] {strides = array<i32: 2, 1>} : memref<20x128xf32, #tpu.memory_space<vmem>>, vector<4x128xf32>
    %c0_106 = arith.constant 0 : index
    %c256_107 = arith.constant 256 : index
    %127 = vector.load %arg3[%c0_106, %c256_107] : memref<32x512xf32, #tpu.memory_space<vmem>>, vector<4x128xf32>
    tpu.vector_store %arg3[%c0_106, %c256_107], %126 {strides = array<i32>} : memref<32x512xf32, #tpu.memory_space<vmem>>, vector<4x128xf32>,
    %c3_108 = arith.constant 3 : index
    %c0_109 = arith.constant 0 : index
    %128 = tpu.strided_load %arg6[%c3_108, %c0_109] {strides = array<i32: 2, 1>} : memref<20x128xf32, #tpu.memory_space<vmem>>, vector<4x128xf32>
    %c0_110 = arith.constant 0 : index
    %c384_111 = arith.constant 384 : index
    %129 = vector.load %arg3[%c0_110, %c384_111] : memref<32x512xf32, #tpu.memory_space<vmem>>, vector<4x128xf32>
    tpu.vector_store %arg3[%c0_110, %c384_111], %128 {strides = array<i32>} : memref<32x512xf32, #tpu.memory_space<vmem>>, vector<4x128xf32>,
    %c10 = arith.constant 10 : index
    %c0_112 = arith.constant 0 : index
    %130 = tpu.strided_load %arg6[%c10, %c0_112] {strides = array<i32: 2, 1>} : memref<20x128xf32, #tpu.memory_space<vmem>>, vector<4x128xf32>
    %c4 = arith.constant 4 : index
    %c0_113 = arith.constant 0 : index
    %131 = vector.load %arg3[%c4, %c0_113] : memref<32x512xf32, #tpu.memory_space<vmem>>, vector<4x128xf32>
    tpu.vector_store %arg3[%c4, %c0_113], %130 {strides = array<i32>} : memref<32x512xf32, #tpu.memory_space<vmem>>, vector<4x128xf32>,
    %c11_114 = arith.constant 11 : index
    %c0_115 = arith.constant 0 : index
    %132 = tpu.strided_load %arg6[%c11_114, %c0_115] {strides = array<i32: 2, 1>} : memref<20x128xf32, #tpu.memory_space<vmem>>, vector<4x128xf32>
    %c4_116 = arith.constant 4 : index
    %c128_117 = arith.constant 128 : index
    %133 = vector.load %arg3[%c4_116, %c128_117] : memref<32x512xf32, #tpu.memory_space<vmem>>, vector<4x128xf32>
    tpu.vector_store %arg3[%c4_116, %c128_117], %132 {strides = array<i32>} : memref<32x512xf32, #tpu.memory_space<vmem>>, vector<4x128xf32>,
    %c12 = arith.constant 12 : index
    %c0_118 = arith.constant 0 : index
    %134 = tpu.strided_load %arg6[%c12, %c0_118] {strides = array<i32: 2, 1>} : memref<20x128xf32, #tpu.memory_space<vmem>>, vector<4x128xf32>
    %c4_119 = arith.constant 4 : index
    %c256_120 = arith.constant 256 : index
    %135 = vector.load %arg3[%c4_119, %c256_120] : memref<32x512xf32, #tpu.memory_space<vmem>>, vector<4x128xf32>
    tpu.vector_store %arg3[%c4_119, %c256_120], %134 {strides = array<i32>} : memref<32x512xf32, #tpu.memory_space<vmem>>, vector<4x128xf32>,
    %c13 = arith.constant 13 : index
    %c0_121 = arith.constant 0 : index
    %136 = tpu.strided_load %arg6[%c13, %c0_121] {strides = array<i32: 2, 1>} : memref<20x128xf32, #tpu.memory_space<vmem>>, vector<4x128xf32>
    %c4_122 = arith.constant 4 : index
    %c384_123 = arith.constant 384 : index
    %137 = vector.load %arg3[%c4_122, %c384_123] : memref<32x512xf32, #tpu.memory_space<vmem>>, vector<4x128xf32>
    tpu.vector_store %arg3[%c4_122, %c384_123], %136 {strides = array<i32>} : memref<32x512xf32, #tpu.memory_space<vmem>>, vector<4x128xf32>,
    %c0_124 = arith.constant 0 : index
    %c0_125 = arith.constant 0 : index
    %138 = vector.load %arg3[%c0_124, %c0_125] : memref<32x512xf32, #tpu.memory_space<vmem>>, vector<8x512xf32>
    %c1040 = arith.constant 1040 : index
    %c0_126 = arith.constant 0 : index
    %139 = vector.load %arg1[%c1040, %c0_126] : memref<2208x128xf32, #tpu.memory_space<vmem>>, vector<512x128xf32>
    %cst_127 = arith.constant dense<0.000000e+00> : vector<8x128xf32>
    %140 = tpu.matmul %138, %139, %cst_127 {dimension_numbers = #tpu.dot_dimension_numbers<[1], [0], [0], [1], [0, 0, 1, 1], [], []>, precision = #tpu.contract_precision<fp32>} : vector<8x512xf32>, vector<512x128xf32>, vector<8x128xf32> -> vector<8x128xf32>
    %cst_128 = arith.constant dense<0.000000e+00> : vector<128xf32>
    %141 = vector.multi_reduction <add>, %140, %cst_128 [0] : vector<8x128xf32> to vector<128xf32>
    %142 = vector.shape_cast %141 : vector<128xf32> to vector<1x128xf32>
    %c0_129 = arith.constant 0 : index
    %c0_130 = arith.constant 0 : index
    %143 = vector.load %arg4[%c0_129, %c0_130] : memref<8x128xf32, #tpu.memory_space<vmem>>, vector<1x128xf32>
    tpu.vector_store %arg4[%c0_129, %c0_130], %142 {strides = array<i32>} : memref<8x128xf32, #tpu.memory_space<vmem>>, vector<1x128xf32>,
    %144 = arith.mulf %140, %140 : vector<8x128xf32>
    %cst_131 = arith.constant dense<0.000000e+00> : vector<128xf32>
    %145 = vector.multi_reduction <add>, %144, %cst_131 [0] : vector<8x128xf32> to vector<128xf32>
    %146 = vector.shape_cast %145 : vector<128xf32> to vector<1x128xf32>
    %c1_132 = arith.constant 1 : index
    %c0_133 = arith.constant 0 : index
    %147 = vector.load %arg4[%c1_132, %c0_133] : memref<8x128xf32, #tpu.memory_space<vmem>>, vector<1x128xf32>
    tpu.vector_store %arg4[%c1_132, %c0_133], %146 {strides = array<i32>} : memref<8x128xf32, #tpu.memory_space<vmem>>, vector<1x128xf32>,
    %c1552 = arith.constant 1552 : index
    %c0_134 = arith.constant 0 : index
    %148 = vector.load %arg1[%c1552, %c0_134] : memref<2208x128xf32, #tpu.memory_space<vmem>>, vector<128x128xf32>
    %c0_135 = arith.constant 0 : index
    %c0_136 = arith.constant 0 : index
    %149 = vector.load %arg4[%c0_135, %c0_136] : memref<8x128xf32, #tpu.memory_space<vmem>>, vector<8x128xf32>
    %cst_137 = arith.constant dense<0.000000e+00> : vector<8x128xf32>
    %150 = tpu.matmul %149, %148, %cst_137 {dimension_numbers = #tpu.dot_dimension_numbers<[1], [0], [0], [1], [0, 0, 1, 1], [], []>, precision = #tpu.contract_precision<fp32>} : vector<8x128xf32>, vector<128x128xf32>, vector<8x128xf32> -> vector<8x128xf32>
    %151 = vector.extract_strided_slice %150 {offsets = [0, 0], sizes = [1, 128], strides = [1, 1]} : vector<8x128xf32> to vector<1x128xf32>
    %cst_138 = arith.constant 3.125000e-02 : f32
    %152 = vector.broadcast %cst_138 : f32 to vector<1x128xf32>
    %153 = arith.mulf %151, %152 : vector<1x128xf32>
    %154 = vector.extract_strided_slice %150 {offsets = [1, 0], sizes = [1, 128], strides = [1, 1]} : vector<8x128xf32> to vector<1x128xf32>
    %cst_139 = arith.constant 3.125000e-02 : f32
    %155 = vector.broadcast %cst_139 : f32 to vector<1x128xf32>
    %156 = arith.mulf %154, %155 : vector<1x128xf32>
    %157 = arith.mulf %153, %153 : vector<1x128xf32>
    %158 = arith.subf %156, %157 : vector<1x128xf32>
    %cst_140 = arith.constant 0.000000e+00 : f32
    %159 = vector.broadcast %cst_140 : f32 to vector<1x128xf32>
    %160 = arith.maximumf %158, %159 : vector<1x128xf32>
    %c1680 = arith.constant 1680 : index
    %c0_141 = arith.constant 0 : index
    %161 = vector.load %arg1[%c1680, %c0_141] : memref<2208x128xf32, #tpu.memory_space<vmem>>, vector<8x128xf32>
    %162 = vector.extract_strided_slice %161 {offsets = [0, 0], sizes = [1, 128], strides = [1, 1]} : vector<8x128xf32> to vector<1x128xf32>
    %cst_142 = arith.constant 9.99999974E-6 : f32
    %163 = vector.broadcast %cst_142 : f32 to vector<1x128xf32>
    %164 = arith.addf %160, %163 : vector<1x128xf32>
    %165 = math.rsqrt %164 : vector<1x128xf32>
    %166 = arith.mulf %162, %165 : vector<1x128xf32>
    %167 = vector.extract_strided_slice %161 {offsets = [1, 0], sizes = [1, 128], strides = [1, 1]} : vector<8x128xf32> to vector<1x128xf32>
    %168 = arith.mulf %153, %166 : vector<1x128xf32>
    %169 = arith.subf %167, %168 : vector<1x128xf32>
    %170 = vector.broadcast %166 : vector<1x128xf32> to vector<8x128xf32>
    %171 = arith.mulf %140, %170 : vector<8x128xf32>
    %172 = vector.broadcast %169 : vector<1x128xf32> to vector<8x128xf32>
    %173 = arith.addf %171, %172 : vector<8x128xf32>
    %cst_143 = arith.constant 0.000000e+00 : f32
    %174 = vector.broadcast %cst_143 : f32 to vector<8x128xf32>
    %175 = arith.cmpf oge, %173, %174 : vector<8x128xf32>
    %cst_144 = arith.constant 2.000000e-01 : f32
    %176 = vector.broadcast %cst_144 : f32 to vector<8x128xf32>
    %177 = arith.mulf %176, %173 : vector<8x128xf32>
    %178 = arith.select %175, %173, %177 : vector<8x128xi1>, vector<8x128xf32>
    %179 = vector.extract_strided_slice %178 {offsets = [0, 0], sizes = [4, 128], strides = [1, 1]} : vector<8x128xf32> to vector<4x128xf32>
    %c0_145 = arith.constant 0 : index
    %c0_146 = arith.constant 0 : index
    %180 = vector.load %arg7[%c0_145, %c0_146] : memref<8x128xf32, #tpu.memory_space<vmem>>, vector<4x128xf32>
    tpu.vector_store %arg7[%c0_145, %c0_146], %179 {strides = array<i32>} : memref<8x128xf32, #tpu.memory_space<vmem>>, vector<4x128xf32>,
    %181 = vector.extract_strided_slice %178 {offsets = [4, 0], sizes = [4, 128], strides = [1, 1]} : vector<8x128xf32> to vector<4x128xf32>
    %c4_147 = arith.constant 4 : index
    %c0_148 = arith.constant 0 : index
    %182 = vector.load %arg7[%c4_147, %c0_148] : memref<8x128xf32, #tpu.memory_space<vmem>>, vector<4x128xf32>
    tpu.vector_store %arg7[%c4_147, %c0_148], %181 {strides = array<i32>} : memref<8x128xf32, #tpu.memory_space<vmem>>, vector<4x128xf32>,
    %c0_149 = arith.constant 0 : index
    %c0_150 = arith.constant 0 : index
    %183 = vector.load %arg7[%c0_149, %c0_150] : memref<8x128xf32, #tpu.memory_space<vmem>>, vector<1x128xf32>
    %c0_151 = arith.constant 0 : index
    %c0_152 = arith.constant 0 : index
    %184 = vector.load %arg3[%c0_151, %c0_152] : memref<32x512xf32, #tpu.memory_space<vmem>>, vector<1x128xf32>
    tpu.vector_store %arg3[%c0_151, %c0_152], %183 {strides = array<i32>} : memref<32x512xf32, #tpu.memory_space<vmem>>, vector<1x128xf32>,
    %c1_153 = arith.constant 1 : index
    %c0_154 = arith.constant 0 : index
    %185 = vector.load %arg7[%c1_153, %c0_154] : memref<8x128xf32, #tpu.memory_space<vmem>>, vector<1x128xf32>
    %c0_155 = arith.constant 0 : index
    %c128_156 = arith.constant 128 : index
    %186 = vector.load %arg3[%c0_155, %c128_156] : memref<32x512xf32, #tpu.memory_space<vmem>>, vector<1x128xf32>
    tpu.vector_store %arg3[%c0_155, %c128_156], %185 {strides = array<i32>} : memref<32x512xf32, #tpu.memory_space<vmem>>, vector<1x128xf32>,
    %c2_157 = arith.constant 2 : index
    %c0_158 = arith.constant 0 : index
    %187 = vector.load %arg7[%c2_157, %c0_158] : memref<8x128xf32, #tpu.memory_space<vmem>>, vector<1x128xf32>
    %c0_159 = arith.constant 0 : index
    %c256_160 = arith.constant 256 : index
    %188 = vector.load %arg3[%c0_159, %c256_160] : memref<32x512xf32, #tpu.memory_space<vmem>>, vector<1x128xf32>
    tpu.vector_store %arg3[%c0_159, %c256_160], %187 {strides = array<i32>} : memref<32x512xf32, #tpu.memory_space<vmem>>, vector<1x128xf32>,
    %c3_161 = arith.constant 3 : index
    %c0_162 = arith.constant 0 : index
    %189 = vector.load %arg7[%c3_161, %c0_162] : memref<8x128xf32, #tpu.memory_space<vmem>>, vector<1x128xf32>
    %c0_163 = arith.constant 0 : index
    %c384_164 = arith.constant 384 : index
    %190 = vector.load %arg3[%c0_163, %c384_164] : memref<32x512xf32, #tpu.memory_space<vmem>>, vector<1x128xf32>
    tpu.vector_store %arg3[%c0_163, %c384_164], %189 {strides = array<i32>} : memref<32x512xf32, #tpu.memory_space<vmem>>, vector<1x128xf32>,
    %c4_165 = arith.constant 4 : index
    %c0_166 = arith.constant 0 : index
    %191 = vector.load %arg7[%c4_165, %c0_166] : memref<8x128xf32, #tpu.memory_space<vmem>>, vector<1x128xf32>
    %c1_167 = arith.constant 1 : index
    %c0_168 = arith.constant 0 : index
    %192 = vector.load %arg3[%c1_167, %c0_168] : memref<32x512xf32, #tpu.memory_space<vmem>>, vector<1x128xf32>
    tpu.vector_store %arg3[%c1_167, %c0_168], %191 {strides = array<i32>} : memref<32x512xf32, #tpu.memory_space<vmem>>, vector<1x128xf32>,
    %c5 = arith.constant 5 : index
    %c0_169 = arith.constant 0 : index
    %193 = vector.load %arg7[%c5, %c0_169] : memref<8x128xf32, #tpu.memory_space<vmem>>, vector<1x128xf32>
    %c1_170 = arith.constant 1 : index
    %c128_171 = arith.constant 128 : index
    %194 = vector.load %arg3[%c1_170, %c128_171] : memref<32x512xf32, #tpu.memory_space<vmem>>, vector<1x128xf32>
    tpu.vector_store %arg3[%c1_170, %c128_171], %193 {strides = array<i32>} : memref<32x512xf32, #tpu.memory_space<vmem>>, vector<1x128xf32>,
    %c6 = arith.constant 6 : index
    %c0_172 = arith.constant 0 : index
    %195 = vector.load %arg7[%c6, %c0_172] : memref<8x128xf32, #tpu.memory_space<vmem>>, vector<1x128xf32>
    %c1_173 = arith.constant 1 : index
    %c256_174 = arith.constant 256 : index
    %196 = vector.load %arg3[%c1_173, %c256_174] : memref<32x512xf32, #tpu.memory_space<vmem>>, vector<1x128xf32>
    tpu.vector_store %arg3[%c1_173, %c256_174], %195 {strides = array<i32>} : memref<32x512xf32, #tpu.memory_space<vmem>>, vector<1x128xf32>,
    %c7 = arith.constant 7 : index
    %c0_175 = arith.constant 0 : index
    %197 = vector.load %arg7[%c7, %c0_175] : memref<8x128xf32, #tpu.memory_space<vmem>>, vector<1x128xf32>
    %c1_176 = arith.constant 1 : index
    %c384_177 = arith.constant 384 : index
    %198 = vector.load %arg3[%c1_176, %c384_177] : memref<32x512xf32, #tpu.memory_space<vmem>>, vector<1x128xf32>
    tpu.vector_store %arg3[%c1_176, %c384_177], %197 {strides = array<i32>} : memref<32x512xf32, #tpu.memory_space<vmem>>, vector<1x128xf32>,
    %c0_178 = arith.constant 0 : index
    %c0_179 = arith.constant 0 : index
    %199 = vector.load %arg3[%c0_178, %c0_179] : memref<32x512xf32, #tpu.memory_space<vmem>>, vector<2x512xf32>
    %c1688 = arith.constant 1688 : index
    %c0_180 = arith.constant 0 : index
    %200 = vector.load %arg1[%c1688, %c0_180] : memref<2208x128xf32, #tpu.memory_space<vmem>>, vector<512x128xf32>
    %cst_181 = arith.constant dense<0.000000e+00> : vector<2x128xf32>
    %201 = tpu.matmul %199, %200, %cst_181 {dimension_numbers = #tpu.dot_dimension_numbers<[1], [0], [0], [1], [0, 0, 1, 1], [], []>, precision = #tpu.contract_precision<fp32>} : vector<2x512xf32>, vector<512x128xf32>, vector<2x128xf32> -> vector<2x128xf32>
    %cst_182 = arith.constant 0.000000e+00 : f32
    %202 = vector.broadcast %cst_182 : f32 to vector<2x128xf32>
    %203 = arith.cmpf oge, %201, %202 : vector<2x128xf32>
    %cst_183 = arith.constant 2.000000e-01 : f32
    %204 = vector.broadcast %cst_183 : f32 to vector<2x128xf32>
    %205 = arith.mulf %204, %201 : vector<2x128xf32>
    %206 = arith.select %203, %201, %205 : vector<2x128xi1>, vector<2x128xf32>
    %c2200 = arith.constant 2200 : index
    %c0_184 = arith.constant 0 : index
    %207 = vector.load %arg1[%c2200, %c0_184] : memref<2208x128xf32, #tpu.memory_space<vmem>>, vector<1x128xf32>
    %208 = vector.broadcast %207 : vector<1x128xf32> to vector<2x128xf32>
    %209 = arith.mulf %206, %208 : vector<2x128xf32>
    %cst_185 = arith.constant dense<0.000000e+00> : vector<2xf32>
    %210 = vector.multi_reduction <add>, %209, %cst_185 [1] : vector<2x128xf32> to vector<2xf32>
    %211 = vector.shape_cast %210 : vector<2xf32> to vector<2x1xf32>
    %cst_186 = arith.constant 0.000000e+00 : f32
    %212 = vector.broadcast %cst_186 : f32 to vector<2x1xf32>
    %213 = arith.subf %212, %211 : vector<2x1xf32>
    %214 = math.exp %213 : vector<2x1xf32>
    %cst_187 = arith.constant 1.000000e+00 : f32
    %215 = vector.broadcast %cst_187 : f32 to vector<2x1xf32>
    %216 = arith.addf %215, %214 : vector<2x1xf32>
    %cst_188 = arith.constant 1.000000e+00 : f32
    %217 = vector.broadcast %cst_188 : f32 to vector<2x1xf32>
    %218 = arith.divf %217, %216 : vector<2x1xf32>
    %c0_189 = arith.constant 0 : index
    %c0_190 = arith.constant 0 : index
    %219 = vector.load %arg2[%c0_189, %c0_190] : memref<2x1xf32, #tpu.memory_space<vmem>>, vector<2x1xf32>
    tpu.vector_store %arg2[%c0_189, %c0_190], %218 {strides = array<i32>} : memref<2x1xf32, #tpu.memory_space<vmem>>, vector<2x1xf32>,
    return
  }
}

</mosaic_0001>

<bundles_post_ra>
// kernel: tpu_custom_call.1
= control target key start
LH: loop header
LB: loop body
LE: loop exit
PB: predicated region body
PF: predicated region fallthrough
CT: control target
= control target key end

     0   :  { %7 = vsyncpa [#allocation8], 0  ;;  %s18332_s0 = inlined_call_operand.hbm [shape: f32[64,128], index: 0, kind: input, shape index: {}]   ;;  %s18333_s1 = inlined_call_operand.hbm [shape: f32[2208,128], index: 1, kind: input, shape index: {}]   ;;  %s18334_s2 = inlined_call_operand.vmem [shape: f32[2,1], index: 2, kind: output, shape index: {}]  }
   0x1   :  { %8 = vsyncpa [#allocation10], 0  ;;  %s13261_s9 = smov [#allocation7]   ;;  %s13213_s13 = scalar_lea.hbm %s18332_s0, 1024 }
   0x2   :  { %s14_s10 = sshll.u32 %s13261_s9, 4  ;;  %p13214_p0 = scmp.ne.s32.totalorder %s18332_s0, %s13213_s13  ;;  %s15_s10 = int_to_ptr.vmem [resolvable:$true] %s14_s10 }
   0x3   :  { %p13217_p1 = scmp.lt.u32.totalorder %s13213_s13, %s18332_s0 }
   0x5   :  { %p13219_p2 = pnand %p13217_p1, %p13214_p0 }
   0x7   :  { %13222 = shalt.err (!%p13219_p2)
}
   0x8   :  { %s13223_s18 = scalar_lea.vmem %s15_s10, 1024  ;;  %p13228_p4 = scmp.lt.s32.totalorder %s15_s10, %s15_s10 }
   0x9   :  { %p13224_p3 = scmp.ne.s32.totalorder %s15_s10, %s13223_s18  ;;  %p13229_p5 = scmp.lt.s32.totalorder %s13223_s18, %s13223_s18 }
   0xb   :  { %p13230_p6 = por %p13229_p5, %p13228_p4 }
   0xd   :  { %p13231_p7 = pnand %p13230_p6, %p13224_p3 }
   0xf   :  { %13234 = shalt.err (!%p13231_p7)
}
  0x10   :  { %s13262_s19 = smov 128   ;;  %s13263_s20 = smov 8  }
  0x11   :  { %20 = dma.hbm_to_vmem [thread:$0]  %s18332_s0, 1024, %s15_s10, [#allocation8], %s13262_s19, %s13262_s19, %s13263_s20  }
  0x12   :  { %s13264_s23 = smov [#allocation9]   ;;  %s13235_s27 = scalar_lea.hbm %s18333_s1, 35328 }
  0x13   :  { %s26_s24 = sshll.u32 %s13264_s23, 4  ;;  %p13236_p8 = scmp.ne.s32.totalorder %s18333_s1, %s13235_s27  ;;  %s27_s24 = int_to_ptr.vmem [resolvable:$true] %s26_s24 }
  0x14   :  { %p13239_p9 = scmp.lt.u32.totalorder %s13235_s27, %s18333_s1 }
  0x16   :  { %p13241_p10 = pnand %p13239_p9, %p13236_p8 }
  0x18   :  { %13244 = shalt.err (!%p13241_p10)
}
  0x19   :  { %s13245_s4 = scalar_lea.vmem %s27_s24, 35328  ;;  %p13250_p12 = scmp.lt.s32.totalorder %s27_s24, %s27_s24 }
  0x1a   :  { %p13246_p11 = scmp.ne.s32.totalorder %s27_s24, %s13245_s4  ;;  %p13251_p13 = scmp.lt.s32.totalorder %s13245_s4, %s13245_s4 }
  0x1c   :  { %p13252_p0 = por %p13251_p13, %p13250_p12 }
  0x1e   :  { %p13253_p1 = pnand %p13252_p0, %p13246_p11 }
  0x20   :  { %13256 = shalt.err (!%p13253_p1)
}
  0x21   :  { %32 = dma.hbm_to_vmem [thread:$0]  %s18333_s1, 35328, %s27_s24, [#allocation10], %s13262_s19, %s13262_s19, %s13263_s20  }
  0x22   :  { %13257 = dma.done.wait [#allocation8], 1024  }
  0x23   :  { %13258 = vsyncadd [#allocation8], 4294966272 }
  0x24   :  { %13259 = dma.done.wait [#allocation10], 35328  }
  0x25   :  { %13260 = vsyncadd [#allocation10], 4294931968  ;;  %v96_v0 = vld [vmem:[#allocation9 + $0x80] sm:$0xff]  ;;  %v97_v1 = vld [vmem:[#allocation9 + $0x88] sm:$0xff]  ;;  %vm13267_vm0 = vmmov 0   ;;  %vm8872_vm9 = vcmask 1041408  }
  0x26   :  { %v80_v2 = vld [vmem:[#allocation9] sm:$0xff]  ;;  %v161_v3 = vand.u32 4294901760, %v96_v0  ;;  %v164_v4 = vand.u32 4294901760, %v97_v1  ;;  %v81_v5 = vld [vmem:[#allocation9 + $0x8] sm:$0xff]  ;;  %v98_v7 = vld [vmem:[#allocation9 + $0x90] sm:$0xff]  ;;  %vm8882_vm10 = vcmask 1024  }
  0x27   :  { %v113_v6 = vand.u32 4294901760, %v80_v2  ;;  %v99_v8 = vld [vmem:[#allocation9 + $0x98] sm:$0xff]  ;;  %v116_v9 = vand.u32 4294901760, %v81_v5  ;;  %v167_v10 = vand.u32 4294901760, %v98_v7  ;;  %v82_v12 = vld [vmem:[#allocation9 + $0x10] sm:$0xff]  ;;  %v100_v18 = vld [vmem:[#allocation9 + $0xa0] sm:$0xff] }
  0x28   :  { %v170_v11 = vand.u32 4294901760, %v99_v8  ;;  %v83_v13 = vld [vmem:[#allocation9 + $0x18] sm:$0xff]  ;;  %v13307_v14 = vpack.c.bf16 %v164_v4, %v161_v3  ;;  %v119_v16 = vand.u32 4294901760, %v82_v12  ;;  %v101_v19 = vld [vmem:[#allocation9 + $0xa8] sm:$0xff]  ;;  %v84_v23 = vld [vmem:[#allocation9 + $0x20] sm:$0xff]  ;;  %v173_v29 = vand.u32 4294901760, %v100_v18 }
  0x29   :  { %v13309_v15 = vsub.f32 %v80_v2, %v113_v6  ;;  %v122_v17 = vand.u32 4294901760, %v83_v13  ;;  %v13311_v20 = vpack.c.bf16 %v116_v9, %v113_v6  ;;  %v13313_v21 = vsub.f32 %v81_v5, %v116_v9  ;;  %v85_v24 = vld [vmem:[#allocation9 + $0x28] sm:$0xff]  ;;  %v102_v37 = vld [vmem:[#allocation9 + $0xb0] sm:$0xff]  ;;  %v103_v42 = vld [vmem:[#allocation9 + $0xb8] sm:$0xff] }
  0x2a   :  { %19232 = vst [vmem:[#allocation13_spill] sm:$0xff] %v13307_v14  ;;  %v13315_v22 = vpack.c.bf16 %v170_v11, %v167_v10  ;;  %11388 = vmatprep.subr.bf16.mxu0 %v13307_v14  ;;  %v13318_v25 = vsub.f32 %v98_v7, %v167_v10  ;;  %v13320_v26 = vsub.f32 %v99_v8, %v170_v11  ;;  %v176_v30 = vand.u32 4294901760, %v101_v19  ;;  %v86_v55 = vld [vmem:[#allocation9 + $0x30] sm:$0xff]  ;;  %v87_v56 = vld [vmem:[#allocation9 + $0x38] sm:$0xff]  ;;  %v105_v2 = vld [vmem:[#allocation9 + $0xc8] sm:$0xff] }
  0x2b   :  { %v13322_v27 = vpack.c.bf16 %v122_v17, %v119_v16  ;;  %v13324_v28 = vsub.f32 %v82_v12, %v119_v16  ;;  %11390 = vmatpush3.bf16.msra.mxu0 %v13311_v20  ;;  %v13327_v31 = vsub.f32 %v96_v0, %v161_v3  ;;  %v13329_v32 = vsub.f32 %v97_v1, %v164_v4  ;;  %v104_v1 = vld [vmem:[#allocation9 + $0xc0] sm:$0xff]  ;;  %v13384_v16 = vld [vmem:[#allocation7 + $0x31] ss:$2 sm:$0xff] }
  0x2c   :  { %11392 = vmatprep.subr.bf16.mxu0 %v13315_v22  ;;  %v125_v33 = vand.u32 4294901760, %v84_v23  ;;  %v128_v34 = vand.u32 4294901760, %v85_v24  ;;  %v18348_v35 = vand.u32 4294901760, %v13309_v15  ;;  %v18346_v36 = vand.u32 4294901760, %v13313_v21  ;;  %v13377_v7 = vld [vmem:[#allocation7 + $0x21] ss:$2 sm:$0xff] }
  0x2d   :  { %v13334_v38 = vsub.f32 %v83_v13, %v122_v17  ;;  %v13336_v39 = vpack.c.bf16 %v176_v30, %v173_v29  ;;  %v13338_v40 = vsub.f32 %v100_v18, %v173_v29  ;;  %v18351_v41 = vand.u32 4294901760, %v13327_v31  ;;  %v13379_v8 = vld [vmem:[#allocation7 + $0x20] ss:$2 sm:$0xff] }
  0x2e   :  { %v13341_v43 = vsub.f32 %v101_v19, %v176_v30  ;;  %v18349_v44 = vand.u32 4294901760, %v13329_v32  ;;  %v13344_v45 = vpack.c.bf16 %v128_v34, %v125_v33  ;;  %v13346_v46 = vsub.f32 %v84_v23, %v125_v33  ;;  %v88_v13 = vld [vmem:[#allocation9 + $0x40] sm:$0xff] }
  0x2f   :  { %11394 = vmatpush3.bf16.msra.mxu0 %v13322_v27  ;;  %v385_v47 = vsub.f32 %v13327_v31, %v18351_v41  ;;  %v273_v48 = vsub.f32 %v13309_v15, %v18348_v35  ;;  %v280_v49 = vsub.f32 %v13313_v21, %v18346_v36  ;;  %v179_v50 = vand.u32 4294901760, %v102_v37  ;;  %v110_v35 = vld [vmem:[#allocation9 + $0xf0] sm:$0xff] }
  0x30   :  { %11396 = vmatprep.subr.bf16.mxu0 %v13336_v39  ;;  %v392_v51 = vsub.f32 %v13329_v32, %v18349_v44  ;;  %v182_v52 = vand.u32 4294901760, %v103_v42  ;;  %v18344_v53 = vand.u32 4294901760, %v13318_v25  ;;  %v18343_v54 = vand.u32 4294901760, %v13320_v26  ;;  %v111_v44 = vld [vmem:[#allocation9 + $0xf8] sm:$0xff] }
  0x31   :  { %v386_v57 = vand.u32 4294901760, %v385_v47  ;;  %v13364_v58 = vsub.f32 %v85_v24, %v128_v34  ;;  %v274_v59 = vand.u32 4294901760, %v273_v48  ;;  %v281_v60 = vand.u32 4294901760, %v280_v49  ;;  %v13392_v24 = vld [vmem:[#allocation7 + $0x30] ss:$2 sm:$0xff] }
  0x32   :  { %v393_v61 = vand.u32 4294901760, %v392_v51  ;;  %v13366_v62 = vpack.c.bf16 %v182_v52, %v179_v50  ;;  %v13368_v63 = vsub.f32 %v102_v37, %v179_v50  ;;  %v399_v0 = vsub.f32 %v13318_v25, %v18344_v53  ;;  %v89_v37 = vld [vmem:[#allocation9 + $0x48] sm:$0xff] }
  0x33   :  { %11398 = vmatpush3.bf16.msra.mxu0 %v13344_v45  ;;  %v11421_v3 = vpack.c.bf16 %v281_v60, %v274_v59  ;;  %v406_v4 = vsub.f32 %v13320_v26, %v18343_v54  ;;  %v131_v5 = vand.u32 4294901760, %v86_v55  ;;  %v134_v6 = vand.u32 4294901760, %v87_v56 }
  0x34   :  { %v11419_v9 = vpack.c.bf16 %v393_v61, %v386_v57  ;;  %11400 = vmatprep.subr.bf16.mxu0 %v13366_v62  ;;  %v400_v10 = vand.u32 4294901760, %v399_v0  ;;  %v18341_v11 = vand.u32 4294901760, %v13324_v28  ;;  %v18339_v12 = vand.u32 4294901760, %v13334_v38  ;;  %v106_v0 = vld [vmem:[#allocation9 + $0xd0] sm:$0xff] }
  0x35   :  { %v13386_v17 = vsub.f32 %v103_v42, %v182_v52  ;;  %v407_v18 = vand.u32 4294901760, %v406_v4  ;;  %v13388_v19 = vpack.c.bf16 %v134_v6, %v131_v5  ;;  %v13390_v23 = vsub.f32 %v86_v55, %v131_v5 }
  0x36   :  { %11420 = vmatprep.subr.bf16.mxu1 %v11419_v9  ;;  %v287_v29 = vsub.f32 %v13324_v28, %v18341_v11  ;;  %v294_v30 = vsub.f32 %v13334_v38, %v18339_v12  ;;  %v185_v33 = vand.u32 4294901760, %v104_v1  ;;  %v188_v34 = vand.u32 4294901760, %v105_v2  ;;  %v109_v12 = vld [vmem:[#allocation9 + $0xe8] sm:$0xff] }
  0x37   :  { %19233 = vst [vmem:[#allocation14_spill] sm:$0xff] %v13388_v19  ;;  %11422 = vmatpush3.bf16.msra.mxu1 %v11421_v3  ;;  %v11423_v42 = vpack.c.bf16 %v407_v18, %v400_v10  ;;  %11402 = vmatpush3.bf16.msra.mxu0 %v13388_v19  ;;  %v18338_v47 = vand.u32 4294901760, %v13338_v40  ;;  %v18336_v48 = vand.u32 4294901760, %v13341_v43  ;;  %v137_v49 = vand.u32 4294901760, %v88_v13  ;;  %v107_v3 = vld [vmem:[#allocation9 + $0xd8] sm:$0xff] }
  0x38   :  { %v13403_v50 = vsub.f32 %v87_v56, %v134_v6  ;;  %v288_v51 = vand.u32 4294901760, %v287_v29  ;;  %v295_v52 = vand.u32 4294901760, %v294_v30  ;;  %v13405_v55 = vpack.c.bf16 %v188_v34, %v185_v33  ;;  %v90_v6 = vld [vmem:[#allocation9 + $0x50] sm:$0xff] }
  0x39   :  { %11424 = vmatprep.subr.bf16.mxu1 %v11423_v42  ;;  %v13407_v57 = vsub.f32 %v104_v1, %v185_v33  ;;  %v413_v59 = vsub.f32 %v13338_v40, %v18338_v47  ;;  %v420_v60 = vsub.f32 %v13341_v43, %v18336_v48  ;;  %v140_v61 = vand.u32 4294901760, %v89_v37  ;;  %v91_v42 = vld [vmem:[#allocation9 + $0x58] sm:$0xff]  ;;  %v108_v47 = vld [vmem:[#allocation9 + $0xe0] sm:$0xff] }
  0x3a   :  { %19234 = vst [vmem:[#allocation15_spill] sm:$0xff] %v13405_v55  ;;  %v11425_v56 = vpack.c.bf16 %v295_v52, %v288_v51  ;;  %11404 = vmatprep.subr.bf16.mxu0 %v13405_v55  ;;  %v13416_v4 = vsub.f32 %v105_v2, %v188_v34  ;;  %v18335_v5 = vand.u32 4294901760, %v13346_v46  ;;  %v18337_v1 = vand.u32 4294901760, %v13364_v58  ;;  %v57_v19 = vld [vmem:[#allocation7 + $0x11] ss:$2 sm:$0xff] }
  0x3b   :  { %v414_v9 = vand.u32 4294901760, %v413_v59  ;;  %v421_v10 = vand.u32 4294901760, %v420_v60  ;;  %v13420_v18 = vpack.c.bf16 %v140_v61, %v137_v49  ;;  %v13422_v29 = vsub.f32 %v88_v13, %v137_v49 }
  0x3c   :  { %11426 = vmatpush3.bf16.msra.mxu1 %v11425_v56  ;;  %v301_v30 = vsub.f32 %v13346_v46, %v18335_v5  ;;  %v308_v2 = vsub.f32 %v13364_v58, %v18337_v1  ;;  %v191_v33 = vand.u32 4294901760, %v106_v0  ;;  %v194_v34 = vand.u32 4294901760, %v107_v3 }
  0x3d   :  { %19235 = vst [vmem:[#allocation16_spill] sm:$0xff] %v13420_v18  ;;  %v11427_v51 = vpack.c.bf16 %v421_v10, %v414_v9  ;;  %11406 = vmatpush3.bf16.msra.mxu0 %v13420_v18  ;;  %v18340_v52 = vand.u32 4294901760, %v13368_v63  ;;  %v18342_v13 = vand.u32 4294901760, %v13386_v17  ;;  %v143_v49 = vand.u32 4294901760, %v90_v6 }
  0x3e   :  { %v13433_v59 = vsub.f32 %v89_v37, %v140_v61  ;;  %v302_v60 = vand.u32 4294901760, %v301_v30  ;;  %v309_v56 = vand.u32 4294901760, %v308_v2  ;;  %v13435_v5 = vpack.c.bf16 %v194_v34, %v191_v33  ;;  %v92_v2 = vld [vmem:[#allocation9 + $0x60] sm:$0xff] }
  0x3f   :  { %11428 = vmatprep.subr.bf16.mxu1 %v11427_v51  ;;  %v13437_v48 = vsub.f32 %v106_v0, %v191_v33  ;;  %v427_v9 = vsub.f32 %v13368_v63, %v18340_v52  ;;  %v434_v10 = vsub.f32 %v13386_v17, %v18342_v13  ;;  %v146_v1 = vand.u32 4294901760, %v91_v42  ;;  %v93_v13 = vld [vmem:[#allocation9 + $0x68] sm:$0xff] }
  0x40   :  { %19236 = vst [vmem:[#allocation17_spill] sm:$0xff] %v13435_v5  ;;  %v11429_v37 = vpack.c.bf16 %v309_v56, %v302_v60  ;;  %11408 = vmatprep.subr.bf16.mxu0 %v13435_v5  ;;  %v13446_v61 = vsub.f32 %v107_v3, %v194_v34  ;;  %v18345_v30 = vand.u32 4294901760, %v13390_v23  ;;  %v18347_v0 = vand.u32 4294901760, %v13403_v50 }
  0x41   :  { %v428_v33 = vand.u32 4294901760, %v427_v9  ;;  %v435_v51 = vand.u32 4294901760, %v434_v10  ;;  %v13450_v52 = vpack.c.bf16 %v146_v1, %v143_v49  ;;  %v13452_v11 = vsub.f32 %v90_v6, %v143_v49 }
  0x42   :  { %11430 = vmatpush3.bf16.msra.mxu1 %v11429_v37  ;;  %v315_v60 = vsub.f32 %v13390_v23, %v18345_v30  ;;  %v322_v3 = vsub.f32 %v13403_v50, %v18347_v0  ;;  %v197_v34 = vand.u32 4294901760, %v108_v47  ;;  %v200_v56 = vand.u32 4294901760, %v109_v12 }
  0x43   :  { %19237 = vst [vmem:[#allocation18_spill] sm:$0xff] %v13450_v52  ;;  %v11431_v54 = vpack.c.bf16 %v435_v51, %v428_v33  ;;  %11410 = vmatpush3.bf16.msra.mxu0 %v13450_v52  ;;  %v18350_v9 = vand.u32 4294901760, %v13407_v57  ;;  %v18352_v6 = vand.u32 4294901760, %v13416_v4  ;;  %v149_v49 = vand.u32 4294901760, %v92_v2 }
  0x44   :  { %v13463_v10 = vsub.f32 %v91_v42, %v146_v1  ;;  %v316_v37 = vand.u32 4294901760, %v315_v60  ;;  %v323_v53 = vand.u32 4294901760, %v322_v3  ;;  %v13465_v30 = vpack.c.bf16 %v200_v56, %v197_v34  ;;  %v94_v60 = vld [vmem:[#allocation9 + $0x70] sm:$0xff] }
  0x45   :  { %11432 = vmatprep.subr.bf16.mxu1 %v11431_v54  ;;  %v13467_v36 = vsub.f32 %v108_v47, %v197_v34  ;;  %v441_v33 = vsub.f32 %v13407_v57, %v18350_v9  ;;  %v448_v51 = vsub.f32 %v13416_v4, %v18352_v6  ;;  %v152_v0 = vand.u32 4294901760, %v93_v13  ;;  %v95_v6 = vld [vmem:[#allocation9 + $0x78] sm:$0xff] }
  0x46   :  { %19238 = vst [vmem:[#allocation19_spill] sm:$0xff] %v13465_v30  ;;  %v11433_v1 = vpack.c.bf16 %v323_v53, %v316_v37  ;;  %11412 = vmatprep.subr.bf16.mxu0 %v13465_v30  ;;  %v13476_v42 = vsub.f32 %v109_v12, %v200_v56  ;;  %v18357_v54 = vand.u32 4294901760, %v13422_v29  ;;  %v18360_v47 = vand.u32 4294901760, %v13433_v59 }
  0x47   :  { %v442_v3 = vand.u32 4294901760, %v441_v33  ;;  %v449_v34 = vand.u32 4294901760, %v448_v51  ;;  %v13480_v9 = vpack.c.bf16 %v152_v0, %v149_v49  ;;  %v13482_v41 = vsub.f32 %v92_v2, %v149_v49 }
  0x48   :  { %11434 = vmatpush3.bf16.msra.mxu1 %v11433_v1  ;;  %v329_v53 = vsub.f32 %v13422_v29, %v18357_v54  ;;  %v336_v12 = vsub.f32 %v13433_v59, %v18360_v47  ;;  %v203_v56 = vand.u32 4294901760, %v110_v35  ;;  %v206_v37 = vand.u32 4294901760, %v111_v44 }
  0x49   :  { %19239 = vst [vmem:[#allocation20_spill] sm:$0xff] %v13480_v9  ;;  %v11435_v30 = vpack.c.bf16 %v449_v34, %v442_v3  ;;  %11414 = vmatpush3.bf16.msra.mxu0 %v13480_v9  ;;  %v18365_v33 = vand.u32 4294901760, %v13437_v48  ;;  %v18366_v2 = vand.u32 4294901760, %v13446_v61  ;;  %v155_v49 = vand.u32 4294901760, %v94_v60  ;;  %v55_v9 = vld [vmem:[#allocation7 + $0x1] ss:$2 sm:$0xff] }
  0x4a   :  { %v13493_v51 = vsub.f32 %v93_v13, %v152_v0  ;;  %v330_v1 = vand.u32 4294901760, %v329_v53  ;;  %v337_v52 = vand.u32 4294901760, %v336_v12  ;;  %v13495_v54 = vpack.c.bf16 %v206_v37, %v203_v56 }
  0x4b   :  { %11436 = vmatprep.subr.bf16.mxu1 %v11435_v30  ;;  %v13497_v5 = vsub.f32 %v110_v35, %v203_v56  ;;  %v455_v3 = vsub.f32 %v13437_v48, %v18365_v33  ;;  %v462_v34 = vsub.f32 %v13446_v61, %v18366_v2  ;;  %v158_v47 = vand.u32 4294901760, %v95_v6  ;;  %v49_v30 = vld [vmem:[#allocation7] ss:$2 sm:$0xff] }
  0x4c   :  { %19240 = vst [vmem:[#allocation21_spill] sm:$0xff] %v13495_v54  ;;  %v11437_v18 = vpack.c.bf16 %v337_v52, %v330_v1  ;;  %11416 = vmatprep.subr.bf16.mxu0 %v13495_v54  ;;  %v13506_v13 = vsub.f32 %v111_v44, %v206_v37  ;;  %v18367_v0 = vand.u32 4294901760, %v13452_v11  ;;  %v18368_v35 = vand.u32 4294901760, %v13463_v10 }
  0x4d   :  { %v456_v53 = vand.u32 4294901760, %v455_v3  ;;  %v463_v12 = vand.u32 4294901760, %v462_v34  ;;  %v13510_v56 = vpack.c.bf16 %v158_v47, %v155_v49  ;;  %v13512_v33 = vsub.f32 %v94_v60, %v155_v49 }
  0x4e   :  { %11438 = vmatpush3.bf16.msra.mxu1 %v11437_v18  ;;  %v343_v52 = vsub.f32 %v13452_v11, %v18367_v0  ;;  %v350_v44 = vsub.f32 %v13463_v10, %v18368_v35  ;;  %v13520_v37 = vand.u32 4294901760, %v55_v9  ;;  %v18371_v1 = vand.u32 4294901760, %v13467_v36 }
  0x4f   :  { %19241 = vst [vmem:[#allocation22_spill] sm:$0xff] %v13510_v56  ;;  %v11439_v2 = vpack.c.bf16 %v463_v12, %v456_v53  ;;  %11418 = vmatpush3.bf16.msra.mxu0 %v13510_v56  ;;  %v18377_v3 = vand.u32 4294901760, %v13476_v42  ;;  %v11451_v18 = vpack.c.bf16 %v13329_v32, %v13327_v31  ;;  %v13527_v60 = vand.u32 4294901760, %v49_v30 }
  0x50   :  { %19242 = vst [vmem:[#allocation23_spill] sm:$0xff] %v13520_v37  ;;  %v344_v49 = vand.u32 4294901760, %v343_v52  ;;  %v351_v34 = vand.u32 4294901760, %v350_v44  ;;  %v13530_v0 = vsub.f32 %v55_v9, %v13520_v37  ;;  %v469_v35 = vsub.f32 %v13467_v36, %v18371_v1  ;;  %494 = vmatprep.mubr.f32.mxu1 %v13520_v37 }
  0x51   :  { %19243 = vst [vmem:[#allocation24_spill] sm:$0xff] %v13527_v60  ;;  %11440 = vmatprep.subr.bf16.mxu1 %v11439_v2  ;;  %v476_v53 = vsub.f32 %v13476_v42, %v18377_v3  ;;  %11452 = vmatprep.subr.bf16.mxu0 %v11451_v18  ;;  %v13540_v12 = vsub.f32 %v49_v30, %v13527_v60  ;;  %v18376_v52 = vand.u32 4294901760, %v13482_v41  ;;  %v18378_v9 = vand.u32 4294901760, %v13493_v51 }
  0x52   :  { %v13544_v44 = vsub.f32 %v95_v6, %v158_v47  ;;  %v11441_v56 = vpack.c.bf16 %v351_v34, %v344_v49  ;;  %v18379_v1 = vand.u32 4294901760, %v13530_v0  ;;  %v470_v54 = vand.u32 4294901760, %v469_v35 }
  0x53   :  { %19244 = vst [vmem:[#allocation25_spill] sm:$0xff] %v13540_v12  ;;  %v477_v37 = vand.u32 4294901760, %v476_v53  ;;  %v18384_v2 = vand.u32 4294901760, %v13540_v12  ;;  %v357_v18 = vsub.f32 %v13482_v41, %v18376_v52  ;;  %v364_v30 = vsub.f32 %v13493_v51, %v18378_v9 }
  0x54   :  { %19245 = vst [vmem:[#allocation26_spill] sm:$0xff] %v13544_v44  ;;  %11442 = vmatpush3.bf16.msra.mxu1 %v11441_v56  ;;  %v211_v6 = vsub.f32 %v13530_v0, %v18379_v1  ;;  %v11453_v47 = vpack.c.bf16 %v13313_v21, %v13309_v15  ;;  %v18385_v35 = vand.u32 4294901760, %v13497_v5  ;;  %v18390_v49 = vand.u32 4294901760, %v13506_v13 }
  0x55   :  { %v11443_v34 = vpack.c.bf16 %v477_v37, %v470_v54  ;;  %v217_v53 = vsub.f32 %v13540_v12, %v18384_v2  ;;  %v358_v52 = vand.u32 4294901760, %v357_v18  ;;  %v365_v3 = vand.u32 4294901760, %v364_v30  ;;  %v51_v12 = vld [vmem:[#allocation7 + $0x10] ss:$2 sm:$0xff] }
  0x56   :  { %v212_v9 = vand.u32 4294901760, %v211_v6  ;;  %v483_v56 = vsub.f32 %v13497_v5, %v18385_v35  ;;  %v490_v1 = vsub.f32 %v13506_v13, %v18390_v49  ;;  %v18389_v55 = vand.u32 4294901760, %v13512_v33 }
  0x57   :  { %11444 = vmatprep.subr.bf16.mxu1 %v11443_v34  ;;  %v218_v54 = vand.u32 4294901760, %v217_v53  ;;  %v11445_v37 = vpack.c.bf16 %v365_v3, %v358_v52  ;;  %v11455_v2 = vpack.c.bf16 %v13320_v26, %v13318_v25  ;;  %v18388_v18 = vand.u32 4294901760, %v13544_v44 }
  0x58   :  { %213 = vmatprep.mubr.f32.mxu0 %v212_v9  ;;  %v484_v30 = vand.u32 4294901760, %v483_v56  ;;  %v491_v6 = vand.u32 4294901760, %v490_v1  ;;  %v371_v35 = vsub.f32 %v13512_v33, %v18389_v55  ;;  %v13580_v3 = vand.u32 4294901760, %v57_v19 }
  0x59   :  { %219 = vmatmul.mubr.f32.vlgmr.msra.gmra.mrb[0].mxu0 %v218_v54  ;;  %11446 = vmatpush3.bf16.msra.mxu1 %v11445_v37  ;;  %v378_v34 = vsub.f32 %v13544_v44, %v18388_v18  ;;  %v11457_v9 = vpack.c.bf16 %v13334_v38, %v13324_v28  ;;  %v11459_v56 = vpack.c.bf16 %v13341_v43, %v13338_v40  ;;  %v13589_v37 = vand.u32 4294901760, %v51_v12 }
  0x5a   :  { %11454 = vmatpush3.bf16.msra.mxu0 %v11453_v47  ;;  %v11447_v52 = vpack.c.bf16 %v491_v6, %v484_v30  ;;  %v372_v53 = vand.u32 4294901760, %v371_v35  ;;  %v13587_v54 = vsub.f32 %v57_v19, %v13580_v3  ;;  %v13592_v18 = vand.u32 4294901760, %v13377_v7 }
  0x5b   :  { %11456 = vmatprep.subr.bf16.mxu0 %v11455_v2  ;;  %v379_v1 = vand.u32 4294901760, %v378_v34  ;;  %v13595_v47 = vand.u32 4294901760, %v13379_v8  ;;  %v11461_v2 = vpack.c.bf16 %v13364_v58, %v13346_v46  ;;  %v13601_v6 = vsub.f32 %v51_v12, %v13589_v37 }
  0x5c   :  { %19246 = vst [vmem:[#allocation27_spill] sm:$0xff] %v13587_v54  ;;  %11448 = vmatprep.subr.bf16.mxu1 %v11447_v52  ;;  %v18391_v30 = vand.u32 4294901760, %v13587_v54  ;;  %v11463_v19 = vpack.c.bf16 %v13386_v17, %v13368_v63  ;;  %v13607_v34 = vsub.f32 %v13377_v7, %v13592_v18  ;;  %v11465_v12 = vpack.c.bf16 %v13403_v50, %v13390_v23 }
  0x5d   :  { %v11449_v35 = vpack.c.bf16 %v379_v1, %v372_v53  ;;  %19247 = vst [vmem:[#allocation28_spill] sm:$0xff] %v13601_v6  ;;  %v13611_v52 = vsub.f32 %v13379_v8, %v13595_v47  ;;  %v13614_v53 = vand.u32 4294901760, %v13384_v16  ;;  %v18397_v1 = vand.u32 4294901760, %v13601_v6 }
  0x5e   :  { %11458 = vmatpush3.bf16.msra.mxu0 %v11457_v9  ;;  %v226_v9 = vsub.f32 %v13587_v54, %v18391_v30  ;;  %v13623_v7 = vand.u32 4294901760, %v13392_v24  ;;  %v11467_v8 = vpack.c.bf16 %v13416_v4, %v13407_v57  ;;  %v19250_v44 = vand.u32 4294901760, %v13329_v32 }
  0x5f   :  { %19248 = vst [vmem:[#allocation29_spill] sm:$0xff] %v13611_v52  ;;  %11450 = vmatpush3.bf16.msra.mxu1 %v11449_v35  ;;  %11460 = vmatprep.subr.bf16.mxu0 %v11459_v56  ;;  %v18402_v56 = vand.u32 4294901760, %v13611_v52  ;;  %v13632_v55 = vsub.f32 %v13384_v16, %v13614_v53  ;;  %v232_v30 = vsub.f32 %v13601_v6, %v18397_v1  ;;  %v19251_v16 = vand.u32 4294901760, %v13607_v34 }
  0x60   :  { %11484 = vmatprep.subr.bf16.mxu1 %v13307_v14  ;;  %v227_v49 = vand.u32 4294901760, %v226_v9  ;;  %v13639_v54 = vsub.f32 %v13392_v24, %v13623_v7  ;;  %v19249_v14 = vand.u32 4294901760, %v13327_v31  ;;  %v19252_v6 = vand.u32 4294901760, %v13309_v15 }
  0x61   :  { %v241_v9 = vsub.f32 %v13607_v34, %v19251_v16  ;;  %v247_v1 = vsub.f32 %v13611_v52, %v18402_v56  ;;  %v19253_v31 = vand.u32 4294901760, %v13313_v21  ;;  %v19255_v16 = vand.u32 4294901760, %v13320_v26 }
  0x62   :  { %v13645_v35 = vpack.c.bf16 %v19250_v44, %v19249_v14  ;;  %496 = vmatmul.mubr.f32.vlgmr.msra.gmra.mrb[0].mxu1 %v13527_v60  ;;  %11462 = vmatpush3.bf16.msra.mxu0 %v11461_v2  ;;  %v233_v14 = vand.u32 4294901760, %v232_v30  ;;  %v261_v44 = vand.u32 4294901760, %v13639_v54  ;;  %v19254_v2 = vand.u32 4294901760, %v13318_v25 }
  0x63   :  { %v11517_v32 = vpack.c.bf16 %v19253_v31, %v19252_v6  ;;  %11486 = vmatpush3.bf16.msra.mxu1 %v13311_v20  ;;  %11464 = vmatprep.subr.bf16.mxu0 %v11463_v19  ;;  %v19256_v56 = vand.u32 4294901760, %v13324_v28  ;;  %v19257_v24 = vand.u32 4294901760, %v13334_v38  ;;  %v11469_v15 = vpack.c.bf16 %v13433_v59, %v13422_v29 }
  0x64   :  { %v11519_v60 = vpack.c.bf16 %v19255_v16, %v19254_v2  ;;  %11488 = vmatprep.subr.bf16.mxu1 %v13315_v22  ;;  %228 = vmatprep.mubr.f32.mxu0 %v227_v49  ;;  %v242_v21 = vand.u32 4294901760, %v241_v9  ;;  %v19258_v30 = vand.u32 4294901760, %v13632_v55  ;;  %v19259_v25 = vand.u32 4294901760, %v13338_v40 }
  0x65   :  { %v11521_v52 = vpack.c.bf16 %v19257_v24, %v19256_v56  ;;  %v19260_v26 = vand.u32 4294901760, %v13341_v43  ;;  %234 = vmatmul.mubr.f32.gmra.mrb[2].mxu0 %v233_v14  ;;  %v248_v28 = vand.u32 4294901760, %v247_v1  ;;  %501 = vmatprep.mubr.f32.mxu1 %v13580_v3  ;;  %v262_v38 = vsub.f32 %v13639_v54, %v261_v44 }
  0x66   :  { %v256_v6 = vsub.f32 %v13632_v55, %v19258_v30  ;;  %v19261_v49 = vand.u32 4294901760, %v13346_v46  ;;  %v19262_v56 = vand.u32 4294901760, %v13364_v58  ;;  %v19263_v24 = vand.u32 4294901760, %v13368_v63  ;;  %11466 = vmatpush3.bf16.msra.mxu0 %v11465_v12  ;;  %243 = vmatprep.mubr.f32.mxu0 %v242_v21 }
  0x67   :  { %v11523_v19 = vpack.c.bf16 %v19260_v26, %v19259_v25  ;;  %v19264_v40 = vand.u32 4294901760, %v13386_v17  ;;  %v19265_v1 = vand.u32 4294901760, %v13390_v23  ;;  %v19266_v14 = vand.u32 4294901760, %v13403_v50  ;;  %11490 = vmatpush3.bf16.msra.mxu1 %v13322_v27  ;;  %11468 = vmatprep.subr.bf16.mxu0 %v11467_v8  ;;  %v19277_v26 = vld [vmem:[#allocation16_spill] sm:$0xff] }
  0x68   :  { %v11525_v9 = vpack.c.bf16 %v19262_v56, %v19261_v49  ;;  %v257_v43 = vand.u32 4294901760, %v256_v6  ;;  %v19267_v16 = vand.u32 4294901760, %v13407_v57  ;;  %v19268_v46 = vand.u32 4294901760, %v13416_v4  ;;  %11492 = vmatprep.subr.bf16.mxu1 %v13336_v39  ;;  %503 = vmatmul.mubr.f32.gmra.mrb[2].mxu1 %v13589_v37  ;;  %v19276_v6 = vld [vmem:[#allocation26_spill] sm:$0xff]  ;;  %v19280_v49 = vld [vmem:[#allocation19_spill] sm:$0xff]  ;;  %v19281_v56 = vld [vmem:[#allocation25_spill] sm:$0xff] }
  0x69   :  { %v11527_v31 = vpack.c.bf16 %v19264_v40, %v19263_v24  ;;  %v11529_v2 = vpack.c.bf16 %v19266_v14, %v19265_v1  ;;  %v19269_v58 = vand.u32 4294901760, %v13422_v29  ;;  %v19270_v63 = vand.u32 4294901760, %v13433_v59  ;;  %249 = vmatmul.mubr.f32.gmra.mrb[4].mxu0 %v248_v28  ;;  %508 = vmatprep.mubr.f32.mxu1 %v13592_v18  ;;  %v19278_v28 = vld [vmem:[#allocation17_spill] sm:$0xff]  ;;  %v19283_v24 = vld [vmem:[#allocation20_spill] sm:$0xff]  ;;  %v19286_v1 = vld [vmem:[#allocation22_spill] sm:$0xff] }
  0x6a   :  { %v13699_v30 = vpack.c.bf16 %v19268_v46, %v19267_v16  ;;  %v11471_v23 = vpack.c.bf16 %v13446_v61, %v13437_v48  ;;  %v19271_v50 = vand.u32 4294901760, %v13437_v48  ;;  %v19272_v57 = vand.u32 4294901760, %v13446_v61  ;;  %11470 = vmatpush3.bf16.msra.mxu0 %v11469_v15  ;;  %258 = vmatprep.mubr.f32.mxu0 %v257_v43  ;;  %v19273_v61 = vld [vmem:[#allocation14_spill] sm:$0xff]  ;;  %v19274_v15 = vld [vmem:[#allocation15_spill] sm:$0xff]  ;;  %v19284_v40 = vld [vmem:[#allocation21_spill] sm:$0xff] }
  0x6b   :  { %v13705_v17 = vpack.c.bf16 %v19270_v63, %v19269_v58  ;;  %v263_v4 = vand.u32 4294901760, %v262_v38  ;;  %v11473_v29 = vpack.c.bf16 %v13463_v10, %v13452_v11  ;;  %11494 = vmatpush3.bf16.msra.mxu1 %v13344_v45  ;;  %v11475_v48 = vpack.c.bf16 %v13476_v42, %v13467_v36  ;;  %v19279_v38 = vld [vmem:[#allocation18_spill] sm:$0xff]  ;;  %v19285_v43 = vld [vmem:[#allocation28_spill] sm:$0xff]  ;;  %v19288_v14 = vld [vmem:[#allocation29_spill] sm:$0xff] }
  0x6c   :  { %v13714_v12 = vpack.c.bf16 %v19272_v57, %v19271_v50  ;;  %11472 = vmatprep.subr.bf16.mxu0 %v11471_v23  ;;  %11496 = vmatprep.subr.bf16.mxu1 %v13366_v62  ;;  %v11477_v59 = vpack.c.bf16 %v13493_v51, %v13482_v41  ;;  %v11479_v8 = vpack.c.bf16 %v13506_v13, %v13497_v5  ;;  %v19275_v21 = vand.u32 4294901760, %v13530_v0  ;;  %v1170_v58 = vld [vmem:[#allocation9 + $0x120] sm:$0xff]  ;;  %v1171_v63 = vld [vmem:[#allocation9 + $0x128] sm:$0xff]  ;;  %v1172_v57 = vld [vmem:[#allocation9 + $0x130] sm:$0xff] }
  0x6d   :  { %510 = vmatmul.mubr.f32.gmra.mrb[4].mxu1 %v13595_v47  ;;  %264 = vmatmul.mubr.f32.gmra.mrb[6].mxu0 %v263_v4  ;;  %v11481_v25 = vpack.c.bf16 %v19276_v6, %v13512_v33  ;;  %v13265_v46 = vmov 0.0   ;;  %v1199_v23 = vand.u32 4294901760, %v1171_v63  ;;  %v1202_v4 = vand.u32 4294901760, %v1172_v57 }
  0x6e   :  { %515 = vmatprep.mubr.f32.mxu1 %v13614_v53  ;;  %11474 = vmatpush3.bf16.msra.mxu0 %v11473_v29  ;;  %39 = vst [vmem:[#allocation3] sm:$0xff] %v13265_v46  ;;  %40 = vst [vmem:[#allocation4] sm:$0xff] %v13265_v46 }
  0x6f   :  { %652 = vmatprep.mubr.f32.mxu0 %v13530_v0  ;;  %11498 = vmatpush3.bf16.msra.mxu1 %v19273_v61  ;;  %v19282_v0 = vld [vmem:[#allocation27_spill] sm:$0xff]  ;;  %41 = vst [vmem:[#allocation4 + $0x8] sm:$0xff] %v13265_v46  ;;  %42 = vst [vmem:[#allocation4 + $0x10] sm:$0xff] %v13265_v46 }
  0x70   :  { %11476 = vmatprep.subr.bf16.mxu0 %v11475_v48  ;;  %11500 = vmatprep.subr.bf16.mxu1 %v19274_v15  ;;  %43 = vst [vmem:[#allocation4 + $0x18] sm:$0xff] %v13265_v46  ;;  %44 = vst [vmem:[#allocation4 + $0x20] sm:$0xf] %v13265_v46 }
  0x71   :  { %517 = vmatmul.mubr.f32.gmra.mrb[6].mxu1 %v13623_v7  ;;  %45 = vst [vmem:[#allocation5] sm:$0xff] %v13265_v46  ;;  %46 = vst [vmem:[#allocation5 + $0x8] sm:$0xff] %v13265_v46 }
  0x72   :  { %786 = vmatprep.mubr.f32.mxu1 %v19275_v21  ;;  %11478 = vmatpush3.bf16.msra.mxu0 %v11477_v59  ;;  %47 = vst [vmem:[#allocation5 + $0x10] sm:$0xf] %v13265_v46  ;;  %48 = vst [vmem:[#allocation6] sm:$0xff] %v13265_v46  ;;  %v1174_v59 = vld [vmem:[#allocation9 + $0x140] sm:$0xff] }
  0x73   :  { %11502 = vmatpush3.bf16.msra.mxu1 %v19277_v26  ;;  %11480 = vmatprep.subr.bf16.mxu0 %v11479_v8  ;;  %v1208_v8 = vand.u32 4294901760, %v1174_v59 }
  0x74   :  { %11504 = vmatprep.subr.bf16.mxu1 %v19278_v28 }
  0x76   :  { %11482 = vmatpush3.bf16.msra.mxu0 %v11481_v25 }
  0x77   :  { %11506 = vmatpush3.bf16.msra.mxu1 %v19279_v38  ;;  %11516 = vmatprep.subr.bf16.mxu0 %v13645_v35  ;;  %v19287_v35 = vld [vmem:[#allocation13_spill] sm:$0xff] }
  0x78   :  { %11508 = vmatprep.subr.bf16.mxu1 %v19280_v49 }
  0x79   :  { %655 = vmatmul.mubr.f32.vlgmr.msra.gmra.mrb[8].mxu0 %v19281_v56 }
  0x7a   :  { %11518 = vmatpush3.bf16.msra.mxu0 %v11517_v32  ;;  %661 = vmatprep.mubr.f32.mxu0 %v19282_v0  ;;  %v19289_v32 = vand.u32 4294901760, %v19281_v56 }
  0x7b   :  { %11510 = vmatpush3.bf16.msra.mxu1 %v19283_v24  ;;  %11520 = vmatprep.subr.bf16.mxu0 %v11519_v60  ;;  %v19290_v60 = vand.u32 4294901760, %v19282_v0  ;;  %v13860_v0 = vsub.f32 %v1171_v63, %v1199_v23 }
  0x7c   :  { %11512 = vmatprep.subr.bf16.mxu1 %v19284_v40 }
  0x7d   :  { %664 = vmatmul.mubr.f32.gmra.mrb[10].mxu0 %v19285_v43 }
  0x7e   :  { %11522 = vmatpush3.bf16.msra.mxu0 %v11521_v52  ;;  %670 = vmatprep.mubr.f32.mxu0 %v13607_v34  ;;  %v19291_v52 = vand.u32 4294901760, %v19285_v43  ;;  %v1179_v43 = vld [vmem:[#allocation9 + $0x168] sm:$0xff] }
  0x7f   :  { %11514 = vmatpush3.bf16.msra.mxu1 %v19286_v1  ;;  %11524 = vmatprep.subr.bf16.mxu0 %v11523_v19  ;;  %v19292_v19 = vand.u32 4294901760, %v13607_v34  ;;  %v19298_v34 = vand.u32 4294901760, %v13467_v36  ;;  %v19302_v36 = vand.u32 4294901760, %v13497_v5  ;;  %v19306_v5 = vld [vmem:[#allocation24_spill] sm:$0xff] }
  0x80   :  { %11548 = vmatprep.subr.bf16.mxu1 %v19287_v35  ;;  %v1181_v35 = vld [vmem:[#allocation9 + $0x178] sm:$0xff] }
  0x81   :  { %673 = vmatmul.mubr.f32.gmra.mrb[12].mxu0 %v19288_v14 }
  0x82   :  { %790 = vmatmul.mubr.f32.vlgmr.msra.gmra.mrb[8].mxu1 %v19289_v32  ;;  %11526 = vmatpush3.bf16.msra.mxu0 %v11525_v9  ;;  %v19294_v9 = vand.u32 4294901760, %v19288_v14  ;;  %v13868_v32 = vsub.f32 %v1174_v59, %v1208_v8 }
  0x83   :  { %11550 = vmatpush3.bf16.msra.mxu1 %v13311_v20  ;;  %679 = vmatprep.mubr.f32.mxu0 %v13632_v55  ;;  %v19293_v20 = vld [vmem:[#allocation23_spill] sm:$0xff] }
  0x84   :  { %797 = vmatprep.mubr.f32.mxu1 %v19290_v60  ;;  %11528 = vmatprep.subr.bf16.mxu0 %v11527_v31  ;;  %v19296_v31 = vand.u32 4294901760, %v13463_v10 }
  0x85   :  { %682 = vmatmul.mubr.f32.gmra.mrb[14].mxu0 %v13639_v54  ;;  %11552 = vmatprep.subr.bf16.mxu1 %v13315_v22  ;;  %v19295_v22 = vand.u32 4294901760, %v13452_v11  ;;  %v19300_v11 = vand.u32 4294901760, %v13482_v41  ;;  %v19305_v41 = vand.u32 4294901760, %v19276_v6 }
  0x86   :  { %801 = vmatmul.mubr.f32.gmra.mrb[10].mxu1 %v19291_v52  ;;  %11530 = vmatpush3.bf16.msra.mxu0 %v11529_v2 }
  0x87   :  { %11554 = vmatpush3.bf16.msra.mxu1 %v13322_v27  ;;  %808 = vmatprep.mubr.f32.mxu1 %v19292_v19  ;;  %v11537_v2 = vpack.c.bf16 %v19296_v31, %v19295_v22  ;;  %v19297_v27 = vand.u32 4294901760, %v13632_v55  ;;  %v19303_v55 = vand.u32 4294901760, %v13506_v13 }
  0x88   :  { %11532 = vmatprep.subr.bf16.mxu0 %v13699_v30  ;;  %11556 = vmatprep.subr.bf16.mxu1 %v13336_v39  ;;  %v19299_v39 = vand.u32 4294901760, %v13476_v42 }
  0x89   :  { %989 = vmatprep.mubr.f32.mxu0 %v19293_v20  ;;  %v11543_v42 = vpack.c.bf16 %v19303_v55, %v19302_v36 }
  0x8a   :  { %812 = vmatmul.mubr.f32.gmra.mrb[12].mxu1 %v19294_v9  ;;  %11534 = vmatpush3.bf16.msra.mxu0 %v13705_v17  ;;  %v11539_v16 = vpack.c.bf16 %v19299_v39, %v19298_v34  ;;  %v1196_v17 = vand.u32 4294901760, %v1170_v58  ;;  %v1223_v9 = vand.u32 4294901760, %v1179_v43 }
  0x8b   :  { %11558 = vmatpush3.bf16.msra.mxu1 %v13344_v45  ;;  %819 = vmatprep.mubr.f32.mxu1 %v19297_v27  ;;  %v19301_v45 = vand.u32 4294901760, %v13493_v51  ;;  %v1167_v51 = vld [vmem:[#allocation9 + $0x108] sm:$0xff] }
  0x8c   :  { %11536 = vmatprep.subr.bf16.mxu0 %v13714_v12  ;;  %11560 = vmatprep.subr.bf16.mxu1 %v13366_v62  ;;  %v19304_v62 = vand.u32 4294901760, %v13512_v33  ;;  %v1166_v33 = vld [vmem:[#allocation9 + $0x100] sm:$0xff]  ;;  %v13842_v50 = vpack.c.bf16 %v1199_v23, %v1196_v17  ;;  %v1173_v12 = vld [vmem:[#allocation9 + $0x138] sm:$0xff]  ;;  %v13858_v56 = vsub.f32 %v1170_v58, %v1196_v17  ;;  %v18415_v58 = vand.u32 4294901760, %v13860_v0 }
  0x8d   :  { %v11541_v10 = vpack.c.bf16 %v19301_v45, %v19300_v11  ;;  %v1184_v13 = vand.u32 4294901760, %v1166_v33  ;;  %v1205_v29 = vand.u32 4294901760, %v1173_v12 }
  0x8e   :  { %823 = vmatmul.mubr.f32.gmra.mrb[14].mxu1 %v261_v44  ;;  %11538 = vmatpush3.bf16.msra.mxu0 %v11537_v2  ;;  %v11545_v54 = vpack.c.bf16 %v19305_v41, %v19304_v62  ;;  %v1187_v44 = vand.u32 4294901760, %v1167_v51  ;;  %v1229_v2 = vand.u32 4294901760, %v1181_v35 }
  0x8f   :  { %11562 = vmatpush3.bf16.msra.mxu1 %v19273_v61  ;;  %11540 = vmatprep.subr.bf16.mxu0 %v11539_v16  ;;  %v13846_v48 = vpack.c.bf16 %v1205_v29, %v1202_v4  ;;  %v1175_v61 = vld [vmem:[#allocation9 + $0x148] sm:$0xff]  ;;  %v13850_v21 = vsub.f32 %v1166_v33, %v1184_v13  ;;  %v13882_v16 = vsub.f32 %v1179_v43, %v1223_v9  ;;  %v18410_v43 = vand.u32 4294901760, %v13868_v32 }
  0x90   :  { %11564 = vmatprep.subr.bf16.mxu1 %v19274_v15  ;;  %1114 = vmatprep.mubr.f32.mxu1 %v19293_v20  ;;  %v1211_v15 = vand.u32 4294901760, %v1175_v61  ;;  %v13852_v6 = vsub.f32 %v1167_v51, %v1187_v44  ;;  %v13886_v45 = vsub.f32 %v1181_v35, %v1229_v2 }
  0x91   :  { %v18420_v36 = vand.u32 4294901760, %v13850_v21 }
  0x92   :  { %11542 = vmatpush3.bf16.msra.mxu0 %v11541_v10  ;;  %v13866_v14 = vpack.c.bf16 %v1211_v15, %v1208_v8  ;;  %v13870_v60 = vsub.f32 %v1175_v61, %v1211_v15  ;;  %v18419_v55 = vand.u32 4294901760, %v13852_v6 }
  0x93   :  { %11566 = vmatpush3.bf16.msra.mxu1 %v19277_v26  ;;  %11544 = vmatprep.subr.bf16.mxu0 %v11543_v42  ;;  %v1278_v62 = vsub.f32 %v13850_v21, %v18420_v36 }
  0x94   :  { %11568 = vmatprep.subr.bf16.mxu1 %v19278_v28  ;;  %v1176_v28 = vld [vmem:[#allocation9 + $0x150] sm:$0xff]  ;;  %v1285_v41 = vsub.f32 %v13852_v6, %v18419_v55 }
  0x95   :  { %v1214_v52 = vand.u32 4294901760, %v1176_v28 }
  0x96   :  { %11546 = vmatpush3.bf16.msra.mxu0 %v11545_v54  ;;  %v1279_v54 = vand.u32 4294901760, %v1278_v62 }
  0x97   :  { %11570 = vmatpush3.bf16.msra.mxu1 %v19279_v38  ;;  %v1177_v38 = vld [vmem:[#allocation9 + $0x158] sm:$0xff]  ;;  %v13873_v22 = vsub.f32 %v1176_v28, %v1214_v52 }
  0x98   :  { %11572 = vmatprep.subr.bf16.mxu1 %v19280_v49  ;;  %v1178_v49 = vld [vmem:[#allocation9 + $0x160] sm:$0xff]  ;;  %v1217_v19 = vand.u32 4294901760, %v1177_v38 }
  0x99   :  { %991 = vmatmul.mubr.f32.vlgmr.msra.gmra.mrb[16].mxu0 %v19306_v5  ;;  %v1220_v20 = vand.u32 4294901760, %v1178_v49 }
  0x9a   :  { %996 = vmatprep.mubr.f32.mxu0 %v13580_v3  ;;  %v13876_v27 = vpack.c.bf16 %v1217_v19, %v1214_v52  ;;  %v13878_v34 = vsub.f32 %v1177_v38, %v1217_v19  ;;  %v1334_v52 = vsub.f32 %v13868_v32, %v18410_v43 }
  0x9b   :  { %11574 = vmatpush3.bf16.msra.mxu1 %v19283_v24  ;;  %v13862_v24 = vsub.f32 %v1172_v57, %v1202_v4  ;;  %v13880_v39 = vsub.f32 %v1178_v49, %v1220_v20  ;;  %v13891_v10 = vpack.c.bf16 %v1223_v9, %v1220_v20  ;;  %v1313_v57 = vsub.f32 %v13860_v0, %v18415_v58 }
  0x9c   :  { %11576 = vmatprep.subr.bf16.mxu1 %v19284_v40  ;;  %v13864_v40 = vsub.f32 %v1173_v12, %v1205_v29 }
  0x9d   :  { %998 = vmatmul.mubr.f32.gmra.mrb[18].mxu0 %v13589_v37  ;;  %v1314_v59 = vand.u32 4294901760, %v1313_v57  ;;  %v18414_v61 = vand.u32 4294901760, %v13862_v24 }
  0x9e   :  { %1003 = vmatprep.mubr.f32.mxu0 %v13592_v18  ;;  %v18413_v8 = vand.u32 4294901760, %v13864_v40 }
  0x9f   :  { %11578 = vmatpush3.bf16.msra.mxu1 %v19286_v1  ;;  %v1180_v1 = vld [vmem:[#allocation9 + $0x170] sm:$0xff]  ;;  %v1320_v28 = vsub.f32 %v13862_v24, %v18414_v61 }
  0xa0   :  { %v1226_v31 = vand.u32 4294901760, %v1180_v1  ;;  %v1327_v38 = vsub.f32 %v13864_v40, %v18413_v8 }
  0xa1   :  { %1005 = vmatmul.mubr.f32.gmra.mrb[20].mxu0 %v13595_v47  ;;  %v1321_v49 = vand.u32 4294901760, %v1320_v28 }
  0xa2   :  { %1116 = vmatmul.mubr.f32.vlgmr.msra.gmra.mrb[16].mxu1 %v19306_v5  ;;  %1010 = vmatprep.mubr.f32.mxu0 %v13614_v53  ;;  %v13884_v11 = vsub.f32 %v1180_v1, %v1226_v31  ;;  %v13897_v42 = vpack.c.bf16 %v1229_v2, %v1226_v31  ;;  %v1286_v5 = vand.u32 4294901760, %v1285_v41  ;;  %v18409_v1 = vand.u32 4294901760, %v13870_v60 }
  0xa3   :  { %1121 = vmatprep.mubr.f32.mxu1 %v13580_v3  ;;  %v18421_v3 = vmov 0.0|0.0   ;;  %v1328_v35 = vand.u32 4294901760, %v1327_v38  ;;  %v1335_v2 = vand.u32 4294901760, %v1334_v52  ;;  %v18408_v41 = vand.u32 4294901760, %v13873_v22 }
  0xa4   :  { %11579 = vmatprep.subr.bf16.mxu0 %v18421_v3  ;;  %v1341_v19 = vsub.f32 %v13870_v60, %v18409_v1  ;;  %v18405_v38 = vand.u32 4294901760, %v13882_v16 }
  0xa5   :  { %1012 = vmatmul.mubr.f32.gmra.mrb[22].mxu0 %v13623_v7  ;;  %v13946_v9 = vpack.c.bf16 %v1328_v35, %v1321_v49 }
  0xa6   :  { %1123 = vmatmul.mubr.f32.gmra.mrb[18].mxu1 %v13589_v37  ;;  %v1168_v37 = vld [vmem:[#allocation9 + $0x110] sm:$0xff]  ;;  %10789 = vmatprep.mubr.msk.f32.mxu0 %vm13267_vm0, %v13265_v46  ;;  %v1342_v62 = vand.u32 4294901760, %v1341_v19 }
  0xa7   :  { %1128 = vmatprep.mubr.f32.mxu1 %v13592_v18  ;;  %v13833_v18 = vpack.c.bf16 %v1187_v44, %v1184_v13  ;;  %v13909_v13 = vpack.c.bf16 %v1286_v5, %v1279_v54  ;;  %v18407_v54 = vand.u32 4294901760, %v13878_v34 }
  0xa9   :  { %11581 = vmatpush3.bf16.msra.mxu0 %v13833_v18 }
  0xaa   :  { %1130 = vmatmul.mubr.f32.gmra.mrb[20].mxu1 %v13595_v47  ;;  %v1169_v47 = vld [vmem:[#allocation9 + $0x118] sm:$0xff]  ;;  %11582 = vmatprep.subr.bf16.mxu0 %v18421_v3 }
  0xab   :  { %1135 = vmatprep.mubr.f32.mxu1 %v13614_v53  ;;  %v1190_v53 = vand.u32 4294901760, %v1168_v37 }
  0xad   :  { %v13854_v25 = vsub.f32 %v1168_v37, %v1190_v53 }
  0xae   :  { %1137 = vmatmul.mubr.f32.gmra.mrb[22].mxu1 %v13623_v7  ;;  %v1193_v7 = vand.u32 4294901760, %v1169_v47 }
  0xaf   :  { %v18418_v33 = vand.u32 4294901760, %v13854_v25 }
  0xb0   :  { %v13838_v30 = vpack.c.bf16 %v1193_v7, %v1190_v53  ;;  %v13856_v26 = vsub.f32 %v1169_v47, %v1193_v7  ;;  %v18416_v7 = vand.u32 4294901760, %v13858_v56 }
  0xb1   :  { %v1292_v44 = vsub.f32 %v13854_v25, %v18418_v33 }
  0xb2   :  { %11584 = vmatpush3.bf16.msra.mxu0 %v13838_v30  ;;  %v18417_v51 = vand.u32 4294901760, %v13856_v26  ;;  %v1306_v23 = vsub.f32 %v13858_v56, %v18416_v7 }
  0xb3   :  { %11585 = vmatprep.subr.bf16.mxu0 %v18421_v3  ;;  %v1293_v47 = vand.u32 4294901760, %v1292_v44 }
  0xb4   :  { %v1299_v37 = vsub.f32 %v13856_v26, %v18417_v51  ;;  %v1307_v29 = vand.u32 4294901760, %v1306_v23 }
  0xb6   :  { %11587 = vmatpush3.bf16.msra.mxu0 %v13842_v50  ;;  %v1300_v53 = vand.u32 4294901760, %v1299_v37  ;;  %v13930_v15 = vpack.c.bf16 %v1314_v59, %v1307_v29  ;;  %v13950_v37 = vpack.c.bf16 %v1342_v62, %v1335_v2  ;;  %v18406_v59 = vand.u32 4294901760, %v13880_v39 }
  0xb7   :  { %11588 = vmatprep.subr.bf16.mxu0 %v18421_v3 }
  0xb8   :  { %v13920_v17 = vpack.c.bf16 %v1300_v53, %v1293_v47  ;;  %v1348_v47 = vsub.f32 %v13873_v22, %v18408_v41  ;;  %v1355_v53 = vsub.f32 %v13878_v34, %v18407_v54  ;;  %v1362_v19 = vsub.f32 %v13880_v39, %v18406_v59 }
  0xba   :  { %11590 = vmatpush3.bf16.msra.mxu0 %v13846_v48  ;;  %v1356_v29 = vand.u32 4294901760, %v1355_v53  ;;  %v1363_v62 = vand.u32 4294901760, %v1362_v19 }
  0xbb   :  { %11591 = vmatprep.subr.bf16.mxu0 %v18421_v3 }
  0xbe   :  { %11593 = vmatpush3.bf16.msra.mxu0 %v13866_v14 }
  0xbf   :  { %11594 = vmatprep.subr.bf16.mxu0 %v18421_v3 }
  0xc2   :  { %11596 = vmatpush3.bf16.msra.mxu0 %v13876_v27 }
  0xc3   :  { %11597 = vmatprep.subr.bf16.mxu0 %v18421_v3 }
  0xc6   :  { %11599 = vmatpush3.bf16.msra.mxu0 %v13891_v10 }
  0xc7   :  { %11600 = vmatprep.subr.bf16.mxu0 %v18421_v3 }
  0xca   :  { %11602 = vmatpush3.bf16.msra.mxu0 %v13897_v42 }
  0xcb   :  { %11603 = vmatprep.subr.bf16.mxu0 %v18421_v3 }
 0x12c   :  { %v8923_v63 = vpop.f32.mrb[0].mxu0 }
 0x12d   :  { %v8924_v12 = vpop.f32.mrb[1].mxu0 }
 0x12e   :  { %v8925_v4 = vadd.f32 %v8924_v12, %v8923_v63  ;;  %v1349_v12 = vand.u32 4294901760, %v1348_v47 }
 0x130   :  { %v13960_v52 = vpack.c.bf16 %v1356_v29, %v1349_v12 }
 0x135   :  { %v8967_v20 = vpop.f32.mrb[0].mxu1 }
 0x136   :  { %v8968_v31 = vpop.f32.mrb[1].mxu1 }
 0x137   :  { %v8969_v5 = vadd.f32 %v8968_v31, %v8967_v20 }
 0x138   :  { %v8926_v44 = vpop.f32.mrb[2].mxu0 }
 0x139   :  { %v498_v63 = vadd.f32 %v8969_v5, %v8925_v4  ;;  %v8927_v23 = vpop.f32.mrb[3].mxu0  ;;  %v1369_v4 = vsub.f32 %v13882_v16, %v18405_v38  ;;  %v18411_v5 = vand.u32 4294901760, %v13884_v11 }
 0x13a   :  { %v8928_v57 = vadd.f32 %v8927_v23, %v8926_v44  ;;  %v18412_v44 = vand.u32 4294901760, %v13886_v45 }
 0x13b   :  { %v8970_v28 = vpop.f32.mrb[2].mxu1  ;;  %v1370_v23 = vand.u32 4294901760, %v1369_v4 }
 0x13c   :  { %v8971_v49 = vpop.f32.mrb[3].mxu1  ;;  %v8929_v35 = vpop.f32.mrb[4].mxu0 }
 0x13d   :  { %v8972_v20 = vadd.f32 %v8971_v49, %v8970_v28  ;;  %v8930_v31 = vpop.f32.mrb[5].mxu0  ;;  %v1376_v28 = vsub.f32 %v13884_v11, %v18411_v5  ;;  %v1383_v49 = vsub.f32 %v13886_v45, %v18412_v44  ;;  %v13976_v19 = vpack.c.bf16 %v1370_v23, %v1363_v62 }
 0x13e   :  { %v8931_v2 = vadd.f32 %v8930_v31, %v8929_v35  ;;  %v11628_v5 = vpack.c.bf16 %v13852_v6, %v13850_v21  ;;  %v11631_v44 = vpack.c.bf16 %v13856_v26, %v13854_v25 }
 0x13f   :  { %v505_v47 = vadd.f32 %v8972_v20, %v8928_v57  ;;  %v1377_v59 = vand.u32 4294901760, %v1376_v28  ;;  %v1384_v54 = vand.u32 4294901760, %v1383_v49 }
 0x140   :  { %v8973_v53 = vpop.f32.mrb[4].mxu1  ;;  %v8932_v12 = vpop.f32.mrb[6].mxu0 }
 0x141   :  { %v8974_v29 = vpop.f32.mrb[5].mxu1  ;;  %v8933_v38 = vpop.f32.mrb[7].mxu0  ;;  %v13978_v41 = vpack.c.bf16 %v1384_v54, %v1377_v59  ;;  %v11637_v54 = vpack.c.bf16 %v13864_v40, %v13862_v24 }
 0x142   :  { %v8975_v35 = vadd.f32 %v8974_v29, %v8973_v53  ;;  %v8934_v31 = vadd.f32 %v8933_v38, %v8932_v12  ;;  %v11634_v38 = vpack.c.bf16 %v13860_v0, %v13858_v56 }
 0x144   :  { %v512_v57 = vadd.f32 %v8975_v35, %v8931_v2  ;;  %v8976_v20 = vpop.f32.mrb[6].mxu1 }
 0x145   :  { %v8977_v4 = vpop.f32.mrb[7].mxu1 }
 0x146   :  { %v8978_v1 = vadd.f32 %v8977_v4, %v8976_v20 }
 0x148   :  { %v519_v43 = vadd.f32 %v8978_v1, %v8934_v31 }
 0x14c   :  { %v9011_v8 = vpop.f32.mrb[8].mxu0 }
 0x14d   :  { %v9012_v53 = vpop.f32.mrb[9].mxu0 }
 0x14e   :  { %v9013_v62 = vadd.f32 %v9012_v53, %v9011_v8  ;;  %v11640_v8 = vpack.c.bf16 %v13870_v60, %v13868_v32 }
 0x150   :  { %v657_v23 = vadd.f32 %v9013_v62, %v498_v63  ;;  %v9014_v2 = vpop.f32.mrb[10].mxu0 }
 0x151   :  { %v9015_v12 = vpop.f32.mrb[11].mxu0 }
 0x152   :  { %v9016_v29 = vadd.f32 %v9015_v12, %v9014_v2 }
 0x154   :  { %v666_v1 = vadd.f32 %v9016_v29, %v505_v47  ;;  %v9017_v59 = vpop.f32.mrb[12].mxu0 }
 0x155   :  { %v9055_v28 = vpop.f32.mrb[8].mxu1  ;;  %v9018_v49 = vpop.f32.mrb[13].mxu0 }
 0x156   :  { %v9019_v35 = vadd.f32 %v9018_v49, %v9017_v59  ;;  %v9056_v31 = vpop.f32.mrb[9].mxu1 }
 0x157   :  { %v9057_v20 = vadd.f32 %v9056_v31, %v9055_v28 }
 0x158   :  { %v675_v4 = vadd.f32 %v9019_v35, %v512_v57  ;;  %v9020_v53 = vpop.f32.mrb[14].mxu0 }
 0x159   :  { %v792_v61 = vadd.f32 %v9057_v20, %v657_v23  ;;  %v9058_v63 = vpop.f32.mrb[10].mxu1  ;;  %v9021_v62 = vpop.f32.mrb[15].mxu0 }
 0x15a   :  { %v9022_v58 = vadd.f32 %v9021_v62, %v9020_v53  ;;  %v9059_v2 = vpop.f32.mrb[11].mxu1 }
 0x15b   :  { %v9060_v12 = vadd.f32 %v9059_v2, %v9058_v63 }
 0x15c   :  { %v684_v29 = vadd.f32 %v9022_v58, %v519_v43 }
 0x15d   :  { %v803_v7 = vadd.f32 %v9060_v12, %v666_v1  ;;  %v9061_v51 = vpop.f32.mrb[12].mxu1 }
 0x15e   :  { %v9062_v59 = vpop.f32.mrb[13].mxu1 }
 0x15f   :  { %v9063_v49 = vadd.f32 %v9062_v59, %v9061_v51 }
 0x161   :  { %v814_v31 = vadd.f32 %v9063_v49, %v675_v4  ;;  %v9064_v57 = vpop.f32.mrb[14].mxu1 }
 0x162   :  { %v9065_v35 = vpop.f32.mrb[15].mxu1 }
 0x163   :  { %v9066_v23 = vadd.f32 %v9065_v35, %v9064_v57 }
 0x165   :  { %v825_v53 = vadd.f32 %v9066_v23, %v684_v29 }
 0x16c   :  { %v9099_v63 = vpop.f32.mrb[16].mxu0 }
 0x16d   :  { %v9100_v62 = vpop.f32.mrb[17].mxu0 }
 0x16e   :  { %v9101_v2 = vadd.f32 %v9100_v62, %v9099_v63 }
 0x170   :  { %v993_v33 = vadd.f32 %v9101_v2, %v792_v61  ;;  %v9102_v58 = vpop.f32.mrb[18].mxu0 }
 0x171   :  { %v9103_v43 = vpop.f32.mrb[19].mxu0 }
 0x172   :  { %v9104_v1 = vadd.f32 %v9103_v43, %v9102_v58 }
 0x174   :  { %v1000_v12 = vadd.f32 %v9104_v1, %v803_v7  ;;  %v9105_v51 = vpop.f32.mrb[20].mxu0 }
 0x175   :  { %v9143_v59 = vpop.f32.mrb[16].mxu1  ;;  %v9106_v55 = vpop.f32.mrb[21].mxu0 }
 0x176   :  { %v9107_v36 = vadd.f32 %v9106_v55, %v9105_v51  ;;  %v9144_v4 = vpop.f32.mrb[17].mxu1 }
 0x177   :  { %v9145_v49 = vadd.f32 %v9144_v4, %v9143_v59 }
 0x178   :  { %v1007_v28 = vadd.f32 %v9107_v36, %v814_v31  ;;  %v9108_v57 = vpop.f32.mrb[22].mxu0 }
 0x179   :  { %v13996_v35 = vadd.f32 %v9145_v49, %v993_v33  ;;  %v9146_v20 = vpop.f32.mrb[18].mxu1  ;;  %v9109_v29 = vpop.f32.mrb[23].mxu0 }
 0x17a   :  { %v9110_v23 = vadd.f32 %v9109_v29, %v9108_v57  ;;  %v9147_v47 = vpop.f32.mrb[19].mxu1 }
 0x17b   :  { %19307 = vst [vmem:[#allocation14_spill] sm:$0xff] %v13996_v35  ;;  %v9148_v63 = vadd.f32 %v9147_v47, %v9146_v20  ;;  %v1152_v33 = vmul.f32 %v13996_v35, %v13996_v35 }
 0x17c   :  { %v1014_v61 = vadd.f32 %v9110_v23, %v825_v53 }
 0x17d   :  { %v13998_v62 = vadd.f32 %v9148_v63, %v1000_v12  ;;  %v9149_v2 = vpop.f32.mrb[20].mxu1 }
 0x17e   :  { %v9150_v7 = vpop.f32.mrb[21].mxu1 }
 0x17f   :  { %19308 = vst [vmem:[#allocation15_spill] sm:$0xff] %v13998_v62  ;;  %v9151_v58 = vadd.f32 %v9150_v7, %v9149_v2  ;;  %v1153_v55 = vmul.f32 %v13998_v62, %v13998_v62  ;;  %v1142_v1 = vadd.f32 %v13998_v62, %v13996_v35 }
 0x181   :  { %v14002_v43 = vadd.f32 %v9151_v58, %v1007_v28  ;;  %v9152_v36 = vpop.f32.mrb[22].mxu1  ;;  %v1156_v53 = vadd.f32 %v1153_v55, %v1152_v33 }
 0x182   :  { %v9153_v31 = vpop.f32.mrb[23].mxu1 }
 0x183   :  { %19309 = vst [vmem:[#allocation26_spill] sm:$0xff] %v14002_v43  ;;  %v1154_v47 = vmul.f32 %v14002_v43, %v14002_v43  ;;  %v9154_v20 = vadd.f32 %v9153_v31, %v9152_v36  ;;  %v1143_v12 = vadd.f32 %v1142_v1, %v14002_v43 }
 0x185   :  { %v14011_v51 = vadd.f32 %v9154_v20, %v1014_v61  ;;  %v1157_v59 = vadd.f32 %v1156_v53, %v1154_v47 }
 0x187   :  { %19310 = vst [vmem:[#allocation16_spill] sm:$0xff] %v14011_v51  ;;  %v1144_v28 = vadd.f32 %v1143_v12, %v14011_v51  ;;  %v1155_v4 = vmul.f32 %v14011_v51, %v14011_v51 }
 0x189   :  { %v1145_v49 = vrot.slane %v1144_v28, 4  ;;  %v1158_v57 = vadd.f32 %v1157_v59, %v1155_v4 }
 0x18b   :  { %v1146_v29 = vadd.f32 %v1145_v49, %v1144_v28  ;;  %v1159_v23 = vrot.slane %v1158_v57, 4 }
 0x18d   :  { %v1147_v63 = vrot.slane %v1146_v29, 2  ;;  %v1160_v2 = vadd.f32 %v1159_v23, %v1158_v57 }
 0x18f   :  { %v1148_v7 = vadd.f32 %v1147_v63, %v1146_v29  ;;  %v1161_v58 = vrot.slane %v1160_v2, 2 }
 0x191   :  { %v1149_v36 = vrot.slane %v1148_v7, 1  ;;  %v1162_v55 = vadd.f32 %v1161_v58, %v1160_v2  ;;  %v14195_v58 = vld [vmem:[#allocation9 + $0x220] sm:$0xff] }
 0x193   :  { %v1150_v31 = vadd.f32 %v1149_v36, %v1148_v7  ;;  %v1163_v33 = vrot.slane %v1162_v55, 1  ;;  %v14193_v7 = vld [vmem:[#allocation9 + $0x218] sm:$0xff] }
 0x194   :  { %v14197_v36 = vld [vmem:[#allocation9 + $0x318] sm:$0xff] }
 0x195   :  { %1151 = vst [vmem:[#allocation3] sm:$0x1] %v1150_v31  ;;  %v1164_v61 = vadd.f32 %v1163_v33, %v1162_v55  ;;  %v18438_v31 = vand.u32 4294901760, %v14193_v7  ;;  %v18437_v33 = vand.u32 4294901760, %v14195_v58 }
 0x197   :  { %1165 = vst [vmem:[#allocation3 + $0x1] sm:$0x1] %v1164_v61  ;;  %v14208_v61 = vld [vmem:[#allocation9 + $0x320] sm:$0xff] }
 0x19e   :  { %v1182_v1 = vld [vmem:[#allocation3] sm:$0xff] }
 0x19f   :  { %v14016_v47 = vand.u32 4294901760, %v1182_v1 }
 0x1a1   :  { %v1265_v20 = vsub.f32 %v1182_v1, %v14016_v47  ;;  %v18436_v1 = vand.u32 4294901760, %v14197_v36 }
 0x1a3   :  { %v1266_v53 = vand.u32 4294901760, %v1265_v20 }
 0x1a5   :  { %v1267_v12 = vsub.f32 %v1265_v20, %v1266_v53 }
 0x1a7   :  { %v1268_v59 = vand.u32 4294901760, %v1267_v12 }
 0x1a9   :  { %10790 = vmatmul.mubr.f32.vlgmr.msra.gmra.mrb[24].mxu0 %v1268_v59 }
 0x1aa   :  { %11605 = vmatpush3.bf16.msra.mxu0 %v13909_v13  ;;  %10824 = vmatprep.mubr.msk.f32.mxu0 %vm13267_vm0, %v13265_v46  ;;  %v19311_v13 = vpack.c.bf16 %v13878_v34, %v13873_v22 }
 0x1ab   :  { %11606 = vmatprep.subr.bf16.mxu0 %v18421_v3 }
 0x1ae   :  { %11608 = vmatpush3.bf16.msra.mxu0 %v13920_v17  ;;  %v19312_v17 = vpack.c.bf16 %v13882_v16, %v13880_v39 }
 0x1af   :  { %11609 = vmatprep.subr.bf16.mxu0 %v18421_v3 }
 0x1b2   :  { %11611 = vmatpush3.bf16.msra.mxu0 %v13930_v15  ;;  %v19313_v15 = vpack.c.bf16 %v13886_v45, %v13884_v11 }
 0x1b3   :  { %11612 = vmatprep.subr.bf16.mxu0 %v18421_v3 }
 0x1b6   :  { %11614 = vmatpush3.bf16.msra.mxu0 %v13946_v9  ;;  %v19314_v9 = vand.u32 4294901760, %v13850_v21  ;;  %v19318_v21 = vand.u32 4294901760, %v13858_v56  ;;  %v19324_v56 = vand.u32 4294901760, %v13873_v22 }
 0x1b7   :  { %11615 = vmatprep.subr.bf16.mxu0 %v18421_v3 }
 0x1ba   :  { %11617 = vmatpush3.bf16.msra.mxu0 %v13950_v37 }
 0x1bb   :  { %11618 = vmatprep.subr.bf16.mxu0 %v18421_v3 }
 0x1be   :  { %11620 = vmatpush3.bf16.msra.mxu0 %v13960_v52  ;;  %v19316_v52 = vand.u32 4294901760, %v13854_v25  ;;  %v19321_v25 = vand.u32 4294901760, %v13864_v40  ;;  %v19327_v40 = vand.u32 4294901760, %v13882_v16 }
 0x1bf   :  { %11621 = vmatprep.subr.bf16.mxu0 %v18421_v3 }
 0x1c2   :  { %11623 = vmatpush3.bf16.msra.mxu0 %v13976_v19 }
 0x1c3   :  { %11624 = vmatprep.subr.bf16.mxu0 %v18421_v3 }
 0x1c6   :  { %11626 = vmatpush3.bf16.msra.mxu0 %v13978_v41  ;;  %v19315_v41 = vand.u32 4294901760, %v13852_v6  ;;  %v19319_v6 = vand.u32 4294901760, %v13860_v0  ;;  %v19325_v0 = vand.u32 4294901760, %v13878_v34  ;;  %v14164_v34 = vld [vmem:[#allocation9 + $0x190] sm:$0xff] }
 0x1c7   :  { %11627 = vmatprep.subr.bf16.mxu0 %v18421_v3 }
 0x1c8   :  { %v11676_v37 = vpack.c.bf16 %v19315_v41, %v19314_v9  ;;  %v11682_v19 = vpack.c.bf16 %v19319_v6, %v19318_v21  ;;  %v11691_v4 = vpack.c.bf16 %v19325_v0, %v19324_v56  ;;  %v14249_v21 = vld [vmem:[#allocation9 + $0x328] sm:$0xff] }
 0x1c9   :  { %10825 = vmatmul.mubr.f32.vlgmr.msra.gmra.mrb[24].mxu0 %v14016_v47 }
 0x1ca   :  { %11629 = vmatpush3.bf16.msra.mxu0 %v11628_v5  ;;  %10859 = vmatprep.mubr.msk.f32.mxu0 %vm13267_vm0, %v13265_v46  ;;  %v19317_v5 = vand.u32 4294901760, %v13856_v26 }
 0x1cb   :  { %11630 = vmatprep.subr.bf16.mxu0 %v18421_v3 }
 0x1ce   :  { %11632 = vmatpush3.bf16.msra.mxu0 %v11631_v44  ;;  %v11679_v44 = vpack.c.bf16 %v19317_v5, %v19316_v52  ;;  %v14245_v5 = vld [vmem:[#allocation9 + $0x228] sm:$0xff] }
 0x1cf   :  { %11633 = vmatprep.subr.bf16.mxu0 %v18421_v3 }
 0x1d2   :  { %11635 = vmatpush3.bf16.msra.mxu0 %v11634_v38  ;;  %v19320_v38 = vand.u32 4294901760, %v13862_v24  ;;  %v19326_v24 = vand.u32 4294901760, %v13880_v39 }
 0x1d3   :  { %11636 = vmatprep.subr.bf16.mxu0 %v18421_v3 }
 0x1d4   :  { %v11685_v26 = vpack.c.bf16 %v19321_v25, %v19320_v38  ;;  %v11694_v49 = vpack.c.bf16 %v19327_v40, %v19326_v24  ;;  %v14260_v25 = vld [vmem:[#allocation9 + $0x330] sm:$0xff] }
 0x1d5   :  { %v14274_v24 = vld [vmem:[#allocation9 + $0x2b0] sm:$0xff] }
 0x1d6   :  { %11638 = vmatpush3.bf16.msra.mxu0 %v11637_v54  ;;  %v19322_v54 = vand.u32 4294901760, %v13868_v32  ;;  %v19328_v32 = vand.u32 4294901760, %v13884_v11  ;;  %v18441_v11 = vand.u32 4294901760, %v14164_v34 }
 0x1d7   :  { %11639 = vmatprep.subr.bf16.mxu0 %v18421_v3 }
 0x1da   :  { %11641 = vmatpush3.bf16.msra.mxu0 %v11640_v8  ;;  %v19323_v8 = vand.u32 4294901760, %v13870_v60  ;;  %v19329_v60 = vand.u32 4294901760, %v13886_v45  ;;  %v14169_v45 = vld [vmem:[#allocation9 + $0x288] sm:$0xff] }
 0x1db   :  { %11642 = vmatprep.subr.bf16.mxu0 %v18421_v3  ;;  %v18440_v29 = vand.u32 4294901760, %v14169_v45 }
 0x1dc   :  { %v11688_v28 = vpack.c.bf16 %v19323_v8, %v19322_v54  ;;  %v11697_v57 = vpack.c.bf16 %v19329_v60, %v19328_v32  ;;  %v14263_v54 = vld [vmem:[#allocation9 + $0x1a8] sm:$0xff]  ;;  %v14265_v8 = vld [vmem:[#allocation9 + $0x1b0] sm:$0xff]  ;;  %v18433_v32 = vand.u32 4294901760, %v14274_v24 }
 0x1dd   :  { %v18429_v56 = vand.u32 4294901760, %v14263_v54  ;;  %v18428_v0 = vand.u32 4294901760, %v14265_v8 }
 0x1de   :  { %11644 = vmatpush3.bf16.msra.mxu0 %v19311_v13  ;;  %v14220_v13 = vld [vmem:[#allocation9 + $0x298] sm:$0xff] }
 0x1df   :  { %11645 = vmatprep.subr.bf16.mxu0 %v18421_v3  ;;  %v18430_v9 = vand.u32 4294901760, %v14220_v13 }
 0x1e2   :  { %11647 = vmatpush3.bf16.msra.mxu0 %v19312_v17  ;;  %v14222_v17 = vld [vmem:[#allocation9 + $0x2a0] sm:$0xff] }
 0x1e3   :  { %11648 = vmatprep.subr.bf16.mxu0 %v18421_v3  ;;  %v18427_v41 = vand.u32 4294901760, %v14222_v17 }
 0x1e5   :  { %v14256_v6 = vpack.c.bf16 %v18427_v41, %v18430_v9  ;;  %v14315_v9 = vld [vmem:[#allocation9 + $0x1b8] sm:$0xff] }
 0x1e6   :  { %11650 = vmatpush3.bf16.msra.mxu0 %v19313_v15  ;;  %v14229_v15 = vpack.c.bf16 %v18437_v33, %v18438_v31 }
 0x1e7   :  { %11651 = vmatprep.subr.bf16.mxu0 %v18421_v3  ;;  %19337 = vst [vmem:[#allocation28_spill] sm:$0xff] %v14256_v6 }
 0x1e8   :  { %19334 = vst [vmem:[#allocation27_spill] sm:$0xff] %v14229_v15 }
 0x1e9   :  { %10860 = vmatmul.mubr.f32.vlgmr.msra.gmra.mrb[24].mxu0 %v1265_v20  ;;  %v14213_v20 = vld [vmem:[#allocation9 + $0x1a0] sm:$0xff] }
 0x1ea   :  { %11653 = vmatpush3.bf16.msra.mxu0 %v13833_v18  ;;  %10894 = vmatprep.mubr.msk.f32.mxu0 %vm13267_vm0, %v13265_v46  ;;  %v18431_v59 = vand.u32 4294901760, %v14213_v20 }
 0x1eb   :  { %11654 = vmatprep.subr.bf16.mxu0 %v18421_v3 }
 0x1ee   :  { %11656 = vmatpush3.bf16.msra.mxu0 %v13838_v30 }
 0x1ef   :  { %11657 = vmatprep.subr.bf16.mxu0 %v18421_v3 }
 0x1f2   :  { %11659 = vmatpush3.bf16.msra.mxu0 %v13842_v50 }
 0x1f3   :  { %11660 = vmatprep.subr.bf16.mxu0 %v18421_v3 }
 0x1f6   :  { %11662 = vmatpush3.bf16.msra.mxu0 %v13846_v48 }
 0x1f7   :  { %11663 = vmatprep.subr.bf16.mxu0 %v18421_v3 }
 0x1fa   :  { %11665 = vmatpush3.bf16.msra.mxu0 %v13866_v14 }
 0x1fb   :  { %11666 = vmatprep.subr.bf16.mxu0 %v18421_v3 }
 0x1fe   :  { %11668 = vmatpush3.bf16.msra.mxu0 %v13876_v27 }
 0x1ff   :  { %11669 = vmatprep.subr.bf16.mxu0 %v18421_v3 }
 0x202   :  { %11671 = vmatpush3.bf16.msra.mxu0 %v13891_v10 }
 0x203   :  { %11672 = vmatprep.subr.bf16.mxu0 %v18421_v3 }
 0x206   :  { %11674 = vmatpush3.bf16.msra.mxu0 %v13897_v42 }
 0x207   :  { %11675 = vmatprep.subr.bf16.mxu0 %v18421_v3 }
 0x209   :  { %10895 = vmatmul.mubr.f32.vlgmr.msra.gmra.mrb[24].mxu0 %v1266_v53  ;;  %v18435_v53 = vand.u32 4294901760, %v14208_v61 }
 0x20a   :  { %11677 = vmatpush3.bf16.msra.mxu0 %v11676_v37  ;;  %10929 = vmatprep.mubr.msk.f32.mxu0 %vm13267_vm0, %v13265_v46 }
 0x20b   :  { %11678 = vmatprep.subr.bf16.mxu0 %v18421_v3  ;;  %v14237_v37 = vpack.c.bf16 %v18435_v53, %v18436_v1  ;;  %v14324_v53 = vld [vmem:[#allocation9 + $0x2b8] sm:$0xff]  ;;  %v14326_v1 = vld [vmem:[#allocation9 + $0x2c0] sm:$0xff] }
 0x20c   :  { %v18454_v31 = vand.u32 4294901760, %v14324_v53 }
 0x20d   :  { %19335 = vst [vmem:[#allocation20_spill] sm:$0xff] %v14237_v37 }
 0x20e   :  { %11680 = vmatpush3.bf16.msra.mxu0 %v11679_v44  ;;  %v14247_v44 = vld [vmem:[#allocation9 + $0x230] sm:$0xff] }
 0x20f   :  { %11681 = vmatprep.subr.bf16.mxu0 %v18421_v3  ;;  %v18423_v38 = vand.u32 4294901760, %v14247_v44 }
 0x212   :  { %11683 = vmatpush3.bf16.msra.mxu0 %v11682_v19  ;;  %v18424_v19 = vand.u32 4294901760, %v14245_v5 }
 0x213   :  { %11684 = vmatprep.subr.bf16.mxu0 %v18421_v3 }
 0x214   :  { %v14281_v40 = vpack.c.bf16 %v18423_v38, %v18424_v19  ;;  %v14299_v38 = vld [vmem:[#allocation9 + $0x240] sm:$0xff]  ;;  %v14301_v19 = vld [vmem:[#allocation9 + $0x338] sm:$0xff] }
 0x215   :  { %v18443_v41 = vand.u32 4294901760, %v14299_v38 }
 0x216   :  { %11686 = vmatpush3.bf16.msra.mxu0 %v11685_v26  ;;  %v18426_v26 = vand.u32 4294901760, %v14249_v21  ;;  %19338 = vst [vmem:[#allocation22_spill] sm:$0xff] %v14281_v40 }
 0x217   :  { %11687 = vmatprep.subr.bf16.mxu0 %v18421_v3 }
 0x21a   :  { %11689 = vmatpush3.bf16.msra.mxu0 %v11688_v28  ;;  %v18425_v28 = vand.u32 4294901760, %v14260_v25 }
 0x21b   :  { %11690 = vmatprep.subr.bf16.mxu0 %v18421_v3 }
 0x21c   :  { %v14289_v60 = vpack.c.bf16 %v18425_v28, %v18426_v26 }
 0x21e   :  { %11692 = vmatpush3.bf16.msra.mxu0 %v11691_v4  ;;  %v14272_v4 = vld [vmem:[#allocation9 + $0x2a8] sm:$0xff]  ;;  %19339 = vst [vmem:[#allocation13_spill] sm:$0xff] %v14289_v60 }
 0x21f   :  { %11693 = vmatprep.subr.bf16.mxu0 %v18421_v3 }
 0x222   :  { %11695 = vmatpush3.bf16.msra.mxu0 %v11694_v49  ;;  %v18434_v49 = vand.u32 4294901760, %v14272_v4 }
 0x223   :  { %11696 = vmatprep.subr.bf16.mxu0 %v18421_v3 }
 0x224   :  { %v14308_v28 = vpack.c.bf16 %v18433_v32, %v18434_v49  ;;  %v18449_v32 = vand.u32 4294901760, %v14315_v9 }
 0x226   :  { %11698 = vmatpush3.bf16.msra.mxu0 %v11697_v57  ;;  %v14295_v57 = vpack.c.bf16 %v18428_v0, %v18429_v56  ;;  %19341 = vst [vmem:[#allocation23_spill] sm:$0xff] %v14308_v28  ;;  %v14312_v0 = vld [vmem:[#allocation9 + $0x340] sm:$0xff]  ;;  %v18446_v56 = vand.u32 4294901760, %v14301_v19 }
 0x227   :  { %11699 = vmatprep.subr.bf16.mxu0 %v18421_v3 }
 0x228   :  { %19340 = vst [vmem:[#allocation29_spill] sm:$0xff] %v14295_v57 }
 0x229   :  { %10930 = vmatmul.mubr.f32.vlgmr.msra.gmra.mrb[24].mxu0 %v14016_v47 }
 0x22a   :  { %11701 = vmatpush3.bf16.msra.mxu0 %v13833_v18  ;;  %10964 = vmatprep.mubr.msk.f32.mxu0 %vm13267_vm0, %v13265_v46  ;;  %v14151_v46 = vld [vmem:[#allocation9 + $0x208] sm:$0xff]  ;;  %v14153_v18 = vld [vmem:[#allocation9 + $0x210] sm:$0xff] }
 0x22b   :  { %11702 = vmatprep.subr.bf16.mxu0 %v18421_v3  ;;  %v19368_v62 = vand.u32 4294901760, %v14153_v18 }
 0x22e   :  { %11704 = vmatpush3.bf16.msra.mxu0 %v13838_v30  ;;  %v14155_v30 = vld [vmem:[#allocation9 + $0x308] sm:$0xff] }
 0x22f   :  { %11705 = vmatprep.subr.bf16.mxu0 %v18421_v3  ;;  %v18450_v22 = vand.u32 4294901760, %v14155_v30  ;;  %v19369_v35 = vand.u32 4294901760, %v14155_v30 }
 0x232   :  { %11707 = vmatpush3.bf16.msra.mxu0 %v13842_v50  ;;  %v18452_v50 = vand.u32 4294901760, %v14151_v46 }
 0x233   :  { %11708 = vmatprep.subr.bf16.mxu0 %v18421_v3 }
 0x236   :  { %11710 = vmatpush3.bf16.msra.mxu0 %v13846_v48  ;;  %v18451_v48 = vand.u32 4294901760, %v14153_v18 }
 0x237   :  { %11711 = vmatprep.subr.bf16.mxu0 %v18421_v3 }
 0x23a   :  { %11713 = vmatpush3.bf16.msra.mxu0 %v13866_v14  ;;  %v14159_v14 = vld [vmem:[#allocation9 + $0x310] sm:$0xff] }
 0x23b   :  { %11714 = vmatprep.subr.bf16.mxu0 %v18421_v3  ;;  %v18447_v39 = vand.u32 4294901760, %v14159_v14 }
 0x23d   :  { %v14185_v63 = vpack.c.bf16 %v18447_v39, %v18450_v22  ;;  %v14367_v22 = vld [vmem:[#allocation9 + $0x1c8] sm:$0xff]  ;;  %v14378_v39 = vld [vmem:[#allocation9 + $0x2d0] sm:$0xff] }
 0x23e   :  { %11716 = vmatpush3.bf16.msra.mxu0 %v13876_v27  ;;  %v14162_v27 = vld [vmem:[#allocation9 + $0x188] sm:$0xff] }
 0x23f   :  { %11717 = vmatprep.subr.bf16.mxu0 %v18421_v3  ;;  %v18442_v16 = vand.u32 4294901760, %v14162_v27  ;;  %19331 = vst [vmem:[#allocation18_spill] sm:$0xff] %v14185_v63 }
 0x241   :  { %v14191_v2 = vpack.c.bf16 %v18441_v11, %v18442_v16  ;;  %v14349_v16 = vld [vmem:[#allocation9 + $0x248] sm:$0xff] }
 0x242   :  { %11719 = vmatpush3.bf16.msra.mxu0 %v13891_v10  ;;  %v14171_v10 = vld [vmem:[#allocation9 + $0x290] sm:$0xff] }
 0x243   :  { %11720 = vmatprep.subr.bf16.mxu0 %v18421_v3  ;;  %v18439_v23 = vand.u32 4294901760, %v14171_v10  ;;  %19332 = vst [vmem:[#allocation19_spill] sm:$0xff] %v14191_v2  ;;  %v14297_v3 = vld [vmem:[#allocation9 + $0x238] sm:$0xff] }
 0x244   :  { %v18444_v26 = vand.u32 4294901760, %v14297_v3 }
 0x245   :  { %v14204_v55 = vpack.c.bf16 %v18439_v23, %v18440_v29  ;;  %v18453_v23 = vand.u32 4294901760, %v14326_v1 }
 0x246   :  { %11722 = vmatpush3.bf16.msra.mxu0 %v13897_v42  ;;  %v14177_v42 = vpack.c.bf16 %v18451_v48, %v18452_v50  ;;  %v14333_v33 = vpack.c.bf16 %v18443_v41, %v18444_v26  ;;  %v14351_v41 = vld [vmem:[#allocation9 + $0x250] sm:$0xff]  ;;  %v14353_v26 = vld [vmem:[#allocation9 + $0x348] sm:$0xff]  ;;  %v18479_v50 = vand.u32 4294901760, %v14378_v39 }
 0x247   :  { %19333 = vst [vmem:[#allocation25_spill] sm:$0xff] %v14204_v55  ;;  %11916 = vmatprep.subr.bf16.mxu0 %v14185_v63  ;;  %v14369_v48 = vld [vmem:[#allocation9 + $0x1d0] sm:$0xff]  ;;  %v14401_v63 = vld [vmem:[#allocation9 + $0x258] sm:$0xff] }
 0x248   :  { %19330 = vst [vmem:[#allocation17_spill] sm:$0xff] %v14177_v42  ;;  %11724 = vmatprep.subr.bf16.mxu1 %v14177_v42  ;;  %19342 = vst [vmem:[#allocation24_spill] sm:$0xff] %v14333_v33  ;;  %v14453_v42 = vld [vmem:[#allocation9 + $0x268] sm:$0xff] }
 0x249   :  { %10965 = vmatmul.mubr.f32.vlgmr.msra.gmra.mrb[24].mxu0 %v14016_v47  ;;  %v14211_v47 = vld [vmem:[#allocation9 + $0x198] sm:$0xff]  ;;  %11726 = vmatpush3.bf16.msra.mxu1 %v14191_v2 }
 0x24a   :  { %v18432_v12 = vand.u32 4294901760, %v14211_v47  ;;  %11918 = vmatpush3.bf16.msra.mxu0 %v14204_v55  ;;  %11728 = vmatprep.subr.bf16.mxu1 %v14229_v15 }
 0x24b   :  { %11920 = vmatprep.subr.bf16.mxu0 %v14237_v37  ;;  %v19352_v37 = vand.u32 4294901760, %v14367_v22 }
 0x24c   :  { %v14243_v52 = vpack.c.bf16 %v18431_v59, %v18432_v12  ;;  %v14317_v59 = vld [vmem:[#allocation9 + $0x1c0] sm:$0xff]  ;;  %v18445_v12 = vand.u32 4294901760, %v14312_v0 }
 0x24d   :  { %v18448_v49 = vand.u32 4294901760, %v14317_v59 }
 0x24e   :  { %19336 = vst [vmem:[#allocation21_spill] sm:$0xff] %v14243_v52  ;;  %11730 = vmatpush3.bf16.msra.mxu1 %v14243_v52  ;;  %11922 = vmatpush3.bf16.msra.mxu0 %v14256_v6  ;;  %v14341_v29 = vpack.c.bf16 %v18445_v12, %v18446_v56  ;;  %v14360_v12 = vpack.c.bf16 %v18453_v23, %v18454_v31  ;;  %v14376_v56 = vld [vmem:[#allocation9 + $0x2c8] sm:$0xff]  ;;  %v19349_v23 = vand.u32 4294901760, %v14353_v26 }
 0x24f   :  { %11732 = vmatprep.subr.bf16.mxu1 %v14281_v40  ;;  %11924 = vmatprep.subr.bf16.mxu0 %v14289_v60  ;;  %v14347_v11 = vpack.c.bf16 %v18448_v49, %v18449_v32  ;;  %v14364_v49 = vld [vmem:[#allocation9 + $0x350] sm:$0xff]  ;;  %v19346_v32 = vand.u32 4294901760, %v14349_v16 }
 0x250   :  { %19343 = vst [vmem:[#allocation30_spill] sm:$0xff] %v14341_v29  ;;  %19345 = vst [vmem:[#allocation32_spill] sm:$0xff] %v14360_v12  ;;  %v19350_v31 = vand.u32 4294901760, %v14364_v49 }
 0x251   :  { %19344 = vst [vmem:[#allocation31_spill] sm:$0xff] %v14347_v11 }
 0x252   :  { %11734 = vmatpush3.bf16.msra.mxu1 %v14295_v57  ;;  %11926 = vmatpush3.bf16.msra.mxu0 %v14308_v28  ;;  %v19347_v28 = vand.u32 4294901760, %v14351_v41  ;;  %v14393_v6 = vpack.c.bf16 %v19350_v31, %v19349_v23  ;;  %v14421_v57 = vld [vmem:[#allocation9 + $0x1e0] sm:$0xff]  ;;  %v14428_v31 = vld [vmem:[#allocation9 + $0x2d8] sm:$0xff] }
 0x253   :  { %11736 = vmatprep.subr.bf16.mxu1 %v14333_v33  ;;  %11928 = vmatprep.subr.bf16.mxu0 %v14341_v29  ;;  %v18480_v29 = vand.u32 4294901760, %v14376_v56  ;;  %v14419_v33 = vld [vmem:[#allocation9 + $0x1d8] sm:$0xff] }
 0x254   :  { %v14385_v60 = vpack.c.bf16 %v19347_v28, %v19346_v32  ;;  %19351 = vst [vmem:[#allocation34_spill] sm:$0xff] %v14393_v6  ;;  %v14403_v28 = vld [vmem:[#allocation9 + $0x260] sm:$0xff]  ;;  %v14405_v32 = vld [vmem:[#allocation9 + $0x358] sm:$0xff]  ;;  %v19362_v15 = vand.u32 4294901760, %v14419_v33 }
 0x255   :  { %v14412_v23 = vpack.c.bf16 %v18479_v50, %v18480_v29  ;;  %v19357_v40 = vand.u32 4294901760, %v14403_v28  ;;  %v19359_v50 = vand.u32 4294901760, %v14405_v32 }
 0x256   :  { %11738 = vmatpush3.bf16.msra.mxu1 %v14347_v11  ;;  %11930 = vmatpush3.bf16.msra.mxu0 %v14360_v12  ;;  %19348 = vst [vmem:[#allocation33_spill] sm:$0xff] %v14385_v60  ;;  %v19353_v12 = vand.u32 4294901760, %v14369_v48  ;;  %v14430_v11 = vld [vmem:[#allocation9 + $0x2e0] sm:$0xff] }
 0x257   :  { %11740 = vmatprep.subr.bf16.mxu1 %v14385_v60  ;;  %19355 = vst [vmem:[#allocation36_spill] sm:$0xff] %v14412_v23  ;;  %11932 = vmatprep.subr.bf16.mxu0 %v14393_v6  ;;  %v18504_v6 = vand.u32 4294901760, %v14428_v31  ;;  %v18503_v60 = vand.u32 4294901760, %v14430_v11 }
 0x258   :  { %v14399_v55 = vpack.c.bf16 %v19353_v12, %v19352_v37  ;;  %v14416_v12 = vld [vmem:[#allocation9 + $0x360] sm:$0xff]  ;;  %v19356_v37 = vand.u32 4294901760, %v14401_v63 }
 0x259   :  { %v19360_v29 = vand.u32 4294901760, %v14416_v12 }
 0x25a   :  { %19354 = vst [vmem:[#allocation35_spill] sm:$0xff] %v14399_v55  ;;  %11742 = vmatpush3.bf16.msra.mxu1 %v14399_v55  ;;  %11934 = vmatpush3.bf16.msra.mxu0 %v14412_v23  ;;  %v14437_v52 = vpack.c.bf16 %v19357_v40, %v19356_v37  ;;  %v19363_v23 = vand.u32 4294901760, %v14421_v57  ;;  %v14455_v40 = vld [vmem:[#allocation9 + $0x270] sm:$0xff]  ;;  %v14457_v37 = vld [vmem:[#allocation9 + $0x368] sm:$0xff] }
 0x25b   :  { %v14445_v55 = vpack.c.bf16 %v19360_v29, %v19359_v50  ;;  %19365 = vst [vmem:[#allocation40_spill] sm:$0xff] %v14455_v40  ;;  %v14464_v50 = vpack.c.bf16 %v18503_v60, %v18504_v6  ;;  %v2055_v29 = vand.u32 4294901760, %v14453_v42  ;;  %v2058_v51 = vand.u32 4294901760, %v14455_v40 }
 0x25c   :  { %19358 = vst [vmem:[#allocation37_spill] sm:$0xff] %v14437_v52  ;;  %v14451_v2 = vpack.c.bf16 %v19363_v23, %v19362_v15  ;;  %11744 = vmatprep.subr.bf16.mxu1 %v14437_v52  ;;  %v19367_v23 = vand.u32 4294901760, %v14151_v46  ;;  %v14477_v52 = vsub.f32 %v14153_v18, %v19368_v62  ;;  %v14482_v60 = vsub.f32 %v14155_v30, %v19369_v35 }
 0x25d   :  { %19361 = vst [vmem:[#allocation38_spill] sm:$0xff] %v14445_v55  ;;  %19366 = vst [vmem:[#allocation41_spill] sm:$0xff] %v14464_v50  ;;  %v19371_v6 = vand.u32 4294901760, %v14159_v14  ;;  %11936 = vmatprep.subr.bf16.mxu0 %v14445_v55  ;;  %v19374_v62 = vand.u32 4294901760, %v14164_v34  ;;  %v19375_v35 = vand.u32 4294901760, %v14169_v45  ;;  %v19389_v15 = vand.u32 4294901760, %v14245_v5 }
 0x25e   :  { %19364 = vst [vmem:[#allocation39_spill] sm:$0xff] %v14451_v2  ;;  %v14472_v43 = vsub.f32 %v14151_v46, %v19367_v23  ;;  %19370 = vst [vmem:[#allocation42_spill] sm:$0xff] %v14482_v60  ;;  %v19373_v46 = vand.u32 4294901760, %v14162_v27  ;;  %11746 = vmatpush3.bf16.msra.mxu1 %v14451_v2  ;;  %11938 = vmatpush3.bf16.msra.mxu0 %v14464_v50  ;;  %v19430_v50 = vand.u32 4294901760, %v14401_v63  ;;  %v1919_v55 = vld [vmem:[#allocation9 + $0x1f0] sm:$0xff]  ;;  %v1950_v2 = vld [vmem:[#allocation9 + $0x2e8] sm:$0xff] }
 0x25f   :  { %v14487_v40 = vsub.f32 %v14159_v14, %v19371_v6  ;;  %v14498_v18 = vsub.f32 %v14164_v34, %v19374_v62  ;;  %v14503_v30 = vsub.f32 %v14169_v45, %v19375_v35  ;;  %v19376_v14 = vand.u32 4294901760, %v14171_v10 }
 0x260   :  { %v14493_v23 = vsub.f32 %v14162_v27, %v19373_v46  ;;  %v19377_v27 = vand.u32 4294901760, %v14193_v7  ;;  %v19378_v34 = vand.u32 4294901760, %v14195_v58  ;;  %v19379_v45 = vand.u32 4294901760, %v14197_v36 }
 0x261   :  { %19372 = vst [vmem:[#allocation43_spill] sm:$0xff] %v14487_v40  ;;  %v14508_v6 = vsub.f32 %v14171_v10, %v19376_v14  ;;  %v19381_v10 = vand.u32 4294901760, %v14208_v61 }
 0x262   :  { %v14514_v46 = vsub.f32 %v14193_v7, %v19377_v27  ;;  %v14519_v62 = vsub.f32 %v14195_v58, %v19378_v34  ;;  %v14524_v35 = vsub.f32 %v14197_v36, %v19379_v45  ;;  %v19383_v7 = vand.u32 4294901760, %v14211_v47 }
 0x263   :  { %v14529_v14 = vsub.f32 %v14208_v61, %v19381_v10  ;;  %v19384_v58 = vand.u32 4294901760, %v14213_v20  ;;  %v19385_v36 = vand.u32 4294901760, %v14220_v13  ;;  %v19387_v61 = vand.u32 4294901760, %v14222_v17 }
 0x264   :  { %19380 = vst [vmem:[#allocation44_spill] sm:$0xff] %v14524_v35  ;;  %v14535_v27 = vsub.f32 %v14211_v47, %v19383_v7  ;;  %v14555_v47 = vsub.f32 %v14245_v5, %v19389_v15  ;;  %v19390_v7 = vand.u32 4294901760, %v14247_v44  ;;  %v19396_v15 = vand.u32 4294901760, %v14265_v8 }
 0x265   :  { %19382 = vst [vmem:[#allocation45_spill] sm:$0xff] %v14529_v14  ;;  %v14540_v34 = vsub.f32 %v14213_v20, %v19384_v58  ;;  %v14545_v45 = vsub.f32 %v14220_v13, %v19385_v36  ;;  %v14550_v10 = vsub.f32 %v14222_v17, %v19387_v61  ;;  %v19391_v58 = vand.u32 4294901760, %v14249_v21 }
 0x266   :  { %v14560_v20 = vsub.f32 %v14247_v44, %v19390_v7  ;;  %v19393_v36 = vand.u32 4294901760, %v14260_v25  ;;  %v19395_v61 = vand.u32 4294901760, %v14263_v54  ;;  %v14580_v44 = vsub.f32 %v14265_v8, %v19396_v15 }
 0x267   :  { %19386 = vst [vmem:[#allocation46_spill] sm:$0xff] %v14545_v45  ;;  %19388 = vst [vmem:[#allocation47_spill] sm:$0xff] %v14550_v10  ;;  %v14565_v13 = vsub.f32 %v14249_v21, %v19391_v58  ;;  %v19397_v7 = vand.u32 4294901760, %v14272_v4  ;;  %v19399_v58 = vand.u32 4294901760, %v14274_v24  ;;  %v19403_v15 = vand.u32 4294901760, %v14301_v19 }
 0x268   :  { %v14570_v17 = vsub.f32 %v14260_v25, %v19393_v36  ;;  %v14575_v5 = vsub.f32 %v14263_v54, %v19395_v61  ;;  %v19401_v36 = vand.u32 4294901760, %v14297_v3  ;;  %v19402_v61 = vand.u32 4294901760, %v14299_v38 }
 0x269   :  { %19392 = vst [vmem:[#allocation48_spill] sm:$0xff] %v14565_v13  ;;  %v14585_v21 = vsub.f32 %v14272_v4, %v19397_v7  ;;  %v14590_v25 = vsub.f32 %v14274_v24, %v19399_v58  ;;  %v14605_v4 = vsub.f32 %v14301_v19, %v19403_v15  ;;  %v19405_v7 = vand.u32 4294901760, %v14312_v0 }
 0x26a   :  { %19394 = vst [vmem:[#allocation49_spill] sm:$0xff] %v14570_v17  ;;  %v14595_v54 = vsub.f32 %v14297_v3, %v19401_v36  ;;  %v14600_v8 = vsub.f32 %v14299_v38, %v19402_v61  ;;  %v19407_v58 = vand.u32 4294901760, %v14315_v9  ;;  %v19409_v36 = vand.u32 4294901760, %v14317_v59 }
 0x26b   :  { %19398 = vst [vmem:[#allocation50_spill] sm:$0xff] %v14585_v21  ;;  %19400 = vst [vmem:[#allocation51_spill] sm:$0xff] %v14590_v25  ;;  %v14610_v24 = vsub.f32 %v14312_v0, %v19405_v7  ;;  %v19410_v61 = vand.u32 4294901760, %v14324_v53  ;;  %v19412_v15 = vand.u32 4294901760, %v14326_v1  ;;  %v19414_v7 = vand.u32 4294901760, %v14349_v16  ;;  %v1953_v25 = vld [vmem:[#allocation9 + $0x300] sm:$0xff] }
 0x26c   :  { %19404 = vst [vmem:[#allocation52_spill] sm:$0xff] %v14605_v4  ;;  %v14615_v3 = vsub.f32 %v14315_v9, %v19407_v58  ;;  %v14620_v38 = vsub.f32 %v14317_v59, %v19409_v36  ;;  %v19416_v58 = vand.u32 4294901760, %v14351_v41  ;;  %v19418_v36 = vand.u32 4294901760, %v14353_v26 }
 0x26d   :  { %19406 = vst [vmem:[#allocation53_spill] sm:$0xff] %v14610_v24  ;;  %v14625_v19 = vsub.f32 %v14324_v53, %v19410_v61  ;;  %v14630_v0 = vsub.f32 %v14326_v1, %v19412_v15  ;;  %v14635_v9 = vsub.f32 %v14349_v16, %v19414_v7  ;;  %v19420_v61 = vand.u32 4294901760, %v14364_v49 }
 0x26e   :  { %19408 = vst [vmem:[#allocation54_spill] sm:$0xff] %v14615_v3  ;;  %v14640_v59 = vsub.f32 %v14351_v41, %v19416_v58  ;;  %v14645_v53 = vsub.f32 %v14353_v26, %v19418_v36  ;;  %v19422_v15 = vand.u32 4294901760, %v14367_v22  ;;  %v19424_v7 = vand.u32 4294901760, %v14369_v48 }
 0x26f   :  { %19411 = vst [vmem:[#allocation55_spill] sm:$0xff] %v14625_v19  ;;  %19413 = vst [vmem:[#allocation56_spill] sm:$0xff] %v14630_v0  ;;  %v14650_v1 = vsub.f32 %v14364_v49, %v19420_v61  ;;  %v19426_v58 = vand.u32 4294901760, %v14376_v56  ;;  %v19428_v36 = vand.u32 4294901760, %v14378_v39  ;;  %v1967_v61 = vld [vmem:[#allocation9 + $0x370] sm:$0xff]  ;;  %v1920_v0 = vld [vmem:[#allocation9 + $0x1f8] sm:$0xff] }
 0x270   :  { %19415 = vst [vmem:[#allocation57_spill] sm:$0xff] %v14635_v9  ;;  %19417 = vst [vmem:[#allocation58_spill] sm:$0xff] %v14640_v59  ;;  %v14655_v16 = vsub.f32 %v14367_v22, %v19422_v15  ;;  %v14660_v41 = vsub.f32 %v14369_v48, %v19424_v7  ;;  %v14675_v22 = vsub.f32 %v14401_v63, %v19430_v50  ;;  %v19432_v15 = vand.u32 4294901760, %v14403_v28  ;;  %v1921_v19 = vld [vmem:[#allocation9 + $0x200] sm:$0xff] }
 0x271   :  { %19419 = vst [vmem:[#allocation59_spill] sm:$0xff] %v14645_v53  ;;  %19421 = vst [vmem:[#allocation60_spill] sm:$0xff] %v14650_v1  ;;  %v14665_v26 = vsub.f32 %v14376_v56, %v19426_v58  ;;  %v14670_v49 = vsub.f32 %v14378_v39, %v19428_v36  ;;  %v19434_v7 = vand.u32 4294901760, %v14405_v32  ;;  %v19436_v58 = vand.u32 4294901760, %v14416_v12  ;;  %v1918_v36 = vld [vmem:[#allocation9 + $0x1e8] sm:$0xff]  ;;  %v1969_v53 = vld [vmem:[#allocation9 + $0x380] sm:$0xff] }
 0x272   :  { %19423 = vst [vmem:[#allocation61_spill] sm:$0xff] %v14655_v16  ;;  %19425 = vst [vmem:[#allocation62_spill] sm:$0xff] %v14660_v41  ;;  %v14680_v48 = vsub.f32 %v14403_v28, %v19432_v15  ;;  %v19438_v63 = vand.u32 4294901760, %v14419_v33  ;;  %v19440_v28 = vand.u32 4294901760, %v14421_v57 }
 0x273   :  { %19427 = vst [vmem:[#allocation63_spill] sm:$0xff] %v14665_v26  ;;  %19429 = vst [vmem:[#allocation64_spill] sm:$0xff] %v14670_v49  ;;  %v14685_v56 = vsub.f32 %v14405_v32, %v19434_v7  ;;  %v14690_v39 = vsub.f32 %v14416_v12, %v19436_v58  ;;  %v19442_v32 = vand.u32 4294901760, %v14428_v31  ;;  %v19444_v12 = vand.u32 4294901760, %v14430_v11 }
 0x274   :  { %19431 = vst [vmem:[#allocation65_spill] sm:$0xff] %v14675_v22  ;;  %19433 = vst [vmem:[#allocation66_spill] sm:$0xff] %v14680_v48  ;;  %v14695_v50 = vsub.f32 %v14419_v33, %v19438_v63  ;;  %v14700_v15 = vsub.f32 %v14421_v57, %v19440_v28  ;;  %v14712_v49 = vpack.c.bf16 %v2058_v51, %v2055_v29  ;;  %v19448_v63 = vld [vmem:[#allocation40_spill] sm:$0xff]  ;;  %v2976_v28 = vand.u32 4294901760, %v1967_v61 }
 0x275   :  { %19435 = vst [vmem:[#allocation67_spill] sm:$0xff] %v14685_v56  ;;  %19437 = vst [vmem:[#allocation68_spill] sm:$0xff] %v14690_v39  ;;  %v14705_v7 = vsub.f32 %v14428_v31, %v19442_v32  ;;  %v14710_v58 = vsub.f32 %v14430_v11, %v19444_v12  ;;  %v1951_v39 = vld [vmem:[#allocation9 + $0x2f0] sm:$0xff]  ;;  %v1936_v56 = vld [vmem:[#allocation9 + $0x278] sm:$0xff]  ;;  %v14715_v33 = vsub.f32 %v14453_v42, %v2055_v29  ;;  %v19450_v26 = vand.u32 4294901760, %v14457_v37 }
 0x276   :  { %19439 = vst [vmem:[#allocation69_spill] sm:$0xff] %v14695_v50  ;;  %19441 = vst [vmem:[#allocation70_spill] sm:$0xff] %v14700_v15  ;;  %v14718_v57 = vsub.f32 %v19448_v63, %v2058_v51  ;;  %v2007_v32 = vand.u32 4294901760, %v1918_v36  ;;  %v2925_v11 = vand.u32 4294901760, %v1950_v2  ;;  %v1937_v12 = vld [vmem:[#allocation9 + $0x280] sm:$0xff]  ;;  %11748 = vmatprep.subr.bf16.mxu1 %v14712_v49  ;;  %v14730_v29 = vsub.f32 %v1967_v61, %v2976_v28 }
 0x277   :  { %19443 = vst [vmem:[#allocation71_spill] sm:$0xff] %v14705_v7  ;;  %19445 = vst [vmem:[#allocation72_spill] sm:$0xff] %v14710_v58  ;;  %v14723_v31 = vsub.f32 %v14457_v37, %v19450_v26  ;;  %v2010_v7 = vand.u32 4294901760, %v1919_v55  ;;  %v1968_v58 = vld [vmem:[#allocation9 + $0x378] sm:$0xff]  ;;  %v19452_v1 = vmov %v19450_v26  ;;  %v2928_v51 = vand.u32 4294901760, %v1951_v39 }
 0x278   :  { %19446 = vst [vmem:[#allocation73_spill] sm:$0xff] %v14712_v49  ;;  %19447 = vst [vmem:[#allocation74_spill] sm:$0xff] %v14715_v33  ;;  %v14728_v42 = vpack.c.bf16 %v2976_v28, %v19452_v1  ;;  %v2061_v63 = vand.u32 4294901760, %v1936_v56  ;;  %v14738_v4 = vsub.f32 %v1950_v2, %v2925_v11  ;;  %v1952_v49 = vld [vmem:[#allocation9 + $0x2f8] sm:$0xff]  ;;  %v2064_v61 = vand.u32 4294901760, %v1937_v12 }
 0x279   :  { %19449 = vst [vmem:[#allocation40_spill] sm:$0xff] %v14718_v57  ;;  %19451 = vst [vmem:[#allocation75_spill] sm:$0xff] %v14723_v31  ;;  %v14732_v26 = vpack.c.bf16 %v2010_v7, %v2007_v32  ;;  %v14734_v31 = vsub.f32 %v1918_v36, %v2007_v32  ;;  %v14736_v24 = vsub.f32 %v1919_v55, %v2010_v7  ;;  %v2982_v36 = vand.u32 4294901760, %v1969_v53 }
 0x27a   :  { %19453 = vst [vmem:[#allocation76_spill] sm:$0xff] %v14728_v42  ;;  %19454 = vst [vmem:[#allocation77_spill] sm:$0xff] %v14730_v29  ;;  %11940 = vmatprep.subr.bf16.mxu0 %v14728_v42  ;;  %v14741_v37 = vpack.c.bf16 %v2928_v51, %v2925_v11  ;;  %v14743_v1 = vsub.f32 %v1951_v39, %v2928_v51  ;;  %v14745_v28 = vsub.f32 %v1936_v56, %v2061_v63 }
 0x27b   :  { %19455 = vst [vmem:[#allocation78_spill] sm:$0xff] %v14732_v26  ;;  %19456 = vst [vmem:[#allocation79_spill] sm:$0xff] %v14734_v31  ;;  %11750 = vmatpush3.bf16.msra.mxu1 %v14732_v26  ;;  %v2979_v29 = vand.u32 4294901760, %v1968_v58  ;;  %v2013_v32 = vand.u32 4294901760, %v1920_v0  ;;  %v2016_v55 = vand.u32 4294901760, %v1921_v19  ;;  %v14749_v2 = vpack.c.bf16 %v2064_v61, %v2061_v63 }
 0x27c   :  { %19457 = vst [vmem:[#allocation80_spill] sm:$0xff] %v14736_v24  ;;  %19458 = vst [vmem:[#allocation81_spill] sm:$0xff] %v14738_v4  ;;  %11942 = vmatpush3.bf16.msra.mxu0 %v14741_v37  ;;  %v14751_v7 = vsub.f32 %v1937_v12, %v2064_v61  ;;  %v2931_v42 = vand.u32 4294901760, %v1952_v49  ;;  %v2934_v11 = vand.u32 4294901760, %v1953_v25  ;;  %v14757_v56 = vsub.f32 %v1969_v53, %v2982_v36 }
 0x27d   :  { %19459 = vst [vmem:[#allocation82_spill] sm:$0xff] %v14741_v37  ;;  %19460 = vst [vmem:[#allocation83_spill] sm:$0xff] %v14743_v1  ;;  %v14753_v4 = vpack.c.bf16 %v2982_v36, %v2979_v29  ;;  %v14755_v39 = vsub.f32 %v1968_v58, %v2979_v29  ;;  %v14759_v51 = vpack.c.bf16 %v2016_v55, %v2013_v32  ;;  %11752 = vmatprep.subr.bf16.mxu1 %v14749_v2 }
 0x27e   :  { %19461 = vst [vmem:[#allocation84_spill] sm:$0xff] %v14745_v28  ;;  %19462 = vst [vmem:[#allocation85_spill] sm:$0xff] %v14749_v2  ;;  %v14762_v26 = vsub.f32 %v1920_v0, %v2013_v32  ;;  %v14764_v1 = vsub.f32 %v1921_v19, %v2016_v55  ;;  %v14766_v63 = vpack.c.bf16 %v2934_v11, %v2931_v42  ;;  %v18535_v53 = vand.u32 4294901760, %v14472_v43 }
 0x27f   :  { %19463 = vst [vmem:[#allocation86_spill] sm:$0xff] %v14751_v7  ;;  %19464 = vst [vmem:[#allocation87_spill] sm:$0xff] %v14753_v4  ;;  %v14768_v12 = vsub.f32 %v1952_v49, %v2931_v42  ;;  %11944 = vmatprep.subr.bf16.mxu0 %v14753_v4  ;;  %11754 = vmatpush3.bf16.msra.mxu1 %v14759_v51  ;;  %v14772_v58 = vsub.f32 %v1953_v25, %v2934_v11  ;;  %v18540_v29 = vand.u32 4294901760, %v14477_v52 }
 0x280   :  { %19465 = vst [vmem:[#allocation88_spill] sm:$0xff] %v14755_v39  ;;  %19466 = vst [vmem:[#allocation89_spill] sm:$0xff] %v14757_v56  ;;  %v11979_v0 = vpack.c.bf16 %v14487_v40, %v14482_v60  ;;  %11946 = vmatpush3.bf16.msra.mxu0 %v14766_v63  ;;  %v18543_v19 = vand.u32 4294901760, %v14493_v23  ;;  %v18546_v49 = vand.u32 4294901760, %v14498_v18  ;;  %v18550_v42 = vand.u32 4294901760, %v14514_v46 }
 0x281   :  { %19467 = vst [vmem:[#allocation90_spill] sm:$0xff] %v14759_v51  ;;  %19468 = vst [vmem:[#allocation91_spill] sm:$0xff] %v14762_v26  ;;  %v2213_v25 = vsub.f32 %v14472_v43, %v18535_v53  ;;  %v2220_v61 = vsub.f32 %v14477_v52, %v18540_v29  ;;  %v18551_v36 = vand.u32 4294901760, %v14519_v62  ;;  %v18557_v53 = vand.u32 4294901760, %v14535_v27 }
 0x282   :  { %19469 = vst [vmem:[#allocation92_spill] sm:$0xff] %v14764_v1  ;;  %19470 = vst [vmem:[#allocation93_spill] sm:$0xff] %v14766_v63  ;;  %11980 = vmatprep.subr.bf16.mxu0 %v11979_v0  ;;  %v2101_v32 = vsub.f32 %v14493_v23, %v18543_v19  ;;  %v2108_v55 = vsub.f32 %v14498_v18, %v18546_v49  ;;  %v2227_v11 = vsub.f32 %v14514_v46, %v18550_v42 }
 0x283   :  { %19471 = vst [vmem:[#allocation94_spill] sm:$0xff] %v14768_v12  ;;  %19472 = vst [vmem:[#allocation95_spill] sm:$0xff] %v14772_v58  ;;  %v2214_v63 = vand.u32 4294901760, %v2213_v25  ;;  %v2221_v4 = vand.u32 4294901760, %v2220_v61  ;;  %v2234_v0 = vsub.f32 %v14519_v62, %v18551_v36  ;;  %v18556_v29 = vand.u32 4294901760, %v14540_v34 }
 0x284   :  { %v2102_v37 = vand.u32 4294901760, %v2101_v32  ;;  %v2109_v19 = vand.u32 4294901760, %v2108_v55  ;;  %v2228_v51 = vand.u32 4294901760, %v2227_v11  ;;  %v2115_v49 = vsub.f32 %v14535_v27, %v18557_v53 }
 0x285   :  { %v11755_v2 = vpack.c.bf16 %v2221_v4, %v2214_v63  ;;  %v2235_v58 = vand.u32 4294901760, %v2234_v0  ;;  %v2122_v25 = vsub.f32 %v14540_v34, %v18556_v29  ;;  %v18553_v36 = vand.u32 4294901760, %v14555_v47 }
 0x286   :  { %v14809_v61 = vpack.c.bf16 %v2109_v19, %v2102_v37  ;;  %v2116_v42 = vand.u32 4294901760, %v2115_v49  ;;  %v18555_v12 = vand.u32 4294901760, %v14560_v20  ;;  %v18554_v11 = vand.u32 4294901760, %v14575_v5 }
 0x287   :  { %11756 = vmatprep.subr.bf16.mxu1 %v11755_v2  ;;  %v14813_v32 = vpack.c.bf16 %v2235_v58, %v2228_v51  ;;  %v2123_v55 = vand.u32 4294901760, %v2122_v25  ;;  %v2241_v4 = vsub.f32 %v14555_v47, %v18553_v36  ;;  %v18558_v63 = vand.u32 4294901760, %v14580_v44 }
 0x288   :  { %v2248_v37 = vsub.f32 %v14560_v20, %v18555_v12  ;;  %v2129_v2 = vsub.f32 %v14575_v5, %v18554_v11  ;;  %v18559_v51 = vand.u32 4294901760, %v14595_v54  ;;  %v18560_v58 = vand.u32 4294901760, %v14600_v8 }
 0x289   :  { %v14823_v19 = vpack.c.bf16 %v2123_v55, %v2116_v42  ;;  %v2242_v49 = vand.u32 4294901760, %v2241_v4  ;;  %v2136_v25 = vsub.f32 %v14580_v44, %v18558_v63  ;;  %v18561_v11 = vand.u32 4294901760, %v14615_v3 }
 0x28a   :  { %v2249_v0 = vand.u32 4294901760, %v2248_v37  ;;  %v2130_v36 = vand.u32 4294901760, %v2129_v2  ;;  %v2255_v42 = vsub.f32 %v14595_v54, %v18559_v51  ;;  %v2262_v55 = vsub.f32 %v14600_v8, %v18560_v58 }
 0x28b   :  { %v2137_v29 = vand.u32 4294901760, %v2136_v25  ;;  %v18564_v4 = vand.u32 4294901760, %v14620_v38  ;;  %v2143_v2 = vsub.f32 %v14615_v3, %v18561_v11  ;;  %v18565_v63 = vand.u32 4294901760, %v14635_v9 }
 0x28c   :  { %v14840_v12 = vpack.c.bf16 %v2249_v0, %v2242_v49  ;;  %v2256_v37 = vand.u32 4294901760, %v2255_v42  ;;  %v2263_v53 = vand.u32 4294901760, %v2262_v55  ;;  %v18569_v49 = vand.u32 4294901760, %v14640_v59 }
 0x28d   :  { %v14847_v51 = vpack.c.bf16 %v2137_v29, %v2130_v36  ;;  %v2150_v58 = vsub.f32 %v14620_v38, %v18564_v4  ;;  %v2144_v25 = vand.u32 4294901760, %v2143_v2  ;;  %v2269_v42 = vsub.f32 %v14635_v9, %v18565_v63 }
 0x28e   :  { %v14853_v0 = vpack.c.bf16 %v2263_v53, %v2256_v37  ;;  %v18568_v55 = vand.u32 4294901760, %v14655_v16  ;;  %v2276_v29 = vsub.f32 %v14640_v59, %v18569_v49  ;;  %v18572_v36 = vand.u32 4294901760, %v14660_v41 }
 0x28f   :  { %v2151_v11 = vand.u32 4294901760, %v2150_v58  ;;  %v2270_v40 = vand.u32 4294901760, %v2269_v42  ;;  %v18573_v37 = vand.u32 4294901760, %v14675_v22  ;;  %v18574_v2 = vand.u32 4294901760, %v14680_v48 }
 0x290   :  { %v2157_v53 = vsub.f32 %v14655_v16, %v18568_v55  ;;  %v2277_v63 = vand.u32 4294901760, %v2276_v29  ;;  %v2164_v58 = vsub.f32 %v14660_v41, %v18572_v36  ;;  %v18575_v49 = vand.u32 4294901760, %v14695_v50 }
 0x291   :  { %v14868_v4 = vpack.c.bf16 %v2151_v11, %v2144_v25  ;;  %v2283_v42 = vsub.f32 %v14675_v22, %v18573_v37  ;;  %v2290_v55 = vsub.f32 %v14680_v48, %v18574_v2  ;;  %v18576_v25 = vand.u32 4294901760, %v14700_v15 }
 0x292   :  { %v2158_v60 = vand.u32 4294901760, %v2157_v53  ;;  %v14880_v56 = vpack.c.bf16 %v2277_v63, %v2270_v40  ;;  %v2165_v11 = vand.u32 4294901760, %v2164_v58  ;;  %v2171_v53 = vsub.f32 %v14695_v50, %v18575_v49 }
 0x293   :  { %v2284_v29 = vand.u32 4294901760, %v2283_v42  ;;  %v2291_v39 = vand.u32 4294901760, %v2290_v55  ;;  %v18577_v36 = vand.u32 4294901760, %v14715_v33  ;;  %v2178_v2 = vsub.f32 %v14700_v15, %v18576_v25 }
 0x294   :  { %19473 = vst [vmem:[#allocation96_spill] sm:$0xff] %v14880_v56  ;;  %v14887_v37 = vpack.c.bf16 %v2165_v11, %v2158_v60  ;;  %v18579_v40 = vand.u32 4294901760, %v14718_v57  ;;  %v2172_v58 = vand.u32 4294901760, %v2171_v53  ;;  %v18578_v42 = vand.u32 4294901760, %v14734_v31 }
 0x295   :  { %v14893_v63 = vpack.c.bf16 %v2291_v39, %v2284_v29  ;;  %v2297_v55 = vsub.f32 %v14715_v33, %v18577_v36  ;;  %v2179_v49 = vand.u32 4294901760, %v2178_v2  ;;  %v18581_v11 = vand.u32 4294901760, %v14736_v24 }
 0x296   :  { %19474 = vst [vmem:[#allocation97_spill] sm:$0xff] %v14887_v37  ;;  %v2304_v60 = vsub.f32 %v14718_v57, %v18579_v40  ;;  %v2185_v39 = vsub.f32 %v14734_v31, %v18578_v42  ;;  %v18580_v29 = vand.u32 4294901760, %v14745_v28  ;;  %v18582_v53 = vand.u32 4294901760, %v14751_v7  ;;  %v1831_v57 = vld [vmem:[#allocation9 + $0x180] sm:$0xff] }
 0x297   :  { %19475 = vst [vmem:[#allocation98_spill] sm:$0xff] %v14893_v63  ;;  %v2298_v37 = vand.u32 4294901760, %v2297_v55  ;;  %v14908_v25 = vpack.c.bf16 %v2179_v49, %v2172_v58  ;;  %v2192_v2 = vsub.f32 %v14736_v24, %v18581_v11  ;;  %v18583_v40 = vand.u32 4294901760, %v14762_v26 }
 0x298   :  { %v2305_v36 = vand.u32 4294901760, %v2304_v60  ;;  %v2186_v63 = vand.u32 4294901760, %v2185_v39  ;;  %v2311_v55 = vsub.f32 %v14745_v28, %v18580_v29  ;;  %v2318_v42 = vsub.f32 %v14751_v7, %v18582_v53 }
 0x299   :  { %19476 = vst [vmem:[#allocation99_spill] sm:$0xff] %v14908_v25  ;;  %v2193_v49 = vand.u32 4294901760, %v2192_v2  ;;  %v18584_v58 = vand.u32 4294901760, %v14764_v1  ;;  %v2199_v39 = vsub.f32 %v14762_v26, %v18583_v40  ;;  %v1843_v50 = vlaneseq }
 0x29a   :  { %v14920_v56 = vpack.c.bf16 %v2305_v36, %v2298_v37  ;;  %v2312_v60 = vand.u32 4294901760, %v2311_v55  ;;  %v2319_v25 = vand.u32 4294901760, %v2318_v42 }
 0x29b   :  { %v14928_v11 = vpack.c.bf16 %v2193_v49, %v2186_v63  ;;  %v2206_v53 = vsub.f32 %v14764_v1, %v18584_v58  ;;  %v2200_v37 = vand.u32 4294901760, %v2199_v39  ;;  %v1844_v58 = vshrl.u32 %v1843_v50, 7  ;;  %v19482_v50 = vld [vmem:[#allocation16_spill] sm:$0xff] }
 0x29c   :  { %v14933_v36 = vpack.c.bf16 %v2319_v25, %v2312_v60 }
 0x29d   :  { %v2207_v42 = vand.u32 4294901760, %v2206_v53  ;;  %v14967_v31 = vsub.s32 0, %v1844_v58 }
 0x29f   :  { %v14941_v29 = vpack.c.bf16 %v2207_v42, %v2200_v37  ;;  %19477 = vst [vmem:[#allocation100_spill] sm:$0xff] %v14967_v31 }
 0x31c   :  { %v1820_v25 = vpop.f32.mrb[24].mxu0 }
 0x31d   :  { %v1824_v39 = vmul.f32 0.001953125, %v1820_v25  ;;  %v10966_v63 = vpop.f32.mrb[25].mxu0  ;;  %v14970_v25 = vsub.s32 1, %v1844_v58 }
 0x31f   :  { %v1825_v40 = vmul.f32 %v1824_v39, %v1824_v39  ;;  %19478 = vst [vmem:[#allocation101_spill] sm:$0xff] %v14970_v25 }
 0x321   :  { %v1827_v37 = vrot.slane %v1825_v40, 7  ;;  %v19479_v40 = vld [vmem:[#allocation14_spill] sm:$0xff] }
 0x323   :  { %v1829_v55 = vsub.f32 %v1824_v39, %v1827_v37 }
 0x325   :  { %v1830_v2 = vmax.f32 %v1829_v55, 0.0  ;;  %v19480_v55 = vld [vmem:[#allocation15_spill] sm:$0xff] }
 0x327   :  { %v1832_v42 = vadd.f32 1e-05, %v1830_v2 }
 0x329   :  { %13200 = vrsqrt.f32 %v1832_v42  ;;  %v19481_v42 = vld [vmem:[#allocation26_spill] sm:$0xff] }
 0x333   :  { %v13201_v33 = vpop.eup %13200 }
 0x334   :  { %v1835_v49 = vrot.slane %v13201_v33, 1 }
 0x336   :  { %v1837_v53 = vmul.f32 %v1835_v49, %v1831_v57 }
 0x338   :  { %v1838_v28 = vmul.f32 %v1837_v53, %v1824_v39  ;;  %v1846_v60 = vrot.slane %v1837_v53, %v14967_v31 }
 0x33a   :  { %v1840_v26 = vrot.slane %v1838_v28, 7  ;;  %v1847_v37 = vmul.f32 %v1846_v60, %v19479_v40  ;;  %v1848_v2 = vmul.f32 %v1846_v60, %v19480_v55  ;;  %v1849_v1 = vmul.f32 %v1846_v60, %v19481_v42 }
 0x33b   :  { %v1850_v7 = vmul.f32 %v1846_v60, %v19482_v50  ;;  %v11981_v50 = vpack.c.bf16 %v14508_v6, %v14503_v30 }
 0x33c   :  { %v1842_v63 = vsub.f32 %v1831_v57, %v1840_v26 }
 0x33e   :  { %v1854_v33 = vrot.slane %v1842_v63, %v14970_v25 }
 0x340   :  { %v1855_v24 = vadd.f32 %v1854_v33, %v1847_v37  ;;  %v1856_v15 = vadd.f32 %v1854_v33, %v1848_v2  ;;  %v1857_v49 = vadd.f32 %v1854_v33, %v1849_v1  ;;  %v1858_v39 = vadd.f32 %v1854_v33, %v1850_v7 }
 0x342   :  { %vm1859_vm1 = vcmp.ge.f32.partialorder %v1855_v24, 0.0  ;;  %vm1860_vm2 = vcmp.ge.f32.partialorder %v1856_v15, 0.0  ;;  %vm1861_vm3 = vcmp.ge.f32.partialorder %v1857_v49, 0.0  ;;  %vm1862_vm4 = vcmp.ge.f32.partialorder %v1858_v39, 0.0 }
 0x343   :  { %v1863_v28 = vmul.f32 0.2, %v1855_v24  ;;  %v1864_v57 = vmul.f32 0.2, %v1856_v15  ;;  %v1865_v26 = vmul.f32 0.2, %v1857_v49 }
 0x344   :  { %v1866_v58 = vmul.f32 0.2, %v1858_v39 }
 0x345   :  { %v1867_v53 = vsel %vm1859_vm1, %v1855_v24, %v1863_v28  ;;  %v1868_v40 = vsel %vm1860_vm2, %v1856_v15, %v1864_v57  ;;  %v1869_v55 = vsel %vm1861_vm3, %v1857_v49, %v1865_v26 }
 0x346   :  { %v1870_v42 = vsel %vm1862_vm4, %v1858_v39, %v1866_v58  ;;  %1871 = vst [vmem:[#allocation4 + $0x1] sm:$0xff] %v1867_v53  ;;  %1872 = vst [vmem:[#allocation4 + $0x9] sm:$0xff] %v1868_v40 }
 0x347   :  { %1873 = vst [vmem:[#allocation4 + $0x13] sm:$0xff] %v1869_v55  ;;  %1874 = vst [vmem:[#allocation4 + $0x1b] sm:$0xff] %v1870_v42 }
 0x34d   :  { %v1875_v60 = vld [vmem:[#allocation4] ss:$2 sm:$0xff]  ;;  %v1878_v63 = vld [vmem:[#allocation4 + $0x1] ss:$2 sm:$0xff] }
 0x34e   :  { %v1884_v1 = vld [vmem:[#allocation4 + $0x3] ss:$2 sm:$0xff]  ;;  %1876 = vst [vmem:[#allocation2] sm:$0xff] %v1875_v60  ;;  %1879 = vst [vmem:[#allocation2 + $0x8] sm:$0xff] %v1878_v63  ;;  %v14977_v7 = vand.u32 4294901760, %v1878_v63  ;;  %v14981_v2 = vand.u32 4294901760, %v1875_v60 }
 0x34f   :  { %1885 = vst [vmem:[#allocation2 + $0x18] sm:$0xff] %v1884_v1  ;;  %v14979_v37 = vand.u32 4294901760, %v1884_v1  ;;  %v1881_v24 = vld [vmem:[#allocation4 + $0x2] ss:$2 sm:$0xff]  ;;  %v1890_v33 = vld [vmem:[#allocation4 + $0x13] ss:$2 sm:$0xff] }
 0x350   :  { %19483 = vst [vmem:[#allocation14_spill] sm:$0xff] %v14977_v7  ;;  %1882 = vst [vmem:[#allocation2 + $0x10] sm:$0xff] %v1881_v24  ;;  %v14983_v15 = vand.u32 4294901760, %v1881_v24  ;;  %v1896_v49 = vld [vmem:[#allocation4 + $0x15] ss:$2 sm:$0xff]  ;;  %v14988_v39 = vsub.f32 %v1878_v63, %v14977_v7  ;;  %v14994_v57 = vsub.f32 %v1875_v60, %v14981_v2  ;;  %v14996_v26 = vand.u32 4294901760, %v1890_v33 }
 0x351   :  { %19484 = vst [vmem:[#allocation15_spill] sm:$0xff] %v14979_v37  ;;  %v14991_v28 = vsub.f32 %v1884_v1, %v14979_v37  ;;  %v1887_v58 = vld [vmem:[#allocation4 + $0x12] ss:$2 sm:$0xff]  ;;  %v15001_v55 = vand.u32 4294901760, %v1896_v49 }
 0x352   :  { %19485 = vst [vmem:[#allocation26_spill] sm:$0xff] %v14983_v15  ;;  %19487 = vst [vmem:[#allocation102_spill] sm:$0xff] %v14994_v57  ;;  %v1893_v53 = vld [vmem:[#allocation4 + $0x14] ss:$2 sm:$0xff]  ;;  %v14999_v40 = vsub.f32 %v1881_v24, %v14983_v15  ;;  %v15003_v42 = vand.u32 4294901760, %v1887_v58  ;;  %v18621_v63 = vand.u32 4294901760, %v14988_v39  ;;  %v15011_v31 = vsub.f32 %v1890_v33, %v14996_v26 }
 0x353   :  { %19486 = vst [vmem:[#allocation16_spill] sm:$0xff] %v14991_v28  ;;  %19489 = vst [vmem:[#allocation104_spill] sm:$0xff] %v15001_v55  ;;  %v15005_v25 = vand.u32 4294901760, %v1893_v53  ;;  %v15015_v24 = vsub.f32 %v1896_v49, %v15001_v55  ;;  %v19495_v60 = vand.u32 4294901760, %v14991_v28  ;;  %v19496_v16 = vand.u32 4294901760, %v14994_v57 }
 0x354   :  { %19488 = vst [vmem:[#allocation103_spill] sm:$0xff] %v14999_v40  ;;  %19491 = vst [vmem:[#allocation106_spill] sm:$0xff] %v15011_v31  ;;  %v15018_v15 = vsub.f32 %v1887_v58, %v15003_v42  ;;  %v2069_v1 = vsub.f32 %v14988_v39, %v18621_v63  ;;  %v18635_v49 = vand.u32 4294901760, %v15011_v31  ;;  %v19497_v58 = vand.u32 4294901760, %v14999_v40 }
 0x355   :  { %19490 = vst [vmem:[#allocation105_spill] sm:$0xff] %v15005_v25  ;;  %19492 = vst [vmem:[#allocation107_spill] sm:$0xff] %v15015_v24  ;;  %v15021_v48 = vsub.f32 %v1893_v53, %v15005_v25  ;;  %v2987_v33 = vsub.f32 %v14991_v28, %v19495_v60  ;;  %v2075_v22 = vsub.f32 %v14994_v57, %v19496_v16  ;;  %v18632_v53 = vand.u32 4294901760, %v15015_v24 }
 0x356   :  { %19493 = vst [vmem:[#allocation108_spill] sm:$0xff] %v15018_v15  ;;  %v2993_v55 = vsub.f32 %v14999_v40, %v19497_v58  ;;  %v18633_v25 = vand.u32 4294901760, %v15018_v15  ;;  %v2070_v41 = vand.u32 4294901760, %v2069_v1  ;;  %v2084_v60 = vsub.f32 %v15011_v31, %v18635_v49  ;;  %v19516_v49 = vld [vmem:[#allocation99_spill] sm:$0xff] }
 0x357   :  { %19494 = vst [vmem:[#allocation109_spill] sm:$0xff] %v15021_v48  ;;  %v18634_v63 = vand.u32 4294901760, %v15021_v48  ;;  %v2988_v9 = vand.u32 4294901760, %v2987_v33  ;;  %v2076_v59 = vand.u32 4294901760, %v2075_v22  ;;  %v3002_v57 = vsub.f32 %v15015_v24, %v18632_v53 }
 0x358   :  { %v2994_v16 = vand.u32 4294901760, %v2993_v55  ;;  %v2090_v58 = vsub.f32 %v15018_v15, %v18633_v25  ;;  %2071 = vmatprep.mubr.f32.mxu1 %v2070_v41  ;;  %v11983_v22 = vpack.c.bf16 %v14529_v14, %v14524_v35  ;;  %v2085_v55 = vand.u32 4294901760, %v2084_v60  ;;  %v19521_v15 = vld [vmem:[#allocation42_spill] sm:$0xff] }
 0x359   :  { %v3008_v3 = vsub.f32 %v15021_v48, %v18634_v63  ;;  %2989 = vmatprep.mubr.f32.mxu0 %v2988_v9  ;;  %2077 = vmatmul.mubr.f32.vlgmr.msra.gmra.mrb[24].mxu1 %v2076_v59  ;;  %v3003_v1 = vand.u32 4294901760, %v3002_v57  ;;  %v11985_v33 = vpack.c.bf16 %v14550_v10, %v14545_v45  ;;  %v11987_v9 = vpack.c.bf16 %v14570_v17, %v14565_v13  ;;  %v19498_v59 = vld [vmem:[#allocation51_spill] sm:$0xff] }
 0x35a   :  { %2995 = vmatmul.mubr.f32.vlgmr.msra.gmra.mrb[26].mxu0 %v2994_v16  ;;  %11758 = vmatpush3.bf16.msra.mxu1 %v14809_v61  ;;  %v2091_v53 = vand.u32 4294901760, %v2090_v58  ;;  %v11989_v41 = vpack.c.bf16 %v19498_v59, %v14585_v21  ;;  %v19499_v61 = vld [vmem:[#allocation52_spill] sm:$0xff]  ;;  %v19503_v57 = vld [vmem:[#allocation59_spill] sm:$0xff]  ;;  %v18644_v31 = vand.u32 4294901760, %v19521_v15 }
 0x35b   :  { %11982 = vmatpush3.bf16.msra.mxu0 %v11981_v50  ;;  %2086 = vmatprep.mubr.f32.mxu1 %v2085_v55  ;;  %v3009_v25 = vand.u32 4294901760, %v3008_v3  ;;  %v19500_v3 = vld [vmem:[#allocation53_spill] sm:$0xff]  ;;  %v19505_v16 = vld [vmem:[#allocation63_spill] sm:$0xff]  ;;  %v19506_v58 = vld [vmem:[#allocation64_spill] sm:$0xff] }
 0x35c   :  { %3004 = vmatprep.mubr.f32.mxu0 %v3003_v1  ;;  %11760 = vmatprep.subr.bf16.mxu1 %v14813_v32  ;;  %v11991_v50 = vpack.c.bf16 %v19500_v3, %v19499_v61  ;;  %v19501_v32 = vld [vmem:[#allocation55_spill] sm:$0xff]  ;;  %v19509_v55 = vld [vmem:[#allocation68_spill] sm:$0xff] }
 0x35d   :  { %11984 = vmatprep.subr.bf16.mxu0 %v11983_v22  ;;  %2092 = vmatmul.mubr.f32.gmra.mrb[26].mxu1 %v2091_v53  ;;  %v19504_v53 = vld [vmem:[#allocation60_spill] sm:$0xff]  ;;  %v11997_v22 = vpack.c.bf16 %v19506_v58, %v19505_v16 }
 0x35e   :  { %3010 = vmatmul.mubr.f32.gmra.mrb[28].mxu0 %v3009_v25  ;;  %11762 = vmatpush3.bf16.msra.mxu1 %v14823_v19  ;;  %v19502_v25 = vld [vmem:[#allocation56_spill] sm:$0xff]  ;;  %v11995_v60 = vpack.c.bf16 %v19504_v53, %v19503_v57 }
 0x35f   :  { %11986 = vmatpush3.bf16.msra.mxu0 %v11985_v33  ;;  %2322 = vmatprep.mubr.f32.mxu1 %v14977_v7  ;;  %v11993_v19 = vpack.c.bf16 %v19502_v25, %v19501_v32  ;;  %v19510_v33 = vld [vmem:[#allocation97_spill] sm:$0xff] }
 0x360   :  { %3384 = vmatprep.mubr.f32.mxu0 %v14991_v28  ;;  %11764 = vmatprep.subr.bf16.mxu1 %v14840_v12  ;;  %v19507_v12 = vld [vmem:[#allocation96_spill] sm:$0xff] }
 0x361   :  { %11988 = vmatprep.subr.bf16.mxu0 %v11987_v9  ;;  %v19512_v9 = vld [vmem:[#allocation72_spill] sm:$0xff] }
 0x362   :  { %11766 = vmatpush3.bf16.msra.mxu1 %v14847_v51  ;;  %v19508_v51 = vld [vmem:[#allocation67_spill] sm:$0xff] }
 0x363   :  { %11990 = vmatpush3.bf16.msra.mxu0 %v11989_v41  ;;  %11768 = vmatprep.subr.bf16.mxu1 %v14853_v0  ;;  %v11999_v1 = vpack.c.bf16 %v19509_v55, %v19508_v51  ;;  %v19511_v0 = vld [vmem:[#allocation71_spill] sm:$0xff] }
 0x364   :  { %11992 = vmatprep.subr.bf16.mxu0 %v11991_v50  ;;  %v12001_v41 = vpack.c.bf16 %v19512_v9, %v19511_v0  ;;  %v19513_v50 = vld [vmem:[#allocation98_spill] sm:$0xff]  ;;  %v19522_v9 = vld [vmem:[#allocation43_spill] sm:$0xff] }
 0x366   :  { %11770 = vmatpush3.bf16.msra.mxu1 %v14868_v4  ;;  %v19514_v4 = vld [vmem:[#allocation75_spill] sm:$0xff] }
 0x367   :  { %11994 = vmatpush3.bf16.msra.mxu0 %v11993_v19  ;;  %11772 = vmatprep.subr.bf16.mxu1 %v19507_v12  ;;  %v19515_v19 = vld [vmem:[#allocation77_spill] sm:$0xff] }
 0x368   :  { %11996 = vmatprep.subr.bf16.mxu0 %v11995_v60  ;;  %v12003_v63 = vpack.c.bf16 %v19515_v19, %v19514_v4  ;;  %v19517_v12 = vld [vmem:[#allocation81_spill] sm:$0xff]  ;;  %v19518_v60 = vld [vmem:[#allocation83_spill] sm:$0xff] }
 0x369   :  { %v12005_v28 = vpack.c.bf16 %v19518_v60, %v19517_v12  ;;  %v19524_v19 = vld [vmem:[#allocation95_spill] sm:$0xff] }
 0x36a   :  { %11774 = vmatpush3.bf16.msra.mxu1 %v19510_v33  ;;  %v19519_v33 = vld [vmem:[#allocation88_spill] sm:$0xff] }
 0x36b   :  { %11998 = vmatpush3.bf16.msra.mxu0 %v11997_v22  ;;  %11776 = vmatprep.subr.bf16.mxu1 %v19513_v50  ;;  %v19520_v22 = vld [vmem:[#allocation89_spill] sm:$0xff]  ;;  %v18643_v50 = vand.u32 4294901760, %v19522_v9 }
 0x36c   :  { %12000 = vmatprep.subr.bf16.mxu0 %v11999_v1  ;;  %v12007_v7 = vpack.c.bf16 %v19520_v22, %v19519_v33  ;;  %v19523_v1 = vld [vmem:[#allocation94_spill] sm:$0xff]  ;;  %v18646_v22 = vand.u32 4294901760, %v14524_v35 }
 0x36e   :  { %11778 = vmatpush3.bf16.msra.mxu1 %v19516_v49  ;;  %v12009_v49 = vpack.c.bf16 %v19524_v19, %v19523_v1 }
 0x36f   :  { %12002 = vmatpush3.bf16.msra.mxu0 %v12001_v41  ;;  %11780 = vmatprep.subr.bf16.mxu1 %v14920_v56  ;;  %v12043_v56 = vpack.c.bf16 %v18643_v50, %v18644_v31  ;;  %v18647_v41 = vand.u32 4294901760, %v14508_v6  ;;  %v18649_v50 = vand.u32 4294901760, %v14550_v10  ;;  %v18650_v31 = vand.u32 4294901760, %v14570_v17  ;;  %v19592_v10 = vld [vmem:[#allocation90_spill] sm:$0xff] }
 0x370   :  { %12004 = vmatprep.subr.bf16.mxu0 %v12003_v63  ;;  %v18648_v63 = vand.u32 4294901760, %v14503_v30  ;;  %v19591_v17 = vand.u32 4294901760, %v14477_v52 }
 0x372   :  { %11782 = vmatpush3.bf16.msra.mxu1 %v14928_v11  ;;  %v18645_v11 = vand.u32 4294901760, %v14529_v14  ;;  %v19594_v14 = vand.u32 4294901760, %v14498_v18 }
 0x373   :  { %12006 = vmatpush3.bf16.msra.mxu0 %v12005_v28  ;;  %11784 = vmatprep.subr.bf16.mxu1 %v14933_v36  ;;  %v19525_v36 = vpack.c.bf16 %v14477_v52, %v14472_v43  ;;  %v18652_v28 = vand.u32 4294901760, %v14545_v45  ;;  %v19593_v45 = vand.u32 4294901760, %v14493_v23  ;;  %v19599_v52 = vand.u32 4294901760, %v14535_v27 }
 0x374   :  { %12008 = vmatprep.subr.bf16.mxu0 %v12007_v7  ;;  %v12045_v7 = vpack.c.bf16 %v18647_v41, %v18648_v63  ;;  %v19527_v41 = vpack.c.bf16 %v14519_v62, %v14514_v46  ;;  %v18655_v63 = vand.u32 4294901760, %v19500_v3  ;;  %v19583_v3 = vld [vmem:[#allocation33_spill] sm:$0xff] }
 0x375   :  { %v11853_v35 = vpack.c.bf16 %v19594_v14, %v19593_v45  ;;  %v19604_v45 = vld [vmem:[#allocation14_spill] sm:$0xff] }
 0x376   :  { %11786 = vmatpush3.bf16.msra.mxu1 %v14941_v29  ;;  %v12047_v29 = vpack.c.bf16 %v18645_v11, %v18646_v22  ;;  %v18654_v11 = vand.u32 4294901760, %v14585_v21  ;;  %v18653_v22 = vand.u32 4294901760, %v19498_v59  ;;  %v19588_v59 = vld [vmem:[#allocation78_spill] sm:$0xff]  ;;  %v19590_v21 = vand.u32 4294901760, %v14472_v43 }
 0x377   :  { %12010 = vmatpush3.bf16.msra.mxu0 %v12009_v49  ;;  %11788 = vmatprep.subr.bf16.mxu1 %v19525_v36  ;;  %v18651_v49 = vand.u32 4294901760, %v14565_v13  ;;  %v12049_v36 = vpack.c.bf16 %v18649_v50, %v18652_v28  ;;  %v19528_v50 = vpack.c.bf16 %v14540_v34, %v14535_v27  ;;  %v18661_v28 = vand.u32 4294901760, %v19504_v53 }
 0x378   :  { %12044 = vmatprep.subr.bf16.mxu0 %v12043_v56  ;;  %v19526_v56 = vpack.c.bf16 %v14498_v18, %v14493_v23  ;;  %v11851_v13 = vpack.c.bf16 %v19591_v17, %v19590_v21  ;;  %v19600_v23 = vand.u32 4294901760, %v14540_v34  ;;  %v19601_v18 = vand.u32 4294901760, %v14555_v47 }
 0x379   :  { %2324 = vmatmul.mubr.f32.vlgmr.msra.gmra.mrb[28].mxu1 %v14981_v2  ;;  %v19607_v34 = vand.u32 4294901760, %v14595_v54  ;;  %v19608_v21 = vand.u32 4294901760, %v14600_v8 }
 0x37a   :  { %3387 = vmatmul.mubr.f32.vlgmr.msra.gmra.mrb[30].mxu0 %v14999_v40  ;;  %2329 = vmatprep.mubr.f32.mxu1 %v14996_v26  ;;  %v19540_v40 = vand.u32 4294901760, %v19509_v55  ;;  %v19549_v55 = vld [vmem:[#allocation89_spill] sm:$0xff]  ;;  %v11857_v17 = vpack.c.bf16 %v19600_v23, %v19599_v52 }
 0x37b   :  { %11790 = vmatpush3.bf16.msra.mxu1 %v19526_v56  ;;  %3393 = vmatprep.mubr.f32.mxu0 %v15015_v24  ;;  %v12051_v56 = vpack.c.bf16 %v18650_v31, %v18651_v49  ;;  %v18658_v31 = vand.u32 4294901760, %v19502_v25  ;;  %v19529_v49 = vpack.c.bf16 %v14560_v20, %v14555_v47  ;;  %v19551_v25 = vld [vmem:[#allocation69_spill] sm:$0xff]  ;;  %v11863_v47 = vpack.c.bf16 %v19608_v21, %v19607_v34 }
 0x37c   :  { %12046 = vmatpush3.bf16.msra.mxu0 %v12045_v7  ;;  %11792 = vmatprep.subr.bf16.mxu1 %v19527_v41  ;;  %v18656_v7 = vand.u32 4294901760, %v19499_v61  ;;  %v12053_v41 = vpack.c.bf16 %v18653_v22, %v18654_v11  ;;  %v19530_v22 = vpack.c.bf16 %v14580_v44, %v14575_v5  ;;  %v19531_v11 = vpack.c.bf16 %v14600_v8, %v14595_v54  ;;  %v19587_v61 = vld [vmem:[#allocation73_spill] sm:$0xff] }
 0x37d   :  { %12048 = vmatprep.subr.bf16.mxu0 %v12047_v29  ;;  %2331 = vmatmul.mubr.f32.gmra.mrb[30].mxu1 %v15003_v42  ;;  %v18659_v29 = vand.u32 4294901760, %v19501_v32  ;;  %v19644_v34 = vld [vmem:[#allocation49_spill] sm:$0xff] }
 0x37e   :  { %3396 = vmatmul.mubr.f32.gmra.mrb[32].mxu0 %v15021_v48  ;;  %2466 = vmatprep.mubr.f32.mxu1 %v14988_v39  ;;  %v19645_v21 = vand.u32 4294901760, %v19644_v34 }
 0x37f   :  { %11794 = vmatpush3.bf16.msra.mxu1 %v19528_v50  ;;  %3681 = vmatprep.mubr.f32.mxu0 %v14979_v37  ;;  %v12055_v50 = vpack.c.bf16 %v18655_v63, %v18656_v7  ;;  %v18669_v63 = vand.u32 4294901760, %v19506_v58  ;;  %v19539_v7 = vand.u32 4294901760, %v19508_v51  ;;  %v19541_v37 = vld [vmem:[#allocation77_spill] sm:$0xff]  ;;  %v18685_v58 = vand.u32 4294901760, %v19549_v55 }
 0x380   :  { %12050 = vmatpush3.bf16.msra.mxu0 %v12049_v36  ;;  %11796 = vmatprep.subr.bf16.mxu1 %v19529_v49  ;;  %v18662_v36 = vand.u32 4294901760, %v19503_v57  ;;  %v12057_v49 = vpack.c.bf16 %v18658_v31, %v18659_v29  ;;  %v19534_v31 = vld [vmem:[#allocation58_spill] sm:$0xff]  ;;  %v19535_v29 = vld [vmem:[#allocation57_spill] sm:$0xff]  ;;  %v18677_v53 = vand.u32 4294901760, %v19541_v37  ;;  %v19558_v37 = vld [vmem:[#allocation79_spill] sm:$0xff] }
 0x381   :  { %12052 = vmatprep.subr.bf16.mxu0 %v12051_v56  ;;  %v19536_v56 = vpack.c.bf16 %v19534_v31, %v19535_v29  ;;  %v19543_v57 = vld [vmem:[#allocation61_spill] sm:$0xff] }
 0x382   :  { %v19580_v55 = vld [vmem:[#allocation29_spill] sm:$0xff] }
 0x383   :  { %11798 = vmatpush3.bf16.msra.mxu1 %v19530_v22  ;;  %v12059_v22 = vpack.c.bf16 %v18661_v28, %v18662_v36  ;;  %v19538_v36 = vld [vmem:[#allocation72_spill] sm:$0xff] }
 0x384   :  { %12054 = vmatpush3.bf16.msra.mxu0 %v12053_v41  ;;  %11800 = vmatprep.subr.bf16.mxu1 %v19531_v11  ;;  %v19532_v11 = vld [vmem:[#allocation54_spill] sm:$0xff]  ;;  %v18675_v41 = vand.u32 4294901760, %v19538_v36 }
 0x385   :  { %12056 = vmatprep.subr.bf16.mxu0 %v12055_v50  ;;  %v19533_v48 = vpack.c.bf16 %v14620_v38, %v19532_v11  ;;  %v19537_v50 = vand.u32 4294901760, %v19505_v16 }
 0x387   :  { %11802 = vmatpush3.bf16.msra.mxu1 %v19533_v48  ;;  %v12061_v24 = vpack.c.bf16 %v18669_v63, %v19537_v50  ;;  %v12063_v48 = vpack.c.bf16 %v19540_v40, %v19539_v7  ;;  %v19545_v50 = vld [vmem:[#allocation66_spill] sm:$0xff]  ;;  %v19546_v63 = vld [vmem:[#allocation65_spill] sm:$0xff]  ;;  %v18683_v7 = vand.u32 4294901760, %v19518_v60  ;;  %v19582_v60 = vld [vmem:[#allocation31_spill] sm:$0xff] }
 0x388   :  { %12058 = vmatpush3.bf16.msra.mxu0 %v12057_v49  ;;  %11804 = vmatprep.subr.bf16.mxu1 %v19536_v56  ;;  %v18678_v49 = vand.u32 4294901760, %v19514_v4  ;;  %v19542_v56 = vld [vmem:[#allocation62_spill] sm:$0xff]  ;;  %v19547_v28 = vpack.c.bf16 %v19545_v50, %v19546_v63  ;;  %v19615_v8 = vand.u32 4294901760, %v19546_v63 }
 0x389   :  { %12060 = vmatprep.subr.bf16.mxu0 %v12059_v22  ;;  %v19544_v16 = vpack.c.bf16 %v19542_v56, %v19543_v57  ;;  %v19548_v22 = vand.u32 4294901760, %v19511_v0  ;;  %v19614_v54 = vand.u32 4294901760, %v19542_v56  ;;  %v19621_v56 = vand.u32 4294901760, %v19558_v37 }
 0x38b   :  { %11806 = vmatpush3.bf16.msra.mxu1 %v19544_v16  ;;  %v12065_v51 = vpack.c.bf16 %v18675_v41, %v19548_v22  ;;  %v12067_v16 = vpack.c.bf16 %v18677_v53, %v18678_v49  ;;  %v19553_v22 = vld [vmem:[#allocation40_spill] sm:$0xff]  ;;  %v19554_v41 = vld [vmem:[#allocation74_spill] sm:$0xff]  ;;  %v18690_v53 = vand.u32 4294901760, %v19523_v1  ;;  %v18689_v49 = vand.u32 4294901760, %v19524_v19  ;;  %v19571_v1 = vld [vmem:[#allocation19_spill] sm:$0xff] }
 0x38c   :  { %12062 = vmatpush3.bf16.msra.mxu0 %v12061_v24  ;;  %11808 = vmatprep.subr.bf16.mxu1 %v19547_v28  ;;  %v18686_v24 = vand.u32 4294901760, %v19519_v33  ;;  %v19550_v28 = vld [vmem:[#allocation70_spill] sm:$0xff]  ;;  %v19555_v40 = vpack.c.bf16 %v19553_v22, %v19554_v41  ;;  %v19572_v19 = vld [vmem:[#allocation104_spill] sm:$0xff] }
 0x38d   :  { %12064 = vmatprep.subr.bf16.mxu0 %v12063_v48  ;;  %v19552_v0 = vpack.c.bf16 %v19550_v28, %v19551_v25  ;;  %v19556_v48 = vand.u32 4294901760, %v19517_v12  ;;  %v19561_v12 = vld [vmem:[#allocation84_spill] sm:$0xff] }
 0x38f   :  { %11810 = vmatpush3.bf16.msra.mxu1 %v19552_v0  ;;  %v12069_v4 = vpack.c.bf16 %v18683_v7, %v19556_v48  ;;  %v12071_v0 = vpack.c.bf16 %v18685_v58, %v18686_v24  ;;  %v12073_v48 = vpack.c.bf16 %v18689_v49, %v18690_v53  ;;  %v19564_v7 = vld [vmem:[#allocation91_spill] sm:$0xff]  ;;  %v19566_v58 = vld [vmem:[#allocation17_spill] sm:$0xff]  ;;  %v19567_v24 = vmov 0.0|0.0   ;;  %v19574_v49 = vld [vmem:[#allocation108_spill] sm:$0xff] }
 0x390   :  { %12066 = vmatpush3.bf16.msra.mxu0 %v12065_v51  ;;  %11812 = vmatprep.subr.bf16.mxu1 %v19555_v40  ;;  %v19557_v51 = vld [vmem:[#allocation80_spill] sm:$0xff]  ;;  %v19560_v40 = vld [vmem:[#allocation86_spill] sm:$0xff]  ;;  %v19577_v53 = vld [vmem:[#allocation21_spill] sm:$0xff] }
 0x391   :  { %12068 = vmatprep.subr.bf16.mxu0 %v12067_v16  ;;  %v19559_v36 = vpack.c.bf16 %v19557_v51, %v19558_v37  ;;  %v19562_v32 = vpack.c.bf16 %v19560_v40, %v19561_v12  ;;  %v19563_v16 = vld [vmem:[#allocation92_spill] sm:$0xff]  ;;  %v19622_v63 = vand.u32 4294901760, %v19557_v51  ;;  %v19627_v37 = vand.u32 4294901760, %v19521_v15 }
 0x392   :  { %v19565_v33 = vpack.c.bf16 %v19563_v16, %v19564_v7 }
 0x393   :  { %11814 = vmatpush3.bf16.msra.mxu1 %v19559_v36  ;;  %v19569_v36 = vld [vmem:[#allocation26_spill] sm:$0xff]  ;;  %v11877_v52 = vpack.c.bf16 %v19622_v63, %v19621_v56  ;;  %v19653_v63 = vld [vmem:[#allocation53_spill] sm:$0xff] }
 0x394   :  { %12070 = vmatpush3.bf16.msra.mxu0 %v12069_v4  ;;  %11816 = vmatprep.subr.bf16.mxu1 %v19562_v32  ;;  %v19568_v4 = vld [vmem:[#allocation102_spill] sm:$0xff] }
 0x395   :  { %12072 = vmatprep.subr.bf16.mxu0 %v12071_v0  ;;  %v19570_v32 = vld [vmem:[#allocation106_spill] sm:$0xff]  ;;  %v19573_v0 = vld [vmem:[#allocation27_spill] sm:$0xff] }
 0x396   :  { %v19598_v43 = vand.u32 4294901760, %v19570_v32 }
 0x397   :  { %11818 = vmatpush3.bf16.msra.mxu1 %v19565_v33  ;;  %v19575_v33 = vld [vmem:[#allocation105_spill] sm:$0xff] }
 0x398   :  { %12074 = vmatpush3.bf16.msra.mxu0 %v12073_v48  ;;  %11820 = vmatprep.subr.bf16.mxu1 %v19566_v58  ;;  %v19576_v48 = vand.u32 4294901760, %v14988_v39  ;;  %v19585_v39 = vld [vmem:[#allocation37_spill] sm:$0xff] }
 0x399   :  { %12107 = vmatprep.subr.bf16.mxu0 %v19567_v24  ;;  %v15261_v24 = vld [vmem:[#allocation5] sm:$0xff] }
 0x39a   :  { %2469 = vmatmul.mubr.f32.vlgmr.msra.gmra.mrb[32].mxu1 %v19568_v4  ;;  %19578 = vst [vmem:[#allocation96_spill] sm:$0xff] %v15261_v24 }
 0x39b   :  { %3683 = vmatmul.mubr.f32.vlgmr.msra.gmra.mrb[34].mxu0 %v19569_v36  ;;  %2475 = vmatprep.mubr.f32.mxu1 %v19570_v32  ;;  %v19579_v36 = vld [vmem:[#allocation22_spill] sm:$0xff] }
 0x39c   :  { %11822 = vmatpush3.bf16.msra.mxu1 %v19571_v1  ;;  %3688 = vmatprep.mubr.f32.mxu0 %v19572_v19  ;;  %v19581_v19 = vld [vmem:[#allocation24_spill] sm:$0xff] }
 0x39d   :  { %11824 = vmatprep.subr.bf16.mxu1 %v19573_v0 }
 0x39e   :  { %2478 = vmatmul.mubr.f32.gmra.mrb[34].mxu1 %v19574_v49 }
 0x39f   :  { %3690 = vmatmul.mubr.f32.gmra.mrb[36].mxu0 %v19575_v33  ;;  %2582 = vmatprep.mubr.f32.mxu1 %v19576_v48  ;;  %v19584_v33 = vld [vmem:[#allocation35_spill] sm:$0xff] }
 0x3a0   :  { %11826 = vmatpush3.bf16.msra.mxu1 %v19577_v53  ;;  %10999 = vmatprep.mubr.msk.f32.mxu0 %vm13267_vm0, %v15261_v24  ;;  %v19586_v48 = vld [vmem:[#allocation39_spill] sm:$0xff]  ;;  %v19589_v24 = vld [vmem:[#allocation85_spill] sm:$0xff] }
 0x3a1   :  { %11828 = vmatprep.subr.bf16.mxu1 %v19579_v36 }
 0x3a4   :  { %11830 = vmatpush3.bf16.msra.mxu1 %v19580_v55 }
 0x3a5   :  { %11832 = vmatprep.subr.bf16.mxu1 %v19581_v19 }
 0x3a8   :  { %11834 = vmatpush3.bf16.msra.mxu1 %v19582_v60 }
 0x3a9   :  { %11836 = vmatprep.subr.bf16.mxu1 %v19583_v3 }
 0x3ac   :  { %11838 = vmatpush3.bf16.msra.mxu1 %v19584_v33 }
 0x3ad   :  { %11840 = vmatprep.subr.bf16.mxu1 %v19585_v39 }
 0x3b0   :  { %11842 = vmatpush3.bf16.msra.mxu1 %v19586_v48  ;;  %v19595_v48 = vand.u32 4294901760, %v14514_v46  ;;  %v19602_v46 = vand.u32 4294901760, %v14560_v20  ;;  %v19609_v20 = vand.u32 4294901760, %v19532_v11  ;;  %v19616_v11 = vand.u32 4294901760, %v19545_v50 }
 0x3b1   :  { %11844 = vmatprep.subr.bf16.mxu1 %v19587_v61  ;;  %v19596_v61 = vand.u32 4294901760, %v14519_v62  ;;  %v19603_v62 = vand.u32 4294901760, %v19574_v49  ;;  %v19611_v49 = vand.u32 4294901760, %v19535_v29  ;;  %v19618_v29 = vand.u32 4294901760, %v19550_v28 }
 0x3b2   :  { %v11859_v14 = vpack.c.bf16 %v19602_v46, %v19601_v18  ;;  %v11871_v32 = vpack.c.bf16 %v19616_v11, %v19615_v8  ;;  %v19623_v50 = vand.u32 4294901760, %v19561_v12  ;;  %v19625_v28 = vand.u32 4294901760, %v19564_v7  ;;  %v19632_v7 = vld [vmem:[#allocation73_spill] sm:$0xff]  ;;  %v19638_v18 = vld [vmem:[#allocation46_spill] sm:$0xff] }
 0x3b4   :  { %11846 = vmatpush3.bf16.msra.mxu1 %v19588_v59  ;;  %v11855_v59 = vpack.c.bf16 %v19596_v61, %v19595_v48 }
 0x3b5   :  { %11848 = vmatprep.subr.bf16.mxu1 %v19589_v24  ;;  %v19597_v24 = vand.u32 4294901760, %v19568_v4 }
 0x3b8   :  { %11850 = vmatpush3.bf16.msra.mxu1 %v19592_v10 }
 0x3b9   :  { %11852 = vmatprep.subr.bf16.mxu1 %v11851_v13  ;;  %v19605_v13 = vand.u32 4294901760, %v14575_v5  ;;  %v19612_v5 = vand.u32 4294901760, %v19534_v31  ;;  %v19619_v31 = vand.u32 4294901760, %v19554_v41  ;;  %v19626_v41 = vand.u32 4294901760, %v19563_v16 }
 0x3bb   :  { %2586 = vmatmul.mubr.f32.vlgmr.msra.gmra.mrb[36].mxu1 %v19597_v24  ;;  %v11867_v24 = vpack.c.bf16 %v19612_v5, %v19611_v49 }
 0x3bc   :  { %2593 = vmatprep.mubr.f32.mxu1 %v19598_v43  ;;  %11854 = vmatpush3.bf16.msra.mxu1 %v11853_v35  ;;  %v19606_v35 = vand.u32 4294901760, %v14580_v44  ;;  %v19613_v44 = vand.u32 4294901760, %v19543_v57  ;;  %v19620_v57 = vand.u32 4294901760, %v19553_v22 }
 0x3bd   :  { %11856 = vmatprep.subr.bf16.mxu1 %v11855_v59  ;;  %v19610_v59 = vand.u32 4294901760, %v14620_v38  ;;  %v19617_v38 = vand.u32 4294901760, %v19551_v25  ;;  %v19624_v25 = vand.u32 4294901760, %v19560_v40  ;;  %v19633_v40 = vld [vmem:[#allocation44_spill] sm:$0xff] }
 0x3be   :  { %v11861_v27 = vpack.c.bf16 %v19606_v35, %v19605_v13  ;;  %v11869_v4 = vpack.c.bf16 %v19614_v54, %v19613_v44  ;;  %v11875_v43 = vpack.c.bf16 %v19620_v57, %v19619_v31  ;;  %v19642_v13 = vld [vmem:[#allocation48_spill] sm:$0xff] }
 0x3bf   :  { %2597 = vmatmul.mubr.f32.gmra.mrb[38].mxu1 %v19603_v62  ;;  %v11865_v61 = vpack.c.bf16 %v19610_v59, %v19609_v20  ;;  %v11873_v48 = vpack.c.bf16 %v19618_v29, %v19617_v38  ;;  %v11879_v23 = vpack.c.bf16 %v19624_v25, %v19623_v50  ;;  %v19643_v35 = vand.u32 4294901760, %v19642_v13  ;;  %v19646_v20 = vld [vmem:[#allocation85_spill] sm:$0xff]  ;;  %v19651_v57 = vld [vmem:[#allocation52_spill] sm:$0xff] }
 0x3c0   :  { %11858 = vmatpush3.bf16.msra.mxu1 %v11857_v17  ;;  %2763 = vmatprep.mubr.f32.mxu1 %v19604_v45  ;;  %v11881_v17 = vpack.c.bf16 %v19626_v41, %v19625_v28  ;;  %v19655_v28 = vld [vmem:[#allocation55_spill] sm:$0xff] }
 0x3c1   :  { %11860 = vmatprep.subr.bf16.mxu1 %v11859_v14  ;;  %v19640_v14 = vld [vmem:[#allocation47_spill] sm:$0xff] }
 0x3c2   :  { %v19641_v62 = vand.u32 4294901760, %v19640_v14 }
 0x3c4   :  { %11862 = vmatpush3.bf16.msra.mxu1 %v11861_v27  ;;  %v3159_v27 = vsub.f32 %v19642_v13, %v19643_v35 }
 0x3c5   :  { %11864 = vmatprep.subr.bf16.mxu1 %v11863_v47  ;;  %v3166_v47 = vsub.f32 %v19644_v34, %v19645_v21 }
 0x3c6   :  { %v3160_v29 = vand.u32 4294901760, %v3159_v27  ;;  %v19672_v27 = vld [vmem:[#allocation71_spill] sm:$0xff] }
 0x3c7   :  { %v19673_v34 = vand.u32 4294901760, %v19672_v27 }
 0x3c8   :  { %11866 = vmatpush3.bf16.msra.mxu1 %v11865_v61 }
 0x3c9   :  { %11868 = vmatprep.subr.bf16.mxu1 %v11867_v24  ;;  %v19647_v24 = vld [vmem:[#allocation50_spill] sm:$0xff]  ;;  %v3089_v21 = vsub.f32 %v19672_v27, %v19673_v34  ;;  %v19704_v34 = vld [vmem:[#allocation32_spill] sm:$0xff] }
 0x3ca   :  { %v19648_v44 = vand.u32 4294901760, %v19647_v24  ;;  %v19703_v27 = vld [vmem:[#allocation30_spill] sm:$0xff] }
 0x3cc   :  { %11870 = vmatpush3.bf16.msra.mxu1 %v11869_v4  ;;  %v3047_v54 = vsub.f32 %v19647_v24, %v19648_v44  ;;  %v19649_v4 = vld [vmem:[#allocation51_spill] sm:$0xff] }
 0x3cd   :  { %11872 = vmatprep.subr.bf16.mxu1 %v11871_v32  ;;  %v19650_v8 = vand.u32 4294901760, %v19649_v4 }
 0x3ce   :  { %v3048_v25 = vand.u32 4294901760, %v3047_v54  ;;  %v19676_v54 = vld [vmem:[#allocation75_spill] sm:$0xff] }
 0x3cf   :  { %v3054_v11 = vsub.f32 %v19649_v4, %v19650_v8  ;;  %v19677_v4 = vand.u32 4294901760, %v19676_v54 }
 0x3d0   :  { %11874 = vmatpush3.bf16.msra.mxu1 %v11873_v48  ;;  %v3167_v48 = vand.u32 4294901760, %v3166_v47  ;;  %v19674_v47 = vld [vmem:[#allocation72_spill] sm:$0xff] }
 0x3d1   :  { %11876 = vmatprep.subr.bf16.mxu1 %v11875_v43  ;;  %v19652_v43 = vand.u32 4294901760, %v19651_v57  ;;  %v3215_v8 = vsub.f32 %v19676_v54, %v19677_v4  ;;  %v19708_v54 = vld [vmem:[#allocation41_spill] sm:$0xff] }
 0x3d3   :  { %v3173_v56 = vsub.f32 %v19651_v57, %v19652_v43  ;;  %v19680_v43 = vld [vmem:[#allocation81_spill] sm:$0xff] }
 0x3d4   :  { %11878 = vmatpush3.bf16.msra.mxu1 %v11877_v52  ;;  %v19654_v52 = vand.u32 4294901760, %v19653_v63 }
 0x3d5   :  { %11880 = vmatprep.subr.bf16.mxu1 %v11879_v23  ;;  %v3055_v23 = vand.u32 4294901760, %v3054_v11  ;;  %v19678_v11 = vld [vmem:[#allocation77_spill] sm:$0xff] }
 0x3d6   :  { %v3180_v50 = vsub.f32 %v19653_v63, %v19654_v52  ;;  %v19682_v52 = vld [vmem:[#allocation83_spill] sm:$0xff] }
 0x3d8   :  { %11882 = vmatpush3.bf16.msra.mxu1 %v11881_v17  ;;  %v19657_v17 = vld [vmem:[#allocation56_spill] sm:$0xff] }
 0x3d9   :  { %11884 = vmatprep.subr.bf16.mxu1 %v19566_v58  ;;  %v19628_v58 = vand.u32 4294901760, %v19522_v9 }
 0x3db   :  { %2765 = vmatmul.mubr.f32.vlgmr.msra.gmra.mrb[40].mxu1 %v14981_v2  ;;  %v3138_v12 = vsub.f32 %v19522_v9, %v19628_v58 }
 0x3dc   :  { %2770 = vmatprep.mubr.f32.mxu1 %v14996_v26  ;;  %11886 = vmatpush3.bf16.msra.mxu1 %v19571_v1  ;;  %v19631_v1 = vld [vmem:[#allocation39_spill] sm:$0xff] }
 0x3dd   :  { %11888 = vmatprep.subr.bf16.mxu1 %v19573_v0  ;;  %v3139_v51 = vand.u32 4294901760, %v3138_v12  ;;  %v11955_v12 = vpack.c.bf16 %v3167_v48, %v3160_v29  ;;  %v3090_v29 = vand.u32 4294901760, %v3089_v21  ;;  %v19705_v21 = vld [vmem:[#allocation34_spill] sm:$0xff] }
 0x3df   :  { %2772 = vmatmul.mubr.f32.gmra.mrb[42].mxu1 %v15003_v42 }
 0x3e0   :  { %11890 = vmatpush3.bf16.msra.mxu1 %v19577_v53  ;;  %2874 = vmatprep.mubr.f32.mxu1 %v19604_v45  ;;  %v3131_v53 = vsub.f32 %v19521_v15, %v19627_v37  ;;  %v19634_v15 = vand.u32 4294901760, %v19633_v40  ;;  %v3040_v45 = vsub.f32 %v19640_v14, %v19641_v62  ;;  %v19658_v37 = vand.u32 4294901760, %v19657_v17 }
 0x3e1   :  { %11892 = vmatprep.subr.bf16.mxu1 %v19579_v36  ;;  %v19635_v36 = vld [vmem:[#allocation45_spill] sm:$0xff] }
 0x3e2   :  { %v3132_v22 = vand.u32 4294901760, %v3131_v53  ;;  %v3145_v16 = vsub.f32 %v19633_v40, %v19634_v15  ;;  %v19636_v9 = vand.u32 4294901760, %v19635_v36  ;;  %v3041_v38 = vand.u32 4294901760, %v3040_v45 }
 0x3e3   :  { %v3068_v53 = vsub.f32 %v19657_v17, %v19658_v37  ;;  %v19686_v37 = vld [vmem:[#allocation89_spill] sm:$0xff] }
 0x3e4   :  { %11894 = vmatpush3.bf16.msra.mxu1 %v19580_v55  ;;  %v19629_v55 = vand.u32 4294901760, %v14503_v30  ;;  %v3152_v0 = vsub.f32 %v19635_v36, %v19636_v9  ;;  %v11947_v59 = vpack.c.bf16 %v3139_v51, %v3132_v22  ;;  %v3146_v61 = vand.u32 4294901760, %v3145_v16  ;;  %v19665_v9 = vld [vmem:[#allocation15_spill] sm:$0xff] }
 0x3e5   :  { %11896 = vmatprep.subr.bf16.mxu1 %v19581_v19  ;;  %v11957_v51 = vpack.c.bf16 %v3055_v23, %v3048_v25  ;;  %v3069_v15 = vand.u32 4294901760, %v3068_v53  ;;  %v3216_v23 = vand.u32 4294901760, %v3215_v8  ;;  %v19687_v53 = vand.u32 4294901760, %v19686_v37 }
 0x3e6   :  { %v3019_v19 = vsub.f32 %v14503_v30, %v19629_v55  ;;  %v3153_v49 = vand.u32 4294901760, %v3152_v0  ;;  %v3174_v55 = vand.u32 4294901760, %v3173_v56  ;;  %v19666_v0 = vld [vmem:[#allocation64_spill] sm:$0xff]  ;;  %v19681_v56 = vand.u32 4294901760, %v19680_v43 }
 0x3e8   :  { %11898 = vmatpush3.bf16.msra.mxu1 %v19582_v60  ;;  %v19630_v60 = vand.u32 4294901760, %v14508_v6  ;;  %v11951_v31 = vpack.c.bf16 %v3153_v49, %v3146_v61  ;;  %v3103_v63 = vsub.f32 %v19680_v43, %v19681_v56  ;;  %v19712_v43 = vld [vmem:[#allocation93_spill] sm:$0xff]  ;;  %v19713_v56 = vld [vmem:[#allocation103_spill] sm:$0xff] }
 0x3e9   :  { %11900 = vmatprep.subr.bf16.mxu1 %v19583_v3 }
 0x3ea   :  { %v3026_v3 = vsub.f32 %v14508_v6, %v19630_v60  ;;  %v19639_v6 = vand.u32 4294901760, %v19638_v18  ;;  %v19659_v60 = vld [vmem:[#allocation59_spill] sm:$0xff] }
 0x3ec   :  { %11902 = vmatpush3.bf16.msra.mxu1 %v19584_v33  ;;  %v3020_v33 = vand.u32 4294901760, %v3019_v19  ;;  %v3027_v30 = vand.u32 4294901760, %v3026_v3  ;;  %v3033_v46 = vsub.f32 %v19638_v18, %v19639_v6  ;;  %v3181_v19 = vand.u32 4294901760, %v3180_v50 }
 0x3ed   :  { %11904 = vmatprep.subr.bf16.mxu1 %v19585_v39  ;;  %v19637_v39 = vld [vmem:[#allocation78_spill] sm:$0xff]  ;;  %v19683_v50 = vand.u32 4294901760, %v19682_v52 }
 0x3ee   :  { %v11949_v5 = vpack.c.bf16 %v3027_v30, %v3020_v33  ;;  %v3034_v32 = vand.u32 4294901760, %v3033_v46  ;;  %v19667_v33 = vand.u32 4294901760, %v19666_v0  ;;  %v19670_v46 = vld [vmem:[#allocation68_spill] sm:$0xff]  ;;  %v11959_v62 = vpack.c.bf16 %v3181_v19, %v3174_v55 }
 0x3ef   :  { %v3110_v25 = vsub.f32 %v19682_v52, %v19683_v50  ;;  %v3104_v55 = vand.u32 4294901760, %v3103_v63  ;;  %v19714_v63 = vand.u32 4294901760, %v19713_v56  ;;  %v19715_v52 = vld [vmem:[#allocation107_spill] sm:$0xff] }
 0x3f0   :  { %11906 = vmatpush3.bf16.msra.mxu1 %v19631_v1  ;;  %v11953_v58 = vpack.c.bf16 %v3041_v38, %v3034_v32  ;;  %v19661_v1 = vld [vmem:[#allocation60_spill] sm:$0xff]  ;;  %v3082_v30 = vsub.f32 %v19666_v0, %v19667_v33  ;;  %v19679_v32 = vand.u32 4294901760, %v19678_v11  ;;  %v19716_v50 = vand.u32 4294901760, %v19715_v52  ;;  %v3829_v56 = vld [vmem:[#allocation9 + $0x3b0] sm:$0xff] }
 0x3f1   :  { %11908 = vmatprep.subr.bf16.mxu1 %v19632_v7  ;;  %v19662_v7 = vand.u32 4294901760, %v19661_v1  ;;  %v3111_v19 = vand.u32 4294901760, %v3110_v25  ;;  %v19717_v25 = vld [vmem:[#allocation109_spill] sm:$0xff]  ;;  %v3857_v52 = vand.u32 4294901760, %v3829_v56 }
 0x3f2   :  { %v3083_v49 = vand.u32 4294901760, %v3082_v30  ;;  %v3222_v38 = vsub.f32 %v19678_v11, %v19679_v32  ;;  %v19692_v30 = vld [vmem:[#allocation18_spill] sm:$0xff]  ;;  %v19709_v11 = vld [vmem:[#allocation76_spill] sm:$0xff] }
 0x3f3   :  { %v3194_v22 = vsub.f32 %v19661_v1, %v19662_v7  ;;  %v19690_v1 = vld [vmem:[#allocation95_spill] sm:$0xff] }
 0x3f4   :  { %11910 = vmatpush3.bf16.msra.mxu1 %v19637_v39  ;;  %v19668_v39 = vld [vmem:[#allocation67_spill] sm:$0xff]  ;;  %v19691_v7 = vand.u32 4294901760, %v19690_v1 }
 0x3f5   :  { %11912 = vmatprep.subr.bf16.mxu1 %v19646_v20  ;;  %v19669_v18 = vand.u32 4294901760, %v19668_v39  ;;  %v3195_v13 = vand.u32 4294901760, %v3194_v22  ;;  %v19675_v20 = vand.u32 4294901760, %v19674_v47 }
 0x3f6   :  { %v3124_v22 = vsub.f32 %v19690_v1, %v19691_v7 }
 0x3f7   :  { %v3201_v6 = vsub.f32 %v19668_v39, %v19669_v18  ;;  %v19693_v39 = vld [vmem:[#allocation26_spill] sm:$0xff]  ;;  %v19694_v18 = vld [vmem:[#allocation104_spill] sm:$0xff] }
 0x3f8   :  { %11914 = vmatpush3.bf16.msra.mxu1 %v19592_v10  ;;  %v19656_v10 = vand.u32 4294901760, %v19655_v28 }
 0x3f9   :  { %11948 = vmatprep.subr.bf16.mxu1 %v11947_v59  ;;  %v3096_v59 = vsub.f32 %v19674_v47, %v19675_v20  ;;  %v19706_v47 = vld [vmem:[#allocation36_spill] sm:$0xff] }
 0x3fa   :  { %v3061_v41 = vsub.f32 %v19655_v28, %v19656_v10  ;;  %v3223_v28 = vand.u32 4294901760, %v3222_v38  ;;  %v19684_v10 = vld [vmem:[#allocation88_spill] sm:$0xff] }
 0x3fb   :  { %2876 = vmatmul.mubr.f32.vlgmr.msra.gmra.mrb[44].mxu1 %v14981_v2  ;;  %v19660_v2 = vand.u32 4294901760, %v19659_v60  ;;  %v3097_v48 = vand.u32 4294901760, %v3096_v59 }
 0x3fc   :  { %2881 = vmatprep.mubr.f32.mxu1 %v14996_v26  ;;  %11950 = vmatpush3.bf16.msra.mxu1 %v11949_v5  ;;  %v3062_v40 = vand.u32 4294901760, %v3061_v41  ;;  %v19663_v26 = vld [vmem:[#allocation63_spill] sm:$0xff]  ;;  %v3202_v5 = vand.u32 4294901760, %v3201_v6  ;;  %v19685_v41 = vand.u32 4294901760, %v19684_v10  ;;  %v19695_v6 = vld [vmem:[#allocation25_spill] sm:$0xff] }
 0x3fd   :  { %11952 = vmatprep.subr.bf16.mxu1 %v11951_v31  ;;  %v3187_v3 = vsub.f32 %v19659_v60, %v19660_v2  ;;  %v19664_v16 = vand.u32 4294901760, %v19663_v26  ;;  %v19688_v60 = vld [vmem:[#allocation94_spill] sm:$0xff] }
 0x3fe   :  { %v11961_v35 = vpack.c.bf16 %v3069_v15, %v3062_v40  ;;  %v3229_v17 = vsub.f32 %v19684_v10, %v19685_v41  ;;  %v19689_v2 = vand.u32 4294901760, %v19688_v60 }
 0x3ff   :  { %2883 = vmatmul.mubr.f32.gmra.mrb[46].mxu1 %v15003_v42  ;;  %v3075_v36 = vsub.f32 %v19663_v26, %v19664_v16  ;;  %v19671_v42 = vand.u32 4294901760, %v19670_v46  ;;  %v3188_v45 = vand.u32 4294901760, %v3187_v3  ;;  %v11973_v26 = vpack.c.bf16 %v3111_v19, %v3104_v55 }
 0x400   :  { %11954 = vmatpush3.bf16.msra.mxu1 %v11953_v58  ;;  %3240 = vmatprep.mubr.f32.mxu1 %v19665_v9  ;;  %v3236_v58 = vsub.f32 %v19686_v37, %v19687_v53  ;;  %v3117_v3 = vsub.f32 %v19688_v60, %v19689_v2  ;;  %v3230_v40 = vand.u32 4294901760, %v3229_v17 }
 0x401   :  { %v3208_v14 = vsub.f32 %v19670_v46, %v19671_v42  ;;  %11956 = vmatprep.subr.bf16.mxu1 %v11955_v12  ;;  %v3076_v61 = vand.u32 4294901760, %v3075_v36  ;;  %v11963_v44 = vpack.c.bf16 %v3195_v13, %v3188_v45  ;;  %v11969_v12 = vpack.c.bf16 %v3097_v48, %v3090_v29  ;;  %v19696_v46 = vld [vmem:[#allocation20_spill] sm:$0xff]  ;;  %v19697_v42 = vld [vmem:[#allocation105_spill] sm:$0xff] }
 0x402   :  { %v3237_v15 = vand.u32 4294901760, %v3236_v58  ;;  %v3118_v16 = vand.u32 4294901760, %v3117_v3  ;;  %v3125_v36 = vand.u32 4294901760, %v3124_v22  ;;  %v19701_v13 = vld [vmem:[#allocation13_spill] sm:$0xff] }
 0x403   :  { %v3209_v24 = vand.u32 4294901760, %v3208_v14  ;;  %v11965_v31 = vpack.c.bf16 %v3083_v49, %v3076_v61  ;;  %v19698_v14 = vld [vmem:[#allocation28_spill] sm:$0xff]  ;;  %v19707_v61 = vld [vmem:[#allocation38_spill] sm:$0xff] }
 0x404   :  { %11958 = vmatpush3.bf16.msra.mxu1 %v11957_v51  ;;  %v11971_v51 = vpack.c.bf16 %v3223_v28, %v3216_v23  ;;  %v11975_v0 = vpack.c.bf16 %v3237_v15, %v3230_v40  ;;  %v11977_v33 = vpack.c.bf16 %v3125_v36, %v3118_v16  ;;  %v19718_v23 = vand.u32 4294901760, %v19717_v25  ;;  %v3830_v25 = vld [vmem:[#allocation9 + $0x3b8] sm:$0xff] }
 0x405   :  { %11960 = vmatprep.subr.bf16.mxu1 %v11959_v62  ;;  %v11967_v57 = vpack.c.bf16 %v3209_v24, %v3202_v5  ;;  %v19699_v62 = vld [vmem:[#allocation16_spill] sm:$0xff] }
 0x406   :  { %v19700_v45 = vand.u32 4294901760, %v19699_v62 }
 0x408   :  { %11962 = vmatpush3.bf16.msra.mxu1 %v11961_v35  ;;  %v19702_v35 = vld [vmem:[#allocation23_spill] sm:$0xff] }
 0x409   :  { %11964 = vmatprep.subr.bf16.mxu1 %v11963_v44 }
 0x40c   :  { %11966 = vmatpush3.bf16.msra.mxu1 %v11965_v31  ;;  %v19710_v31 = vld [vmem:[#allocation82_spill] sm:$0xff] }
 0x40d   :  { %11968 = vmatprep.subr.bf16.mxu1 %v11967_v57  ;;  %v19711_v57 = vld [vmem:[#allocation87_spill] sm:$0xff] }
 0x410   :  { %11970 = vmatpush3.bf16.msra.mxu1 %v11969_v12 }
 0x411   :  { %11972 = vmatprep.subr.bf16.mxu1 %v11971_v51 }
 0x414   :  { %11974 = vmatpush3.bf16.msra.mxu1 %v11973_v26 }
 0x415   :  { %11976 = vmatprep.subr.bf16.mxu1 %v11975_v0 }
 0x418   :  { %11978 = vmatpush3.bf16.msra.mxu1 %v11977_v33 }
 0x419   :  { %12012 = vmatprep.subr.bf16.mxu1 %v19692_v30 }
 0x41b   :  { %3242 = vmatmul.mubr.f32.vlgmr.msra.gmra.mrb[48].mxu1 %v19693_v39 }
 0x41c   :  { %3247 = vmatprep.mubr.f32.mxu1 %v19694_v18  ;;  %12014 = vmatpush3.bf16.msra.mxu1 %v19695_v6 }
 0x41d   :  { %12016 = vmatprep.subr.bf16.mxu1 %v19696_v46 }
 0x41f   :  { %3249 = vmatmul.mubr.f32.gmra.mrb[50].mxu1 %v19697_v42 }
 0x420   :  { %12018 = vmatpush3.bf16.msra.mxu1 %v19698_v14  ;;  %3500 = vmatprep.mubr.f32.mxu1 %v19700_v45 }
 0x421   :  { %12020 = vmatprep.subr.bf16.mxu1 %v19701_v13 }
 0x424   :  { %12022 = vmatpush3.bf16.msra.mxu1 %v19702_v35 }
 0x425   :  { %12024 = vmatprep.subr.bf16.mxu1 %v19703_v27 }
 0x428   :  { %12026 = vmatpush3.bf16.msra.mxu1 %v19704_v34 }
 0x429   :  { %12028 = vmatprep.subr.bf16.mxu1 %v19705_v21 }
 0x42c   :  { %12030 = vmatpush3.bf16.msra.mxu1 %v19706_v47  ;;  %v9289_v20 = vpop.f32.mrb[24].mxu1 }
 0x42d   :  { %v9517_v59 = vpop.f32.mrb[26].mxu0  ;;  %12032 = vmatprep.subr.bf16.mxu1 %v19707_v61  ;;  %v9290_v49 = vpop.f32.mrb[25].mxu1 }
 0x42e   :  { %v9518_v5 = vpop.f32.mrb[27].mxu0  ;;  %v9291_v24 = vadd.f32 %v9290_v49, %v9289_v20 }
 0x42f   :  { %v15484_v44 = vadd.f32 %v9518_v5, %v9517_v59  ;;  %v3824_v5 = vld [vmem:[#allocation9 + $0x388] sm:$0xff] }
 0x430   :  { %12034 = vmatpush3.bf16.msra.mxu1 %v19708_v54  ;;  %v9292_v4 = vpop.f32.mrb[26].mxu1 }
 0x431   :  { %v9520_v8 = vpop.f32.mrb[28].mxu0  ;;  %12036 = vmatprep.subr.bf16.mxu1 %v19709_v11  ;;  %v9293_v32 = vpop.f32.mrb[27].mxu1 }
 0x432   :  { %v9521_v38 = vpop.f32.mrb[29].mxu0  ;;  %v9294_v29 = vadd.f32 %v9293_v32, %v9292_v4  ;;  %v3827_v32 = vld [vmem:[#allocation9 + $0x3a0] sm:$0xff] }
 0x433   :  { %v15488_v48 = vadd.f32 %v9521_v38, %v9520_v8 }
 0x434   :  { %12038 = vmatpush3.bf16.msra.mxu1 %v19710_v31 }
 0x435   :  { %12040 = vmatprep.subr.bf16.mxu1 %v19711_v57 }
 0x438   :  { %12042 = vmatpush3.bf16.msra.mxu1 %v19712_v43 }
 0x439   :  { %12076 = vmatprep.subr.bf16.mxu1 %v19692_v30 }
 0x43b   :  { %3504 = vmatmul.mubr.f32.vlgmr.msra.gmra.mrb[52].mxu1 %v19714_v63 }
 0x43c   :  { %3511 = vmatprep.mubr.f32.mxu1 %v19716_v50  ;;  %12078 = vmatpush3.bf16.msra.mxu1 %v19695_v6 }
 0x43d   :  { %12080 = vmatprep.subr.bf16.mxu1 %v19696_v46 }
 0x43f   :  { %3515 = vmatmul.mubr.f32.gmra.mrb[54].mxu1 %v19718_v23  ;;  %v3831_v23 = vld [vmem:[#allocation9 + $0x3c0] sm:$0xff] }
 0x440   :  { %12082 = vmatpush3.bf16.msra.mxu1 %v19698_v14  ;;  %3792 = vmatprep.mubr.f32.mxu1 %v19665_v9 }
 0x441   :  { %12084 = vmatprep.subr.bf16.mxu1 %v19701_v13 }
 0x444   :  { %12086 = vmatpush3.bf16.msra.mxu1 %v19702_v35 }
 0x445   :  { %12088 = vmatprep.subr.bf16.mxu1 %v19703_v27 }
 0x448   :  { %12090 = vmatpush3.bf16.msra.mxu1 %v19704_v34 }
 0x449   :  { %12092 = vmatprep.subr.bf16.mxu1 %v19705_v21 }
 0x44c   :  { %12094 = vmatpush3.bf16.msra.mxu1 %v19706_v47  ;;  %v9327_v28 = vpop.f32.mrb[28].mxu1 }
 0x44d   :  { %v9593_v10 = vpop.f32.mrb[30].mxu0  ;;  %12096 = vmatprep.subr.bf16.mxu1 %v19707_v61  ;;  %v9328_v41 = vpop.f32.mrb[29].mxu1 }
 0x44e   :  { %v9594_v17 = vpop.f32.mrb[31].mxu0  ;;  %v9329_v37 = vadd.f32 %v9328_v41, %v9327_v28  ;;  %v3860_v28 = vand.u32 4294901760, %v3830_v25 }
 0x44f   :  { %v15511_v9 = vadd.f32 %v9594_v17, %v9593_v10  ;;  %v3863_v10 = vand.u32 4294901760, %v3831_v23  ;;  %v3832_v17 = vld [vmem:[#allocation9 + $0x3c8] sm:$0xff] }
 0x450   :  { %12098 = vmatpush3.bf16.msra.mxu1 %v19708_v54  ;;  %v2326_v53 = vadd.f32 %v9329_v37, %v9291_v24  ;;  %v9330_v58 = vpop.f32.mrb[30].mxu1  ;;  %v3825_v24 = vld [vmem:[#allocation9 + $0x390] sm:$0xff]  ;;  %v3842_v54 = vand.u32 4294901760, %v3824_v5 }
 0x451   :  { %v9596_v12 = vpop.f32.mrb[32].mxu0  ;;  %12100 = vmatprep.subr.bf16.mxu1 %v19709_v11  ;;  %v9331_v55 = vpop.f32.mrb[31].mxu1  ;;  %v3845_v4 = vand.u32 4294901760, %v3825_v24  ;;  %v3826_v11 = vld [vmem:[#allocation9 + $0x398] sm:$0xff]  ;;  %v15543_v41 = vpack.c.bf16 %v3863_v10, %v3860_v28  ;;  %v3833_v37 = vld [vmem:[#allocation9 + $0x3d0] sm:$0xff] }
 0x452   :  { %v9597_v19 = vpop.f32.mrb[33].mxu0  ;;  %v9332_v60 = vadd.f32 %v9331_v55, %v9330_v58  ;;  %v3848_v38 = vand.u32 4294901760, %v3826_v11  ;;  %v3869_v58 = vand.u32 4294901760, %v3833_v37 }
 0x453   :  { %v15515_v2 = vadd.f32 %v9597_v19, %v9596_v12  ;;  %v15531_v8 = vpack.c.bf16 %v3845_v4, %v3842_v54  ;;  %v15546_v12 = vsub.f32 %v3824_v5, %v3842_v54  ;;  %v15548_v55 = vsub.f32 %v3825_v24, %v3845_v4 }
 0x454   :  { %12102 = vmatpush3.bf16.msra.mxu1 %v19710_v31  ;;  %v2333_v3 = vadd.f32 %v9332_v60, %v9294_v29  ;;  %v3851_v29 = vand.u32 4294901760, %v3827_v32  ;;  %v19719_v31 = vmov 0.0|0.0   ;;  %v15550_v19 = vsub.f32 %v3826_v11, %v3848_v38 }
 0x455   :  { %12104 = vmatprep.subr.bf16.mxu1 %v19711_v57  ;;  %12109 = vmatpush3.bf16.msra.mxu0 %v15531_v8 }
 0x456   :  { %12110 = vmatprep.subr.bf16.mxu0 %v19719_v31  ;;  %v15535_v57 = vpack.c.bf16 %v3851_v29, %v3848_v38  ;;  %v15552_v60 = vsub.f32 %v3827_v32, %v3851_v29  ;;  %v3935_v38 = vand.u32 4294901760, %v15546_v12  ;;  %v18726_v29 = vand.u32 4294901760, %v15548_v55 }
 0x458   :  { %12106 = vmatpush3.bf16.msra.mxu1 %v19712_v43  ;;  %v3828_v43 = vld [vmem:[#allocation9 + $0x3a8] sm:$0xff] }
 0x459   :  { %12112 = vmatpush3.bf16.msra.mxu0 %v15535_v57  ;;  %v3854_v63 = vand.u32 4294901760, %v3828_v43 }
 0x45a   :  { %12113 = vmatprep.subr.bf16.mxu0 %v19719_v31 }
 0x45b   :  { %3794 = vmatmul.mubr.f32.vlgmr.msra.gmra.mrb[56].mxu1 %v19693_v39  ;;  %v15539_v50 = vpack.c.bf16 %v3857_v52, %v3854_v63 }
 0x45c   :  { %3799 = vmatprep.mubr.f32.mxu1 %v19694_v18 }
 0x45d   :  { %12115 = vmatpush3.bf16.msra.mxu0 %v15539_v50 }
 0x45e   :  { %12116 = vmatprep.subr.bf16.mxu0 %v19719_v31 }
 0x45f   :  { %3801 = vmatmul.mubr.f32.gmra.mrb[58].mxu1 %v19697_v42 }
 0x461   :  { %12118 = vmatpush3.bf16.msra.mxu0 %v15543_v41 }
 0x462   :  { %12119 = vmatprep.subr.bf16.mxu0 %v19719_v31 }
 0x46d   :  { %v9365_v1 = vpop.f32.mrb[32].mxu1 }
 0x46e   :  { %v9669_v7 = vpop.f32.mrb[34].mxu0  ;;  %v9366_v22 = vpop.f32.mrb[33].mxu1 }
 0x46f   :  { %v9367_v51 = vadd.f32 %v9366_v22, %v9365_v1  ;;  %v9670_v40 = vpop.f32.mrb[35].mxu0  ;;  %v3835_v1 = vld [vmem:[#allocation9 + $0x3e0] sm:$0xff]  ;;  %v15555_v22 = vsub.f32 %v3828_v43, %v3854_v63 }
 0x470   :  { %v15523_v15 = vadd.f32 %v9670_v40, %v9669_v7  ;;  %v3836_v7 = vld [vmem:[#allocation9 + $0x3e8] sm:$0xff]  ;;  %v15559_v40 = vsub.f32 %v3830_v25, %v3860_v28 }
 0x471   :  { %v2471_v26 = vadd.f32 %v9367_v51, %v2326_v53  ;;  %v9368_v16 = vpop.f32.mrb[34].mxu1  ;;  %v3866_v53 = vand.u32 4294901760, %v3832_v17  ;;  %v15557_v51 = vsub.f32 %v3829_v56, %v3857_v52  ;;  %v3936_v52 = vsub.f32 %v15546_v12, %v3935_v38 }
 0x472   :  { %v9672_v36 = vpop.f32.mrb[36].mxu0  ;;  %v9369_v0 = vpop.f32.mrb[35].mxu1 }
 0x473   :  { %v9370_v33 = vadd.f32 %v9369_v0, %v9368_v16  ;;  %v9673_v30 = vpop.f32.mrb[37].mxu0  ;;  %v3837_v16 = vld [vmem:[#allocation9 + $0x3f0] sm:$0xff]  ;;  %v3839_v0 = vld [vmem:[#allocation9 + $0x400] sm:$0xff] }
 0x474   :  { %v15525_v6 = vadd.f32 %v9673_v30, %v9672_v36  ;;  %v3838_v36 = vld [vmem:[#allocation9 + $0x3f8] sm:$0xff]  ;;  %v15565_v30 = vsub.f32 %v3832_v17, %v3866_v53 }
 0x475   :  { %v2480_v39 = vadd.f32 %v9370_v33, %v2333_v3  ;;  %v3834_v3 = vld [vmem:[#allocation9 + $0x3d8] sm:$0xff]  ;;  %v15563_v33 = vpack.c.bf16 %v3869_v58, %v3866_v53 }
 0x477   :  { %12121 = vmatpush3.bf16.msra.mxu0 %v15563_v33 }
 0x478   :  { %12122 = vmatprep.subr.bf16.mxu0 %v19719_v31 }
 0x48e   :  { %v9403_v46 = vpop.f32.mrb[36].mxu1 }
 0x48f   :  { %v9404_v18 = vpop.f32.mrb[37].mxu1 }
 0x490   :  { %v9405_v14 = vadd.f32 %v9404_v18, %v9403_v46  ;;  %v3872_v46 = vand.u32 4294901760, %v3834_v3  ;;  %v3875_v18 = vand.u32 4294901760, %v3835_v1 }
 0x492   :  { %v2588_v42 = vadd.f32 %v9405_v14, %v2471_v26  ;;  %v9406_v62 = vpop.f32.mrb[38].mxu1  ;;  %v15561_v26 = vsub.f32 %v3831_v23, %v3863_v10  ;;  %v3878_v14 = vand.u32 4294901760, %v3836_v7  ;;  %v3937_v23 = vand.u32 4294901760, %v3936_v52 }
 0x493   :  { %v9407_v45 = vpop.f32.mrb[39].mxu1  ;;  %v18724_v10 = vand.u32 4294901760, %v15552_v60 }
 0x494   :  { %v9408_v13 = vadd.f32 %v9407_v45, %v9406_v62  ;;  %v3881_v62 = vand.u32 4294901760, %v3837_v16  ;;  %v3884_v45 = vand.u32 4294901760, %v3838_v36 }
 0x496   :  { %v2599_v35 = vadd.f32 %v9408_v13, %v2480_v39  ;;  %v15567_v39 = vsub.f32 %v3833_v37, %v3869_v58  ;;  %v3887_v13 = vand.u32 4294901760, %v3839_v0  ;;  %v15586_v54 = vpack.c.bf16 %v3881_v62, %v3878_v14 }
 0x498   :  { %v15594_v63 = vpack.c.bf16 %v3887_v13, %v3884_v45 }
 0x4ae   :  { %v9441_v27 = vpop.f32.mrb[40].mxu1 }
 0x4af   :  { %v9442_v34 = vpop.f32.mrb[41].mxu1 }
 0x4b0   :  { %v9443_v21 = vadd.f32 %v9442_v34, %v9441_v27  ;;  %v15575_v27 = vsub.f32 %v3835_v1, %v3875_v18  ;;  %v15577_v34 = vsub.f32 %v3836_v7, %v3878_v14  ;;  %v18723_v1 = vand.u32 4294901760, %v15555_v22 }
 0x4b1   :  { %v18720_v14 = vand.u32 4294901760, %v15561_v26 }
 0x4b2   :  { %v15527_v47 = vadd.f32 %v9443_v21, %v2588_v42  ;;  %v9444_v20 = vpop.f32.mrb[42].mxu1  ;;  %v15570_v42 = vsub.f32 %v3834_v3, %v3872_v46 }
 0x4b3   :  { %v9445_v59 = vpop.f32.mrb[43].mxu1 }
 0x4b4   :  { %v9446_v61 = vadd.f32 %v9445_v59, %v9444_v20  ;;  %v15579_v20 = vsub.f32 %v3837_v16, %v3881_v62  ;;  %v15581_v59 = vsub.f32 %v3838_v36, %v3884_v45  ;;  %v3964_v16 = vsub.f32 %v15555_v22, %v18723_v1 }
 0x4b6   :  { %v15529_v49 = vadd.f32 %v9446_v61, %v2599_v35  ;;  %v15573_v35 = vpack.c.bf16 %v3875_v18, %v3872_v46  ;;  %v15583_v61 = vsub.f32 %v3839_v0, %v3887_v13  ;;  %v3965_v0 = vand.u32 4294901760, %v3964_v16 }
 0x4b7   :  { %v18721_v18 = vand.u32 4294901760, %v15559_v40  ;;  %v3985_v13 = vsub.f32 %v15561_v26, %v18720_v14  ;;  %v18713_v16 = vand.u32 4294901760, %v15577_v34 }
 0x4b8   :  { %12124 = vmatpush3.bf16.msra.mxu0 %v15573_v35 }
 0x4b9   :  { %12125 = vmatprep.subr.bf16.mxu0 %v19719_v31  ;;  %v3978_v45 = vsub.f32 %v15559_v40, %v18721_v18 }
 0x4bc   :  { %12127 = vmatpush3.bf16.msra.mxu0 %v15586_v54 }
 0x4bd   :  { %12128 = vmatprep.subr.bf16.mxu0 %v19719_v31 }
 0x4c0   :  { %12130 = vmatpush3.bf16.msra.mxu0 %v15594_v63 }
 0x4c1   :  { %12131 = vmatprep.subr.bf16.mxu0 %v19719_v31 }
 0x4ce   :  { %v9479_v21 = vpop.f32.mrb[44].mxu1 }
 0x4cf   :  { %v9480_v5 = vpop.f32.mrb[45].mxu1 }
 0x4d0   :  { %v9481_v24 = vadd.f32 %v9480_v5, %v9479_v21  ;;  %v3979_v21 = vand.u32 4294901760, %v3978_v45  ;;  %v3986_v5 = vand.u32 4294901760, %v3985_v13 }
 0x4d2   :  { %v2878_v4 = vadd.f32 %v9481_v24, %v15527_v47  ;;  %v9482_v11 = vpop.f32.mrb[46].mxu1  ;;  %v3943_v47 = vsub.f32 %v15548_v55, %v18726_v29  ;;  %v18719_v24 = vand.u32 4294901760, %v15565_v30 }
 0x4d3   :  { %v9483_v32 = vpop.f32.mrb[47].mxu1 }
 0x4d4   :  { %v9484_v43 = vadd.f32 %v9483_v32, %v9482_v11  ;;  %v2997_v56 = vadd.f32 %v15484_v44, %v2878_v4  ;;  %v3944_v28 = vand.u32 4294901760, %v3943_v47  ;;  %v18725_v44 = vand.u32 4294901760, %v15550_v19 }
 0x4d5   :  { %v18716_v4 = vand.u32 4294901760, %v15567_v39  ;;  %v15639_v11 = vpack.c.bf16 %v3986_v5, %v3979_v21  ;;  %v3992_v32 = vsub.f32 %v15565_v30, %v18719_v24 }
 0x4d6   :  { %v2885_v25 = vadd.f32 %v9484_v43, %v15529_v49  ;;  %v15609_v37 = vpack.c.bf16 %v3944_v28, %v3937_v23  ;;  %v3950_v53 = vsub.f32 %v15550_v19, %v18725_v44  ;;  %v3957_v49 = vsub.f32 %v15552_v60, %v18724_v10 }
 0x4d7   :  { %v3999_v43 = vsub.f32 %v15567_v39, %v18716_v4  ;;  %v3993_v52 = vand.u32 4294901760, %v3992_v32  ;;  %v18714_v23 = vand.u32 4294901760, %v15575_v27 }
 0x4d8   :  { %v3012_v17 = vadd.f32 %v15488_v48, %v2885_v25  ;;  %v3951_v58 = vand.u32 4294901760, %v3950_v53  ;;  %v3958_v3 = vand.u32 4294901760, %v3957_v49  ;;  %v18722_v48 = vand.u32 4294901760, %v15557_v51 }
 0x4d9   :  { %v4000_v47 = vand.u32 4294901760, %v3999_v43  ;;  %v18715_v25 = vand.u32 4294901760, %v15570_v42  ;;  %v4013_v49 = vsub.f32 %v15575_v27, %v18714_v23  ;;  %v18718_v43 = vand.u32 4294901760, %v15581_v59 }
 0x4da   :  { %v15619_v7 = vpack.c.bf16 %v3958_v3, %v3951_v58  ;;  %v3971_v36 = vsub.f32 %v15557_v51, %v18722_v48 }
 0x4db   :  { %v15649_v28 = vpack.c.bf16 %v4000_v47, %v3993_v52  ;;  %v4006_v53 = vsub.f32 %v15570_v42, %v18715_v25  ;;  %v4014_v3 = vand.u32 4294901760, %v4013_v49  ;;  %v18717_v52 = vand.u32 4294901760, %v15583_v61 }
 0x4dc   :  { %v3972_v46 = vand.u32 4294901760, %v3971_v36  ;;  %v18712_v36 = vand.u32 4294901760, %v15579_v20  ;;  %v4034_v49 = vsub.f32 %v15581_v59, %v18718_v43 }
 0x4dd   :  { %v4007_v58 = vand.u32 4294901760, %v4006_v53 }
 0x4de   :  { %v15629_v62 = vpack.c.bf16 %v3972_v46, %v3965_v0  ;;  %v4020_v46 = vsub.f32 %v15577_v34, %v18713_v16  ;;  %v4027_v45 = vsub.f32 %v15579_v20, %v18712_v36 }
 0x4df   :  { %v15659_v0 = vpack.c.bf16 %v4014_v3, %v4007_v58  ;;  %v4041_v58 = vsub.f32 %v15583_v61, %v18717_v52 }
 0x4e0   :  { %v4021_v5 = vand.u32 4294901760, %v4020_v46  ;;  %v4028_v32 = vand.u32 4294901760, %v4027_v45  ;;  %v4035_v46 = vand.u32 4294901760, %v4034_v49 }
 0x4e1   :  { %v4042_v45 = vand.u32 4294901760, %v4041_v58 }
 0x4e2   :  { %v15669_v53 = vpack.c.bf16 %v4028_v32, %v4021_v5  ;;  %v12156_v5 = vpack.c.bf16 %v15548_v55, %v15546_v12  ;;  %v12159_v32 = vpack.c.bf16 %v15552_v60, %v15550_v19  ;;  %v19724_v12 = vand.u32 4294901760, %v15555_v22 }
 0x4e3   :  { %v15678_v4 = vpack.c.bf16 %v4042_v45, %v4035_v46 }
 0x4ee   :  { %v9555_v13 = vpop.f32.mrb[48].mxu1 }
 0x4ef   :  { %v9556_v21 = vpop.f32.mrb[49].mxu1 }
 0x4f0   :  { %v9557_v47 = vadd.f32 %v9556_v21, %v9555_v13 }
 0x4f2   :  { %v3244_v3 = vadd.f32 %v9557_v47, %v2997_v56  ;;  %v9558_v36 = vpop.f32.mrb[50].mxu1  ;;  %v12162_v56 = vpack.c.bf16 %v15557_v51, %v15555_v22  ;;  %v12165_v47 = vpack.c.bf16 %v15561_v26, %v15559_v40  ;;  %v19730_v22 = vand.u32 4294901760, %v15570_v42 }
 0x4f3   :  { %v9559_v16 = vpop.f32.mrb[51].mxu1 }
 0x4f4   :  { %v9560_v23 = vadd.f32 %v9559_v16, %v9558_v36  ;;  %v3389_v25 = vadd.f32 %v15511_v9, %v3244_v3  ;;  %v12168_v9 = vpack.c.bf16 %v15567_v39, %v15565_v30  ;;  %v12174_v36 = vpack.c.bf16 %v15579_v20, %v15577_v34 }
 0x4f6   :  { %v3251_v13 = vadd.f32 %v9560_v23, %v3012_v17  ;;  %v12171_v17 = vpack.c.bf16 %v15575_v27, %v15570_v42  ;;  %v15850_v42 = vld [vmem:[#allocation9 + $0x598] sm:$0xff] }
 0x4f8   :  { %v3398_v21 = vadd.f32 %v15515_v2, %v3251_v13  ;;  %v12177_v13 = vpack.c.bf16 %v15583_v61, %v15581_v59 }
 0x50e   :  { %v9631_v23 = vpop.f32.mrb[52].mxu1 }
 0x50f   :  { %v9632_v2 = vpop.f32.mrb[53].mxu1 }
 0x510   :  { %v9633_v16 = vadd.f32 %v9632_v2, %v9631_v23 }
 0x512   :  { %v3506_v49 = vadd.f32 %v9633_v16, %v3389_v25  ;;  %v9634_v58 = vpop.f32.mrb[54].mxu1 }
 0x513   :  { %v9635_v3 = vpop.f32.mrb[55].mxu1 }
 0x514   :  { %v9636_v46 = vadd.f32 %v9635_v3, %v9634_v58  ;;  %v3685_v45 = vadd.f32 %v15523_v15, %v3506_v49 }
 0x516   :  { %v3517_v52 = vadd.f32 %v9636_v46, %v3398_v21 }
 0x518   :  { %v3692_v43 = vadd.f32 %v15525_v6, %v3517_v52 }
 0x52e   :  { %v9707_v24 = vpop.f32.mrb[56].mxu1 }
 0x52f   :  { %v9708_v14 = vpop.f32.mrb[57].mxu1 }
 0x530   :  { %v9709_v18 = vadd.f32 %v9708_v14, %v9707_v24 }
 0x532   :  { %v15699_v48 = vadd.f32 %v9709_v18, %v3685_v45  ;;  %v9710_v23 = vpop.f32.mrb[58].mxu1 }
 0x533   :  { %v9711_v2 = vpop.f32.mrb[59].mxu1 }
 0x534   :  { %v9712_v1 = vadd.f32 %v9711_v2, %v9710_v23  ;;  %v3814_v16 = vmul.f32 %v15699_v48, %v15699_v48 }
 0x536   :  { %v15701_v25 = vadd.f32 %v9712_v1, %v3692_v43 }
 0x538   :  { %v3806_v15 = vadd.f32 %v15701_v25, %v15699_v48  ;;  %v3815_v21 = vmul.f32 %v15701_v25, %v15701_v25 }
 0x53a   :  { %v3807_v6 = vrot.slane %v3806_v15, 4  ;;  %v3816_v52 = vadd.f32 %v3815_v21, %v3814_v16  ;;  %v19720_v21 = vld [vmem:[#allocation96_spill] sm:$0xff] }
 0x53c   :  { %v3808_v49 = vadd.f32 %v3807_v6, %v3806_v15  ;;  %v3817_v14 = vrot.slane %v3816_v52, 4  ;;  %v15886_v6 = vld [vmem:[#allocation9 + $0x4a8] sm:$0xff] }
 0x53e   :  { %v3809_v18 = vrot.slane %v3808_v49, 2  ;;  %v3818_v24 = vadd.f32 %v3817_v14, %v3816_v52  ;;  %v15888_v52 = vld [vmem:[#allocation9 + $0x5a0] sm:$0xff] }
 0x540   :  { %v3810_v58 = vadd.f32 %v3809_v18, %v3808_v49  ;;  %v3819_v3 = vrot.slane %v3818_v24, 2  ;;  %v18739_v18 = vand.u32 4294901760, %v15886_v6 }
 0x542   :  { %v3811_v46 = vrot.slane %v3810_v58, 1  ;;  %v3820_v1 = vadd.f32 %v3819_v3, %v3818_v24  ;;  %v15899_v24 = vld [vmem:[#allocation9 + $0x5a8] sm:$0xff]  ;;  %v15902_v3 = vld [vmem:[#allocation9 + $0x420] sm:$0xff] }
 0x544   :  { %v3812_v43 = vadd.f32 %v3811_v46, %v3810_v58  ;;  %v3821_v45 = vrot.slane %v3820_v1, 1  ;;  %v18738_v58 = vand.u32 4294901760, %v15888_v52  ;;  %v15904_v46 = vld [vmem:[#allocation9 + $0x428] sm:$0xff] }
 0x546   :  { %3813 = vst [vmem:[#allocation3] sm:$0x1] %v3812_v43  ;;  %v3822_v23 = vadd.f32 %v3821_v45, %v3820_v1  ;;  %v18737_v1 = vand.u32 4294901760, %v15899_v24  ;;  %v18736_v43 = vand.u32 4294901760, %v15902_v3  ;;  %v18735_v45 = vand.u32 4294901760, %v15904_v46 }
 0x548   :  { %3823 = vst [vmem:[#allocation3 + $0x1] sm:$0x1] %v3822_v23  ;;  %v15911_v23 = vld [vmem:[#allocation9 + $0x520] sm:$0xff] }
 0x54f   :  { %v3840_v2 = vld [vmem:[#allocation3] sm:$0xff] }
 0x550   :  { %v15709_v10 = vand.u32 4294901760, %v3840_v2 }
 0x552   :  { %v3923_v44 = vsub.f32 %v3840_v2, %v15709_v10  ;;  %v15913_v2 = vld [vmem:[#allocation9 + $0x528] sm:$0xff] }
 0x554   :  { %v3924_v29 = vand.u32 4294901760, %v3923_v44 }
 0x556   :  { %v3925_v16 = vsub.f32 %v3923_v44, %v3924_v29 }
 0x558   :  { %v3926_v15 = vand.u32 4294901760, %v3925_v16 }
 0x55a   :  { %11000 = vmatmul.mubr.f32.vlgmr.msra.gmra.mrb[38].mxu0 %v3926_v15  ;;  %v18734_v15 = vand.u32 4294901760, %v15911_v23 }
 0x55b   :  { %12133 = vmatpush3.bf16.msra.mxu0 %v15609_v37  ;;  %11034 = vmatprep.mubr.msk.f32.mxu0 %vm13267_vm0, %v19720_v21 }
 0x55c   :  { %12134 = vmatprep.subr.bf16.mxu0 %v19719_v31 }
 0x55f   :  { %12136 = vmatpush3.bf16.msra.mxu0 %v15619_v7  ;;  %v19722_v7 = vand.u32 4294901760, %v15550_v19  ;;  %v19727_v19 = vand.u32 4294901760, %v15561_v26  ;;  %v19733_v26 = vand.u32 4294901760, %v15579_v20  ;;  %v18747_v20 = vand.u32 4294901760, %v15850_v42 }
 0x560   :  { %12137 = vmatprep.subr.bf16.mxu0 %v19719_v31 }
 0x563   :  { %12139 = vmatpush3.bf16.msra.mxu0 %v15629_v62  ;;  %v19723_v62 = vand.u32 4294901760, %v15552_v60 }
 0x564   :  { %12140 = vmatprep.subr.bf16.mxu0 %v19719_v31 }
 0x567   :  { %12142 = vmatpush3.bf16.msra.mxu0 %v15639_v11  ;;  %v13211_v11 = vld [vmem:[#allocation5] sm:$0xff] }
 0x568   :  { %12143 = vmatprep.subr.bf16.mxu0 %v19719_v31 }
 0x56b   :  { %12145 = vmatpush3.bf16.msra.mxu0 %v15649_v28  ;;  %v19728_v28 = vand.u32 4294901760, %v15565_v30  ;;  %v19734_v30 = vand.u32 4294901760, %v15581_v59 }
 0x56c   :  { %12146 = vmatprep.subr.bf16.mxu0 %v19719_v31 }
 0x56f   :  { %12148 = vmatpush3.bf16.msra.mxu0 %v15659_v0  ;;  %v19729_v0 = vand.u32 4294901760, %v15567_v39  ;;  %v19735_v39 = vand.u32 4294901760, %v15583_v61 }
 0x570   :  { %12149 = vmatprep.subr.bf16.mxu0 %v19719_v31 }
 0x573   :  { %12151 = vmatpush3.bf16.msra.mxu0 %v15669_v53  ;;  %v12216_v53 = vpack.c.bf16 %v19729_v0, %v19728_v28 }
 0x574   :  { %12152 = vmatprep.subr.bf16.mxu0 %v19719_v31 }
 0x577   :  { %12154 = vmatpush3.bf16.msra.mxu0 %v15678_v4  ;;  %v12207_v4 = vpack.c.bf16 %v19723_v62, %v19722_v7  ;;  %v15936_v7 = vld [vmem:[#allocation9 + $0x4b0] sm:$0xff]  ;;  %v15938_v62 = vld [vmem:[#allocation9 + $0x4b8] sm:$0xff] }
 0x578   :  { %12155 = vmatprep.subr.bf16.mxu0 %v19719_v31 }
 0x57a   :  { %11035 = vmatmul.mubr.f32.vlgmr.msra.gmra.mrb[38].mxu0 %v15709_v10 }
 0x57b   :  { %12157 = vmatpush3.bf16.msra.mxu0 %v12156_v5  ;;  %11069 = vmatprep.mubr.msk.f32.mxu0 %vm13267_vm0, %v19720_v21 }
 0x57c   :  { %12158 = vmatprep.subr.bf16.mxu0 %v19719_v31 }
 0x57f   :  { %12160 = vmatpush3.bf16.msra.mxu0 %v12159_v32 }
 0x580   :  { %12161 = vmatprep.subr.bf16.mxu0 %v19719_v31 }
 0x583   :  { %12163 = vmatpush3.bf16.msra.mxu0 %v12162_v56  ;;  %v12225_v56 = vpack.c.bf16 %v19735_v39, %v19734_v30  ;;  %v15988_v39 = vld [vmem:[#allocation9 + $0x4c0] sm:$0xff] }
 0x584   :  { %12164 = vmatprep.subr.bf16.mxu0 %v19719_v31 }
 0x587   :  { %12166 = vmatpush3.bf16.msra.mxu0 %v12165_v47 }
 0x588   :  { %12167 = vmatprep.subr.bf16.mxu0 %v19719_v31 }
 0x58b   :  { %12169 = vmatpush3.bf16.msra.mxu0 %v12168_v9 }
 0x58c   :  { %12170 = vmatprep.subr.bf16.mxu0 %v19719_v31 }
 0x58f   :  { %12172 = vmatpush3.bf16.msra.mxu0 %v12171_v17 }
 0x590   :  { %12173 = vmatprep.subr.bf16.mxu0 %v19719_v31 }
 0x593   :  { %12175 = vmatpush3.bf16.msra.mxu0 %v12174_v36 }
 0x594   :  { %12176 = vmatprep.subr.bf16.mxu0 %v19719_v31 }
 0x597   :  { %12178 = vmatpush3.bf16.msra.mxu0 %v12177_v13  ;;  %v15884_v13 = vld [vmem:[#allocation9 + $0x4a0] sm:$0xff] }
 0x598   :  { %12179 = vmatprep.subr.bf16.mxu0 %v19719_v31  ;;  %v18742_v14 = vand.u32 4294901760, %v15884_v13 }
 0x59a   :  { %11070 = vmatmul.mubr.f32.vlgmr.msra.gmra.mrb[38].mxu0 %v3923_v44  ;;  %v19721_v44 = vand.u32 4294901760, %v15548_v55  ;;  %v19725_v55 = vand.u32 4294901760, %v15557_v51  ;;  %v19731_v51 = vand.u32 4294901760, %v15575_v27  ;;  %v15853_v27 = vld [vmem:[#allocation9 + $0x410] sm:$0xff]  ;;  %v15920_v16 = vpack.c.bf16 %v18739_v18, %v18742_v14  ;;  %v4599_v18 = vld [vmem:[#allocation9 + $0x548] sm:$0xff] }
 0x59b   :  { %12181 = vmatpush3.bf16.msra.mxu0 %v15531_v8  ;;  %11104 = vmatprep.mubr.msk.f32.mxu0 %vm13267_vm0, %v19720_v21  ;;  %v18746_v59 = vand.u32 4294901760, %v15853_v27  ;;  %v18733_v21 = vand.u32 4294901760, %v15913_v2  ;;  %v5508_v14 = vand.u32 4294901760, %v4599_v18 }
 0x59c   :  { %12182 = vmatprep.subr.bf16.mxu0 %v19719_v31  ;;  %v12204_v37 = vpack.c.bf16 %v19721_v44, %v3935_v38  ;;  %v12210_v38 = vpack.c.bf16 %v19725_v55, %v19724_v12  ;;  %v12219_v5 = vpack.c.bf16 %v19731_v51, %v19730_v22  ;;  %19740 = vst [vmem:[#allocation43_spill] sm:$0xff] %v15920_v16  ;;  %v18730_v12 = vand.u32 4294901760, %v15936_v7  ;;  %v15963_v22 = vld [vmem:[#allocation9 + $0x530] sm:$0xff]  ;;  %v15965_v51 = vld [vmem:[#allocation9 + $0x538] sm:$0xff] }
 0x59d   :  { %v15928_v44 = vpack.c.bf16 %v18737_v1, %v18738_v58  ;;  %v18727_v55 = vand.u32 4294901760, %v15938_v62  ;;  %v4598_v58 = vld [vmem:[#allocation9 + $0x540] sm:$0xff] }
 0x59f   :  { %12184 = vmatpush3.bf16.msra.mxu0 %v15535_v57  ;;  %19741 = vst [vmem:[#allocation54_spill] sm:$0xff] %v15928_v44 }
 0x5a0   :  { %12185 = vmatprep.subr.bf16.mxu0 %v19719_v31 }
 0x5a3   :  { %12187 = vmatpush3.bf16.msra.mxu0 %v15539_v50 }
 0x5a4   :  { %12188 = vmatprep.subr.bf16.mxu0 %v19719_v31 }
 0x5a7   :  { %12190 = vmatpush3.bf16.msra.mxu0 %v15543_v41 }
 0x5a8   :  { %12191 = vmatprep.subr.bf16.mxu0 %v19719_v31 }
 0x5ab   :  { %12193 = vmatpush3.bf16.msra.mxu0 %v15563_v33 }
 0x5ac   :  { %12194 = vmatprep.subr.bf16.mxu0 %v19719_v31 }
 0x5af   :  { %12196 = vmatpush3.bf16.msra.mxu0 %v15573_v35 }
 0x5b0   :  { %12197 = vmatprep.subr.bf16.mxu0 %v19719_v31 }
 0x5b3   :  { %12199 = vmatpush3.bf16.msra.mxu0 %v15586_v54 }
 0x5b4   :  { %12200 = vmatprep.subr.bf16.mxu0 %v19719_v31 }
 0x5b7   :  { %12202 = vmatpush3.bf16.msra.mxu0 %v15594_v63 }
 0x5b8   :  { %12203 = vmatprep.subr.bf16.mxu0 %v19719_v31 }
 0x5ba   :  { %11105 = vmatmul.mubr.f32.vlgmr.msra.gmra.mrb[38].mxu0 %v3924_v29  ;;  %v19726_v29 = vand.u32 4294901760, %v15559_v40  ;;  %v19732_v40 = vand.u32 4294901760, %v15577_v34  ;;  %v15855_v34 = vld [vmem:[#allocation9 + $0x418] sm:$0xff] }
 0x5bb   :  { %12205 = vmatpush3.bf16.msra.mxu0 %v12204_v37  ;;  %11139 = vmatprep.mubr.msk.f32.mxu0 %vm13267_vm0, %v13211_v11  ;;  %v18745_v61 = vand.u32 4294901760, %v15855_v34  ;;  %v15934_v37 = vpack.c.bf16 %v18735_v45, %v18736_v43 }
 0x5bc   :  { %12206 = vmatprep.subr.bf16.mxu0 %v19719_v31  ;;  %v12213_v60 = vpack.c.bf16 %v19727_v19, %v19726_v29  ;;  %v12222_v32 = vpack.c.bf16 %v19733_v26, %v19732_v40  ;;  %v15954_v19 = vld [vmem:[#allocation9 + $0x430] sm:$0xff]  ;;  %v18741_v40 = vand.u32 4294901760, %v15963_v22  ;;  %v18740_v26 = vand.u32 4294901760, %v15965_v51 }
 0x5bd   :  { %v15882_v36 = vpack.c.bf16 %v18745_v61, %v18746_v59  ;;  %19742 = vst [vmem:[#allocation58_spill] sm:$0xff] %v15934_v37  ;;  %v18732_v0 = vand.u32 4294901760, %v15954_v19  ;;  %v4584_v61 = vld [vmem:[#allocation9 + $0x4d0] sm:$0xff]  ;;  %v4585_v59 = vld [vmem:[#allocation9 + $0x4d8] sm:$0xff] }
 0x5bf   :  { %12208 = vmatpush3.bf16.msra.mxu0 %v12207_v4  ;;  %19738 = vst [vmem:[#allocation99_spill] sm:$0xff] %v15882_v36  ;;  %v15940_v4 = vld [vmem:[#allocation9 + $0x5b0] sm:$0xff] }
 0x5c0   :  { %12209 = vmatprep.subr.bf16.mxu0 %v19719_v31  ;;  %v18729_v29 = vand.u32 4294901760, %v15940_v4 }
 0x5c3   :  { %12211 = vmatpush3.bf16.msra.mxu0 %v12210_v38  ;;  %v15951_v38 = vld [vmem:[#allocation9 + $0x5b8] sm:$0xff] }
 0x5c4   :  { %12212 = vmatprep.subr.bf16.mxu0 %v19719_v31  ;;  %v18728_v28 = vand.u32 4294901760, %v15951_v38 }
 0x5c7   :  { %12214 = vmatpush3.bf16.msra.mxu0 %v12213_v60  ;;  %v15956_v60 = vld [vmem:[#allocation9 + $0x438] sm:$0xff] }
 0x5c8   :  { %12215 = vmatprep.subr.bf16.mxu0 %v19719_v31 }
 0x5cb   :  { %12217 = vmatpush3.bf16.msra.mxu0 %v12216_v53  ;;  %v18731_v53 = vand.u32 4294901760, %v15956_v60 }
 0x5cc   :  { %12218 = vmatprep.subr.bf16.mxu0 %v19719_v31 }
 0x5cd   :  { %v15986_v30 = vpack.c.bf16 %v18731_v53, %v18732_v0  ;;  %v4615_v53 = vld [vmem:[#allocation9 + $0x5c8] sm:$0xff] }
 0x5ce   :  { %v5556_v45 = vand.u32 4294901760, %v4615_v53 }
 0x5cf   :  { %12220 = vmatpush3.bf16.msra.mxu0 %v12219_v5  ;;  %v15972_v5 = vpack.c.bf16 %v18727_v55, %v18730_v12  ;;  %19746 = vst [vmem:[#allocation66_spill] sm:$0xff] %v15986_v30  ;;  %v15992_v55 = vld [vmem:[#allocation9 + $0x5c0] sm:$0xff] }
 0x5d0   :  { %12221 = vmatprep.subr.bf16.mxu0 %v19719_v31  ;;  %v5553_v0 = vand.u32 4294901760, %v15992_v55 }
 0x5d1   :  { %19744 = vst [vmem:[#allocation62_spill] sm:$0xff] %v15972_v5 }
 0x5d3   :  { %12223 = vmatpush3.bf16.msra.mxu0 %v12222_v32  ;;  %v15980_v32 = vpack.c.bf16 %v18728_v28, %v18729_v29  ;;  %v15999_v28 = vpack.c.bf16 %v18740_v26, %v18741_v40  ;;  %v4691_v29 = vand.u32 4294901760, %v15988_v39  ;;  %v5505_v40 = vand.u32 4294901760, %v4598_v58 }
 0x5d4   :  { %12224 = vmatprep.subr.bf16.mxu0 %v19719_v31 }
 0x5d5   :  { %19745 = vst [vmem:[#allocation61_spill] sm:$0xff] %v15980_v32  ;;  %19747 = vst [vmem:[#allocation65_spill] sm:$0xff] %v15999_v28 }
 0x5d7   :  { %12226 = vmatpush3.bf16.msra.mxu0 %v12225_v56  ;;  %v15990_v56 = vld [vmem:[#allocation9 + $0x4c8] sm:$0xff] }
 0x5d8   :  { %12227 = vmatprep.subr.bf16.mxu0 %v19719_v31  ;;  %v4694_v12 = vand.u32 4294901760, %v15990_v56 }
 0x5da   :  { %11140 = vmatmul.mubr.f32.vlgmr.msra.gmra.mrb[38].mxu0 %v15709_v10  ;;  %v16007_v26 = vpack.c.bf16 %v4694_v12, %v4691_v29 }
 0x5db   :  { %12229 = vmatpush3.bf16.msra.mxu0 %v15531_v8  ;;  %11174 = vmatprep.mubr.msk.f32.mxu0 %vm13267_vm0, %v13211_v11  ;;  %v15842_v8 = vld [vmem:[#allocation9 + $0x490] sm:$0xff]  ;;  %v15947_v11 = vpack.c.bf16 %v18733_v21, %v18734_v15  ;;  %v4566_v21 = vld [vmem:[#allocation9 + $0x440] sm:$0xff]  ;;  %v4567_v15 = vld [vmem:[#allocation9 + $0x448] sm:$0xff] }
 0x5dc   :  { %12230 = vmatprep.subr.bf16.mxu0 %v19719_v31  ;;  %v4643_v43 = vand.u32 4294901760, %v4566_v21  ;;  %v4646_v1 = vand.u32 4294901760, %v4567_v15  ;;  %19748 = vst [vmem:[#allocation70_spill] sm:$0xff] %v16007_v26 }
 0x5dd   :  { %19743 = vst [vmem:[#allocation57_spill] sm:$0xff] %v15947_v11 }
 0x5df   :  { %12232 = vmatpush3.bf16.msra.mxu0 %v15535_v57  ;;  %v15844_v57 = vld [vmem:[#allocation9 + $0x498] sm:$0xff] }
 0x5e0   :  { %12233 = vmatprep.subr.bf16.mxu0 %v19719_v31 }
 0x5e3   :  { %12235 = vmatpush3.bf16.msra.mxu0 %v15539_v50  ;;  %v15846_v50 = vld [vmem:[#allocation9 + $0x590] sm:$0xff] }
 0x5e4   :  { %12236 = vmatprep.subr.bf16.mxu0 %v19719_v31 }
 0x5e7   :  { %12238 = vmatpush3.bf16.msra.mxu0 %v15543_v41  ;;  %v18750_v41 = vand.u32 4294901760, %v15842_v8 }
 0x5e8   :  { %12239 = vmatprep.subr.bf16.mxu0 %v19719_v31 }
 0x5eb   :  { %12241 = vmatpush3.bf16.msra.mxu0 %v15563_v33  ;;  %v18749_v33 = vand.u32 4294901760, %v15844_v57 }
 0x5ec   :  { %12242 = vmatprep.subr.bf16.mxu0 %v19719_v31 }
 0x5ef   :  { %12244 = vmatpush3.bf16.msra.mxu0 %v15573_v35  ;;  %v18748_v35 = vand.u32 4294901760, %v15846_v50 }
 0x5f0   :  { %12245 = vmatprep.subr.bf16.mxu0 %v19719_v31 }
 0x5f1   :  { %v15876_v17 = vpack.c.bf16 %v18747_v20, %v18748_v35  ;;  %v4616_v20 = vld [vmem:[#allocation9 + $0x5d0] sm:$0xff]  ;;  %v16014_v35 = vpack.c.bf16 %v5508_v14, %v5505_v40 }
 0x5f3   :  { %12247 = vmatpush3.bf16.msra.mxu0 %v15586_v54  ;;  %v15860_v54 = vld [vmem:[#allocation9 + $0x510] sm:$0xff]  ;;  %19737 = vst [vmem:[#allocation98_spill] sm:$0xff] %v15876_v17  ;;  %19751 = vst [vmem:[#allocation74_spill] sm:$0xff] %v16014_v35 }
 0x5f4   :  { %12248 = vmatprep.subr.bf16.mxu0 %v19719_v31  ;;  %v18744_v47 = vand.u32 4294901760, %v15860_v54 }
 0x5f7   :  { %12250 = vmatpush3.bf16.msra.mxu0 %v15594_v63  ;;  %v15862_v63 = vld [vmem:[#allocation9 + $0x518] sm:$0xff] }
 0x5f8   :  { %v18743_v9 = vand.u32 4294901760, %v15862_v63  ;;  %12444 = vmatprep.subr.bf16.mxu0 %v15876_v17 }
 0x5fa   :  { %11175 = vmatmul.mubr.f32.vlgmr.msra.gmra.mrb[38].mxu0 %v15709_v10  ;;  %v15868_v10 = vpack.c.bf16 %v18749_v33, %v18750_v41  ;;  %v15895_v49 = vpack.c.bf16 %v18743_v9, %v18744_v47  ;;  %v16009_v9 = vpack.c.bf16 %v5556_v45, %v5553_v0  ;;  %v16011_v47 = vpack.c.bf16 %v4646_v1, %v4643_v43 }
 0x5fb   :  { %v4697_v33 = vand.u32 4294901760, %v4584_v61  ;;  %v4700_v41 = vand.u32 4294901760, %v4585_v59 }
 0x5fc   :  { %19736 = vst [vmem:[#allocation97_spill] sm:$0xff] %v15868_v10  ;;  %12252 = vmatprep.subr.bf16.mxu1 %v15868_v10  ;;  %19739 = vst [vmem:[#allocation42_spill] sm:$0xff] %v15895_v49  ;;  %12446 = vmatpush3.bf16.msra.mxu0 %v15895_v49  ;;  %v16150_v10 = vsub.f32 %v4566_v21, %v4643_v43  ;;  %v4619_v43 = vld [vmem:[#allocation9 + $0x5e8] sm:$0xff]  ;;  %v4570_v21 = vld [vmem:[#allocation9 + $0x460] sm:$0xff] }
 0x5fd   :  { %12254 = vmatpush3.bf16.msra.mxu1 %v15882_v36  ;;  %12448 = vmatprep.subr.bf16.mxu0 %v15928_v44  ;;  %19749 = vst [vmem:[#allocation69_spill] sm:$0xff] %v16009_v9  ;;  %19750 = vst [vmem:[#allocation40_spill] sm:$0xff] %v16011_v47  ;;  %v5559_v44 = vand.u32 4294901760, %v4616_v20  ;;  %v19754_v36 = vand.u32 4294901760, %v15846_v50 }
 0x5fe   :  { %12256 = vmatprep.subr.bf16.mxu1 %v15920_v16 }
 0x600   :  { %12450 = vmatpush3.bf16.msra.mxu0 %v15947_v11  ;;  %v4568_v11 = vld [vmem:[#allocation9 + $0x450] sm:$0xff] }
 0x601   :  { %12258 = vmatpush3.bf16.msra.mxu1 %v15934_v37  ;;  %12452 = vmatprep.subr.bf16.mxu0 %v15980_v32  ;;  %v4617_v32 = vld [vmem:[#allocation9 + $0x5d8] sm:$0xff]  ;;  %v4649_v17 = vand.u32 4294901760, %v4568_v11 }
 0x602   :  { %12260 = vmatprep.subr.bf16.mxu1 %v15972_v5  ;;  %v5562_v49 = vand.u32 4294901760, %v4617_v32  ;;  %v19752_v5 = vand.u32 4294901760, %v15842_v8 }
 0x604   :  { %12454 = vmatpush3.bf16.msra.mxu0 %v15999_v28  ;;  %v4569_v28 = vld [vmem:[#allocation9 + $0x458] sm:$0xff]  ;;  %v16021_v37 = vsub.f32 %v15842_v8, %v19752_v5  ;;  %v19758_v8 = vand.u32 4294901760, %v15853_v27 }
 0x605   :  { %12262 = vmatpush3.bf16.msra.mxu1 %v15986_v30  ;;  %12456 = vmatprep.subr.bf16.mxu0 %v16009_v9  ;;  %v4652_v30 = vand.u32 4294901760, %v4569_v28  ;;  %v16031_v9 = vsub.f32 %v15846_v50, %v19754_v36  ;;  %v19760_v50 = vand.u32 4294901760, %v15860_v54 }
 0x606   :  { %12264 = vmatprep.subr.bf16.mxu1 %v16007_v26  ;;  %v19753_v26 = vand.u32 4294901760, %v15844_v57  ;;  %v16042_v5 = vsub.f32 %v15853_v27, %v19758_v8  ;;  %v19763_v8 = vand.u32 4294901760, %v15886_v6 }
 0x607   :  { %19755 = vst [vmem:[#allocation80_spill] sm:$0xff] %v16031_v9  ;;  %v16052_v36 = vsub.f32 %v15860_v54, %v19760_v50  ;;  %v19765_v50 = vand.u32 4294901760, %v15899_v24 }
 0x608   :  { %v16026_v16 = vsub.f32 %v15844_v57, %v19753_v26  ;;  %12458 = vmatpush3.bf16.msra.mxu0 %v16014_v35  ;;  %v19759_v57 = vand.u32 4294901760, %v15855_v34  ;;  %v19762_v35 = vand.u32 4294901760, %v15884_v13 }
 0x609   :  { %12266 = vmatpush3.bf16.msra.mxu1 %v16011_v47  ;;  %v19756_v47 = vand.u32 4294901760, %v15850_v42 }
 0x60a   :  { %v16047_v26 = vsub.f32 %v15855_v34, %v19759_v57  ;;  %v16062_v27 = vsub.f32 %v15884_v13, %v19762_v35  ;;  %v16067_v34 = vsub.f32 %v15886_v6, %v19763_v8  ;;  %v19764_v57 = vand.u32 4294901760, %v15888_v52 }
 0x60b   :  { %v16036_v31 = vsub.f32 %v15850_v42, %v19756_v47  ;;  %v19761_v42 = vand.u32 4294901760, %v15862_v63  ;;  %v19767_v13 = vand.u32 4294901760, %v15904_v46  ;;  %v19768_v8 = vand.u32 4294901760, %v15911_v23 }
 0x60c   :  { %v16072_v54 = vsub.f32 %v15888_v52, %v19764_v57  ;;  %v19770_v57 = vand.u32 4294901760, %v15913_v2 }
 0x60d   :  { %19757 = vst [vmem:[#allocation79_spill] sm:$0xff] %v16036_v31  ;;  %v16057_v47 = vsub.f32 %v15862_v63, %v19761_v42  ;;  %v16077_v63 = vsub.f32 %v15899_v24, %v19765_v50  ;;  %v19766_v42 = vand.u32 4294901760, %v15902_v3  ;;  %v16087_v6 = vsub.f32 %v15904_v46, %v19767_v13 }
 0x60e   :  { %v16092_v52 = vsub.f32 %v15911_v23, %v19768_v8  ;;  %v16097_v24 = vsub.f32 %v15913_v2, %v19770_v57  ;;  %v19772_v50 = vand.u32 4294901760, %v15936_v7  ;;  %v19774_v13 = vand.u32 4294901760, %v15940_v4 }
 0x60f   :  { %v16082_v35 = vsub.f32 %v15902_v3, %v19766_v42  ;;  %v19773_v42 = vand.u32 4294901760, %v15938_v62  ;;  %v19776_v8 = vand.u32 4294901760, %v15951_v38  ;;  %v19778_v57 = vand.u32 4294901760, %v15954_v19 }
 0x610   :  { %19769 = vst [vmem:[#allocation86_spill] sm:$0xff] %v16092_v52  ;;  %19771 = vst [vmem:[#allocation84_spill] sm:$0xff] %v16097_v24  ;;  %v16102_v3 = vsub.f32 %v15936_v7, %v19772_v50  ;;  %v16112_v23 = vsub.f32 %v15940_v4, %v19774_v13  ;;  %v19779_v50 = vand.u32 4294901760, %v15956_v60  ;;  %v19782_v13 = vand.u32 4294901760, %v15965_v51 }
 0x611   :  { %v16107_v46 = vsub.f32 %v15938_v62, %v19773_v42  ;;  %v16117_v2 = vsub.f32 %v15951_v38, %v19776_v8  ;;  %v16122_v7 = vsub.f32 %v15954_v19, %v19778_v57  ;;  %v19780_v42 = vand.u32 4294901760, %v15963_v22 }
 0x612   :  { %19775 = vst [vmem:[#allocation92_spill] sm:$0xff] %v16112_v23  ;;  %v16127_v62 = vsub.f32 %v15956_v60, %v19779_v50  ;;  %v16137_v38 = vsub.f32 %v15965_v51, %v19782_v13  ;;  %v16140_v8 = vsub.f32 %v15988_v39, %v4691_v29  ;;  %v16143_v19 = vsub.f32 %v15990_v56, %v4694_v12  ;;  %v4600_v50 = vld [vmem:[#allocation9 + $0x550] sm:$0xff]  ;;  %v4601_v13 = vld [vmem:[#allocation9 + $0x558] sm:$0xff]  ;;  %v4586_v29 = vld [vmem:[#allocation9 + $0x4e0] sm:$0xff] }
 0x613   :  { %19777 = vst [vmem:[#allocation91_spill] sm:$0xff] %v16117_v2  ;;  %v16132_v4 = vsub.f32 %v15963_v22, %v19780_v42  ;;  %v16146_v57 = vsub.f32 %v15992_v55, %v5553_v0  ;;  %v16148_v60 = vsub.f32 %v4615_v53, %v5556_v45  ;;  %v16152_v22 = vsub.f32 %v4567_v15, %v4646_v1  ;;  %v4587_v39 = vld [vmem:[#allocation9 + $0x4e8] sm:$0xff]  ;;  %v4618_v0 = vld [vmem:[#allocation9 + $0x5e0] sm:$0xff] }
 0x614   :  { %19783 = vst [vmem:[#allocation102_spill] sm:$0xff] %v16137_v38  ;;  %v16154_v42 = vsub.f32 %v4598_v58, %v5505_v40  ;;  %v16156_v51 = vsub.f32 %v4599_v18, %v5508_v14  ;;  %v16158_v38 = vpack.c.bf16 %v4700_v41, %v4697_v33  ;;  %v16160_v12 = vsub.f32 %v4584_v61, %v4697_v33  ;;  %v4571_v15 = vld [vmem:[#allocation9 + $0x468] sm:$0xff]  ;;  %v4602_v40 = vld [vmem:[#allocation9 + $0x560] sm:$0xff] }
 0x615   :  { %19781 = vst [vmem:[#allocation17_spill] sm:$0xff] %v16132_v4  ;;  %19784 = vst [vmem:[#allocation106_spill] sm:$0xff] %v16146_v57  ;;  %v16162_v55 = vsub.f32 %v4585_v59, %v4700_v41  ;;  %v16164_v45 = vpack.c.bf16 %v5562_v49, %v5559_v44  ;;  %v16166_v1 = vsub.f32 %v4616_v20, %v5559_v44  ;;  %v5511_v41 = vand.u32 4294901760, %v4600_v50  ;;  %v4591_v57 = vld [vmem:[#allocation9 + $0x508] sm:$0xff]  ;;  %v4622_v4 = vld [vmem:[#allocation9 + $0x600] sm:$0xff] }
 0x616   :  { %19785 = vst [vmem:[#allocation19_spill] sm:$0xff] %v16148_v60  ;;  %19786 = vst [vmem:[#allocation27_spill] sm:$0xff] %v16154_v42  ;;  %v16168_v58 = vsub.f32 %v4617_v32, %v5562_v49  ;;  %v16170_v14 = vpack.c.bf16 %v4652_v30, %v4649_v17  ;;  %v16172_v18 = vsub.f32 %v4568_v11, %v4649_v17  ;;  %12268 = vmatprep.subr.bf16.mxu1 %v16158_v38  ;;  %v4603_v32 = vld [vmem:[#allocation9 + $0x568] sm:$0xff]  ;;  %v4621_v42 = vld [vmem:[#allocation9 + $0x5f8] sm:$0xff] }
 0x617   :  { %19787 = vst [vmem:[#allocation108_spill] sm:$0xff] %v16156_v51  ;;  %19788 = vst [vmem:[#allocation21_spill] sm:$0xff] %v16158_v38  ;;  %12460 = vmatprep.subr.bf16.mxu0 %v16164_v45  ;;  %v16176_v33 = vsub.f32 %v4569_v28, %v4652_v30  ;;  %v5514_v59 = vand.u32 4294901760, %v4601_v13  ;;  %v4703_v61 = vand.u32 4294901760, %v4586_v29  ;;  %v4706_v20 = vand.u32 4294901760, %v4587_v39  ;;  %v4588_v30 = vld [vmem:[#allocation9 + $0x4f0] sm:$0xff] }
 0x618   :  { %19789 = vst [vmem:[#allocation22_spill] sm:$0xff] %v16164_v45  ;;  %19790 = vst [vmem:[#allocation29_spill] sm:$0xff] %v16166_v1  ;;  %12270 = vmatpush3.bf16.msra.mxu1 %v16170_v14  ;;  %v5565_v44 = vand.u32 4294901760, %v4618_v0  ;;  %v5568_v49 = vand.u32 4294901760, %v4619_v43  ;;  %v4655_v53 = vand.u32 4294901760, %v4570_v21  ;;  %v16181_v11 = vsub.f32 %v4600_v50, %v5511_v41  ;;  %v4589_v45 = vld [vmem:[#allocation9 + $0x4f8] sm:$0xff] }
 0x619   :  { %19791 = vst [vmem:[#allocation24_spill] sm:$0xff] %v16168_v58  ;;  %19792 = vst [vmem:[#allocation31_spill] sm:$0xff] %v16170_v14  ;;  %v16179_v17 = vpack.c.bf16 %v5514_v59, %v5511_v41  ;;  %v16183_v56 = vsub.f32 %v4601_v13, %v5514_v59  ;;  %v16185_v28 = vsub.f32 %v4586_v29, %v4703_v61  ;;  %v4620_v38 = vld [vmem:[#allocation9 + $0x5f0] sm:$0xff]  ;;  %v4658_v13 = vand.u32 4294901760, %v4571_v15 }
 0x61a   :  { %19793 = vst [vmem:[#allocation33_spill] sm:$0xff] %v16172_v18  ;;  %19794 = vst [vmem:[#allocation35_spill] sm:$0xff] %v16176_v33  ;;  %v16187_v58 = vpack.c.bf16 %v4706_v20, %v4703_v61  ;;  %v16189_v14 = vsub.f32 %v4587_v39, %v4706_v20  ;;  %v16191_v1 = vpack.c.bf16 %v5568_v49, %v5565_v44  ;;  %v5517_v29 = vand.u32 4294901760, %v4602_v40 }
 0x61b   :  { %19795 = vst [vmem:[#allocation37_spill] sm:$0xff] %v16179_v17  ;;  %19796 = vst [vmem:[#allocation90_spill] sm:$0xff] %v16181_v11  ;;  %v16193_v51 = vsub.f32 %v4618_v0, %v5565_v44  ;;  %12462 = vmatpush3.bf16.msra.mxu0 %v16179_v17  ;;  %v16196_v50 = vsub.f32 %v4619_v43, %v5568_v49  ;;  %v16198_v41 = vsub.f32 %v4570_v21, %v4655_v53  ;;  %v4573_v0 = vld [vmem:[#allocation9 + $0x478] sm:$0xff]  ;;  %v4604_v21 = vld [vmem:[#allocation9 + $0x570] sm:$0xff] }
 0x61c   :  { %19797 = vst [vmem:[#allocation14_spill] sm:$0xff] %v16183_v56  ;;  %19798 = vst [vmem:[#allocation39_spill] sm:$0xff] %v16185_v28  ;;  %12272 = vmatprep.subr.bf16.mxu1 %v16187_v58  ;;  %12464 = vmatprep.subr.bf16.mxu0 %v16191_v1  ;;  %v5520_v59 = vand.u32 4294901760, %v4603_v32  ;;  %v4709_v39 = vand.u32 4294901760, %v4588_v30  ;;  %v4712_v61 = vand.u32 4294901760, %v4589_v45  ;;  %v5571_v20 = vand.u32 4294901760, %v4620_v38 }
 0x61d   :  { %19799 = vst [vmem:[#allocation73_spill] sm:$0xff] %v16187_v58  ;;  %19800 = vst [vmem:[#allocation44_spill] sm:$0xff] %v16189_v14  ;;  %v4572_v56 = vld [vmem:[#allocation9 + $0x470] sm:$0xff]  ;;  %v16202_v44 = vpack.c.bf16 %v4658_v13, %v4655_v53  ;;  %v16206_v43 = vsub.f32 %v4602_v40, %v5517_v29  ;;  %v5574_v49 = vand.u32 4294901760, %v4621_v42  ;;  %v4605_v17 = vld [vmem:[#allocation9 + $0x578] sm:$0xff] }
 0x61e   :  { %19801 = vst [vmem:[#allocation45_spill] sm:$0xff] %v16191_v1  ;;  %19802 = vst [vmem:[#allocation78_spill] sm:$0xff] %v16193_v51  ;;  %v16204_v51 = vsub.f32 %v4571_v15, %v4658_v13  ;;  %v16208_v11 = vpack.c.bf16 %v5520_v59, %v5517_v29  ;;  %v16210_v58 = vsub.f32 %v4603_v32, %v5520_v59  ;;  %v4623_v53 = vld [vmem:[#allocation9 + $0x608] sm:$0xff]  ;;  %v4661_v32 = vand.u32 4294901760, %v4572_v56 }
 0x61f   :  { %19803 = vst [vmem:[#allocation46_spill] sm:$0xff] %v16196_v50  ;;  %19804 = vst [vmem:[#allocation47_spill] sm:$0xff] %v16198_v41  ;;  %v4590_v50 = vld [vmem:[#allocation9 + $0x500] sm:$0xff]  ;;  %v16212_v1 = vpack.c.bf16 %v4712_v61, %v4709_v39  ;;  %v16214_v60 = vsub.f32 %v4588_v30, %v4709_v39  ;;  %12274 = vmatpush3.bf16.msra.mxu1 %v16202_v44  ;;  %v16217_v15 = vsub.f32 %v4589_v45, %v4712_v61 }
 0x620   :  { %19805 = vst [vmem:[#allocation48_spill] sm:$0xff] %v16202_v44  ;;  %19806 = vst [vmem:[#allocation49_spill] sm:$0xff] %v16204_v51  ;;  %v16219_v40 = vpack.c.bf16 %v5574_v49, %v5571_v20  ;;  %v16221_v13 = vsub.f32 %v4620_v38, %v5571_v20  ;;  %12466 = vmatpush3.bf16.msra.mxu0 %v16208_v11  ;;  %v4664_v30 = vand.u32 4294901760, %v4573_v0  ;;  %v5523_v29 = vand.u32 4294901760, %v4604_v21 }
 0x621   :  { %19807 = vst [vmem:[#allocation85_spill] sm:$0xff] %v16206_v43  ;;  %19808 = vst [vmem:[#allocation50_spill] sm:$0xff] %v16208_v11  ;;  %v16223_v43 = vsub.f32 %v4621_v42, %v5574_v49  ;;  %12276 = vmatprep.subr.bf16.mxu1 %v16212_v1  ;;  %v5526_v59 = vand.u32 4294901760, %v4605_v17  ;;  %v4715_v39 = vand.u32 4294901760, %v4590_v50  ;;  %v4718_v44 = vand.u32 4294901760, %v4591_v57  ;;  %v4575_v49 = vld [vmem:[#allocation9 + $0x488] sm:$0xff] }
 0x622   :  { %19809 = vst [vmem:[#allocation51_spill] sm:$0xff] %v16210_v58  ;;  %19810 = vst [vmem:[#allocation52_spill] sm:$0xff] %v16212_v1  ;;  %12468 = vmatprep.subr.bf16.mxu0 %v16219_v40  ;;  %v5577_v45 = vand.u32 4294901760, %v4622_v4  ;;  %v5580_v61 = vand.u32 4294901760, %v4623_v53  ;;  %v4574_v58 = vld [vmem:[#allocation9 + $0x480] sm:$0xff]  ;;  %v16228_v2 = vpack.c.bf16 %v4664_v30, %v4661_v32  ;;  %v16230_v38 = vsub.f32 %v4572_v56, %v4661_v32  ;;  %v4607_v1 = vld [vmem:[#allocation9 + $0x588] sm:$0xff] }
 0x623   :  { %19811 = vst [vmem:[#allocation53_spill] sm:$0xff] %v16214_v60  ;;  %19812 = vst [vmem:[#allocation55_spill] sm:$0xff] %v16217_v15  ;;  %v16232_v42 = vsub.f32 %v4573_v0, %v4664_v30  ;;  %v16234_v20 = vpack.c.bf16 %v5526_v59, %v5523_v29  ;;  %v4606_v11 = vld [vmem:[#allocation9 + $0x580] sm:$0xff]  ;;  %v16242_v23 = vsub.f32 %v4590_v50, %v4715_v39  ;;  %v4667_v30 = vand.u32 4294901760, %v4574_v58 }
 0x624   :  { %19813 = vst [vmem:[#allocation56_spill] sm:$0xff] %v16219_v40  ;;  %19814 = vst [vmem:[#allocation59_spill] sm:$0xff] %v16221_v13  ;;  %v16238_v13 = vsub.f32 %v4605_v17, %v5526_v59  ;;  %v16240_v40 = vpack.c.bf16 %v4718_v44, %v4715_v39  ;;  %12278 = vmatpush3.bf16.msra.mxu1 %v16228_v2  ;;  %v16246_v56 = vsub.f32 %v4591_v57, %v4718_v44 }
 0x625   :  { %19815 = vst [vmem:[#allocation60_spill] sm:$0xff] %v16223_v43  ;;  %19816 = vst [vmem:[#allocation63_spill] sm:$0xff] %v16228_v2  ;;  %v16236_v43 = vsub.f32 %v4604_v21, %v5523_v29  ;;  %12470 = vmatpush3.bf16.msra.mxu0 %v16234_v20  ;;  %v16248_v0 = vpack.c.bf16 %v5580_v61, %v5577_v45  ;;  %v16250_v32 = vsub.f32 %v4622_v4, %v5577_v45 }
 0x626   :  { %19817 = vst [vmem:[#allocation15_spill] sm:$0xff] %v16230_v38  ;;  %19818 = vst [vmem:[#allocation64_spill] sm:$0xff] %v16232_v42  ;;  %12280 = vmatprep.subr.bf16.mxu1 %v16240_v40  ;;  %v16253_v21 = vsub.f32 %v4623_v53, %v5580_v61  ;;  %v4670_v17 = vand.u32 4294901760, %v4575_v49  ;;  %v5529_v29 = vand.u32 4294901760, %v4606_v11  ;;  %v5532_v59 = vand.u32 4294901760, %v4607_v1 }
 0x627   :  { %19819 = vst [vmem:[#allocation67_spill] sm:$0xff] %v16234_v20  ;;  %19820 = vst [vmem:[#allocation68_spill] sm:$0xff] %v16236_v43  ;;  %12472 = vmatprep.subr.bf16.mxu0 %v16248_v0  ;;  %v16256_v50 = vsub.f32 %v4574_v58, %v4667_v30  ;;  %v18829_v39 = vand.u32 4294901760, %v16021_v37  ;;  %v18828_v57 = vand.u32 4294901760, %v16026_v16  ;;  %v12507_v4 = vpack.c.bf16 %v16036_v31, %v16031_v9 }
 0x628   :  { %19821 = vst [vmem:[#allocation71_spill] sm:$0xff] %v16238_v13  ;;  %19822 = vst [vmem:[#allocation72_spill] sm:$0xff] %v16240_v40  ;;  %v16262_v44 = vpack.c.bf16 %v4670_v17, %v4667_v30  ;;  %v16264_v45 = vsub.f32 %v4575_v49, %v4670_v17  ;;  %v16266_v53 = vpack.c.bf16 %v5532_v59, %v5529_v29  ;;  %v18834_v40 = vand.u32 4294901760, %v16042_v5 }
 0x629   :  { %19823 = vst [vmem:[#allocation75_spill] sm:$0xff] %v16242_v23  ;;  %19824 = vst [vmem:[#allocation77_spill] sm:$0xff] %v16246_v56  ;;  %v16268_v61 = vsub.f32 %v4606_v11, %v5529_v29  ;;  %v16270_v20 = vsub.f32 %v4607_v1, %v5532_v59  ;;  %v4852_v58 = vsub.f32 %v16021_v37, %v18829_v39  ;;  %v18837_v49 = vand.u32 4294901760, %v16047_v26 }
 0x62a   :  { %19825 = vst [vmem:[#allocation81_spill] sm:$0xff] %v16248_v0  ;;  %19826 = vst [vmem:[#allocation83_spill] sm:$0xff] %v16250_v32  ;;  %v4859_v0 = vsub.f32 %v16026_v16, %v18828_v57  ;;  %12282 = vmatpush3.bf16.msra.mxu1 %v16262_v44  ;;  %12474 = vmatpush3.bf16.msra.mxu0 %v16266_v53  ;;  %v18838_v11 = vand.u32 4294901760, %v16062_v27  ;;  %v18839_v1 = vand.u32 4294901760, %v16067_v34 }
 0x62b   :  { %19827 = vst [vmem:[#allocation88_spill] sm:$0xff] %v16253_v21  ;;  %19828 = vst [vmem:[#allocation89_spill] sm:$0xff] %v16256_v50  ;;  %v4853_v30 = vand.u32 4294901760, %v4852_v58  ;;  %12508 = vmatprep.subr.bf16.mxu0 %v12507_v4  ;;  %v4740_v29 = vsub.f32 %v16042_v5, %v18834_v40  ;;  %v4747_v59 = vsub.f32 %v16047_v26, %v18837_v49  ;;  %v18843_v58 = vand.u32 4294901760, %v16082_v35 }
 0x62c   :  { %19829 = vst [vmem:[#allocation94_spill] sm:$0xff] %v16262_v44  ;;  %19830 = vst [vmem:[#allocation95_spill] sm:$0xff] %v16264_v45  ;;  %v4860_v17 = vand.u32 4294901760, %v4859_v0  ;;  %v4866_v57 = vsub.f32 %v16062_v27, %v18838_v11  ;;  %v4873_v39 = vsub.f32 %v16067_v34, %v18839_v1  ;;  %v18842_v1 = vand.u32 4294901760, %v16102_v3 }
 0x62d   :  { %19831 = vst [vmem:[#allocation18_spill] sm:$0xff] %v16266_v53  ;;  %19832 = vst [vmem:[#allocation26_spill] sm:$0xff] %v16268_v61  ;;  %v4741_v4 = vand.u32 4294901760, %v4740_v29  ;;  %v18841_v53 = vand.u32 4294901760, %v16087_v6  ;;  %v4748_v44 = vand.u32 4294901760, %v4747_v59  ;;  %v4754_v49 = vsub.f32 %v16082_v35, %v18843_v58 }
 0x62e   :  { %19833 = vst [vmem:[#allocation104_spill] sm:$0xff] %v16270_v20  ;;  %v12283_v0 = vpack.c.bf16 %v4860_v17, %v4853_v30  ;;  %v4867_v40 = vand.u32 4294901760, %v4866_v57  ;;  %v4874_v2 = vand.u32 4294901760, %v4873_v39  ;;  %v18844_v20 = vand.u32 4294901760, %v16107_v46 }
 0x62f   :  { %v4761_v11 = vsub.f32 %v16087_v6, %v18841_v53  ;;  %v16306_v30 = vpack.c.bf16 %v4748_v44, %v4741_v4  ;;  %v4755_v29 = vand.u32 4294901760, %v4754_v49  ;;  %v18845_v39 = vand.u32 4294901760, %v16122_v7 }
 0x630   :  { %12284 = vmatprep.subr.bf16.mxu1 %v12283_v0  ;;  %v16308_v17 = vpack.c.bf16 %v4874_v2, %v4867_v40  ;;  %v4880_v59 = vsub.f32 %v16102_v3, %v18842_v1  ;;  %v4887_v0 = vsub.f32 %v16107_v46, %v18844_v20  ;;  %v18849_v53 = vand.u32 4294901760, %v16127_v62 }
 0x631   :  { %v4762_v57 = vand.u32 4294901760, %v4761_v11  ;;  %v4768_v44 = vsub.f32 %v16122_v7, %v18845_v39  ;;  %v18850_v2 = vand.u32 4294901760, %v16140_v8  ;;  %v18852_v40 = vand.u32 4294901760, %v16143_v19 }
 0x632   :  { %v4881_v11 = vand.u32 4294901760, %v4880_v59  ;;  %v4888_v4 = vand.u32 4294901760, %v4887_v0  ;;  %v4775_v1 = vsub.f32 %v16127_v62, %v18849_v53  ;;  %v18856_v53 = vand.u32 4294901760, %v16160_v12 }
 0x633   :  { %v16323_v49 = vpack.c.bf16 %v4762_v57, %v4755_v29  ;;  %v4769_v58 = vand.u32 4294901760, %v4768_v44  ;;  %v4894_v20 = vsub.f32 %v16140_v8, %v18850_v2  ;;  %v4901_v39 = vsub.f32 %v16143_v19, %v18852_v40 }
 0x634   :  { %v16334_v61 = vpack.c.bf16 %v4888_v4, %v4881_v11  ;;  %v4776_v31 = vand.u32 4294901760, %v4775_v1  ;;  %v18851_v29 = vand.u32 4294901760, %v16150_v10  ;;  %v18855_v57 = vand.u32 4294901760, %v16152_v22 }
 0x635   :  { %v4895_v59 = vand.u32 4294901760, %v4894_v20  ;;  %v4902_v0 = vand.u32 4294901760, %v4901_v39  ;;  %v18858_v1 = vand.u32 4294901760, %v16162_v55  ;;  %v4908_v20 = vsub.f32 %v16160_v12, %v18856_v53 }
 0x636   :  { %v16339_v44 = vpack.c.bf16 %v4776_v31, %v4769_v58  ;;  %v4782_v2 = vsub.f32 %v16150_v10, %v18851_v29  ;;  %v4789_v11 = vsub.f32 %v16152_v22, %v18855_v57  ;;  %v18860_v39 = vand.u32 4294901760, %v16172_v18 }
 0x637   :  { %v16348_v4 = vpack.c.bf16 %v4902_v0, %v4895_v59  ;;  %v4915_v29 = vsub.f32 %v16162_v55, %v18858_v1  ;;  %v18861_v40 = vand.u32 4294901760, %v16176_v33  ;;  %v4909_v9 = vand.u32 4294901760, %v4908_v20 }
 0x638   :  { %v4783_v31 = vand.u32 4294901760, %v4782_v2  ;;  %v4790_v58 = vand.u32 4294901760, %v4789_v11  ;;  %v4796_v59 = vsub.f32 %v16172_v18, %v18860_v39  ;;  %v18863_v0 = vand.u32 4294901760, %v16185_v28  ;;  %v19871_v18 = vld [vmem:[#allocation79_spill] sm:$0xff] }
 0x639   :  { %v4916_v53 = vand.u32 4294901760, %v4915_v29  ;;  %v4803_v2 = vsub.f32 %v16176_v33, %v18861_v40  ;;  %v18864_v11 = vand.u32 4294901760, %v16189_v14  ;;  %v18866_v1 = vand.u32 4294901760, %v16198_v41 }
 0x63a   :  { %v16362_v57 = vpack.c.bf16 %v4790_v58, %v4783_v31  ;;  %v4797_v21 = vand.u32 4294901760, %v4796_v59  ;;  %v4922_v20 = vsub.f32 %v16185_v28, %v18863_v0  ;;  %v18867_v31 = vand.u32 4294901760, %v16204_v51 }
 0x63b   :  { %v16372_v32 = vpack.c.bf16 %v4916_v53, %v4909_v9  ;;  %v4804_v39 = vand.u32 4294901760, %v4803_v2  ;;  %v4929_v29 = vsub.f32 %v16189_v14, %v18864_v11  ;;  %v4810_v59 = vsub.f32 %v16198_v41, %v18866_v1 }
 0x63c   :  { %v4923_v58 = vand.u32 4294901760, %v4922_v20  ;;  %v18868_v40 = vand.u32 4294901760, %v16214_v60  ;;  %v4817_v9 = vsub.f32 %v16204_v51, %v18867_v31  ;;  %v18869_v53 = vand.u32 4294901760, %v16217_v15 }
 0x63d   :  { %v16382_v13 = vpack.c.bf16 %v4804_v39, %v4797_v21  ;;  %v4930_v0 = vand.u32 4294901760, %v4929_v29  ;;  %v4811_v2 = vand.u32 4294901760, %v4810_v59  ;;  %v18870_v11 = vand.u32 4294901760, %v16230_v38 }
 0x63e   :  { %v4936_v20 = vsub.f32 %v16214_v60, %v18868_v40  ;;  %v4818_v1 = vand.u32 4294901760, %v4817_v9  ;;  %v4943_v21 = vsub.f32 %v16217_v15, %v18869_v53  ;;  %v18871_v39 = vand.u32 4294901760, %v16232_v42 }
 0x63f   :  { %19834 = vst [vmem:[#allocation25_spill] sm:$0xff] %v16382_v13  ;;  %v16392_v43 = vpack.c.bf16 %v4930_v0, %v4923_v58  ;;  %v4824_v59 = vsub.f32 %v16230_v38, %v18870_v11  ;;  %v18872_v31 = vand.u32 4294901760, %v16242_v23  ;;  %v18873_v58 = vand.u32 4294901760, %v16246_v56 }
 0x640   :  { %v4937_v29 = vand.u32 4294901760, %v4936_v20  ;;  %v16402_v13 = vpack.c.bf16 %v4818_v1, %v4811_v2  ;;  %v4944_v40 = vand.u32 4294901760, %v4943_v21  ;;  %v4831_v0 = vsub.f32 %v16232_v42, %v18871_v39 }
 0x641   :  { %19835 = vst [vmem:[#allocation20_spill] sm:$0xff] %v16392_v43  ;;  %v4825_v9 = vand.u32 4294901760, %v4824_v59  ;;  %v4950_v20 = vsub.f32 %v16242_v23, %v18872_v31  ;;  %v18874_v53 = vand.u32 4294901760, %v16256_v50  ;;  %v4957_v1 = vsub.f32 %v16246_v56, %v18873_v58  ;;  %v19838_v56 = vld [vmem:[#allocation101_spill] sm:$0xff] }
 0x642   :  { %19836 = vst [vmem:[#allocation105_spill] sm:$0xff] %v16402_v13  ;;  %v16412_v43 = vpack.c.bf16 %v4944_v40, %v4937_v29  ;;  %v4832_v11 = vand.u32 4294901760, %v4831_v0  ;;  %v18875_v2 = vand.u32 4294901760, %v16264_v45  ;;  %v18915_v33 = vand.u32 4294901760, %v19871_v18 }
 0x643   :  { %v4951_v21 = vand.u32 4294901760, %v4950_v20  ;;  %v4838_v59 = vsub.f32 %v16256_v50, %v18874_v53  ;;  %v4958_v13 = vand.u32 4294901760, %v4957_v1 }
 0x644   :  { %v16423_v31 = vpack.c.bf16 %v4832_v11, %v4825_v9  ;;  %v4845_v40 = vsub.f32 %v16264_v45, %v18875_v2  ;;  %v4489_v2 = vld [vmem:[#allocation9 + $0x408] sm:$0xff]  ;;  %v19867_v45 = vld [vmem:[#allocation71_spill] sm:$0xff] }
 0x645   :  { %v4839_v29 = vand.u32 4294901760, %v4838_v59  ;;  %v16430_v58 = vpack.c.bf16 %v4958_v13, %v4951_v21 }
 0x646   :  { %v4846_v20 = vand.u32 4294901760, %v4845_v40 }
 0x648   :  { %v16436_v11 = vpack.c.bf16 %v4846_v20, %v4839_v29 }
 0x6cd   :  { %v4478_v1 = vpop.f32.mrb[38].mxu0 }
 0x6ce   :  { %v4482_v13 = vmul.f32 0.0078125, %v4478_v1  ;;  %v11176_v9 = vpop.f32.mrb[39].mxu0  ;;  %v19837_v1 = vld [vmem:[#allocation100_spill] sm:$0xff] }
 0x6d0   :  { %v4483_v39 = vmul.f32 %v4482_v13, %v4482_v13 }
 0x6d2   :  { %v4485_v29 = vrot.slane %v4483_v39, 7 }
 0x6d4   :  { %v4487_v53 = vsub.f32 %v4482_v13, %v4485_v29 }
 0x6d6   :  { %v4488_v0 = vmax.f32 %v4487_v53, 0.0 }
 0x6d8   :  { %v4490_v20 = vadd.f32 1e-05, %v4488_v0 }
 0x6da   :  { %13202 = vrsqrt.f32 %v4490_v20 }
 0x6e4   :  { %v13203_v41 = vpop.eup %13202 }
 0x6e5   :  { %v4493_v60 = vrot.slane %v13203_v41, 1 }
 0x6e7   :  { %v4495_v15 = vmul.f32 %v4493_v60, %v4489_v2 }
 0x6e9   :  { %v4496_v59 = vmul.f32 %v4495_v15, %v4482_v13  ;;  %v4504_v9 = vrot.slane %v4495_v15, %v19837_v1  ;;  %v12509_v1 = vpack.c.bf16 %v16057_v47, %v16052_v36 }
 0x6eb   :  { %v4498_v38 = vrot.slane %v4496_v59, 7  ;;  %v4505_v21 = vmul.f32 %v4504_v9, %v15699_v48  ;;  %v4506_v23 = vmul.f32 %v4504_v9, %v15701_v25 }
 0x6ed   :  { %v4500_v42 = vsub.f32 %v4489_v2, %v4498_v38 }
 0x6ef   :  { %v4510_v40 = vrot.slane %v4500_v42, %v19838_v56 }
 0x6f1   :  { %v4511_v39 = vadd.f32 %v4510_v40, %v4505_v21  ;;  %v4512_v29 = vadd.f32 %v4510_v40, %v4506_v23 }
 0x6f3   :  { %vm4513_vm5 = vcmp.ge.f32.partialorder %v4511_v39, 0.0  ;;  %vm4514_vm6 = vcmp.ge.f32.partialorder %v4512_v29, 0.0  ;;  %v4515_v53 = vmul.f32 0.2, %v4511_v39  ;;  %v4516_v0 = vmul.f32 0.2, %v4512_v29 }
 0x6f5   :  { %v4517_v20 = vsel %vm4513_vm5, %v4511_v39, %v4515_v53  ;;  %v4518_v41 = vsel %vm4514_vm6, %v4512_v29, %v4516_v0 }
 0x6f6   :  { %4519 = vst [vmem:[#allocation5 + $0x1] sm:$0xff] %v4517_v20  ;;  %4520 = vst [vmem:[#allocation5 + $0xb] sm:$0xff] %v4518_v41 }
 0x6fd   :  { %v4521_v60 = vld [vmem:[#allocation5] ss:$2 sm:$0xf]  ;;  %v4533_v15 = vld [vmem:[#allocation5 + $0xa] ss:$2 sm:$0xf] }
 0x6fe   :  { %v4527_v59 = vld [vmem:[#allocation5 + $0x2] ss:$2 sm:$0xf]  ;;  %v4539_v38 = vld [vmem:[#allocation5 + $0xb] ss:$2 sm:$0xf] }
 0x6ff   :  { %4522 = vst [vmem:[#allocation2] sm:$0xf] %v4521_v60  ;;  %4528 = vst [vmem:[#allocation2 + $0x10] sm:$0xf] %v4527_v59  ;;  %v4535_v48 = vrot.slane %v4533_v15, 4  ;;  %v4541_v25 = vrot.slane %v4539_v38, 4 }
 0x700   :  { %v4545_v2 = vld [vmem:[#allocation5 + $0xc] ss:$2 sm:$0xf]  ;;  %v4551_v13 = vld [vmem:[#allocation5 + $0xd] ss:$2 sm:$0xf] }
 0x701   :  { %v4547_v42 = vrot.slane %v4545_v2, 4  ;;  %v4553_v23 = vrot.slane %v4551_v13, 4  ;;  %4537 = vst [vmem:[#allocation2] sm:$0xf0] %v4535_v48  ;;  %4543 = vst [vmem:[#allocation2 + $0x8] sm:$0xf0] %v4541_v25 }
 0x702   :  { %v4524_v21 = vld [vmem:[#allocation5 + $0x1] ss:$2 sm:$0xf] }
 0x703   :  { %4549 = vst [vmem:[#allocation2 + $0x10] sm:$0xf0] %v4547_v42  ;;  %4525 = vst [vmem:[#allocation2 + $0x8] sm:$0xf] %v4524_v21 }
 0x704   :  { %v4530_v40 = vld [vmem:[#allocation5 + $0x3] ss:$2 sm:$0xf]  ;;  %4555 = vst [vmem:[#allocation2 + $0x18] sm:$0xf0] %v4553_v23 }
 0x705   :  { %4531 = vst [vmem:[#allocation2 + $0x18] sm:$0xf] %v4530_v40 }
 0x708   :  { %v4556_v9 = vld [vmem:[#allocation2] sm:$0xff] }
 0x709   :  { %v16466_v29 = vand.u32 4294901760, %v4556_v9 }
 0x70a   :  { %v4557_v39 = vld [vmem:[#allocation2 + $0x8] sm:$0xff]  ;;  %v4558_v53 = vld [vmem:[#allocation2 + $0x10] sm:$0xff] }
 0x70b   :  { %v16468_v0 = vand.u32 4294901760, %v4557_v39  ;;  %v16470_v41 = vand.u32 4294901760, %v4558_v53  ;;  %v16475_v59 = vsub.f32 %v4556_v9, %v16466_v29 }
 0x70c   :  { %v4559_v20 = vld [vmem:[#allocation2 + $0x18] sm:$0xff] }
 0x70d   :  { %19839 = vst [vmem:[#allocation28_spill] sm:$0xff] %v16468_v0  ;;  %19840 = vst [vmem:[#allocation16_spill] sm:$0xff] %v16470_v41  ;;  %v16472_v60 = vand.u32 4294901760, %v4559_v20  ;;  %v16478_v15 = vsub.f32 %v4557_v39, %v16468_v0  ;;  %v16481_v38 = vsub.f32 %v4558_v53, %v16470_v41  ;;  %v18890_v25 = vand.u32 4294901760, %v16475_v59  ;;  %v19862_v41 = vld [vmem:[#allocation51_spill] sm:$0xff] }
 0x70e   :  { %19842 = vst [vmem:[#allocation23_spill] sm:$0xff] %v16475_v59 }
 0x70f   :  { %19841 = vst [vmem:[#allocation13_spill] sm:$0xff] %v16472_v60  ;;  %19843 = vst [vmem:[#allocation30_spill] sm:$0xff] %v16481_v38  ;;  %v16484_v48 = vsub.f32 %v4559_v20, %v16472_v60  ;;  %v18893_v2 = vand.u32 4294901760, %v16478_v15  ;;  %v18891_v42 = vand.u32 4294901760, %v16481_v38  ;;  %v4729_v23 = vsub.f32 %v16475_v59, %v18890_v25 }
 0x710   :  { %v12511_v25 = vpack.c.bf16 %v16077_v63, %v16072_v54 }
 0x711   :  { %19844 = vst [vmem:[#allocation32_spill] sm:$0xff] %v16484_v48  ;;  %v18892_v13 = vand.u32 4294901760, %v16484_v48  ;;  %v4723_v21 = vsub.f32 %v16478_v15, %v18893_v2  ;;  %v5591_v40 = vsub.f32 %v16481_v38, %v18891_v42  ;;  %v4730_v39 = vand.u32 4294901760, %v4729_v23  ;;  %v19852_v42 = vld [vmem:[#allocation108_spill] sm:$0xff] }
 0x712   :  { %v12513_v23 = vpack.c.bf16 %v16097_v24, %v16092_v52 }
 0x713   :  { %v5585_v9 = vsub.f32 %v16484_v48, %v18892_v13  ;;  %v4724_v53 = vand.u32 4294901760, %v4723_v21  ;;  %v5592_v20 = vand.u32 4294901760, %v5591_v40  ;;  %v19845_v21 = vld [vmem:[#allocation92_spill] sm:$0xff]  ;;  %v19846_v40 = vld [vmem:[#allocation91_spill] sm:$0xff] }
 0x715   :  { %v5586_v56 = vand.u32 4294901760, %v5585_v9  ;;  %4725 = vmatprep.mubr.f32.mxu1 %v4724_v53  ;;  %v19850_v53 = vld [vmem:[#allocation19_spill] sm:$0xff] }
 0x716   :  { %4731 = vmatmul.mubr.f32.vlgmr.msra.gmra.mrb[60].mxu1 %v4730_v39  ;;  %v19849_v39 = vld [vmem:[#allocation106_spill] sm:$0xff] }
 0x717   :  { %5587 = vmatprep.mubr.f32.mxu0 %v5586_v56  ;;  %12286 = vmatpush3.bf16.msra.mxu1 %v16306_v30  ;;  %v12515_v56 = vpack.c.bf16 %v19846_v40, %v19845_v21  ;;  %v19847_v30 = vld [vmem:[#allocation17_spill] sm:$0xff] }
 0x718   :  { %5593 = vmatmul.mubr.f32.vlgmr.msra.gmra.mrb[40].mxu0 %v5592_v20  ;;  %4961 = vmatprep.mubr.f32.mxu1 %v16468_v0  ;;  %v12519_v20 = vpack.c.bf16 %v19850_v53, %v19849_v39  ;;  %v19860_v0 = vld [vmem:[#allocation20_spill] sm:$0xff] }
 0x719   :  { %12510 = vmatpush3.bf16.msra.mxu0 %v12509_v1  ;;  %5960 = vmatprep.mubr.f32.mxu0 %v16484_v48  ;;  %v19848_v1 = vld [vmem:[#allocation102_spill] sm:$0xff] }
 0x71a   :  { %12288 = vmatprep.subr.bf16.mxu1 %v16308_v17  ;;  %12512 = vmatprep.subr.bf16.mxu0 %v12511_v25  ;;  %v12517_v9 = vpack.c.bf16 %v19848_v1, %v19847_v30  ;;  %v19851_v17 = vld [vmem:[#allocation27_spill] sm:$0xff] }
 0x71b   :  { %12290 = vmatpush3.bf16.msra.mxu1 %v16323_v49  ;;  %v12521_v25 = vpack.c.bf16 %v19852_v42, %v19851_v17  ;;  %v19853_v49 = vld [vmem:[#allocation29_spill] sm:$0xff] }
 0x71c   :  { %12292 = vmatprep.subr.bf16.mxu1 %v16334_v61  ;;  %v19855_v61 = vld [vmem:[#allocation90_spill] sm:$0xff] }
 0x71d   :  { %12514 = vmatpush3.bf16.msra.mxu0 %v12513_v23  ;;  %v19854_v23 = vld [vmem:[#allocation24_spill] sm:$0xff] }
 0x71e   :  { %12516 = vmatprep.subr.bf16.mxu0 %v12515_v56  ;;  %v12523_v13 = vpack.c.bf16 %v19854_v23, %v19853_v49  ;;  %v19856_v56 = vld [vmem:[#allocation14_spill] sm:$0xff] }
 0x71f   :  { %12294 = vmatpush3.bf16.msra.mxu1 %v16339_v44  ;;  %v12525_v2 = vpack.c.bf16 %v19856_v56, %v19855_v61  ;;  %v19857_v44 = vld [vmem:[#allocation78_spill] sm:$0xff] }
 0x720   :  { %12296 = vmatprep.subr.bf16.mxu1 %v16348_v4  ;;  %v19859_v4 = vld [vmem:[#allocation25_spill] sm:$0xff] }
 0x721   :  { %12518 = vmatpush3.bf16.msra.mxu0 %v12517_v9  ;;  %v19858_v9 = vld [vmem:[#allocation46_spill] sm:$0xff] }
 0x722   :  { %12520 = vmatprep.subr.bf16.mxu0 %v12519_v20  ;;  %v12527_v48 = vpack.c.bf16 %v19858_v9, %v19857_v44  ;;  %v19861_v20 = vld [vmem:[#allocation85_spill] sm:$0xff] }
 0x723   :  { %12298 = vmatpush3.bf16.msra.mxu1 %v16362_v57  ;;  %v12529_v59 = vpack.c.bf16 %v19862_v41, %v19861_v20  ;;  %v19863_v57 = vld [vmem:[#allocation59_spill] sm:$0xff] }
 0x724   :  { %12300 = vmatprep.subr.bf16.mxu1 %v16372_v32  ;;  %v19865_v32 = vld [vmem:[#allocation105_spill] sm:$0xff] }
 0x725   :  { %12522 = vmatpush3.bf16.msra.mxu0 %v12521_v25  ;;  %v19864_v25 = vld [vmem:[#allocation60_spill] sm:$0xff] }
 0x726   :  { %12524 = vmatprep.subr.bf16.mxu0 %v12523_v13  ;;  %v12531_v50 = vpack.c.bf16 %v19864_v25, %v19863_v57  ;;  %v19866_v13 = vld [vmem:[#allocation68_spill] sm:$0xff] }
 0x727   :  { %12302 = vmatpush3.bf16.msra.mxu1 %v19859_v4  ;;  %v12533_v51 = vpack.c.bf16 %v19867_v45, %v19866_v13  ;;  %v19868_v4 = vld [vmem:[#allocation83_spill] sm:$0xff]  ;;  %v18917_v45 = vand.u32 4294901760, %v16057_v47 }
 0x728   :  { %12304 = vmatprep.subr.bf16.mxu1 %v19860_v0  ;;  %v19870_v0 = vld [vmem:[#allocation80_spill] sm:$0xff] }
 0x729   :  { %12526 = vmatpush3.bf16.msra.mxu0 %v12525_v2  ;;  %v19869_v2 = vld [vmem:[#allocation88_spill] sm:$0xff]  ;;  %v18916_v14 = vand.u32 4294901760, %v19870_v0 }
 0x72a   :  { %12528 = vmatprep.subr.bf16.mxu0 %v12527_v48  ;;  %v12535_v28 = vpack.c.bf16 %v19869_v2, %v19868_v4  ;;  %v19872_v48 = vld [vmem:[#allocation26_spill] sm:$0xff]  ;;  %v18919_v2 = vand.u32 4294901760, %v16072_v54 }
 0x72b   :  { %12306 = vmatpush3.bf16.msra.mxu1 %v19865_v32 }
 0x72c   :  { %12308 = vmatprep.subr.bf16.mxu1 %v16412_v43  ;;  %v18918_v43 = vand.u32 4294901760, %v16052_v36 }
 0x72d   :  { %12530 = vmatpush3.bf16.msra.mxu0 %v12529_v59  ;;  %v19873_v59 = vld [vmem:[#allocation104_spill] sm:$0xff] }
 0x72e   :  { %12532 = vmatprep.subr.bf16.mxu0 %v12531_v50  ;;  %v12537_v32 = vpack.c.bf16 %v19873_v59, %v19872_v48  ;;  %v12571_v50 = vpack.c.bf16 %v18915_v33, %v18916_v14  ;;  %v18920_v33 = vand.u32 4294901760, %v16097_v24  ;;  %v18923_v14 = vand.u32 4294901760, %v19845_v21 }
 0x72f   :  { %12310 = vmatpush3.bf16.msra.mxu1 %v16423_v31  ;;  %v18922_v31 = vand.u32 4294901760, %v19846_v40  ;;  %v19935_v40 = vand.u32 4294901760, %v16047_v26  ;;  %v19936_v24 = vand.u32 4294901760, %v16062_v27 }
 0x730   :  { %12312 = vmatprep.subr.bf16.mxu1 %v16430_v58  ;;  %v18921_v58 = vand.u32 4294901760, %v16092_v52  ;;  %v19937_v52 = vand.u32 4294901760, %v16067_v34 }
 0x731   :  { %12534 = vmatpush3.bf16.msra.mxu0 %v12533_v51  ;;  %v19874_v51 = vpack.c.bf16 %v16026_v16, %v16021_v37 }
 0x732   :  { %12536 = vmatprep.subr.bf16.mxu0 %v12535_v28  ;;  %v12573_v28 = vpack.c.bf16 %v18917_v45, %v18918_v43  ;;  %v18927_v45 = vand.u32 4294901760, %v19847_v30  ;;  %v18924_v43 = vand.u32 4294901760, %v19848_v1  ;;  %v19933_v1 = vld [vmem:[#allocation94_spill] sm:$0xff]  ;;  %v19934_v30 = vand.u32 4294901760, %v16042_v5 }
 0x733   :  { %12314 = vmatpush3.bf16.msra.mxu1 %v16436_v11  ;;  %v19875_v11 = vand.u32 4294901760, %v16077_v63 }
 0x734   :  { %12316 = vmatprep.subr.bf16.mxu1 %v19874_v51  ;;  %v19876_v51 = vpack.c.bf16 %v16047_v26, %v16042_v5  ;;  %v12381_v21 = vpack.c.bf16 %v19935_v40, %v19934_v30  ;;  %v19942_v26 = vand.u32 4294901760, %v16102_v3  ;;  %v19943_v40 = vand.u32 4294901760, %v16107_v46 }
 0x735   :  { %12538 = vmatpush3.bf16.msra.mxu0 %v12537_v32  ;;  %v12575_v32 = vpack.c.bf16 %v19875_v11, %v18919_v2  ;;  %v19877_v11 = vpack.c.bf16 %v16067_v34, %v16062_v27  ;;  %v18925_v2 = vand.u32 4294901760, %v19850_v53  ;;  %v19932_v53 = vand.u32 4294901760, %v16026_v16 }
 0x736   :  { %12572 = vmatprep.subr.bf16.mxu0 %v12571_v50  ;;  %4963 = vmatmul.mubr.f32.vlgmr.msra.gmra.mrb[62].mxu1 %v16466_v29  ;;  %v12577_v50 = vpack.c.bf16 %v18920_v33, %v18921_v58  ;;  %v19878_v33 = vpack.c.bf16 %v16087_v6, %v16082_v35  ;;  %v19879_v58 = vpack.c.bf16 %v16107_v46, %v16102_v3  ;;  %v19940_v16 = vand.u32 4294901760, %v16082_v35 }
 0x737   :  { %12318 = vmatpush3.bf16.msra.mxu1 %v19876_v51  ;;  %5098 = vmatprep.mubr.f32.mxu1 %v16478_v15  ;;  %v18926_v51 = vand.u32 4294901760, %v19849_v39  ;;  %v12387_v27 = vpack.c.bf16 %v19943_v40, %v19942_v26  ;;  %v19944_v34 = vand.u32 4294901760, %v16122_v7  ;;  %v19947_v35 = vand.u32 4294901760, %v16143_v19  ;;  %v19979_v40 = vld [vmem:[#allocation91_spill] sm:$0xff] }
 0x738   :  { %5963 = vmatmul.mubr.f32.vlgmr.msra.gmra.mrb[42].mxu0 %v16481_v38  ;;  %12320 = vmatprep.subr.bf16.mxu1 %v19877_v11  ;;  %v12581_v11 = vpack.c.bf16 %v18924_v43, %v18927_v45  ;;  %v19881_v43 = vpack.c.bf16 %v16143_v19, %v16140_v8  ;;  %v18937_v45 = vand.u32 4294901760, %v19858_v9  ;;  %v19885_v38 = vld [vmem:[#allocation33_spill] sm:$0xff]  ;;  %v19893_v9 = vand.u32 4294901760, %v19864_v25  ;;  %v19903_v25 = vld [vmem:[#allocation15_spill] sm:$0xff] }
 0x739   :  { %12574 = vmatpush3.bf16.msra.mxu0 %v12573_v28  ;;  %6237 = vmatprep.mubr.f32.mxu0 %v16472_v60  ;;  %v12579_v28 = vpack.c.bf16 %v18922_v31, %v18923_v14  ;;  %v18931_v31 = vand.u32 4294901760, %v19851_v17  ;;  %v18928_v14 = vand.u32 4294901760, %v19852_v42  ;;  %v19930_v42 = vld [vmem:[#allocation72_spill] sm:$0xff]  ;;  %v19931_v17 = vand.u32 4294901760, %v16021_v37 }
 0x73a   :  { %12576 = vmatprep.subr.bf16.mxu0 %v12575_v32  ;;  %v18930_v32 = vand.u32 4294901760, %v19853_v49  ;;  %v19896_v49 = vld [vmem:[#allocation47_spill] sm:$0xff]  ;;  %v19939_v37 = vld [vmem:[#allocation28_spill] sm:$0xff]  ;;  %v19949_v3 = vand.u32 4294901760, %v16152_v22  ;;  %v19950_v46 = vand.u32 4294901760, %v16160_v12 }
 0x73b   :  { %12322 = vmatpush3.bf16.msra.mxu1 %v19878_v33  ;;  %v12583_v33 = vpack.c.bf16 %v18925_v2, %v18926_v51  ;;  %v18935_v2 = vand.u32 4294901760, %v19855_v61  ;;  %v18934_v51 = vand.u32 4294901760, %v19856_v56  ;;  %v19894_v56 = vld [vmem:[#allocation88_spill] sm:$0xff]  ;;  %v12379_v39 = vpack.c.bf16 %v19932_v53, %v19931_v17 }
 0x73c   :  { %12324 = vmatprep.subr.bf16.mxu1 %v19879_v58  ;;  %v19880_v58 = vpack.c.bf16 %v16127_v62, %v16122_v7  ;;  %v19941_v53 = vand.u32 4294901760, %v16087_v6  ;;  %v19948_v6 = vand.u32 4294901760, %v16150_v10  ;;  %v19951_v7 = vand.u32 4294901760, %v16162_v55 }
 0x73d   :  { %12578 = vmatpush3.bf16.msra.mxu0 %v12577_v50  ;;  %v18929_v50 = vand.u32 4294901760, %v19854_v23  ;;  %v18953_v23 = vand.u32 4294901760, %v19894_v56  ;;  %v19927_v56 = vld [vmem:[#allocation48_spill] sm:$0xff] }
 0x73e   :  { %12580 = vmatprep.subr.bf16.mxu0 %v12579_v28  ;;  %v12585_v28 = vpack.c.bf16 %v18928_v14, %v18931_v31  ;;  %v19883_v14 = vpack.c.bf16 %v16162_v55, %v16160_v12  ;;  %v19892_v31 = vand.u32 4294901760, %v19863_v57  ;;  %v12385_v5 = vpack.c.bf16 %v19941_v53, %v19940_v16 }
 0x73f   :  { %12326 = vmatpush3.bf16.msra.mxu1 %v19880_v58  ;;  %v12587_v58 = vpack.c.bf16 %v18929_v50, %v18930_v32  ;;  %v18944_v32 = vand.u32 4294901760, %v19862_v41  ;;  %v12393_v30 = vpack.c.bf16 %v19949_v3, %v19948_v6 }
 0x740   :  { %12328 = vmatprep.subr.bf16.mxu1 %v19881_v43  ;;  %v19882_v43 = vpack.c.bf16 %v16152_v22, %v16150_v10  ;;  %v19956_v22 = vand.u32 4294901760, %v19896_v49 }
 0x741   :  { %12582 = vmatpush3.bf16.msra.mxu0 %v12581_v11  ;;  %v18938_v11 = vand.u32 4294901760, %v19857_v44 }
 0x742   :  { %12584 = vmatprep.subr.bf16.mxu0 %v12583_v33  ;;  %v12589_v33 = vpack.c.bf16 %v18934_v51, %v18935_v2  ;;  %v19887_v51 = vld [vmem:[#allocation44_spill] sm:$0xff]  ;;  %v19888_v2 = vld [vmem:[#allocation39_spill] sm:$0xff] }
 0x743   :  { %12330 = vmatpush3.bf16.msra.mxu1 %v19882_v43  ;;  %v12591_v43 = vpack.c.bf16 %v18937_v45, %v18938_v11  ;;  %v19889_v50 = vpack.c.bf16 %v19887_v51, %v19888_v2  ;;  %v19891_v11 = vld [vmem:[#allocation71_spill] sm:$0xff]  ;;  %v19954_v19 = vand.u32 4294901760, %v19888_v2  ;;  %v19955_v10 = vand.u32 4294901760, %v19887_v51 }
 0x744   :  { %12332 = vmatprep.subr.bf16.mxu1 %v19883_v14  ;;  %v19884_v14 = vld [vmem:[#allocation35_spill] sm:$0xff] }
 0x745   :  { %12586 = vmatpush3.bf16.msra.mxu0 %v12585_v28  ;;  %v19886_v61 = vpack.c.bf16 %v19884_v14, %v19885_v38  ;;  %v18951_v28 = vand.u32 4294901760, %v19891_v11  ;;  %v19928_v11 = vld [vmem:[#allocation52_spill] sm:$0xff] }
 0x746   :  { %12588 = vmatprep.subr.bf16.mxu0 %v12587_v58  ;;  %v19890_v58 = vand.u32 4294901760, %v19861_v20 }
 0x747   :  { %12334 = vmatpush3.bf16.msra.mxu1 %v19886_v61  ;;  %v12595_v61 = vpack.c.bf16 %v19893_v9, %v19892_v31  ;;  %v18957_v9 = vand.u32 4294901760, %v19872_v48  ;;  %v18956_v31 = vand.u32 4294901760, %v19873_v59  ;;  %v19916_v48 = vand.u32 4294901760, %v16478_v15  ;;  %v19924_v59 = vld [vmem:[#allocation21_spill] sm:$0xff]  ;;  %v19925_v15 = vld [vmem:[#allocation31_spill] sm:$0xff] }
 0x748   :  { %12336 = vmatprep.subr.bf16.mxu1 %v19889_v50  ;;  %v12593_v44 = vpack.c.bf16 %v18944_v32, %v19890_v58  ;;  %v19895_v50 = vld [vmem:[#allocation49_spill] sm:$0xff]  ;;  %v19898_v58 = vld [vmem:[#allocation55_spill] sm:$0xff] }
 0x749   :  { %12590 = vmatpush3.bf16.msra.mxu0 %v12589_v33  ;;  %v18954_v33 = vand.u32 4294901760, %v19868_v4  ;;  %v19897_v20 = vpack.c.bf16 %v19895_v50, %v19896_v49  ;;  %v19899_v32 = vld [vmem:[#allocation53_spill] sm:$0xff]  ;;  %v19957_v12 = vand.u32 4294901760, %v19895_v50 }
 0x74a   :  { %12592 = vmatprep.subr.bf16.mxu0 %v12591_v43  ;;  %v19900_v45 = vpack.c.bf16 %v19898_v58, %v19899_v32  ;;  %v19901_v43 = vand.u32 4294901760, %v19866_v13  ;;  %v19906_v13 = vld [vmem:[#allocation75_spill] sm:$0xff]  ;;  %v19958_v55 = vand.u32 4294901760, %v19899_v32 }
 0x74b   :  { %12338 = vmatpush3.bf16.msra.mxu1 %v19897_v20  ;;  %v12599_v20 = vpack.c.bf16 %v18953_v23, %v18954_v33  ;;  %v19911_v23 = vld [vmem:[#allocation97_spill] sm:$0xff]  ;;  %v19912_v33 = vmov 0.0|0.0   ;;  %v19962_v51 = vand.u32 4294901760, %v19906_v13 }
 0x74c   :  { %12340 = vmatprep.subr.bf16.mxu1 %v19900_v45  ;;  %v12597_v57 = vpack.c.bf16 %v18951_v28, %v19901_v43  ;;  %v19905_v45 = vld [vmem:[#allocation77_spill] sm:$0xff]  ;;  %v12601_v43 = vpack.c.bf16 %v18956_v31, %v18957_v9  ;;  %v19917_v31 = vld [vmem:[#allocation43_spill] sm:$0xff]  ;;  %v19921_v9 = vld [vmem:[#allocation66_spill] sm:$0xff] }
 0x74d   :  { %12594 = vmatpush3.bf16.msra.mxu0 %v12593_v44  ;;  %v19902_v44 = vld [vmem:[#allocation64_spill] sm:$0xff]  ;;  %v19907_v60 = vpack.c.bf16 %v19905_v45, %v19906_v13  ;;  %v19909_v28 = vld [vmem:[#allocation89_spill] sm:$0xff]  ;;  %v19963_v49 = vand.u32 4294901760, %v19905_v45  ;;  %v19967_v13 = vand.u32 4294901760, %v19871_v18 }
 0x74e   :  { %12596 = vmatprep.subr.bf16.mxu0 %v12595_v61  ;;  %v19904_v41 = vpack.c.bf16 %v19902_v44, %v19903_v25  ;;  %v19908_v61 = vld [vmem:[#allocation95_spill] sm:$0xff]  ;;  %v19961_v2 = vand.u32 4294901760, %v19902_v44  ;;  %v19964_v50 = vand.u32 4294901760, %v19909_v28 }
 0x74f   :  { %v19910_v4 = vpack.c.bf16 %v19908_v61, %v19909_v28  ;;  %v19965_v32 = vand.u32 4294901760, %v19908_v61  ;;  %v5721_v28 = vsub.f32 %v19871_v18, %v19967_v13  ;;  %v19971_v18 = vand.u32 4294901760, %v16077_v63 }
 0x750   :  { %12342 = vmatpush3.bf16.msra.mxu1 %v19904_v41  ;;  %v19913_v41 = vld [vmem:[#allocation23_spill] sm:$0xff] }
 0x751   :  { %12598 = vmatpush3.bf16.msra.mxu0 %v12597_v57  ;;  %12344 = vmatprep.subr.bf16.mxu1 %v19907_v60  ;;  %v19914_v57 = vld [vmem:[#allocation16_spill] sm:$0xff]  ;;  %v19915_v60 = vld [vmem:[#allocation99_spill] sm:$0xff]  ;;  %v12409_v26 = vpack.c.bf16 %v19965_v32, %v19964_v50  ;;  %v5722_v44 = vand.u32 4294901760, %v5721_v28  ;;  %v5735_v61 = vsub.f32 %v16077_v63, %v19971_v18  ;;  %v20001_v18 = vld [vmem:[#allocation14_spill] sm:$0xff] }
 0x752   :  { %12600 = vmatprep.subr.bf16.mxu0 %v12599_v20  ;;  %v16705_v20 = vld [vmem:[#allocation6] sm:$0xff] }
 0x753   :  { %19918 = vst [vmem:[#allocation34_spill] sm:$0xff] %v16705_v20  ;;  %v19997_v28 = vld [vmem:[#allocation24_spill] sm:$0xff] }
 0x754   :  { %12346 = vmatpush3.bf16.msra.mxu1 %v19910_v4  ;;  %v19919_v4 = vld [vmem:[#allocation58_spill] sm:$0xff] }
 0x755   :  { %12602 = vmatpush3.bf16.msra.mxu0 %v12601_v43  ;;  %12348 = vmatprep.subr.bf16.mxu1 %v19911_v23  ;;  %v19920_v43 = vld [vmem:[#allocation62_spill] sm:$0xff] }
 0x756   :  { %12635 = vmatprep.subr.bf16.mxu0 %v19912_v33  ;;  %v19922_v33 = vld [vmem:[#allocation70_spill] sm:$0xff] }
 0x757   :  { %5101 = vmatmul.mubr.f32.vlgmr.msra.gmra.mrb[64].mxu1 %v19913_v41 }
 0x758   :  { %6239 = vmatmul.mubr.f32.vlgmr.msra.gmra.mrb[44].mxu0 %v19914_v57  ;;  %12350 = vmatpush3.bf16.msra.mxu1 %v19915_v60  ;;  %v19923_v57 = vld [vmem:[#allocation40_spill] sm:$0xff] }
 0x759   :  { %5205 = vmatprep.mubr.f32.mxu1 %v19916_v48  ;;  %12352 = vmatprep.subr.bf16.mxu1 %v19917_v31  ;;  %v19926_v48 = vld [vmem:[#allocation73_spill] sm:$0xff] }
 0x75a   :  { %11209 = vmatprep.mubr.msk.f32.mxu0 %vm13267_vm0, %v16705_v20  ;;  %v19929_v20 = vld [vmem:[#allocation63_spill] sm:$0xff] }
 0x75c   :  { %12354 = vmatpush3.bf16.msra.mxu1 %v19919_v4 }
 0x75d   :  { %12356 = vmatprep.subr.bf16.mxu1 %v19920_v43 }
 0x760   :  { %12358 = vmatpush3.bf16.msra.mxu1 %v19921_v9 }
 0x761   :  { %12360 = vmatprep.subr.bf16.mxu1 %v19922_v33 }
 0x764   :  { %12362 = vmatpush3.bf16.msra.mxu1 %v19923_v57 }
 0x765   :  { %12364 = vmatprep.subr.bf16.mxu1 %v19924_v59 }
 0x768   :  { %12366 = vmatpush3.bf16.msra.mxu1 %v19925_v15 }
 0x769   :  { %12368 = vmatprep.subr.bf16.mxu1 %v19926_v48 }
 0x76c   :  { %12370 = vmatpush3.bf16.msra.mxu1 %v19927_v56 }
 0x76d   :  { %12372 = vmatprep.subr.bf16.mxu1 %v19928_v11 }
 0x770   :  { %12374 = vmatpush3.bf16.msra.mxu1 %v19929_v20  ;;  %v12383_v20 = vpack.c.bf16 %v19937_v52, %v19936_v24  ;;  %v19945_v52 = vand.u32 4294901760, %v16127_v62  ;;  %v19952_v62 = vand.u32 4294901760, %v19885_v38  ;;  %v19959_v38 = vand.u32 4294901760, %v19898_v58 }
 0x771   :  { %12376 = vmatprep.subr.bf16.mxu1 %v19930_v42  ;;  %v19938_v42 = vand.u32 4294901760, %v19913_v41  ;;  %v12399_v41 = vpack.c.bf16 %v19955_v10, %v19954_v19  ;;  %v19968_v58 = vand.u32 4294901760, %v16052_v36  ;;  %v19986_v10 = vld [vmem:[#allocation106_spill] sm:$0xff] }
 0x772   :  { %v12389_v24 = vpack.c.bf16 %v19945_v52, %v19944_v34  ;;  %v12403_v16 = vpack.c.bf16 %v19959_v38, %v19958_v55  ;;  %v19981_v34 = vld [vmem:[#allocation72_spill] sm:$0xff] }
 0x774   :  { %12378 = vmatpush3.bf16.msra.mxu1 %v19933_v1 }
 0x775   :  { %12380 = vmatprep.subr.bf16.mxu1 %v12379_v39  ;;  %v12395_v39 = vpack.c.bf16 %v19951_v7, %v19950_v46 }
 0x777   :  { %5209 = vmatmul.mubr.f32.vlgmr.msra.gmra.mrb[66].mxu1 %v19938_v42  ;;  %v19946_v42 = vand.u32 4294901760, %v16140_v8  ;;  %v19953_v8 = vand.u32 4294901760, %v19884_v14  ;;  %v19960_v14 = vand.u32 4294901760, %v19903_v25 }
 0x778   :  { %12382 = vmatpush3.bf16.msra.mxu1 %v12381_v21  ;;  %5375 = vmatprep.mubr.f32.mxu1 %v19939_v37 }
 0x779   :  { %12384 = vmatprep.subr.bf16.mxu1 %v12383_v20  ;;  %v12391_v21 = vpack.c.bf16 %v19947_v35, %v19946_v42  ;;  %v12397_v17 = vpack.c.bf16 %v19953_v8, %v19952_v62  ;;  %v12401_v20 = vpack.c.bf16 %v19957_v12, %v19956_v22  ;;  %v12405_v53 = vpack.c.bf16 %v19961_v2, %v19960_v14  ;;  %v19988_v12 = vld [vmem:[#allocation19_spill] sm:$0xff] }
 0x77a   :  { %v5736_v42 = vand.u32 4294901760, %v5735_v61  ;;  %v19990_v14 = vld [vmem:[#allocation27_spill] sm:$0xff]  ;;  %v20002_v61 = vand.u32 4294901760, %v20001_v18 }
 0x77c   :  { %12386 = vmatpush3.bf16.msra.mxu1 %v12385_v5  ;;  %v12407_v5 = vpack.c.bf16 %v19963_v49, %v19962_v51 }
 0x77d   :  { %12388 = vmatprep.subr.bf16.mxu1 %v12387_v27  ;;  %v19980_v27 = vand.u32 4294901760, %v19979_v40 }
 0x77f   :  { %v5749_v63 = vsub.f32 %v19979_v40, %v19980_v27 }
 0x780   :  { %12390 = vmatpush3.bf16.msra.mxu1 %v12389_v24 }
 0x781   :  { %12392 = vmatprep.subr.bf16.mxu1 %v12391_v21  ;;  %v19982_v21 = vld [vmem:[#allocation17_spill] sm:$0xff] }
 0x782   :  { %v19983_v6 = vand.u32 4294901760, %v19982_v21 }
 0x784   :  { %12394 = vmatpush3.bf16.msra.mxu1 %v12393_v30  ;;  %v5630_v3 = vsub.f32 %v19982_v21, %v19983_v6  ;;  %v19984_v30 = vld [vmem:[#allocation102_spill] sm:$0xff] }
 0x785   :  { %12396 = vmatprep.subr.bf16.mxu1 %v12395_v39  ;;  %v19985_v46 = vand.u32 4294901760, %v19984_v30 }
 0x786   :  { %v5631_v38 = vand.u32 4294901760, %v5630_v3  ;;  %v20011_v3 = vld [vmem:[#allocation59_spill] sm:$0xff] }
 0x787   :  { %v5637_v7 = vsub.f32 %v19984_v30, %v19985_v46  ;;  %v20012_v30 = vand.u32 4294901760, %v20011_v3 }
 0x788   :  { %12398 = vmatpush3.bf16.msra.mxu1 %v12397_v17  ;;  %v5750_v17 = vand.u32 4294901760, %v5749_v63  ;;  %v20009_v63 = vld [vmem:[#allocation51_spill] sm:$0xff] }
 0x789   :  { %12400 = vmatprep.subr.bf16.mxu1 %v12399_v41  ;;  %v19987_v41 = vand.u32 4294901760, %v19986_v10  ;;  %v5798_v46 = vsub.f32 %v20011_v3, %v20012_v30  ;;  %v20043_v3 = vld [vmem:[#allocation67_spill] sm:$0xff]  ;;  %v20044_v30 = vld [vmem:[#allocation81_spill] sm:$0xff] }
 0x78b   :  { %v5756_v22 = vsub.f32 %v19986_v10, %v19987_v41  ;;  %v20015_v41 = vld [vmem:[#allocation68_spill] sm:$0xff] }
 0x78c   :  { %12402 = vmatpush3.bf16.msra.mxu1 %v12401_v20  ;;  %v19989_v20 = vand.u32 4294901760, %v19988_v12 }
 0x78d   :  { %12404 = vmatprep.subr.bf16.mxu1 %v12403_v16  ;;  %v5638_v16 = vand.u32 4294901760, %v5637_v7  ;;  %v20013_v7 = vld [vmem:[#allocation60_spill] sm:$0xff] }
 0x78e   :  { %v5763_v55 = vsub.f32 %v19988_v12, %v19989_v20  ;;  %v20017_v20 = vld [vmem:[#allocation71_spill] sm:$0xff] }
 0x790   :  { %12406 = vmatpush3.bf16.msra.mxu1 %v12405_v53  ;;  %v19992_v53 = vld [vmem:[#allocation108_spill] sm:$0xff] }
 0x791   :  { %12408 = vmatprep.subr.bf16.mxu1 %v12407_v5  ;;  %v19993_v51 = vand.u32 4294901760, %v19992_v53  ;;  %v19994_v5 = vld [vmem:[#allocation13_spill] sm:$0xff] }
 0x793   :  { %v5651_v49 = vsub.f32 %v19992_v53, %v19993_v51  ;;  %v20021_v51 = vld [vmem:[#allocation88_spill] sm:$0xff] }
 0x794   :  { %12410 = vmatpush3.bf16.msra.mxu1 %v12409_v26  ;;  %v5757_v26 = vand.u32 4294901760, %v5756_v22  ;;  %v20016_v22 = vand.u32 4294901760, %v20015_v41 }
 0x795   :  { %12412 = vmatprep.subr.bf16.mxu1 %v19911_v23  ;;  %v19966_v23 = vand.u32 4294901760, %v19870_v0 }
 0x796   :  { %v5686_v12 = vsub.f32 %v20015_v41, %v20016_v22 }
 0x797   :  { %5377 = vmatmul.mubr.f32.vlgmr.msra.gmra.mrb[68].mxu1 %v16466_v29  ;;  %v5714_v25 = vsub.f32 %v19870_v0, %v19966_v23  ;;  %v19970_v0 = vand.u32 4294901760, %v16072_v54  ;;  %v5764_v23 = vand.u32 4294901760, %v5763_v55  ;;  %v20018_v55 = vand.u32 4294901760, %v20017_v20 }
 0x798   :  { %12414 = vmatpush3.bf16.msra.mxu1 %v19915_v60  ;;  %5479 = vmatprep.mubr.f32.mxu1 %v19939_v37  ;;  %v19972_v60 = vld [vmem:[#allocation63_spill] sm:$0xff] }
 0x799   :  { %12416 = vmatprep.subr.bf16.mxu1 %v19917_v31  ;;  %v5715_v31 = vand.u32 4294901760, %v5714_v25  ;;  %v5728_v45 = vsub.f32 %v16072_v54, %v19970_v0  ;;  %v19995_v25 = vld [vmem:[#allocation29_spill] sm:$0xff] }
 0x79b   :  { %v12475_v52 = vpack.c.bf16 %v5722_v44, %v5715_v31  ;;  %v5729_v24 = vand.u32 4294901760, %v5728_v45  ;;  %v5652_v31 = vand.u32 4294901760, %v5651_v49  ;;  %v19999_v44 = vld [vmem:[#allocation90_spill] sm:$0xff]  ;;  %v20022_v49 = vand.u32 4294901760, %v20021_v51 }
 0x79c   :  { %12418 = vmatpush3.bf16.msra.mxu1 %v19919_v4  ;;  %v19973_v4 = vld [vmem:[#allocation86_spill] sm:$0xff]  ;;  %v20000_v0 = vand.u32 4294901760, %v19999_v44 }
 0x79d   :  { %12420 = vmatprep.subr.bf16.mxu1 %v19920_v43  ;;  %v19975_v43 = vld [vmem:[#allocation84_spill] sm:$0xff]  ;;  %v12479_v19 = vpack.c.bf16 %v5736_v42, %v5729_v24 }
 0x79e   :  { %v5658_v45 = vsub.f32 %v19999_v44, %v20000_v0 }
 0x7a0   :  { %12422 = vmatpush3.bf16.msra.mxu1 %v19921_v9  ;;  %v19969_v9 = vand.u32 4294901760, %v16057_v47  ;;  %v5659_v24 = vand.u32 4294901760, %v5658_v45 }
 0x7a1   :  { %12424 = vmatprep.subr.bf16.mxu1 %v19922_v33  ;;  %v5602_v33 = vsub.f32 %v16052_v36, %v19968_v58  ;;  %v19998_v58 = vand.u32 4294901760, %v19997_v28 }
 0x7a4   :  { %12426 = vmatpush3.bf16.msra.mxu1 %v19923_v57  ;;  %v5603_v57 = vand.u32 4294901760, %v5602_v33  ;;  %v5777_v33 = vsub.f32 %v19997_v28, %v19998_v58  ;;  %v20025_v28 = vld [vmem:[#allocation104_spill] sm:$0xff] }
 0x7a5   :  { %12428 = vmatprep.subr.bf16.mxu1 %v19924_v59  ;;  %v5609_v59 = vsub.f32 %v16057_v47, %v19969_v9  ;;  %v19974_v47 = vand.u32 4294901760, %v19973_v4  ;;  %v12485_v9 = vpack.c.bf16 %v5638_v16, %v5631_v38  ;;  %v5693_v38 = vsub.f32 %v20017_v20, %v20018_v55 }
 0x7a6   :  { %v5799_v16 = vand.u32 4294901760, %v5798_v46  ;;  %v20026_v58 = vand.u32 4294901760, %v20025_v28  ;;  %v20045_v46 = vld [vmem:[#allocation18_spill] sm:$0xff] }
 0x7a7   :  { %v5610_v36 = vand.u32 4294901760, %v5609_v59 }
 0x7a8   :  { %12430 = vmatpush3.bf16.msra.mxu1 %v19925_v15 }
 0x7a9   :  { %12432 = vmatprep.subr.bf16.mxu1 %v19926_v48  ;;  %v19977_v48 = vld [vmem:[#allocation92_spill] sm:$0xff]  ;;  %v12477_v35 = vpack.c.bf16 %v5610_v36, %v5603_v57  ;;  %v5665_v57 = vsub.f32 %v20001_v18, %v20002_v61  ;;  %v20003_v36 = vld [vmem:[#allocation78_spill] sm:$0xff] }
 0x7aa   :  { %v19978_v37 = vand.u32 4294901760, %v19977_v48 }
 0x7ab   :  { %v5666_v42 = vand.u32 4294901760, %v5665_v57  ;;  %v20027_v57 = vld [vmem:[#allocation98_spill] sm:$0xff] }
 0x7ac   :  { %12434 = vmatpush3.bf16.msra.mxu1 %v19927_v56  ;;  %v5616_v56 = vsub.f32 %v19973_v4, %v19974_v47  ;;  %v5742_v54 = vsub.f32 %v19977_v48, %v19978_v37  ;;  %v20005_v47 = vld [vmem:[#allocation46_spill] sm:$0xff]  ;;  %v5778_v48 = vand.u32 4294901760, %v5777_v33  ;;  %v5707_v33 = vsub.f32 %v20025_v28, %v20026_v58  ;;  %v6365_v58 = vld [vmem:[#allocation9 + $0x620] sm:$0xff] }
 0x7ad   :  { %12436 = vmatprep.subr.bf16.mxu1 %v19928_v11  ;;  %v19976_v11 = vand.u32 4294901760, %v19975_v43 }
 0x7ae   :  { %v5617_v39 = vand.u32 4294901760, %v5616_v56  ;;  %v5743_v8 = vand.u32 4294901760, %v5742_v54  ;;  %v20006_v56 = vand.u32 4294901760, %v20005_v47  ;;  %v20007_v54 = vld [vmem:[#allocation85_spill] sm:$0xff]  ;;  %v5708_v45 = vand.u32 4294901760, %v5707_v33  ;;  %v6366_v33 = vld [vmem:[#allocation9 + $0x628] sm:$0xff] }
 0x7af   :  { %v5623_v15 = vsub.f32 %v19975_v43, %v19976_v11  ;;  %v12487_v11 = vpack.c.bf16 %v5764_v23, %v5757_v26  ;;  %v20008_v40 = vand.u32 4294901760, %v20007_v54  ;;  %v5687_v26 = vand.u32 4294901760, %v5686_v12 }
 0x7b0   :  { %12438 = vmatpush3.bf16.msra.mxu1 %v19972_v60  ;;  %v12483_v32 = vpack.c.bf16 %v5750_v17, %v5743_v8  ;;  %v20004_v60 = vand.u32 4294901760, %v20003_v36  ;;  %v5791_v43 = vsub.f32 %v20005_v47, %v20006_v56  ;;  %v5694_v23 = vand.u32 4294901760, %v5693_v38  ;;  %v20032_v56 = vld [vmem:[#allocation54_spill] sm:$0xff] }
 0x7b1   :  { %12440 = vmatprep.subr.bf16.mxu1 %v19981_v34  ;;  %v5624_v62 = vand.u32 4294901760, %v5623_v15  ;;  %v5672_v27 = vsub.f32 %v20007_v54, %v20008_v40  ;;  %v20010_v34 = vand.u32 4294901760, %v20009_v63  ;;  %v20038_v54 = vld [vmem:[#allocation22_spill] sm:$0xff]  ;;  %v20039_v40 = vld [vmem:[#allocation37_spill] sm:$0xff] }
 0x7b2   :  { %v5784_v4 = vsub.f32 %v20003_v36, %v20004_v60  ;;  %v5792_v21 = vand.u32 4294901760, %v5791_v43  ;;  %v12501_v44 = vpack.c.bf16 %v5694_v23, %v5687_v26  ;;  %v20028_v36 = vld [vmem:[#allocation16_spill] sm:$0xff]  ;;  %v20029_v60 = vld [vmem:[#allocation42_spill] sm:$0xff]  ;;  %v20033_v43 = vld [vmem:[#allocation57_spill] sm:$0xff] }
 0x7b3   :  { %v12481_v50 = vpack.c.bf16 %v5624_v62, %v5617_v39  ;;  %v20014_v39 = vand.u32 4294901760, %v20013_v7  ;;  %v5673_v8 = vand.u32 4294901760, %v5672_v27  ;;  %v20040_v27 = vld [vmem:[#allocation45_spill] sm:$0xff]  ;;  %v6363_v26 = vld [vmem:[#allocation9 + $0x610] sm:$0xff]  ;;  %v6364_v23 = vld [vmem:[#allocation9 + $0x618] sm:$0xff] }
 0x7b4   :  { %12442 = vmatpush3.bf16.msra.mxu1 %v19933_v1  ;;  %v19991_v1 = vand.u32 4294901760, %v19990_v14 }
 0x7b5   :  { %12476 = vmatprep.subr.bf16.mxu1 %v12475_v52  ;;  %v5679_v52 = vsub.f32 %v20009_v63, %v20010_v34  ;;  %v5805_v62 = vsub.f32 %v20013_v7, %v20014_v39  ;;  %v20046_v7 = vld [vmem:[#allocation30_spill] sm:$0xff] }
 0x7b6   :  { %v5644_v2 = vsub.f32 %v19990_v14, %v19991_v1  ;;  %v20019_v1 = vld [vmem:[#allocation83_spill] sm:$0xff]  ;;  %v20047_v39 = vand.u32 4294901760, %v20046_v7 }
 0x7b7   :  { %5481 = vmatmul.mubr.f32.vlgmr.msra.gmra.mrb[70].mxu1 %v16466_v29  ;;  %v19996_v29 = vand.u32 4294901760, %v19995_v25  ;;  %v5680_v17 = vand.u32 4294901760, %v5679_v52  ;;  %v5806_v14 = vand.u32 4294901760, %v5805_v62 }
 0x7b8   :  { %12478 = vmatpush3.bf16.msra.mxu1 %v12477_v35  ;;  %5823 = vmatprep.mubr.f32.mxu1 %v19994_v5  ;;  %v5645_v59 = vand.u32 4294901760, %v5644_v2  ;;  %v5785_v35 = vand.u32 4294901760, %v5784_v4  ;;  %v20020_v2 = vand.u32 4294901760, %v20019_v1  ;;  %v20030_v4 = vld [vmem:[#allocation32_spill] sm:$0xff] }
 0x7b9   :  { %12480 = vmatprep.subr.bf16.mxu1 %v12479_v19  ;;  %v5770_v13 = vsub.f32 %v19995_v25, %v19996_v29  ;;  %v12493_v19 = vpack.c.bf16 %v5666_v42, %v5659_v24  ;;  %v20023_v25 = vld [vmem:[#allocation26_spill] sm:$0xff]  ;;  %v20031_v47 = vand.u32 4294901760, %v20030_v4 }
 0x7ba   :  { %v12489_v37 = vpack.c.bf16 %v5652_v31, %v5645_v59  ;;  %v12495_v10 = vpack.c.bf16 %v5792_v21, %v5785_v35  ;;  %v5812_v53 = vsub.f32 %v20019_v1, %v20020_v2  ;;  %v20024_v29 = vand.u32 4294901760, %v20023_v25  ;;  %v20041_v35 = vld [vmem:[#allocation50_spill] sm:$0xff] }
 0x7bb   :  { %v5771_v15 = vand.u32 4294901760, %v5770_v13 }
 0x7bc   :  { %12482 = vmatpush3.bf16.msra.mxu1 %v12481_v50  ;;  %v5819_v50 = vsub.f32 %v20021_v51, %v20022_v49  ;;  %v5700_v13 = vsub.f32 %v20023_v25, %v20024_v29  ;;  %v5813_v59 = vand.u32 4294901760, %v5812_v53  ;;  %v6381_v29 = vand.u32 4294901760, %v6363_v26 }
 0x7bd   :  { %12484 = vmatprep.subr.bf16.mxu1 %v12483_v32  ;;  %v12491_v6 = vpack.c.bf16 %v5778_v48, %v5771_v15  ;;  %v12497_v32 = vpack.c.bf16 %v5680_v17, %v5673_v8  ;;  %v20035_v15 = vld [vmem:[#allocation65_spill] sm:$0xff] }
 0x7be   :  { %v5820_v31 = vand.u32 4294901760, %v5819_v50  ;;  %v5701_v0 = vand.u32 4294901760, %v5700_v13  ;;  %v20036_v48 = vld [vmem:[#allocation69_spill] sm:$0xff]  ;;  %v6384_v13 = vand.u32 4294901760, %v6364_v23 }
 0x7c0   :  { %12486 = vmatpush3.bf16.msra.mxu1 %v12485_v9  ;;  %v12499_v9 = vpack.c.bf16 %v5806_v14, %v5799_v16  ;;  %v12503_v18 = vpack.c.bf16 %v5820_v31, %v5813_v59  ;;  %v12505_v61 = vpack.c.bf16 %v5708_v45, %v5701_v0  ;;  %v16952_v28 = vpack.c.bf16 %v6384_v13, %v6381_v29  ;;  %v6367_v0 = vld [vmem:[#allocation9 + $0x630] sm:$0xff]  ;;  %v6368_v45 = vld [vmem:[#allocation9 + $0x638] sm:$0xff] }
 0x7c1   :  { %12488 = vmatprep.subr.bf16.mxu1 %v12487_v11  ;;  %v20034_v11 = vld [vmem:[#allocation61_spill] sm:$0xff]  ;;  %v6390_v59 = vand.u32 4294901760, %v6366_v33  ;;  %v20048_v31 = vmov 0.0|0.0  }
 0x7c2   :  { %12637 = vmatpush3.bf16.msra.mxu0 %v16952_v28 }
 0x7c3   :  { %12638 = vmatprep.subr.bf16.mxu0 %v20048_v31 }
 0x7c4   :  { %12490 = vmatpush3.bf16.msra.mxu1 %v12489_v37  ;;  %v20037_v37 = vld [vmem:[#allocation74_spill] sm:$0xff] }
 0x7c5   :  { %12492 = vmatprep.subr.bf16.mxu1 %v12491_v6  ;;  %v20042_v6 = vld [vmem:[#allocation56_spill] sm:$0xff] }
 0x7c8   :  { %12494 = vmatpush3.bf16.msra.mxu1 %v12493_v19 }
 0x7c9   :  { %12496 = vmatprep.subr.bf16.mxu1 %v12495_v10 }
 0x7cc   :  { %12498 = vmatpush3.bf16.msra.mxu1 %v12497_v32 }
 0x7cd   :  { %12500 = vmatprep.subr.bf16.mxu1 %v12499_v9  ;;  %v6387_v9 = vand.u32 4294901760, %v6365_v58 }
 0x7d0   :  { %12502 = vmatpush3.bf16.msra.mxu1 %v12501_v44  ;;  %v16956_v44 = vpack.c.bf16 %v6390_v59, %v6387_v9 }
 0x7d1   :  { %12504 = vmatprep.subr.bf16.mxu1 %v12503_v18  ;;  %v6393_v18 = vand.u32 4294901760, %v6367_v0 }
 0x7d2   :  { %12640 = vmatpush3.bf16.msra.mxu0 %v16956_v44 }
 0x7d3   :  { %12641 = vmatprep.subr.bf16.mxu0 %v20048_v31 }
 0x7d4   :  { %12506 = vmatpush3.bf16.msra.mxu1 %v12505_v61  ;;  %v6396_v61 = vand.u32 4294901760, %v6368_v45 }
 0x7d5   :  { %12540 = vmatprep.subr.bf16.mxu1 %v20027_v57 }
 0x7d7   :  { %5825 = vmatmul.mubr.f32.vlgmr.msra.gmra.mrb[72].mxu1 %v20028_v36 }
 0x7d8   :  { %12542 = vmatpush3.bf16.msra.mxu1 %v20029_v60  ;;  %6067 = vmatprep.mubr.f32.mxu1 %v20031_v47 }
 0x7d9   :  { %12544 = vmatprep.subr.bf16.mxu1 %v20032_v56 }
 0x7dc   :  { %12546 = vmatpush3.bf16.msra.mxu1 %v20033_v43 }
 0x7dd   :  { %12548 = vmatprep.subr.bf16.mxu1 %v20034_v11 }
 0x7e0   :  { %12550 = vmatpush3.bf16.msra.mxu1 %v20035_v15 }
 0x7e1   :  { %12552 = vmatprep.subr.bf16.mxu1 %v20036_v48 }
 0x7e4   :  { %12554 = vmatpush3.bf16.msra.mxu1 %v20037_v37 }
 0x7e5   :  { %12556 = vmatprep.subr.bf16.mxu1 %v20038_v54 }
 0x7e8   :  { %12558 = vmatpush3.bf16.msra.mxu1 %v20039_v40 }
 0x7e9   :  { %12560 = vmatprep.subr.bf16.mxu1 %v20040_v27  ;;  %v9847_v63 = vpop.f32.mrb[60].mxu1 }
 0x7ea   :  { %v9848_v52 = vpop.f32.mrb[61].mxu1 }
 0x7eb   :  { %v10057_v34 = vpop.f32.mrb[40].mxu0  ;;  %v9849_v24 = vadd.f32 %v9848_v52, %v9847_v63  ;;  %v6375_v63 = vld [vmem:[#allocation9 + $0x670] sm:$0xff]  ;;  %v16977_v52 = vsub.f32 %v6368_v45, %v6396_v61 }
 0x7ec   :  { %v10058_v42 = vpop.f32.mrb[41].mxu0  ;;  %12562 = vmatpush3.bf16.msra.mxu1 %v20041_v35 }
 0x7ed   :  { %v16920_v21 = vadd.f32 %v10058_v42, %v10057_v34  ;;  %12564 = vmatprep.subr.bf16.mxu1 %v20042_v6  ;;  %v16975_v34 = vsub.f32 %v6367_v0, %v6393_v18 }
 0x7f0   :  { %12566 = vmatpush3.bf16.msra.mxu1 %v20043_v3 }
 0x7f1   :  { %12568 = vmatprep.subr.bf16.mxu1 %v20044_v30 }
 0x7f4   :  { %12570 = vmatpush3.bf16.msra.mxu1 %v20045_v46 }
 0x7f5   :  { %12604 = vmatprep.subr.bf16.mxu1 %v20027_v57  ;;  %v16960_v57 = vpack.c.bf16 %v6396_v61, %v6393_v18 }
 0x7f7   :  { %6071 = vmatmul.mubr.f32.vlgmr.msra.gmra.mrb[74].mxu1 %v20047_v39  ;;  %12643 = vmatpush3.bf16.msra.mxu0 %v16960_v57 }
 0x7f8   :  { %12606 = vmatpush3.bf16.msra.mxu1 %v20029_v60  ;;  %6341 = vmatprep.mubr.f32.mxu1 %v19994_v5  ;;  %v6370_v60 = vld [vmem:[#allocation9 + $0x648] sm:$0xff] }
 0x7f9   :  { %12608 = vmatprep.subr.bf16.mxu1 %v20032_v56  ;;  %v6402_v47 = vand.u32 4294901760, %v6370_v60  ;;  %12644 = vmatprep.subr.bf16.mxu0 %v20048_v31 }
 0x7fb   :  { %v16981_v42 = vsub.f32 %v6370_v60, %v6402_v47  ;;  %v18986_v60 = vand.u32 4294901760, %v16975_v34 }
 0x7fc   :  { %12610 = vmatpush3.bf16.msra.mxu1 %v20033_v43  ;;  %v6371_v43 = vld [vmem:[#allocation9 + $0x650] sm:$0xff] }
 0x7fd   :  { %12612 = vmatprep.subr.bf16.mxu1 %v20034_v11  ;;  %v6372_v11 = vld [vmem:[#allocation9 + $0x658] sm:$0xff] }
 0x800   :  { %12614 = vmatpush3.bf16.msra.mxu1 %v20035_v15  ;;  %v16966_v15 = vsub.f32 %v6363_v26, %v6381_v29 }
 0x801   :  { %12616 = vmatprep.subr.bf16.mxu1 %v20036_v48  ;;  %v16968_v48 = vsub.f32 %v6364_v23, %v6384_v13 }
 0x804   :  { %12618 = vmatpush3.bf16.msra.mxu1 %v20037_v37  ;;  %v16970_v37 = vsub.f32 %v6365_v58, %v6387_v9 }
 0x805   :  { %12620 = vmatprep.subr.bf16.mxu1 %v20038_v54  ;;  %v16972_v54 = vsub.f32 %v6366_v33, %v6390_v59 }
 0x806   :  { %v6488_v59 = vand.u32 4294901760, %v16970_v37 }
 0x807   :  { %v6495_v0 = vand.u32 4294901760, %v16972_v54 }
 0x808   :  { %12622 = vmatpush3.bf16.msra.mxu1 %v20039_v40  ;;  %v6373_v40 = vld [vmem:[#allocation9 + $0x660] sm:$0xff]  ;;  %v6489_v61 = vsub.f32 %v16970_v37, %v6488_v59 }
 0x809   :  { %12624 = vmatprep.subr.bf16.mxu1 %v20040_v27  ;;  %v9882_v62 = vpop.f32.mrb[62].mxu1  ;;  %v6374_v27 = vld [vmem:[#allocation9 + $0x668] sm:$0xff]  ;;  %v6411_v7 = vand.u32 4294901760, %v6373_v40 }
 0x80a   :  { %v9883_v8 = vpop.f32.mrb[63].mxu1  ;;  %v6414_v39 = vand.u32 4294901760, %v6374_v27 }
 0x80b   :  { %v10127_v5 = vpop.f32.mrb[42].mxu0  ;;  %v9884_v17 = vadd.f32 %v9883_v8, %v9882_v62  ;;  %v6417_v62 = vand.u32 4294901760, %v6375_v63 }
 0x80c   :  { %v10128_v19 = vpop.f32.mrb[43].mxu0  ;;  %12626 = vmatpush3.bf16.msra.mxu1 %v20041_v35  ;;  %v6376_v35 = vld [vmem:[#allocation9 + $0x678] sm:$0xff] }
 0x80d   :  { %v16941_v10 = vadd.f32 %v10128_v19, %v10127_v5  ;;  %12628 = vmatprep.subr.bf16.mxu1 %v20042_v6  ;;  %v4965_v41 = vadd.f32 %v9884_v17, %v9849_v24  ;;  %v6377_v6 = vld [vmem:[#allocation9 + $0x680] sm:$0xff]  ;;  %v6420_v5 = vand.u32 4294901760, %v6376_v35 }
 0x80e   :  { %v6423_v8 = vand.u32 4294901760, %v6377_v6 }
 0x810   :  { %12630 = vmatpush3.bf16.msra.mxu1 %v20043_v3  ;;  %v6378_v3 = vld [vmem:[#allocation9 + $0x688] sm:$0xff] }
 0x811   :  { %12632 = vmatprep.subr.bf16.mxu1 %v20044_v30  ;;  %v6405_v30 = vand.u32 4294901760, %v6371_v43 }
 0x813   :  { %v16986_v19 = vsub.f32 %v6371_v43, %v6405_v30 }
 0x814   :  { %12634 = vmatpush3.bf16.msra.mxu1 %v20045_v46  ;;  %v6408_v46 = vand.u32 4294901760, %v6372_v11 }
 0x816   :  { %v16984_v17 = vpack.c.bf16 %v6408_v46, %v6405_v30 }
 0x817   :  { %6343 = vmatmul.mubr.f32.vlgmr.msra.gmra.mrb[76].mxu1 %v20028_v36  ;;  %v6369_v36 = vld [vmem:[#allocation9 + $0x640] sm:$0xff] }
 0x818   :  { %v6399_v4 = vand.u32 4294901760, %v6369_v36 }
 0x81a   :  { %v16964_v56 = vpack.c.bf16 %v6402_v47, %v6399_v4  ;;  %v16979_v24 = vsub.f32 %v6369_v36, %v6399_v4  ;;  %v6490_v36 = vand.u32 4294901760, %v6489_v61  ;;  %v18985_v4 = vand.u32 4294901760, %v16977_v52 }
 0x81b   :  { %v6503_v47 = vsub.f32 %v16975_v34, %v18986_v60 }
 0x81c   :  { %12646 = vmatpush3.bf16.msra.mxu0 %v16964_v56  ;;  %v6510_v43 = vsub.f32 %v16977_v52, %v18985_v4 }
 0x81d   :  { %12647 = vmatprep.subr.bf16.mxu0 %v20048_v31 }
 0x820   :  { %12649 = vmatpush3.bf16.msra.mxu0 %v16984_v17 }
 0x821   :  { %12650 = vmatprep.subr.bf16.mxu0 %v20048_v31 }
 0x82a   :  { %v9917_v22 = vpop.f32.mrb[64].mxu1 }
 0x82b   :  { %v10197_v12 = vpop.f32.mrb[44].mxu0  ;;  %v9918_v20 = vpop.f32.mrb[65].mxu1 }
 0x82c   :  { %v9919_v55 = vadd.f32 %v9918_v20, %v9917_v22  ;;  %v10198_v38 = vpop.f32.mrb[45].mxu0  ;;  %v6426_v22 = vand.u32 4294901760, %v6378_v3  ;;  %v16992_v20 = vsub.f32 %v6374_v27, %v6414_v39  ;;  %v6511_v27 = vand.u32 4294901760, %v6510_v43 }
 0x82d   :  { %v16948_v16 = vadd.f32 %v10198_v38, %v10197_v12  ;;  %v16990_v12 = vsub.f32 %v6373_v40, %v6411_v7  ;;  %v16997_v38 = vpack.c.bf16 %v6414_v39, %v6411_v7  ;;  %v6504_v40 = vand.u32 4294901760, %v6503_v47 }
 0x82e   :  { %v5103_v14 = vadd.f32 %v9919_v55, %v4965_v41  ;;  %v16988_v41 = vsub.f32 %v6372_v11, %v6408_v46  ;;  %v16994_v55 = vsub.f32 %v6375_v63, %v6417_v62  ;;  %v17013_v23 = vpack.c.bf16 %v6426_v22, %v6423_v8 }
 0x82f   :  { %12652 = vmatpush3.bf16.msra.mxu0 %v16997_v38  ;;  %v18984_v63 = vand.u32 4294901760, %v16979_v24  ;;  %v18982_v39 = vand.u32 4294901760, %v16986_v19 }
 0x830   :  { %12653 = vmatprep.subr.bf16.mxu0 %v20048_v31 }
 0x84a   :  { %v9952_v1 = vpop.f32.mrb[66].mxu1 }
 0x84b   :  { %v9953_v2 = vpop.f32.mrb[67].mxu1 }
 0x84c   :  { %v9954_v53 = vadd.f32 %v9953_v2, %v9952_v1  ;;  %v17001_v1 = vsub.f32 %v6377_v6, %v6423_v8  ;;  %v17003_v2 = vsub.f32 %v6378_v3, %v6426_v22  ;;  %v17048_v6 = vpack.c.bf16 %v6511_v27, %v6504_v40 }
 0x84d   :  { %v6517_v3 = vsub.f32 %v16979_v24, %v18984_v63  ;;  %v6531_v8 = vsub.f32 %v16986_v19, %v18982_v39 }
 0x84e   :  { %v5211_v51 = vadd.f32 %v9954_v53, %v5103_v14  ;;  %v16999_v14 = vsub.f32 %v6376_v35, %v6420_v5  ;;  %v17007_v53 = vpack.c.bf16 %v6420_v5, %v6417_v62  ;;  %v18983_v35 = vand.u32 4294901760, %v16981_v42 }
 0x84f   :  { %v6518_v46 = vand.u32 4294901760, %v6517_v3  ;;  %v18981_v62 = vand.u32 4294901760, %v16988_v41  ;;  %v18976_v3 = vand.u32 4294901760, %v17001_v1 }
 0x850   :  { %12655 = vmatpush3.bf16.msra.mxu0 %v17007_v53  ;;  %v6524_v30 = vsub.f32 %v16981_v42, %v18983_v35 }
 0x851   :  { %12656 = vmatprep.subr.bf16.mxu0 %v20048_v31  ;;  %v6538_v22 = vsub.f32 %v16988_v41, %v18981_v62 }
 0x852   :  { %v6525_v7 = vand.u32 4294901760, %v6524_v30  ;;  %v18975_v30 = vand.u32 4294901760, %v17003_v2 }
 0x854   :  { %12658 = vmatpush3.bf16.msra.mxu0 %v17013_v23  ;;  %v17058_v5 = vpack.c.bf16 %v6525_v7, %v6518_v46  ;;  %v6573_v7 = vsub.f32 %v17001_v1, %v18976_v3 }
 0x855   :  { %12659 = vmatprep.subr.bf16.mxu0 %v20048_v31 }
 0x86a   :  { %v9987_v49 = vpop.f32.mrb[68].mxu1 }
 0x86b   :  { %v9988_v50 = vpop.f32.mrb[69].mxu1 }
 0x86c   :  { %v9989_v32 = vadd.f32 %v9988_v50, %v9987_v49  ;;  %v6474_v49 = vand.u32 4294901760, %v16966_v15  ;;  %v6481_v50 = vand.u32 4294901760, %v16968_v48 }
 0x86e   :  { %v16950_v25 = vadd.f32 %v9989_v32, %v5211_v51  ;;  %v6475_v29 = vsub.f32 %v16966_v15, %v6474_v49  ;;  %v6482_v13 = vsub.f32 %v16968_v48, %v6481_v50 }
 0x870   :  { %v6476_v33 = vand.u32 4294901760, %v6475_v29  ;;  %v6483_v9 = vand.u32 4294901760, %v6482_v13  ;;  %v18979_v29 = vand.u32 4294901760, %v16992_v20 }
 0x872   :  { %v17027_v18 = vpack.c.bf16 %v6483_v9, %v6476_v33  ;;  %v6552_v33 = vsub.f32 %v16992_v20, %v18979_v29 }
 0x874   :  { %v6553_v61 = vand.u32 4294901760, %v6552_v33 }
 0x88a   :  { %v10022_v51 = vpop.f32.mrb[70].mxu1 }
 0x88b   :  { %v10023_v32 = vpop.f32.mrb[71].mxu1 }
 0x88c   :  { %v10024_v26 = vadd.f32 %v10023_v32, %v10022_v51  ;;  %v6532_v51 = vand.u32 4294901760, %v6531_v8  ;;  %v6539_v32 = vand.u32 4294901760, %v6538_v22  ;;  %v6580_v8 = vsub.f32 %v17003_v2, %v18975_v30 }
 0x88d   :  { %v12693_v30 = vpack.c.bf16 %v16981_v42, %v16979_v24 }
 0x88e   :  { %v5483_v58 = vadd.f32 %v10024_v26, %v16950_v25  ;;  %v6496_v25 = vsub.f32 %v16972_v54, %v6495_v0  ;;  %v18980_v26 = vand.u32 4294901760, %v16990_v12  ;;  %v17068_v13 = vpack.c.bf16 %v6539_v32, %v6532_v51 }
 0x88f   :  { %v6574_v51 = vand.u32 4294901760, %v6573_v7  ;;  %v6581_v32 = vand.u32 4294901760, %v6580_v8  ;;  %v12696_v7 = vpack.c.bf16 %v16988_v41, %v16986_v19 }
 0x890   :  { %v5595_v45 = vadd.f32 %v16920_v21, %v5483_v58  ;;  %v6497_v21 = vand.u32 4294901760, %v6496_v25  ;;  %v6545_v58 = vsub.f32 %v16990_v12, %v18980_v26  ;;  %v18978_v25 = vand.u32 4294901760, %v16994_v55 }
 0x892   :  { %v17044_v11 = vpack.c.bf16 %v6497_v21, %v6490_v36  ;;  %v6546_v9 = vand.u32 4294901760, %v6545_v58  ;;  %v18977_v36 = vand.u32 4294901760, %v16999_v14  ;;  %v6559_v47 = vsub.f32 %v16994_v55, %v18978_v25 }
 0x894   :  { %v17078_v21 = vpack.c.bf16 %v6553_v61, %v6546_v9  ;;  %v6566_v43 = vsub.f32 %v16999_v14, %v18977_v36  ;;  %v6560_v40 = vand.u32 4294901760, %v6559_v47  ;;  %v12681_v9 = vpack.c.bf16 %v6581_v32, %v6574_v51 }
 0x896   :  { %v6567_v27 = vand.u32 4294901760, %v6566_v43  ;;  %v12684_v43 = vpack.c.bf16 %v16968_v48, %v16966_v15  ;;  %v20050_v15 = vand.u32 4294901760, %v16975_v34  ;;  %v20051_v48 = vand.u32 4294901760, %v16977_v52 }
 0x898   :  { %v12678_v46 = vpack.c.bf16 %v6567_v27, %v6560_v40  ;;  %v12687_v40 = vpack.c.bf16 %v16972_v54, %v16970_v37  ;;  %v12690_v27 = vpack.c.bf16 %v16977_v52, %v16975_v34  ;;  %v20053_v37 = vand.u32 4294901760, %v16981_v42 }
 0x899   :  { %v20056_v34 = vand.u32 4294901760, %v16990_v12  ;;  %v20057_v52 = vand.u32 4294901760, %v16992_v20  ;;  %v20059_v42 = vand.u32 4294901760, %v16999_v14 }
 0x8aa   :  { %v10092_v22 = vpop.f32.mrb[72].mxu1 }
 0x8ab   :  { %v10093_v58 = vpop.f32.mrb[73].mxu1 }
 0x8ac   :  { %v10094_v33 = vadd.f32 %v10093_v58, %v10092_v22  ;;  %v12705_v22 = vpack.c.bf16 %v17003_v2, %v17001_v1 }
 0x8ae   :  { %v5827_v61 = vadd.f32 %v10094_v33, %v5595_v45  ;;  %v12699_v45 = vpack.c.bf16 %v16992_v20, %v16990_v12  ;;  %v17241_v12 = vld [vmem:[#allocation9 + $0x820] sm:$0xff] }
 0x8b0   :  { %v5965_v47 = vadd.f32 %v16941_v10, %v5827_v61  ;;  %v12702_v10 = vpack.c.bf16 %v16999_v14, %v16994_v55 }
 0x8ca   :  { %v10162_v8 = vpop.f32.mrb[74].mxu1 }
 0x8cb   :  { %v10163_v51 = vpop.f32.mrb[75].mxu1 }
 0x8cc   :  { %v10164_v32 = vadd.f32 %v10163_v51, %v10162_v8 }
 0x8ce   :  { %v6073_v58 = vadd.f32 %v10164_v32, %v5965_v47 }
 0x8d0   :  { %v6241_v33 = vadd.f32 %v16948_v16, %v6073_v58 }
 0x8ea   :  { %v10232_v61 = vpop.f32.mrb[76].mxu1 }
 0x8eb   :  { %v10233_v3 = vpop.f32.mrb[77].mxu1 }
 0x8ec   :  { %v10234_v36 = vadd.f32 %v10233_v3, %v10232_v61 }
 0x8ee   :  { %v17112_v25 = vadd.f32 %v10234_v36, %v6241_v33 }
 0x8f0   :  { %v6348_v29 = vrot.slane %v17112_v25, 4  ;;  %v6355_v26 = vmul.f32 %v17112_v25, %v17112_v25 }
 0x8f2   :  { %v6349_v62 = vadd.f32 %v6348_v29, %v17112_v25  ;;  %v6356_v39 = vrot.slane %v6355_v26, 4 }
 0x8f4   :  { %v6350_v35 = vrot.slane %v6349_v62, 2  ;;  %v6357_v63 = vadd.f32 %v6356_v39, %v6355_v26 }
 0x8f6   :  { %v6351_v4 = vadd.f32 %v6350_v35, %v6349_v62  ;;  %v6358_v8 = vrot.slane %v6357_v63, 2  ;;  %v20049_v35 = vld [vmem:[#allocation34_spill] sm:$0xff] }
 0x8f8   :  { %v6352_v47 = vrot.slane %v6351_v4, 1  ;;  %v6359_v51 = vadd.f32 %v6358_v8, %v6357_v63 }
 0x8fa   :  { %v6353_v16 = vadd.f32 %v6352_v47, %v6351_v4  ;;  %v6360_v32 = vrot.slane %v6359_v51, 1  ;;  %v17302_v47 = vld [vmem:[#allocation9 + $0x7a8] sm:$0xff] }
 0x8fc   :  { %6354 = vst [vmem:[#allocation3] sm:$0x1] %v6353_v16  ;;  %v6361_v3 = vadd.f32 %v6360_v32, %v6359_v51  ;;  %v17304_v51 = vld [vmem:[#allocation9 + $0x7b0] sm:$0xff]  ;;  %v18994_v32 = vand.u32 4294901760, %v17302_v47 }
 0x8fe   :  { %6362 = vst [vmem:[#allocation3 + $0x1] sm:$0x1] %v6361_v3  ;;  %v18993_v3 = vand.u32 4294901760, %v17304_v51 }
 0x905   :  { %v6379_v36 = vld [vmem:[#allocation3] sm:$0xff] }
 0x906   :  { %v17118_v58 = vand.u32 4294901760, %v6379_v36 }
 0x908   :  { %v6462_v33 = vsub.f32 %v6379_v36, %v17118_v58 }
 0x90a   :  { %v6463_v61 = vand.u32 4294901760, %v6462_v33 }
 0x90c   :  { %v6464_v60 = vsub.f32 %v6462_v33, %v6463_v61 }
 0x90e   :  { %v6465_v29 = vand.u32 4294901760, %v6464_v60  ;;  %v12735_v60 = vpack.c.bf16 %v6495_v0, %v6488_v59  ;;  %v20054_v59 = vand.u32 4294901760, %v16986_v19  ;;  %v20055_v0 = vand.u32 4294901760, %v16988_v41 }
 0x90f   :  { %v20060_v19 = vand.u32 4294901760, %v17001_v1  ;;  %v20061_v41 = vand.u32 4294901760, %v17003_v2  ;;  %v17251_v2 = vld [vmem:[#allocation9 + $0x798] sm:$0xff] }
 0x910   :  { %11210 = vmatmul.mubr.f32.vlgmr.msra.gmra.mrb[46].mxu0 %v6465_v29  ;;  %v12744_v4 = vpack.c.bf16 %v20055_v0, %v20054_v59  ;;  %v19004_v39 = vand.u32 4294901760, %v17251_v2  ;;  %v17331_v29 = vld [vmem:[#allocation9 + $0x838] sm:$0xff] }
 0x911   :  { %12661 = vmatpush3.bf16.msra.mxu0 %v17027_v18  ;;  %11244 = vmatprep.mubr.msk.f32.mxu0 %vm13267_vm0, %v20049_v35  ;;  %v12732_v18 = vpack.c.bf16 %v6481_v50, %v6474_v49  ;;  %v12738_v49 = vpack.c.bf16 %v20051_v48, %v20050_v15  ;;  %v20052_v50 = vand.u32 4294901760, %v16979_v24  ;;  %v20058_v24 = vand.u32 4294901760, %v16994_v55  ;;  %v17244_v55 = vld [vmem:[#allocation9 + $0x698] sm:$0xff]  ;;  %v17342_v15 = vld [vmem:[#allocation9 + $0x840] sm:$0xff] }
 0x912   :  { %12662 = vmatprep.subr.bf16.mxu0 %v20048_v31  ;;  %v19006_v14 = vand.u32 4294901760, %v17244_v55  ;;  %v18988_v48 = vand.u32 4294901760, %v17331_v29  ;;  %v17354_v0 = vld [vmem:[#allocation9 + $0x7b8] sm:$0xff] }
 0x913   :  { %v12741_v54 = vpack.c.bf16 %v20053_v37, %v20052_v50  ;;  %v12750_v63 = vpack.c.bf16 %v20059_v42, %v20058_v24  ;;  %v17347_v50 = vld [vmem:[#allocation9 + $0x6c0] sm:$0xff]  ;;  %v18987_v37 = vand.u32 4294901760, %v17342_v15 }
 0x914   :  { %v18989_v59 = vand.u32 4294901760, %v17347_v50 }
 0x915   :  { %12664 = vmatpush3.bf16.msra.mxu0 %v17044_v11  ;;  %v12747_v11 = vpack.c.bf16 %v20057_v52, %v20056_v34  ;;  %v18999_v52 = vand.u32 4294901760, %v17354_v0  ;;  %v17371_v24 = vpack.c.bf16 %v18987_v37, %v18988_v48 }
 0x916   :  { %12665 = vmatprep.subr.bf16.mxu0 %v20048_v31 }
 0x917   :  { %20071 = vst [vmem:[#allocation109_spill] sm:$0xff] %v17371_v24 }
 0x919   :  { %12667 = vmatpush3.bf16.msra.mxu0 %v17048_v6  ;;  %v12753_v6 = vpack.c.bf16 %v20061_v41, %v20060_v19  ;;  %v17381_v19 = vld [vmem:[#allocation9 + $0x750] sm:$0xff]  ;;  %v17383_v41 = vld [vmem:[#allocation9 + $0x848] sm:$0xff] }
 0x91a   :  { %12668 = vmatprep.subr.bf16.mxu0 %v20048_v31  ;;  %v7209_v48 = vand.u32 4294901760, %v17381_v19 }
 0x91d   :  { %12670 = vmatpush3.bf16.msra.mxu0 %v17058_v5 }
 0x91e   :  { %12671 = vmatprep.subr.bf16.mxu0 %v20048_v31 }
 0x921   :  { %12673 = vmatpush3.bf16.msra.mxu0 %v17068_v13  ;;  %v17275_v13 = vld [vmem:[#allocation9 + $0x728] sm:$0xff] }
 0x922   :  { %12674 = vmatprep.subr.bf16.mxu0 %v20048_v31 }
 0x925   :  { %12676 = vmatpush3.bf16.msra.mxu0 %v17078_v21  ;;  %v17277_v21 = vld [vmem:[#allocation9 + $0x730] sm:$0xff] }
 0x926   :  { %12677 = vmatprep.subr.bf16.mxu0 %v20048_v31 }
 0x929   :  { %12679 = vmatpush3.bf16.msra.mxu0 %v12678_v46 }
 0x92a   :  { %12680 = vmatprep.subr.bf16.mxu0 %v20048_v31 }
 0x92d   :  { %12682 = vmatpush3.bf16.msra.mxu0 %v12681_v9  ;;  %v19002_v9 = vand.u32 4294901760, %v17275_v13 }
 0x92e   :  { %12683 = vmatprep.subr.bf16.mxu0 %v20048_v31 }
 0x930   :  { %11245 = vmatmul.mubr.f32.vlgmr.msra.gmra.mrb[46].mxu0 %v17118_v58 }
 0x931   :  { %12685 = vmatpush3.bf16.msra.mxu0 %v12684_v43  ;;  %11279 = vmatprep.mubr.msk.f32.mxu0 %vm13267_vm0, %v20049_v35  ;;  %v19001_v43 = vand.u32 4294901760, %v17277_v21 }
 0x932   :  { %12686 = vmatprep.subr.bf16.mxu0 %v20048_v31 }
 0x933   :  { %v17311_v16 = vpack.c.bf16 %v19001_v43, %v19002_v9 }
 0x935   :  { %12688 = vmatpush3.bf16.msra.mxu0 %v12687_v40  ;;  %v17290_v40 = vld [vmem:[#allocation9 + $0x830] sm:$0xff]  ;;  %20066 = vst [vmem:[#allocation82_spill] sm:$0xff] %v17311_v16 }
 0x936   :  { %12689 = vmatprep.subr.bf16.mxu0 %v20048_v31 }
 0x939   :  { %12691 = vmatpush3.bf16.msra.mxu0 %v12690_v27 }
 0x93a   :  { %12692 = vmatprep.subr.bf16.mxu0 %v20048_v31 }
 0x93d   :  { %12694 = vmatpush3.bf16.msra.mxu0 %v12693_v30  ;;  %v17279_v30 = vld [vmem:[#allocation9 + $0x828] sm:$0xff] }
 0x93e   :  { %12695 = vmatprep.subr.bf16.mxu0 %v20048_v31  ;;  %v19000_v27 = vand.u32 4294901760, %v17279_v30 }
 0x941   :  { %12697 = vmatpush3.bf16.msra.mxu0 %v12696_v7  ;;  %v17293_v7 = vld [vmem:[#allocation9 + $0x6a8] sm:$0xff] }
 0x942   :  { %12698 = vmatprep.subr.bf16.mxu0 %v20048_v31 }
 0x945   :  { %12700 = vmatpush3.bf16.msra.mxu0 %v12699_v45  ;;  %v17295_v45 = vld [vmem:[#allocation9 + $0x6b0] sm:$0xff] }
 0x946   :  { %12701 = vmatprep.subr.bf16.mxu0 %v20048_v31  ;;  %v18995_v8 = vand.u32 4294901760, %v17295_v45 }
 0x949   :  { %12703 = vmatpush3.bf16.msra.mxu0 %v12702_v10  ;;  %v18997_v10 = vand.u32 4294901760, %v17290_v40 }
 0x94a   :  { %12704 = vmatprep.subr.bf16.mxu0 %v20048_v31 }
 0x94b   :  { %v17319_v36 = vpack.c.bf16 %v18997_v10, %v19000_v27  ;;  %v7114_v10 = vld [vmem:[#allocation9 + $0x7d0] sm:$0xff] }
 0x94c   :  { %v8023_v27 = vand.u32 4294901760, %v7114_v10 }
 0x94d   :  { %12706 = vmatpush3.bf16.msra.mxu0 %v12705_v22  ;;  %v18996_v22 = vand.u32 4294901760, %v17293_v7  ;;  %20067 = vst [vmem:[#allocation87_spill] sm:$0xff] %v17319_v36 }
 0x94e   :  { %12707 = vmatprep.subr.bf16.mxu0 %v20048_v31 }
 0x950   :  { %11280 = vmatmul.mubr.f32.vlgmr.msra.gmra.mrb[46].mxu0 %v6462_v33  ;;  %v17327_v33 = vld [vmem:[#allocation9 + $0x738] sm:$0xff] }
 0x951   :  { %12709 = vmatpush3.bf16.msra.mxu0 %v16952_v28  ;;  %11314 = vmatprep.mubr.msk.f32.mxu0 %vm13267_vm0, %v20049_v35 }
 0x952   :  { %12710 = vmatprep.subr.bf16.mxu0 %v20048_v31 }
 0x955   :  { %12712 = vmatpush3.bf16.msra.mxu0 %v16956_v44 }
 0x956   :  { %12713 = vmatprep.subr.bf16.mxu0 %v20048_v31 }
 0x959   :  { %12715 = vmatpush3.bf16.msra.mxu0 %v16960_v57 }
 0x95a   :  { %12716 = vmatprep.subr.bf16.mxu0 %v20048_v31 }
 0x95d   :  { %12718 = vmatpush3.bf16.msra.mxu0 %v16964_v56 }
 0x95e   :  { %12719 = vmatprep.subr.bf16.mxu0 %v20048_v31 }
 0x961   :  { %12721 = vmatpush3.bf16.msra.mxu0 %v16984_v17 }
 0x962   :  { %12722 = vmatprep.subr.bf16.mxu0 %v20048_v31 }
 0x965   :  { %12724 = vmatpush3.bf16.msra.mxu0 %v16997_v38 }
 0x966   :  { %12725 = vmatprep.subr.bf16.mxu0 %v20048_v31 }
 0x969   :  { %12727 = vmatpush3.bf16.msra.mxu0 %v17007_v53 }
 0x96a   :  { %12728 = vmatprep.subr.bf16.mxu0 %v20048_v31 }
 0x96d   :  { %12730 = vmatpush3.bf16.msra.mxu0 %v17013_v23 }
 0x96e   :  { %12731 = vmatprep.subr.bf16.mxu0 %v20048_v31 }
 0x970   :  { %11315 = vmatmul.mubr.f32.vlgmr.msra.gmra.mrb[46].mxu0 %v6463_v61  ;;  %v17329_v61 = vld [vmem:[#allocation9 + $0x740] sm:$0xff] }
 0x971   :  { %12733 = vmatpush3.bf16.msra.mxu0 %v12732_v18  ;;  %11349 = vmatprep.mubr.msk.f32.mxu0 %vm13267_vm0, %v20049_v35  ;;  %v18992_v18 = vand.u32 4294901760, %v17327_v33 }
 0x972   :  { %12734 = vmatprep.subr.bf16.mxu0 %v20048_v31 }
 0x975   :  { %12736 = vmatpush3.bf16.msra.mxu0 %v12735_v60  ;;  %v18991_v60 = vand.u32 4294901760, %v17329_v61 }
 0x976   :  { %12737 = vmatprep.subr.bf16.mxu0 %v20048_v31 }
 0x977   :  { %v17363_v34 = vpack.c.bf16 %v18991_v60, %v18992_v18  ;;  %v7081_v60 = vld [vmem:[#allocation9 + $0x6c8] sm:$0xff]  ;;  %v7082_v18 = vld [vmem:[#allocation9 + $0x6d0] sm:$0xff] }
 0x979   :  { %12739 = vmatpush3.bf16.msra.mxu0 %v12738_v49  ;;  %v17345_v49 = vld [vmem:[#allocation9 + $0x6b8] sm:$0xff]  ;;  %20070 = vst [vmem:[#allocation107_spill] sm:$0xff] %v17363_v34 }
 0x97a   :  { %12740 = vmatprep.subr.bf16.mxu0 %v20048_v31 }
 0x97d   :  { %12742 = vmatpush3.bf16.msra.mxu0 %v12741_v54  ;;  %v18990_v54 = vand.u32 4294901760, %v17345_v49 }
 0x97e   :  { %12743 = vmatprep.subr.bf16.mxu0 %v20048_v31 }
 0x97f   :  { %v17377_v42 = vpack.c.bf16 %v18989_v59, %v18990_v54  ;;  %v7130_v59 = vld [vmem:[#allocation9 + $0x850] sm:$0xff]  ;;  %v8068_v54 = vand.u32 4294901760, %v17383_v41 }
 0x981   :  { %12745 = vmatpush3.bf16.msra.mxu0 %v12744_v4  ;;  %v17356_v4 = vld [vmem:[#allocation9 + $0x7c0] sm:$0xff]  ;;  %20072 = vst [vmem:[#allocation96_spill] sm:$0xff] %v17377_v42 }
 0x982   :  { %12746 = vmatprep.subr.bf16.mxu0 %v20048_v31 }
 0x985   :  { %12748 = vmatpush3.bf16.msra.mxu0 %v12747_v11  ;;  %v18998_v11 = vand.u32 4294901760, %v17356_v4 }
 0x986   :  { %12749 = vmatprep.subr.bf16.mxu0 %v20048_v31 }
 0x989   :  { %12751 = vmatpush3.bf16.msra.mxu0 %v12750_v63  ;;  %v17379_v63 = vld [vmem:[#allocation9 + $0x748] sm:$0xff] }
 0x98a   :  { %12752 = vmatprep.subr.bf16.mxu0 %v20048_v31  ;;  %v7206_v37 = vand.u32 4294901760, %v17379_v63 }
 0x98d   :  { %12754 = vmatpush3.bf16.msra.mxu0 %v12753_v6  ;;  %v17390_v6 = vpack.c.bf16 %v18998_v11, %v18999_v52  ;;  %v17398_v11 = vpack.c.bf16 %v7209_v48, %v7206_v37 }
 0x98e   :  { %12755 = vmatprep.subr.bf16.mxu0 %v20048_v31 }
 0x98f   :  { %20073 = vst [vmem:[#allocation25_spill] sm:$0xff] %v17390_v6  ;;  %20074 = vst [vmem:[#allocation20_spill] sm:$0xff] %v17398_v11 }
 0x990   :  { %11350 = vmatmul.mubr.f32.vlgmr.msra.gmra.mrb[46].mxu0 %v17118_v58 }
 0x991   :  { %12757 = vmatpush3.bf16.msra.mxu0 %v16952_v28  ;;  %11384 = vmatprep.mubr.msk.f32.mxu0 %vm13267_vm0, %v20049_v35  ;;  %v17233_v28 = vld [vmem:[#allocation9 + $0x718] sm:$0xff]  ;;  %v17338_v35 = vpack.c.bf16 %v18993_v3, %v18994_v32  ;;  %v8071_v3 = vand.u32 4294901760, %v7130_v59  ;;  %v7158_v32 = vand.u32 4294901760, %v7081_v60 }
 0x992   :  { %12758 = vmatprep.subr.bf16.mxu0 %v20048_v31 }
 0x993   :  { %20069 = vst [vmem:[#allocation103_spill] sm:$0xff] %v17338_v35  ;;  %v17400_v43 = vpack.c.bf16 %v8071_v3, %v8068_v54 }
 0x995   :  { %12760 = vmatpush3.bf16.msra.mxu0 %v16956_v44  ;;  %v17235_v44 = vld [vmem:[#allocation9 + $0x720] sm:$0xff]  ;;  %20075 = vst [vmem:[#allocation105_spill] sm:$0xff] %v17400_v43 }
 0x996   :  { %12761 = vmatprep.subr.bf16.mxu0 %v20048_v31 }
 0x999   :  { %12763 = vmatpush3.bf16.msra.mxu0 %v16960_v57  ;;  %v17237_v57 = vld [vmem:[#allocation9 + $0x818] sm:$0xff] }
 0x99a   :  { %12764 = vmatprep.subr.bf16.mxu0 %v20048_v31  ;;  %v19008_v20 = vand.u32 4294901760, %v17237_v57 }
 0x99d   :  { %12766 = vmatpush3.bf16.msra.mxu0 %v16964_v56  ;;  %v19010_v56 = vand.u32 4294901760, %v17233_v28 }
 0x99e   :  { %12767 = vmatprep.subr.bf16.mxu0 %v20048_v31 }
 0x9a1   :  { %12769 = vmatpush3.bf16.msra.mxu0 %v16984_v17  ;;  %v19009_v17 = vand.u32 4294901760, %v17235_v44 }
 0x9a2   :  { %12770 = vmatprep.subr.bf16.mxu0 %v20048_v31 }
 0x9a5   :  { %12772 = vmatpush3.bf16.msra.mxu0 %v16997_v38  ;;  %v19007_v38 = vand.u32 4294901760, %v17241_v12 }
 0x9a6   :  { %12773 = vmatprep.subr.bf16.mxu0 %v20048_v31 }
 0x9a7   :  { %v17267_v5 = vpack.c.bf16 %v19007_v38, %v19008_v20 }
 0x9a9   :  { %12775 = vmatpush3.bf16.msra.mxu0 %v17007_v53  ;;  %v17253_v53 = vld [vmem:[#allocation9 + $0x7a0] sm:$0xff]  ;;  %20063 = vst [vmem:[#allocation38_spill] sm:$0xff] %v17267_v5 }
 0x9aa   :  { %12776 = vmatprep.subr.bf16.mxu0 %v20048_v31  ;;  %v17246_v31 = vld [vmem:[#allocation9 + $0x6a0] sm:$0xff]  ;;  %v19003_v62 = vand.u32 4294901760, %v17253_v53 }
 0x9ab   :  { %v19005_v1 = vand.u32 4294901760, %v17246_v31 }
 0x9ac   :  { %v17286_v46 = vpack.c.bf16 %v19003_v62, %v19004_v39  ;;  %v7099_v62 = vld [vmem:[#allocation9 + $0x758] sm:$0xff]  ;;  %v7100_v39 = vld [vmem:[#allocation9 + $0x760] sm:$0xff] }
 0x9ad   :  { %12778 = vmatpush3.bf16.msra.mxu0 %v17013_v23  ;;  %v17259_v23 = vpack.c.bf16 %v19009_v17, %v19010_v56  ;;  %v17273_v26 = vpack.c.bf16 %v19005_v1, %v19006_v14  ;;  %v7131_v1 = vld [vmem:[#allocation9 + $0x858] sm:$0xff]  ;;  %v7212_v38 = vand.u32 4294901760, %v7099_v62  ;;  %v7215_v20 = vand.u32 4294901760, %v7100_v39  ;;  %v7132_v17 = vld [vmem:[#allocation9 + $0x860] sm:$0xff] }
 0x9ae   :  { %20065 = vst [vmem:[#allocation76_spill] sm:$0xff] %v17286_v46  ;;  %12972 = vmatprep.subr.bf16.mxu0 %v17267_v5  ;;  %v7083_v56 = vld [vmem:[#allocation9 + $0x6d8] sm:$0xff]  ;;  %v20078_v5 = vand.u32 4294901760, %v17233_v28 }
 0x9af   :  { %20062 = vst [vmem:[#allocation36_spill] sm:$0xff] %v17259_v23  ;;  %20064 = vst [vmem:[#allocation41_spill] sm:$0xff] %v17273_v26  ;;  %12780 = vmatprep.subr.bf16.mxu1 %v17259_v23  ;;  %v17549_v23 = vpack.c.bf16 %v7215_v20, %v7212_v38 }
 0x9b0   :  { %11385 = vmatmul.mubr.f32.vlgmr.msra.gmra.mrb[46].mxu0 %v17118_v58  ;;  %12782 = vmatpush3.bf16.msra.mxu1 %v17273_v26  ;;  %v17325_v58 = vpack.c.bf16 %v18995_v8, %v18996_v22  ;;  %v7161_v8 = vand.u32 4294901760, %v7082_v18  ;;  %v7113_v22 = vld [vmem:[#allocation9 + $0x7c8] sm:$0xff]  ;;  %v17541_v26 = vsub.f32 %v7081_v60, %v7158_v32 }
 0x9b1   :  { %12974 = vmatpush3.bf16.msra.mxu0 %v17286_v46  ;;  %12784 = vmatprep.subr.bf16.mxu1 %v17311_v16  ;;  %v8020_v52 = vand.u32 4294901760, %v7113_v22  ;;  %20114 = vst [vmem:[#allocation95_spill] sm:$0xff] %v17549_v23  ;;  %v7085_v60 = vld [vmem:[#allocation9 + $0x6e8] sm:$0xff] }
 0x9b2   :  { %20068 = vst [vmem:[#allocation93_spill] sm:$0xff] %v17325_v58  ;;  %12976 = vmatprep.subr.bf16.mxu0 %v17319_v36  ;;  %v17402_v9 = vpack.c.bf16 %v7161_v8, %v7158_v32  ;;  %v7164_v36 = vand.u32 4294901760, %v7083_v56  ;;  %v7134_v32 = vld [vmem:[#allocation9 + $0x870] sm:$0xff] }
 0x9b3   :  { %v17405_v14 = vpack.c.bf16 %v8023_v27, %v8020_v52 }
 0x9b4   :  { %12786 = vmatpush3.bf16.msra.mxu1 %v17325_v58  ;;  %20076 = vst [vmem:[#allocation80_spill] sm:$0xff] %v17402_v9  ;;  %v20080_v58 = vand.u32 4294901760, %v17237_v57 }
 0x9b5   :  { %12978 = vmatpush3.bf16.msra.mxu0 %v17338_v35  ;;  %12788 = vmatprep.subr.bf16.mxu1 %v17363_v34  ;;  %20077 = vst [vmem:[#allocation79_spill] sm:$0xff] %v17405_v14  ;;  %v8077_v35 = vand.u32 4294901760, %v7132_v17 }
 0x9b6   :  { %12980 = vmatprep.subr.bf16.mxu0 %v17371_v24  ;;  %v8074_v24 = vand.u32 4294901760, %v7131_v1 }
 0x9b8   :  { %12790 = vmatpush3.bf16.msra.mxu1 %v17377_v42  ;;  %v17412_v42 = vsub.f32 %v17233_v28, %v20078_v5  ;;  %v20084_v28 = vand.u32 4294901760, %v17244_v55 }
 0x9b9   :  { %12982 = vmatpush3.bf16.msra.mxu0 %v17390_v6  ;;  %12792 = vmatprep.subr.bf16.mxu1 %v17398_v11  ;;  %v7084_v6 = vld [vmem:[#allocation9 + $0x6e0] sm:$0xff]  ;;  %v20079_v11 = vand.u32 4294901760, %v17235_v44 }
 0x9ba   :  { %12984 = vmatprep.subr.bf16.mxu0 %v17400_v43  ;;  %v7167_v46 = vand.u32 4294901760, %v7084_v6  ;;  %v17422_v43 = vsub.f32 %v17237_v57, %v20080_v58  ;;  %v17433_v5 = vsub.f32 %v17244_v55, %v20084_v28  ;;  %v20086_v57 = vand.u32 4294901760, %v17251_v2 }
 0x9bb   :  { %v17417_v34 = vsub.f32 %v17235_v44, %v20079_v11  ;;  %v20085_v44 = vand.u32 4294901760, %v17246_v31  ;;  %v20089_v28 = vand.u32 4294901760, %v17277_v21 }
 0x9bc   :  { %12794 = vmatpush3.bf16.msra.mxu1 %v17402_v9  ;;  %20081 = vst [vmem:[#allocation35_spill] sm:$0xff] %v17422_v43  ;;  %v20082_v9 = vand.u32 4294901760, %v17241_v12  ;;  %v17443_v58 = vsub.f32 %v17251_v2, %v20086_v57  ;;  %v20091_v57 = vand.u32 4294901760, %v17290_v40 }
 0x9bd   :  { %12986 = vmatpush3.bf16.msra.mxu0 %v17405_v14  ;;  %v17438_v11 = vsub.f32 %v17246_v31, %v20085_v44  ;;  %v20088_v14 = vand.u32 4294901760, %v17275_v13  ;;  %v17458_v31 = vsub.f32 %v17277_v21, %v20089_v28  ;;  %v20090_v44 = vand.u32 4294901760, %v17279_v30  ;;  %12796 = vmatprep.subr.bf16.mxu1 %v17549_v23  ;;  %v7135_v23 = vld [vmem:[#allocation9 + $0x878] sm:$0xff] }
 0x9be   :  { %v17427_v16 = vsub.f32 %v17241_v12, %v20082_v9  ;;  %v20087_v12 = vand.u32 4294901760, %v17253_v53  ;;  %v20094_v28 = vand.u32 4294901760, %v17302_v47 }
 0x9bf   :  { %v17453_v55 = vsub.f32 %v17275_v13, %v20088_v14  ;;  %v17463_v2 = vsub.f32 %v17279_v30, %v20090_v44  ;;  %v20093_v13 = vand.u32 4294901760, %v17295_v45  ;;  %v20096_v44 = vand.u32 4294901760, %v17304_v51 }
 0x9c0   :  { %20083 = vst [vmem:[#allocation33_spill] sm:$0xff] %v17427_v16  ;;  %v17448_v9 = vsub.f32 %v17253_v53, %v20087_v12  ;;  %v17468_v53 = vsub.f32 %v17290_v40, %v20091_v57  ;;  %v20092_v12 = vand.u32 4294901760, %v17293_v7  ;;  %v17483_v30 = vsub.f32 %v17302_v47, %v20094_v28 }
 0x9c1   :  { %v17478_v21 = vsub.f32 %v17295_v45, %v20093_v13  ;;  %v17488_v40 = vsub.f32 %v17304_v51, %v20096_v44  ;;  %v20098_v57 = vand.u32 4294901760, %v17327_v33  ;;  %v20100_v13 = vand.u32 4294901760, %v17331_v29 }
 0x9c2   :  { %v17473_v14 = vsub.f32 %v17293_v7, %v20092_v12  ;;  %20095 = vst [vmem:[#allocation44_spill] sm:$0xff] %v17483_v30  ;;  %v20099_v12 = vand.u32 4294901760, %v17329_v61  ;;  %v20102_v28 = vand.u32 4294901760, %v17342_v15  ;;  %v20104_v44 = vand.u32 4294901760, %v17345_v49 }
 0x9c3   :  { %20097 = vst [vmem:[#allocation39_spill] sm:$0xff] %v17488_v40  ;;  %v17493_v7 = vsub.f32 %v17327_v33, %v20098_v57  ;;  %v17503_v47 = vsub.f32 %v17331_v29, %v20100_v13  ;;  %v20105_v57 = vand.u32 4294901760, %v17347_v50  ;;  %v20108_v13 = vand.u32 4294901760, %v17356_v4 }
 0x9c4   :  { %v17498_v45 = vsub.f32 %v17329_v61, %v20099_v12  ;;  %v17508_v51 = vsub.f32 %v17342_v15, %v20102_v28  ;;  %v17513_v33 = vsub.f32 %v17345_v49, %v20104_v44  ;;  %v20106_v12 = vand.u32 4294901760, %v17354_v0 }
 0x9c5   :  { %20101 = vst [vmem:[#allocation49_spill] sm:$0xff] %v17503_v47  ;;  %v17518_v61 = vsub.f32 %v17347_v50, %v20105_v57  ;;  %v17528_v15 = vsub.f32 %v17356_v4, %v20108_v13  ;;  %v17531_v28 = vsub.f32 %v17379_v63, %v7206_v37  ;;  %v17534_v49 = vsub.f32 %v17381_v19, %v7209_v48  ;;  %v7115_v57 = vld [vmem:[#allocation9 + $0x7d8] sm:$0xff]  ;;  %v7116_v13 = vld [vmem:[#allocation9 + $0x7e0] sm:$0xff]  ;;  %v7101_v37 = vld [vmem:[#allocation9 + $0x768] sm:$0xff] }
 0x9c6   :  { %20103 = vst [vmem:[#allocation47_spill] sm:$0xff] %v17508_v51  ;;  %v17523_v29 = vsub.f32 %v17354_v0, %v20106_v12  ;;  %v17537_v44 = vsub.f32 %v17383_v41, %v8068_v54  ;;  %v17539_v50 = vsub.f32 %v7130_v59, %v8071_v3  ;;  %v17543_v0 = vsub.f32 %v7082_v18, %v7161_v8  ;;  %v7102_v63 = vld [vmem:[#allocation9 + $0x770] sm:$0xff]  ;;  %v7133_v59 = vld [vmem:[#allocation9 + $0x868] sm:$0xff] }
 0x9c7   :  { %20109 = vst [vmem:[#allocation53_spill] sm:$0xff] %v17528_v15  ;;  %v17545_v12 = vsub.f32 %v7113_v22, %v8020_v52  ;;  %v17547_v4 = vsub.f32 %v7114_v10, %v8023_v27  ;;  %v17551_v48 = vsub.f32 %v7099_v62, %v7212_v38  ;;  %v17553_v54 = vsub.f32 %v7100_v39, %v7215_v20  ;;  %v7086_v18 = vld [vmem:[#allocation9 + $0x6f0] sm:$0xff]  ;;  %v7137_v15 = vld [vmem:[#allocation9 + $0x888] sm:$0xff] }
 0x9c8   :  { %20107 = vst [vmem:[#allocation55_spill] sm:$0xff] %v17523_v29  ;;  %20110 = vst [vmem:[#allocation64_spill] sm:$0xff] %v17537_v44  ;;  %v17555_v3 = vpack.c.bf16 %v8077_v35, %v8074_v24  ;;  %v17557_v8 = vsub.f32 %v7131_v1, %v8074_v24  ;;  %v17559_v22 = vsub.f32 %v7132_v17, %v8077_v35  ;;  %v8026_v20 = vand.u32 4294901760, %v7115_v57  ;;  %v7117_v24 = vld [vmem:[#allocation9 + $0x7e8] sm:$0xff]  ;;  %v7118_v19 = vld [vmem:[#allocation9 + $0x7f0] sm:$0xff] }
 0x9c9   :  { %20111 = vst [vmem:[#allocation15_spill] sm:$0xff] %v17539_v50  ;;  %20112 = vst [vmem:[#allocation77_spill] sm:$0xff] %v17545_v12  ;;  %v17561_v27 = vpack.c.bf16 %v7167_v46, %v7164_v36  ;;  %v17563_v10 = vsub.f32 %v7083_v56, %v7164_v36  ;;  %v17567_v38 = vsub.f32 %v7084_v6, %v7167_v46  ;;  %v8029_v39 = vand.u32 4294901760, %v7116_v13  ;;  %v7103_v6 = vld [vmem:[#allocation9 + $0x778] sm:$0xff]  ;;  %v7136_v12 = vld [vmem:[#allocation9 + $0x880] sm:$0xff] }
 0x9ca   :  { %20113 = vst [vmem:[#allocation75_spill] sm:$0xff] %v17547_v4  ;;  %20115 = vst [vmem:[#allocation89_spill] sm:$0xff] %v17555_v3  ;;  %12988 = vmatprep.subr.bf16.mxu0 %v17555_v3  ;;  %v7218_v62 = vand.u32 4294901760, %v7101_v37  ;;  %v7221_v1 = vand.u32 4294901760, %v7102_v63  ;;  %v8080_v52 = vand.u32 4294901760, %v7133_v59  ;;  %v8083_v17 = vand.u32 4294901760, %v7134_v32 }
 0x9cb   :  { %20116 = vst [vmem:[#allocation97_spill] sm:$0xff] %v17557_v8  ;;  %20117 = vst [vmem:[#allocation23_spill] sm:$0xff] %v17559_v22  ;;  %12798 = vmatpush3.bf16.msra.mxu1 %v17561_v27  ;;  %v7170_v35 = vand.u32 4294901760, %v7085_v60  ;;  %v17570_v56 = vpack.c.bf16 %v8029_v39, %v8026_v20  ;;  %v17572_v36 = vsub.f32 %v7115_v57, %v8026_v20  ;;  %v7104_v3 = vld [vmem:[#allocation9 + $0x780] sm:$0xff]  ;;  %v7106_v44 = vld [vmem:[#allocation9 + $0x790] sm:$0xff] }
 0x9cc   :  { %20118 = vst [vmem:[#allocation99_spill] sm:$0xff] %v17561_v27  ;;  %20119 = vst [vmem:[#allocation43_spill] sm:$0xff] %v17563_v10  ;;  %v17574_v41 = vsub.f32 %v7116_v13, %v8029_v39  ;;  %v17576_v46 = vsub.f32 %v7101_v37, %v7218_v62  ;;  %v17578_v22 = vpack.c.bf16 %v7221_v1, %v7218_v62  ;;  %v7173_v13 = vand.u32 4294901760, %v7086_v18 }
 0x9cd   :  { %20120 = vst [vmem:[#allocation58_spill] sm:$0xff] %v17567_v38  ;;  %20121 = vst [vmem:[#allocation62_spill] sm:$0xff] %v17570_v56  ;;  %v17580_v27 = vsub.f32 %v7102_v63, %v7221_v1  ;;  %v17582_v8 = vpack.c.bf16 %v8083_v17, %v8080_v52  ;;  %v17584_v4 = vsub.f32 %v7133_v59, %v8080_v52  ;;  %12990 = vmatpush3.bf16.msra.mxu0 %v17570_v56  ;;  %v7088_v59 = vld [vmem:[#allocation9 + $0x700] sm:$0xff] }
 0x9ce   :  { %20122 = vst [vmem:[#allocation66_spill] sm:$0xff] %v17572_v36  ;;  %20123 = vst [vmem:[#allocation70_spill] sm:$0xff] %v17574_v41  ;;  %v17587_v57 = vsub.f32 %v7134_v32, %v8083_v17  ;;  %v17589_v20 = vsub.f32 %v7085_v60, %v7170_v35  ;;  %v8032_v37 = vand.u32 4294901760, %v7117_v24  ;;  %12800 = vmatprep.subr.bf16.mxu1 %v17578_v22  ;;  %v8035_v39 = vand.u32 4294901760, %v7118_v19  ;;  %v7087_v41 = vld [vmem:[#allocation9 + $0x6f8] sm:$0xff]  ;;  %v7120_v56 = vld [vmem:[#allocation9 + $0x800] sm:$0xff] }
 0x9cf   :  { %20124 = vst [vmem:[#allocation40_spill] sm:$0xff] %v17576_v46  ;;  %20125 = vst [vmem:[#allocation21_spill] sm:$0xff] %v17578_v22  ;;  %12992 = vmatprep.subr.bf16.mxu0 %v17582_v8  ;;  %v7224_v63 = vand.u32 4294901760, %v7103_v6  ;;  %v7227_v62 = vand.u32 4294901760, %v7104_v3  ;;  %v8086_v1 = vand.u32 4294901760, %v7135_v23  ;;  %v17593_v52 = vpack.c.bf16 %v7173_v13, %v7170_v35  ;;  %v7119_v60 = vld [vmem:[#allocation9 + $0x7f8] sm:$0xff] }
 0x9d0   :  { %20126 = vst [vmem:[#allocation31_spill] sm:$0xff] %v17580_v27  ;;  %20127 = vst [vmem:[#allocation73_spill] sm:$0xff] %v17582_v8  ;;  %v17597_v32 = vsub.f32 %v7117_v24, %v8032_v37  ;;  %v8089_v17 = vand.u32 4294901760, %v7136_v12  ;;  %v17599_v36 = vpack.c.bf16 %v8035_v39, %v8032_v37  ;;  %v17601_v22 = vsub.f32 %v7118_v19, %v8035_v39  ;;  %v7138_v35 = vld [vmem:[#allocation9 + $0x890] sm:$0xff] }
 0x9d1   :  { %20128 = vst [vmem:[#allocation48_spill] sm:$0xff] %v17584_v4  ;;  %20129 = vst [vmem:[#allocation52_spill] sm:$0xff] %v17587_v57  ;;  %v17595_v4 = vsub.f32 %v7086_v18, %v7173_v13  ;;  %v7105_v57 = vld [vmem:[#allocation9 + $0x788] sm:$0xff]  ;;  %v17603_v8 = vpack.c.bf16 %v7227_v62, %v7224_v63  ;;  %v17605_v50 = vsub.f32 %v7103_v6, %v7224_v63  ;;  %12802 = vmatpush3.bf16.msra.mxu1 %v17593_v52 }
 0x9d2   :  { %20130 = vst [vmem:[#allocation94_spill] sm:$0xff] %v17589_v20  ;;  %20131 = vst [vmem:[#allocation28_spill] sm:$0xff] %v17593_v52  ;;  %v17608_v18 = vsub.f32 %v7104_v3, %v7227_v62  ;;  %v17610_v24 = vpack.c.bf16 %v8089_v17, %v8086_v1  ;;  %v17612_v13 = vsub.f32 %v7135_v23, %v8086_v1  ;;  %12994 = vmatpush3.bf16.msra.mxu0 %v17599_v36 }
 0x9d3   :  { %20132 = vst [vmem:[#allocation63_spill] sm:$0xff] %v17595_v4  ;;  %20133 = vst [vmem:[#allocation86_spill] sm:$0xff] %v17597_v32  ;;  %v17614_v32 = vsub.f32 %v7136_v12, %v8089_v17  ;;  %12804 = vmatprep.subr.bf16.mxu1 %v17603_v8  ;;  %v7176_v19 = vand.u32 4294901760, %v7087_v41  ;;  %v7179_v6 = vand.u32 4294901760, %v7088_v59  ;;  %v8038_v37 = vand.u32 4294901760, %v7119_v60  ;;  %v7090_v17 = vld [vmem:[#allocation9 + $0x710] sm:$0xff] }
 0x9d4   :  { %20134 = vst [vmem:[#allocation84_spill] sm:$0xff] %v17599_v36  ;;  %20135 = vst [vmem:[#allocation92_spill] sm:$0xff] %v17601_v22  ;;  %v8041_v39 = vand.u32 4294901760, %v7120_v56  ;;  %12996 = vmatprep.subr.bf16.mxu0 %v17610_v24  ;;  %v7230_v63 = vand.u32 4294901760, %v7105_v57  ;;  %v7233_v52 = vand.u32 4294901760, %v7106_v44  ;;  %v8092_v3 = vand.u32 4294901760, %v7137_v15 }
 0x9d5   :  { %20136 = vst [vmem:[#allocation91_spill] sm:$0xff] %v17603_v8  ;;  %20137 = vst [vmem:[#allocation72_spill] sm:$0xff] %v17605_v50  ;;  %v8095_v62 = vand.u32 4294901760, %v7138_v35  ;;  %v7089_v22 = vld [vmem:[#allocation9 + $0x708] sm:$0xff]  ;;  %v17619_v29 = vpack.c.bf16 %v7179_v6, %v7176_v19  ;;  %v17621_v23 = vsub.f32 %v7087_v41, %v7176_v19  ;;  %v17623_v12 = vsub.f32 %v7088_v59, %v7179_v6  ;;  %v7122_v8 = vld [vmem:[#allocation9 + $0x810] sm:$0xff] }
 0x9d6   :  { %20138 = vst [vmem:[#allocation17_spill] sm:$0xff] %v17608_v18  ;;  %20139 = vst [vmem:[#allocation102_spill] sm:$0xff] %v17610_v24  ;;  %v17625_v1 = vpack.c.bf16 %v8041_v39, %v8038_v37  ;;  %v7121_v36 = vld [vmem:[#allocation9 + $0x808] sm:$0xff]  ;;  %v17631_v24 = vpack.c.bf16 %v7233_v52, %v7230_v63  ;;  %v17633_v51 = vsub.f32 %v7105_v57, %v7230_v63  ;;  %v7182_v6 = vand.u32 4294901760, %v7089_v22 }
 0x9d7   :  { %20140 = vst [vmem:[#allocation106_spill] sm:$0xff] %v17612_v13  ;;  %20141 = vst [vmem:[#allocation19_spill] sm:$0xff] %v17614_v32  ;;  %v17627_v32 = vsub.f32 %v7119_v60, %v8038_v37  ;;  %v17629_v13 = vsub.f32 %v7120_v56, %v8041_v39  ;;  %12806 = vmatpush3.bf16.msra.mxu1 %v17619_v29  ;;  %v17637_v41 = vsub.f32 %v7106_v44, %v7233_v52 }
 0x9d8   :  { %20142 = vst [vmem:[#allocation27_spill] sm:$0xff] %v17619_v29  ;;  %20143 = vst [vmem:[#allocation108_spill] sm:$0xff] %v17621_v23  ;;  %12998 = vmatpush3.bf16.msra.mxu0 %v17625_v1  ;;  %v17639_v59 = vpack.c.bf16 %v8095_v62, %v8092_v3  ;;  %v17641_v19 = vsub.f32 %v7137_v15, %v8092_v3  ;;  %12808 = vmatprep.subr.bf16.mxu1 %v17631_v24  ;;  %v7185_v56 = vand.u32 4294901760, %v7090_v17 }
 0x9d9   :  { %20144 = vst [vmem:[#allocation13_spill] sm:$0xff] %v17623_v12  ;;  %20145 = vst [vmem:[#allocation29_spill] sm:$0xff] %v17625_v1  ;;  %v17644_v60 = vsub.f32 %v7138_v35, %v8095_v62  ;;  %v8044_v37 = vand.u32 4294901760, %v7121_v36  ;;  %v8047_v39 = vand.u32 4294901760, %v7122_v8  ;;  %v17647_v57 = vsub.f32 %v7089_v22, %v7182_v6 }
 0x9da   :  { %20146 = vst [vmem:[#allocation24_spill] sm:$0xff] %v17627_v32  ;;  %20147 = vst [vmem:[#allocation90_spill] sm:$0xff] %v17629_v13  ;;  %13000 = vmatprep.subr.bf16.mxu0 %v17639_v59  ;;  %v19087_v63 = vand.u32 4294901760, %v17412_v42  ;;  %v19086_v44 = vand.u32 4294901760, %v17417_v34  ;;  %v13035_v15 = vpack.c.bf16 %v17427_v16, %v17422_v43  ;;  %v17653_v52 = vpack.c.bf16 %v7185_v56, %v7182_v6 }
 0x9db   :  { %20148 = vst [vmem:[#allocation14_spill] sm:$0xff] %v17631_v24  ;;  %20149 = vst [vmem:[#allocation78_spill] sm:$0xff] %v17633_v51  ;;  %v17655_v3 = vsub.f32 %v7090_v17, %v7185_v56  ;;  %v17657_v35 = vpack.c.bf16 %v8047_v39, %v8044_v37  ;;  %v17659_v62 = vsub.f32 %v7121_v36, %v8044_v37  ;;  %v19092_v24 = vand.u32 4294901760, %v17433_v5 }
 0x9dc   :  { %20150 = vst [vmem:[#allocation46_spill] sm:$0xff] %v17637_v41  ;;  %20151 = vst [vmem:[#allocation85_spill] sm:$0xff] %v17639_v59  ;;  %v17661_v1 = vsub.f32 %v7122_v8, %v8047_v39  ;;  %v7367_v22 = vsub.f32 %v17412_v42, %v19087_v63  ;;  %v7374_v59 = vsub.f32 %v17417_v34, %v19086_v44  ;;  %12810 = vmatpush3.bf16.msra.mxu1 %v17653_v52 }
 0x9dd   :  { %20152 = vst [vmem:[#allocation51_spill] sm:$0xff] %v17641_v19  ;;  %20153 = vst [vmem:[#allocation59_spill] sm:$0xff] %v17644_v60  ;;  %13002 = vmatpush3.bf16.msra.mxu0 %v17657_v35  ;;  %v19095_v17 = vand.u32 4294901760, %v17438_v11  ;;  %v19096_v36 = vand.u32 4294901760, %v17453_v55  ;;  %v19097_v8 = vand.u32 4294901760, %v17458_v31  ;;  %v7255_v37 = vsub.f32 %v17433_v5, %v19092_v24 }
 0x9de   :  { %20154 = vst [vmem:[#allocation60_spill] sm:$0xff] %v17647_v57  ;;  %20155 = vst [vmem:[#allocation68_spill] sm:$0xff] %v17653_v52  ;;  %v7368_v6 = vand.u32 4294901760, %v7367_v22  ;;  %v7375_v56 = vand.u32 4294901760, %v7374_v59  ;;  %13036 = vmatprep.subr.bf16.mxu0 %v13035_v15  ;;  %v19101_v22 = vand.u32 4294901760, %v17473_v14 }
 0x9df   :  { %20156 = vst [vmem:[#allocation71_spill] sm:$0xff] %v17655_v3  ;;  %20157 = vst [vmem:[#allocation83_spill] sm:$0xff] %v17657_v35  ;;  %v7262_v39 = vsub.f32 %v17438_v11, %v19095_v17  ;;  %v7381_v44 = vsub.f32 %v17453_v55, %v19096_v36  ;;  %v7388_v63 = vsub.f32 %v17458_v31, %v19097_v8  ;;  %v7256_v15 = vand.u32 4294901760, %v7255_v37 }
 0x9e0   :  { %20158 = vst [vmem:[#allocation88_spill] sm:$0xff] %v17659_v62  ;;  %20159 = vst [vmem:[#allocation26_spill] sm:$0xff] %v17661_v1  ;;  %v12811_v59 = vpack.c.bf16 %v7375_v56, %v7368_v6  ;;  %v19099_v35 = vand.u32 4294901760, %v17478_v21  ;;  %v7269_v17 = vsub.f32 %v17473_v14, %v19101_v22  ;;  %v19100_v8 = vand.u32 4294901760, %v17493_v7 }
 0x9e1   :  { %v7263_v52 = vand.u32 4294901760, %v7262_v39  ;;  %v7382_v24 = vand.u32 4294901760, %v7381_v44  ;;  %v7389_v29 = vand.u32 4294901760, %v7388_v63  ;;  %v19102_v1 = vand.u32 4294901760, %v17498_v45 }
 0x9e2   :  { %12812 = vmatprep.subr.bf16.mxu1 %v12811_v59  ;;  %v7276_v36 = vsub.f32 %v17478_v21, %v19099_v35  ;;  %v7270_v37 = vand.u32 4294901760, %v7269_v17  ;;  %v19103_v63 = vand.u32 4294901760, %v17513_v33  ;;  %v7395_v39 = vsub.f32 %v17493_v7, %v19100_v8 }
 0x9e3   :  { %v17697_v6 = vpack.c.bf16 %v7263_v52, %v7256_v15  ;;  %v17699_v56 = vpack.c.bf16 %v7389_v29, %v7382_v24  ;;  %v7402_v59 = vsub.f32 %v17498_v45, %v19102_v1  ;;  %v19107_v35 = vand.u32 4294901760, %v17518_v61 }
 0x9e4   :  { %v7277_v44 = vand.u32 4294901760, %v7276_v36  ;;  %v7283_v52 = vsub.f32 %v17513_v33, %v19103_v63  ;;  %v19108_v29 = vand.u32 4294901760, %v17531_v28  ;;  %v19110_v24 = vand.u32 4294901760, %v17534_v49 }
 0x9e5   :  { %v7396_v36 = vand.u32 4294901760, %v7395_v39  ;;  %v7403_v15 = vand.u32 4294901760, %v7402_v59  ;;  %v7290_v8 = vsub.f32 %v17518_v61, %v19107_v35  ;;  %v19114_v35 = vand.u32 4294901760, %v17551_v48 }
 0x9e6   :  { %v17714_v17 = vpack.c.bf16 %v7277_v44, %v7270_v37  ;;  %v7284_v22 = vand.u32 4294901760, %v7283_v52  ;;  %v7409_v1 = vsub.f32 %v17531_v28, %v19108_v29  ;;  %v7416_v63 = vsub.f32 %v17534_v49, %v19110_v24 }
 0x9e7   :  { %v17725_v62 = vpack.c.bf16 %v7403_v15, %v7396_v36  ;;  %v7291_v16 = vand.u32 4294901760, %v7290_v8  ;;  %v19109_v37 = vand.u32 4294901760, %v17541_v26  ;;  %v19113_v44 = vand.u32 4294901760, %v17543_v0 }
 0x9e8   :  { %v7410_v39 = vand.u32 4294901760, %v7409_v1  ;;  %v7417_v59 = vand.u32 4294901760, %v7416_v63  ;;  %v19116_v8 = vand.u32 4294901760, %v17553_v54  ;;  %v7423_v1 = vsub.f32 %v17551_v48, %v19114_v35 }
 0x9e9   :  { %v17730_v52 = vpack.c.bf16 %v7291_v16, %v7284_v22  ;;  %v7297_v29 = vsub.f32 %v17541_v26, %v19109_v37  ;;  %v7304_v36 = vsub.f32 %v17543_v0, %v19113_v44  ;;  %v19118_v63 = vand.u32 4294901760, %v17563_v10 }
 0x9ea   :  { %v17739_v15 = vpack.c.bf16 %v7417_v59, %v7410_v39  ;;  %v7430_v37 = vsub.f32 %v17553_v54, %v19116_v8  ;;  %v19119_v24 = vand.u32 4294901760, %v17567_v38  ;;  %v7424_v43 = vand.u32 4294901760, %v7423_v1 }
 0x9eb   :  { %v7298_v16 = vand.u32 4294901760, %v7297_v29  ;;  %v7305_v22 = vand.u32 4294901760, %v7304_v36  ;;  %v7311_v39 = vsub.f32 %v17563_v10, %v19118_v63  ;;  %v19121_v59 = vand.u32 4294901760, %v17576_v46  ;;  %v20196_v10 = vld [vmem:[#allocation33_spill] sm:$0xff] }
 0x9ec   :  { %v7431_v35 = vand.u32 4294901760, %v7430_v37  ;;  %v7318_v29 = vsub.f32 %v17567_v38, %v19119_v24  ;;  %v19122_v36 = vand.u32 4294901760, %v17580_v27  ;;  %v19124_v8 = vand.u32 4294901760, %v17589_v20 }
 0x9ed   :  { %v17753_v44 = vpack.c.bf16 %v7305_v22, %v7298_v16  ;;  %v7312_v60 = vand.u32 4294901760, %v7311_v39  ;;  %v7437_v1 = vsub.f32 %v17576_v46, %v19121_v59  ;;  %v19125_v16 = vand.u32 4294901760, %v17595_v4 }
 0x9ee   :  { %v17763_v19 = vpack.c.bf16 %v7431_v35, %v7424_v43  ;;  %v7319_v63 = vand.u32 4294901760, %v7318_v29  ;;  %v7444_v37 = vsub.f32 %v17580_v27, %v19122_v36  ;;  %v7325_v39 = vsub.f32 %v17589_v20, %v19124_v8 }
 0x9ef   :  { %v7438_v22 = vand.u32 4294901760, %v7437_v1  ;;  %v19126_v24 = vand.u32 4294901760, %v17605_v50  ;;  %v7332_v43 = vsub.f32 %v17595_v4, %v19125_v16  ;;  %v19127_v35 = vand.u32 4294901760, %v17608_v18 }
 0x9f0   :  { %v17773_v13 = vpack.c.bf16 %v7319_v63, %v7312_v60  ;;  %v7445_v59 = vand.u32 4294901760, %v7444_v37  ;;  %v7326_v29 = vand.u32 4294901760, %v7325_v39  ;;  %v19128_v36 = vand.u32 4294901760, %v17621_v23 }
 0x9f1   :  { %v7451_v1 = vsub.f32 %v17605_v50, %v19126_v24  ;;  %v7333_v8 = vand.u32 4294901760, %v7332_v43  ;;  %v7458_v60 = vsub.f32 %v17608_v18, %v19127_v35  ;;  %v19129_v63 = vand.u32 4294901760, %v17623_v12 }
 0x9f2   :  { %20160 = vst [vmem:[#allocation104_spill] sm:$0xff] %v17773_v13  ;;  %v17783_v32 = vpack.c.bf16 %v7445_v59, %v7438_v22  ;;  %v7339_v39 = vsub.f32 %v17621_v23, %v19128_v36  ;;  %v19130_v16 = vand.u32 4294901760, %v17633_v51  ;;  %v19131_v22 = vand.u32 4294901760, %v17637_v41 }
 0x9f3   :  { %v7452_v37 = vand.u32 4294901760, %v7451_v1  ;;  %v17793_v13 = vpack.c.bf16 %v7333_v8, %v7326_v29  ;;  %v7459_v24 = vand.u32 4294901760, %v7458_v60  ;;  %v7346_v59 = vsub.f32 %v17623_v12, %v19129_v63  ;;  %v20163_v12 = vld [vmem:[#allocation100_spill] sm:$0xff] }
 0x9f4   :  { %20161 = vst [vmem:[#allocation98_spill] sm:$0xff] %v17783_v32  ;;  %v7340_v43 = vand.u32 4294901760, %v7339_v39  ;;  %v7465_v1 = vsub.f32 %v17633_v51, %v19130_v16  ;;  %v19132_v35 = vand.u32 4294901760, %v17647_v57  ;;  %v7472_v8 = vsub.f32 %v17637_v41, %v19131_v22 }
 0x9f5   :  { %20162 = vst [vmem:[#allocation16_spill] sm:$0xff] %v17793_v13  ;;  %v17803_v32 = vpack.c.bf16 %v7459_v24, %v7452_v37  ;;  %v7347_v36 = vand.u32 4294901760, %v7346_v59  ;;  %v19133_v29 = vand.u32 4294901760, %v17655_v3  ;;  %v19173_v38 = vand.u32 4294901760, %v20196_v10 }
 0x9f6   :  { %v7466_v60 = vand.u32 4294901760, %v7465_v1  ;;  %v7353_v39 = vsub.f32 %v17647_v57, %v19132_v35  ;;  %v7473_v13 = vand.u32 4294901760, %v7472_v8 }
 0x9f7   :  { %v17814_v16 = vpack.c.bf16 %v7347_v36, %v7340_v43  ;;  %v7360_v24 = vsub.f32 %v17655_v3, %v19133_v29  ;;  %v7028_v29 = vld [vmem:[#allocation9 + $0x690] sm:$0xff]  ;;  %v20192_v3 = vld [vmem:[#allocation90_spill] sm:$0xff] }
 0x9f8   :  { %v7354_v37 = vand.u32 4294901760, %v7353_v39  ;;  %v17821_v22 = vpack.c.bf16 %v7473_v13, %v7466_v60  ;;  %v20164_v60 = vld [vmem:[#allocation101_spill] sm:$0xff] }
 0x9f9   :  { %v7361_v1 = vand.u32 4294901760, %v7360_v24 }
 0x9fb   :  { %v17827_v36 = vpack.c.bf16 %v7361_v1, %v7354_v37 }
 0xa83   :  { %v7017_v8 = vpop.f32.mrb[46].mxu0 }
 0xa84   :  { %v7021_v24 = vmul.f32 0.03125, %v7017_v8  ;;  %v11386_v43 = vpop.f32.mrb[47].mxu0 }
 0xa86   :  { %v7022_v63 = vmul.f32 %v7021_v24, %v7021_v24 }
 0xa88   :  { %v7024_v37 = vrot.slane %v7022_v63, 7 }
 0xa8a   :  { %v7026_v35 = vsub.f32 %v7021_v24, %v7024_v37 }
 0xa8c   :  { %v7027_v59 = vmax.f32 %v7026_v35, 0.0 }
 0xa8e   :  { %v7029_v1 = vadd.f32 1e-05, %v7027_v59 }
 0xa90   :  { %13204 = vrsqrt.f32 %v7029_v1 }
 0xa9a   :  { %v13205_v20 = vpop.eup %13204 }
 0xa9b   :  { %v7032_v50 = vrot.slane %v13205_v20, 1 }
 0xa9d   :  { %v7034_v18 = vmul.f32 %v7032_v50, %v7028_v29 }
 0xa9f   :  { %v7035_v39 = vmul.f32 %v7034_v18, %v7021_v24  ;;  %v7043_v13 = vrot.slane %v7034_v18, %v20163_v12 }
 0xaa1   :  { %v7037_v23 = vrot.slane %v7035_v39, 7  ;;  %v7044_v41 = vmul.f32 %v7043_v13, %v17112_v25 }
 0xaa3   :  { %v7039_v51 = vsub.f32 %v7028_v29, %v7037_v23 }
 0xaa5   :  { %v7048_v8 = vrot.slane %v7039_v51, %v20164_v60 }
 0xaa7   :  { %v7049_v43 = vadd.f32 %v7048_v8, %v7044_v41 }
 0xaa9   :  { %vm7050_vm7 = vcmp.ge.f32.partialorder %v7049_v43, 0.0  ;;  %v7051_v63 = vmul.f32 0.2, %v7049_v43 }
 0xaab   :  { %v7052_v37 = vsel %vm7050_vm7, %v7049_v43, %v7051_v63 }
 0xaac   :  { %7053 = vst [vmem:[#allocation6] sm:$0xff] %v7052_v37  }
 0xab3   :  { %v7055_v35 = vld [vmem:[#allocation6] sm:$0x1]  ;;  %v7059_v59 = vld [vmem:[#allocation6 + $0x2] sm:$0x1]  ;;  %v7063_v1 = vld [vmem:[#allocation6 + $0x4] sm:$0x1] }
 0xab4   :  { %v7067_v57 = vld [vmem:[#allocation6 + $0x6] sm:$0x1]  ;;  %7056 = vst [vmem:[#allocation2] sm:$0x1] %v7055_v35  ;;  %7060 = vst [vmem:[#allocation2 + $0x10] sm:$0x1] %v7059_v59 }
 0xab5   :  { %7064 = vst [vmem:[#allocation2 + $0x1] sm:$0x1] %v7063_v1  ;;  %v7057_v50 = vld [vmem:[#allocation6 + $0x1] sm:$0x1]  ;;  %v7065_v20 = vld [vmem:[#allocation6 + $0x5] sm:$0x1] }
 0xab6   :  { %7068 = vst [vmem:[#allocation2 + $0x11] sm:$0x1] %v7067_v57  ;;  %7058 = vst [vmem:[#allocation2 + $0x8] sm:$0x1] %v7057_v50  ;;  %v7061_v25 = vld [vmem:[#allocation6 + $0x3] sm:$0x1] }
 0xab7   :  { %7066 = vst [vmem:[#allocation2 + $0x9] sm:$0x1] %v7065_v20  ;;  %v7069_v18 = vld [vmem:[#allocation6 + $0x7] sm:$0x1]  ;;  %7062 = vst [vmem:[#allocation2 + $0x18] sm:$0x1] %v7061_v25 }
 0xab8   :  { %7070 = vst [vmem:[#allocation2 + $0x19] sm:$0x1] %v7069_v18 }
 0xabc   :  { %v7071_v51 = vld [vmem:[#allocation2] sm:$0x3] }
 0xabd   :  { %v17856_v12 = vand.u32 4294901760, %v7071_v51  ;;  %v7073_v41 = vld [vmem:[#allocation2 + $0x10] sm:$0x3] }
 0xabe   :  { %v7072_v23 = vld [vmem:[#allocation2 + $0x8] sm:$0x3]  ;;  %v17860_v13 = vand.u32 4294901760, %v7073_v41 }
 0xabf   :  { %v17858_v29 = vand.u32 4294901760, %v7072_v23  ;;  %v7074_v39 = vld [vmem:[#allocation2 + $0x18] sm:$0x3]  ;;  %v17865_v57 = vsub.f32 %v7071_v51, %v17856_v12 }
 0xac0   :  { %20166 = vst [vmem:[#allocation32_spill] sm:$0xff] %v17860_v13  ;;  %v17862_v60 = vand.u32 4294901760, %v7074_v39  ;;  %v17871_v8 = vsub.f32 %v7073_v41, %v17860_v13 }
 0xac1   :  { %20165 = vst [vmem:[#allocation42_spill] sm:$0xff] %v17858_v29  ;;  %20168 = vst [vmem:[#allocation57_spill] sm:$0xff] %v17865_v57  ;;  %v17868_v24 = vsub.f32 %v7072_v23, %v17858_v29  ;;  %v19150_v63 = vand.u32 4294901760, %v17865_v57 }
 0xac2   :  { %20167 = vst [vmem:[#allocation54_spill] sm:$0xff] %v17862_v60  ;;  %20169 = vst [vmem:[#allocation61_spill] sm:$0xff] %v17871_v8  ;;  %v17874_v43 = vsub.f32 %v7074_v39, %v17862_v60  ;;  %v19151_v35 = vand.u32 4294901760, %v17871_v8  ;;  %v13037_v39 = vpack.c.bf16 %v17448_v9, %v17443_v58 }
 0xac3   :  { %v19153_v37 = vand.u32 4294901760, %v17868_v24  ;;  %v7244_v1 = vsub.f32 %v17865_v57, %v19150_v63  ;;  %v13039_v63 = vpack.c.bf16 %v17468_v53, %v17463_v2 }
 0xac4   :  { %20170 = vst [vmem:[#allocation65_spill] sm:$0xff] %v17874_v43  ;;  %v19152_v59 = vand.u32 4294901760, %v17874_v43  ;;  %v8106_v20 = vsub.f32 %v17871_v8, %v19151_v35 }
 0xac5   :  { %v7238_v50 = vsub.f32 %v17868_v24, %v19153_v37  ;;  %v7245_v18 = vand.u32 4294901760, %v7244_v1  ;;  %v13041_v1 = vpack.c.bf16 %v17488_v40, %v17483_v30 }
 0xac6   :  { %v8100_v25 = vsub.f32 %v17874_v43, %v19152_v59  ;;  %v8107_v23 = vand.u32 4294901760, %v8106_v20 }
 0xac7   :  { %v7239_v51 = vand.u32 4294901760, %v7238_v50  ;;  %v20171_v50 = vld [vmem:[#allocation47_spill] sm:$0xff] }
 0xac8   :  { %v8101_v41 = vand.u32 4294901760, %v8100_v25  ;;  %v13043_v20 = vpack.c.bf16 %v20171_v50, %v17503_v47  ;;  %v20173_v25 = vld [vmem:[#allocation53_spill] sm:$0xff] }
 0xac9   :  { %7240 = vmatprep.mubr.f32.mxu1 %v7239_v51  ;;  %v20174_v51 = vld [vmem:[#allocation64_spill] sm:$0xff] }
 0xaca   :  { %8102 = vmatprep.mubr.f32.mxu0 %v8101_v41  ;;  %7246 = vmatmul.mubr.f32.vlgmr.msra.gmra.mrb[78].mxu1 %v7245_v18 }
 0xacb   :  { %12814 = vmatpush3.bf16.msra.mxu1 %v17697_v6  ;;  %8108 = vmatmul.mubr.f32.vlgmr.msra.gmra.mrb[48].mxu0 %v8107_v23  ;;  %v20172_v6 = vld [vmem:[#allocation55_spill] sm:$0xff] }
 0xacc   :  { %13038 = vmatpush3.bf16.msra.mxu0 %v13037_v39  ;;  %7476 = vmatprep.mubr.f32.mxu1 %v17858_v29  ;;  %v13045_v18 = vpack.c.bf16 %v20173_v25, %v20172_v6  ;;  %v20175_v23 = vld [vmem:[#allocation15_spill] sm:$0xff]  ;;  %v20187_v29 = vld [vmem:[#allocation92_spill] sm:$0xff] }
 0xacd   :  { %8475 = vmatprep.mubr.f32.mxu0 %v17874_v43  ;;  %12816 = vmatprep.subr.bf16.mxu1 %v17699_v56  ;;  %v13047_v41 = vpack.c.bf16 %v20175_v23, %v20174_v51  ;;  %v20176_v56 = vld [vmem:[#allocation77_spill] sm:$0xff]  ;;  %v20177_v39 = vld [vmem:[#allocation75_spill] sm:$0xff]  ;;  %v20185_v43 = vld [vmem:[#allocation98_spill] sm:$0xff] }
 0xace   :  { %13040 = vmatprep.subr.bf16.mxu0 %v13039_v63  ;;  %v13049_v63 = vpack.c.bf16 %v20177_v39, %v20176_v56 }
 0xacf   :  { %12818 = vmatpush3.bf16.msra.mxu1 %v17714_v17  ;;  %v20178_v17 = vld [vmem:[#allocation97_spill] sm:$0xff] }
 0xad0   :  { %13042 = vmatpush3.bf16.msra.mxu0 %v13041_v1  ;;  %12820 = vmatprep.subr.bf16.mxu1 %v17725_v62  ;;  %v20179_v1 = vld [vmem:[#allocation23_spill] sm:$0xff]  ;;  %v20180_v62 = vld [vmem:[#allocation66_spill] sm:$0xff] }
 0xad1   :  { %13044 = vmatprep.subr.bf16.mxu0 %v13043_v20  ;;  %v13051_v35 = vpack.c.bf16 %v20179_v1, %v20178_v17  ;;  %v20181_v20 = vld [vmem:[#allocation70_spill] sm:$0xff] }
 0xad2   :  { %v13053_v59 = vpack.c.bf16 %v20181_v20, %v20180_v62 }
 0xad3   :  { %12822 = vmatpush3.bf16.msra.mxu1 %v17730_v52  ;;  %v20182_v52 = vld [vmem:[#allocation48_spill] sm:$0xff] }
 0xad4   :  { %13046 = vmatpush3.bf16.msra.mxu0 %v13045_v18  ;;  %12824 = vmatprep.subr.bf16.mxu1 %v17739_v15  ;;  %v20183_v18 = vld [vmem:[#allocation52_spill] sm:$0xff] }
 0xad5   :  { %13048 = vmatprep.subr.bf16.mxu0 %v13047_v41  ;;  %v13055_v37 = vpack.c.bf16 %v20183_v18, %v20182_v52  ;;  %v20184_v15 = vld [vmem:[#allocation104_spill] sm:$0xff]  ;;  %v20186_v41 = vld [vmem:[#allocation86_spill] sm:$0xff] }
 0xad6   :  { %v13057_v13 = vpack.c.bf16 %v20187_v29, %v20186_v41 }
 0xad7   :  { %12826 = vmatpush3.bf16.msra.mxu1 %v17753_v44  ;;  %v20188_v44 = vld [vmem:[#allocation106_spill] sm:$0xff] }
 0xad8   :  { %13050 = vmatpush3.bf16.msra.mxu0 %v13049_v63  ;;  %12828 = vmatprep.subr.bf16.mxu1 %v17763_v19  ;;  %v20189_v63 = vld [vmem:[#allocation19_spill] sm:$0xff]  ;;  %v20190_v19 = vld [vmem:[#allocation16_spill] sm:$0xff] }
 0xad9   :  { %13052 = vmatprep.subr.bf16.mxu0 %v13051_v35  ;;  %v13059_v57 = vpack.c.bf16 %v20189_v63, %v20188_v44  ;;  %v20191_v35 = vld [vmem:[#allocation24_spill] sm:$0xff] }
 0xada   :  { %v13061_v4 = vpack.c.bf16 %v20192_v3, %v20191_v35  ;;  %v19175_v3 = vand.u32 4294901760, %v17448_v9 }
 0xadb   :  { %12830 = vmatpush3.bf16.msra.mxu1 %v20184_v15  ;;  %v20193_v15 = vld [vmem:[#allocation51_spill] sm:$0xff] }
 0xadc   :  { %13054 = vmatpush3.bf16.msra.mxu0 %v13053_v59  ;;  %12832 = vmatprep.subr.bf16.mxu1 %v20185_v43  ;;  %v20194_v59 = vld [vmem:[#allocation59_spill] sm:$0xff] }
 0xadd   :  { %13056 = vmatprep.subr.bf16.mxu0 %v13055_v37  ;;  %v13063_v46 = vpack.c.bf16 %v20194_v59, %v20193_v15  ;;  %v20195_v43 = vld [vmem:[#allocation35_spill] sm:$0xff]  ;;  %v20197_v37 = vld [vmem:[#allocation88_spill] sm:$0xff]  ;;  %v19177_v59 = vand.u32 4294901760, %v17463_v2 }
 0xade   :  { %v19174_v27 = vand.u32 4294901760, %v20195_v43 }
 0xadf   :  { %12834 = vmatpush3.bf16.msra.mxu1 %v20190_v19 }
 0xae0   :  { %13058 = vmatpush3.bf16.msra.mxu0 %v13057_v13  ;;  %12836 = vmatprep.subr.bf16.mxu1 %v17803_v32  ;;  %v20198_v13 = vld [vmem:[#allocation26_spill] sm:$0xff]  ;;  %v19176_v32 = vand.u32 4294901760, %v17443_v58 }
 0xae1   :  { %13060 = vmatprep.subr.bf16.mxu0 %v13059_v57  ;;  %v13065_v19 = vpack.c.bf16 %v20198_v13, %v20197_v37  ;;  %v13099_v57 = vpack.c.bf16 %v19173_v38, %v19174_v27  ;;  %v19178_v38 = vand.u32 4294901760, %v17488_v40  ;;  %v19181_v27 = vand.u32 4294901760, %v17503_v47 }
 0xae2   :  { %v20259_v40 = vand.u32 4294901760, %v17453_v55 }
 0xae3   :  { %12838 = vmatpush3.bf16.msra.mxu1 %v17814_v16  ;;  %v19180_v16 = vand.u32 4294901760, %v20171_v50  ;;  %v20258_v50 = vand.u32 4294901760, %v17438_v11 }
 0xae4   :  { %13062 = vmatpush3.bf16.msra.mxu0 %v13061_v4  ;;  %12840 = vmatprep.subr.bf16.mxu1 %v17821_v22  ;;  %v20199_v4 = vpack.c.bf16 %v17417_v34, %v17412_v42  ;;  %v19179_v22 = vand.u32 4294901760, %v17483_v30  ;;  %v20260_v30 = vand.u32 4294901760, %v17458_v31 }
 0xae5   :  { %13064 = vmatprep.subr.bf16.mxu0 %v13063_v46  ;;  %v13101_v46 = vpack.c.bf16 %v19175_v3, %v19176_v32  ;;  %v19185_v3 = vand.u32 4294901760, %v20172_v6  ;;  %v19182_v32 = vand.u32 4294901760, %v20173_v25  ;;  %v20256_v25 = vld [vmem:[#allocation68_spill] sm:$0xff]  ;;  %v20257_v6 = vand.u32 4294901760, %v17433_v5 }
 0xae7   :  { %12842 = vmatpush3.bf16.msra.mxu1 %v17827_v36  ;;  %v20200_v36 = vand.u32 4294901760, %v17468_v53  ;;  %v12909_v47 = vpack.c.bf16 %v20258_v50, %v20257_v6  ;;  %v20266_v50 = vand.u32 4294901760, %v17498_v45 }
 0xae8   :  { %13066 = vmatpush3.bf16.msra.mxu0 %v13065_v19  ;;  %12844 = vmatprep.subr.bf16.mxu1 %v20199_v4  ;;  %v20201_v4 = vpack.c.bf16 %v17438_v11, %v17433_v5  ;;  %v20265_v11 = vand.u32 4294901760, %v17493_v7 }
 0xae9   :  { %13100 = vmatprep.subr.bf16.mxu0 %v13099_v57  ;;  %v13103_v19 = vpack.c.bf16 %v20200_v36, %v19177_v59  ;;  %v13105_v57 = vpack.c.bf16 %v19178_v38, %v19179_v22  ;;  %v20202_v36 = vpack.c.bf16 %v17458_v31, %v17453_v55  ;;  %v19183_v59 = vand.u32 4294901760, %v20175_v23 }
 0xaea   :  { %7478 = vmatmul.mubr.f32.vlgmr.msra.gmra.mrb[80].mxu1 %v17856_v12  ;;  %v20203_v38 = vpack.c.bf16 %v17478_v21, %v17473_v14  ;;  %v20204_v22 = vpack.c.bf16 %v17498_v45, %v17493_v7  ;;  %v20255_v23 = vand.u32 4294901760, %v17417_v34  ;;  %v20263_v34 = vand.u32 4294901760, %v17473_v14 }
 0xaeb   :  { %8478 = vmatmul.mubr.f32.vlgmr.msra.gmra.mrb[50].mxu0 %v17871_v8  ;;  %12846 = vmatpush3.bf16.msra.mxu1 %v20201_v4  ;;  %v19184_v4 = vand.u32 4294901760, %v20174_v51  ;;  %v20210_v8 = vld [vmem:[#allocation43_spill] sm:$0xff]  ;;  %v12915_v55 = vpack.c.bf16 %v20266_v50, %v20265_v11  ;;  %v20267_v31 = vand.u32 4294901760, %v17513_v33  ;;  %v20270_v14 = vand.u32 4294901760, %v17534_v49 }
 0xaec   :  { %7613 = vmatprep.mubr.f32.mxu1 %v17868_v24  ;;  %13102 = vmatpush3.bf16.msra.mxu0 %v13101_v46  ;;  %v13107_v46 = vpack.c.bf16 %v19180_v16, %v19181_v27  ;;  %v19189_v16 = vand.u32 4294901760, %v20176_v56  ;;  %v19186_v27 = vand.u32 4294901760, %v20177_v39  ;;  %v20253_v39 = vld [vmem:[#allocation14_spill] sm:$0xff]  ;;  %v20254_v56 = vand.u32 4294901760, %v17412_v42  ;;  %v20302_v50 = vld [vmem:[#allocation47_spill] sm:$0xff] }
 0xaed   :  { %8752 = vmatprep.mubr.f32.mxu0 %v17862_v60  ;;  %12848 = vmatprep.subr.bf16.mxu1 %v20202_v36  ;;  %v13109_v36 = vpack.c.bf16 %v19182_v32, %v19185_v3  ;;  %v20206_v32 = vpack.c.bf16 %v17534_v49, %v17531_v28  ;;  %v19195_v3 = vand.u32 4294901760, %v20183_v18  ;;  %v20218_v18 = vand.u32 4294901760, %v20189_v63  ;;  %v20228_v63 = vld [vmem:[#allocation108_spill] sm:$0xff]  ;;  %v20262_v42 = vld [vmem:[#allocation42_spill] sm:$0xff] }
 0xaee   :  { %13104 = vmatprep.subr.bf16.mxu0 %v13103_v19  ;;  %v19188_v19 = vand.u32 4294901760, %v20178_v17  ;;  %v20221_v17 = vld [vmem:[#allocation94_spill] sm:$0xff]  ;;  %v12907_v51 = vpack.c.bf16 %v20255_v23, %v20254_v56  ;;  %v20264_v23 = vand.u32 4294901760, %v17478_v21  ;;  %v20271_v21 = vand.u32 4294901760, %v17541_v26 }
 0xaef   :  { %12850 = vmatpush3.bf16.msra.mxu1 %v20203_v38  ;;  %v13111_v38 = vpack.c.bf16 %v19183_v59, %v19184_v4  ;;  %v19193_v59 = vand.u32 4294901760, %v20180_v62  ;;  %v19192_v4 = vand.u32 4294901760, %v20181_v20  ;;  %v20219_v20 = vld [vmem:[#allocation59_spill] sm:$0xff]  ;;  %v20272_v7 = vand.u32 4294901760, %v17543_v0 }
 0xaf0   :  { %13106 = vmatpush3.bf16.msra.mxu0 %v13105_v57  ;;  %12852 = vmatprep.subr.bf16.mxu1 %v20204_v22  ;;  %v19187_v57 = vand.u32 4294901760, %v20179_v1  ;;  %v20205_v22 = vpack.c.bf16 %v17518_v61, %v17513_v33  ;;  %v19211_v1 = vand.u32 4294901760, %v20219_v20  ;;  %v20249_v20 = vld [vmem:[#allocation21_spill] sm:$0xff]  ;;  %v12913_v5 = vpack.c.bf16 %v20264_v23, %v20263_v34 }
 0xaf1   :  { %13108 = vmatprep.subr.bf16.mxu0 %v13107_v46  ;;  %v13113_v46 = vpack.c.bf16 %v19186_v27, %v19189_v16  ;;  %v20208_v27 = vpack.c.bf16 %v17553_v54, %v17551_v48  ;;  %v20217_v16 = vand.u32 4294901760, %v20188_v44  ;;  %v20273_v45 = vand.u32 4294901760, %v17551_v48 }
 0xaf2   :  { %v20274_v33 = vand.u32 4294901760, %v17553_v54 }
 0xaf3   :  { %12854 = vmatpush3.bf16.msra.mxu1 %v20205_v22  ;;  %v13115_v22 = vpack.c.bf16 %v19187_v57, %v19188_v19  ;;  %v19202_v19 = vand.u32 4294901760, %v20187_v29 }
 0xaf4   :  { %13110 = vmatpush3.bf16.msra.mxu0 %v13109_v36  ;;  %12856 = vmatprep.subr.bf16.mxu1 %v20206_v32  ;;  %v19196_v36 = vand.u32 4294901760, %v20182_v52  ;;  %v20207_v32 = vpack.c.bf16 %v17543_v0, %v17541_v26  ;;  %v12923_v56 = vpack.c.bf16 %v20274_v33, %v20273_v45  ;;  %v20279_v0 = vand.u32 4294901760, %v20221_v17 }
 0xaf5   :  { %13112 = vmatprep.subr.bf16.mxu0 %v13111_v38  ;;  %v13117_v38 = vpack.c.bf16 %v19192_v4, %v19193_v59  ;;  %v20212_v4 = vld [vmem:[#allocation31_spill] sm:$0xff]  ;;  %v20213_v59 = vld [vmem:[#allocation40_spill] sm:$0xff] }
 0xaf6   :  { %v20214_v57 = vpack.c.bf16 %v20212_v4, %v20213_v59  ;;  %v20277_v49 = vand.u32 4294901760, %v20213_v59  ;;  %v20278_v26 = vand.u32 4294901760, %v20212_v4 }
 0xaf7   :  { %12858 = vmatpush3.bf16.msra.mxu1 %v20207_v32  ;;  %v13119_v32 = vpack.c.bf16 %v19195_v3, %v19196_v36  ;;  %v20216_v36 = vld [vmem:[#allocation90_spill] sm:$0xff] }
 0xaf8   :  { %13114 = vmatpush3.bf16.msra.mxu0 %v13113_v46  ;;  %12860 = vmatprep.subr.bf16.mxu1 %v20208_v27  ;;  %v20209_v27 = vld [vmem:[#allocation58_spill] sm:$0xff]  ;;  %v19209_v46 = vand.u32 4294901760, %v20216_v36  ;;  %v20252_v36 = vld [vmem:[#allocation27_spill] sm:$0xff] }
 0xaf9   :  { %13116 = vmatprep.subr.bf16.mxu0 %v13115_v22  ;;  %v20211_v62 = vpack.c.bf16 %v20209_v27, %v20210_v8  ;;  %v20215_v22 = vand.u32 4294901760, %v20186_v41 }
 0xafb   :  { %12862 = vmatpush3.bf16.msra.mxu1 %v20211_v62  ;;  %v13121_v52 = vpack.c.bf16 %v19202_v19, %v20215_v22  ;;  %v13123_v62 = vpack.c.bf16 %v20218_v18, %v20217_v16  ;;  %v20223_v22 = vld [vmem:[#allocation17_spill] sm:$0xff]  ;;  %v20224_v19 = vld [vmem:[#allocation72_spill] sm:$0xff]  ;;  %v19215_v18 = vand.u32 4294901760, %v20197_v37  ;;  %v19214_v16 = vand.u32 4294901760, %v20198_v13  ;;  %v20241_v37 = vld [vmem:[#allocation82_spill] sm:$0xff] }
 0xafc   :  { %13118 = vmatpush3.bf16.msra.mxu0 %v13117_v38  ;;  %12864 = vmatprep.subr.bf16.mxu1 %v20214_v57  ;;  %v19212_v38 = vand.u32 4294901760, %v20193_v15  ;;  %v20220_v57 = vld [vmem:[#allocation63_spill] sm:$0xff]  ;;  %v20225_v3 = vpack.c.bf16 %v20223_v22, %v20224_v19  ;;  %v20281_v54 = vand.u32 4294901760, %v20224_v19 }
 0xafd   :  { %13120 = vmatprep.subr.bf16.mxu0 %v13119_v32  ;;  %v20222_v41 = vpack.c.bf16 %v20220_v57, %v20221_v17  ;;  %v20226_v32 = vand.u32 4294901760, %v20191_v35  ;;  %v20231_v35 = vld [vmem:[#allocation78_spill] sm:$0xff]  ;;  %v20247_v13 = vld [vmem:[#allocation95_spill] sm:$0xff]  ;;  %v20280_v48 = vand.u32 4294901760, %v20220_v57 }
 0xafe   :  { %v20285_v4 = vand.u32 4294901760, %v20231_v35 }
 0xaff   :  { %12866 = vmatpush3.bf16.msra.mxu1 %v20222_v41  ;;  %v13125_v44 = vpack.c.bf16 %v19209_v46, %v20226_v32  ;;  %v13127_v41 = vpack.c.bf16 %v19211_v1, %v19212_v38  ;;  %v13129_v32 = vpack.c.bf16 %v19214_v16, %v19215_v18  ;;  %v20234_v46 = vld [vmem:[#allocation60_spill] sm:$0xff]  ;;  %v20237_v38 = vld [vmem:[#allocation57_spill] sm:$0xff] }
 0xb00   :  { %13122 = vmatpush3.bf16.msra.mxu0 %v13121_v52  ;;  %12868 = vmatprep.subr.bf16.mxu1 %v20225_v3  ;;  %v20227_v52 = vld [vmem:[#allocation13_spill] sm:$0xff]  ;;  %v20230_v3 = vld [vmem:[#allocation46_spill] sm:$0xff]  ;;  %v20236_v1 = vld [vmem:[#allocation36_spill] sm:$0xff]  ;;  %v20287_v57 = vand.u32 4294901760, %v20234_v46 }
 0xb01   :  { %13124 = vmatprep.subr.bf16.mxu0 %v13123_v62  ;;  %v20229_v29 = vpack.c.bf16 %v20227_v52, %v20228_v63  ;;  %v20232_v60 = vpack.c.bf16 %v20230_v3, %v20231_v35  ;;  %v20233_v62 = vld [vmem:[#allocation71_spill] sm:$0xff]  ;;  %v20242_v16 = vld [vmem:[#allocation93_spill] sm:$0xff]  ;;  %v20244_v18 = vld [vmem:[#allocation96_spill] sm:$0xff]  ;;  %v20284_v59 = vand.u32 4294901760, %v20227_v52  ;;  %v20286_v17 = vand.u32 4294901760, %v20230_v3 }
 0xb02   :  { %v20235_v15 = vpack.c.bf16 %v20233_v62, %v20234_v46  ;;  %v20288_v19 = vand.u32 4294901760, %v20233_v62  ;;  %v20290_v35 = vand.u32 4294901760, %v20196_v10  ;;  %v20291_v46 = vand.u32 4294901760, %v17443_v58 }
 0xb03   :  { %12870 = vmatpush3.bf16.msra.mxu1 %v20229_v29  ;;  %v20238_v29 = vld [vmem:[#allocation32_spill] sm:$0xff] }
 0xb04   :  { %13126 = vmatpush3.bf16.msra.mxu0 %v13125_v44  ;;  %12872 = vmatprep.subr.bf16.mxu1 %v20232_v60  ;;  %v20239_v44 = vld [vmem:[#allocation41_spill] sm:$0xff]  ;;  %v20240_v60 = vand.u32 4294901760, %v17868_v24  ;;  %v20250_v24 = vld [vmem:[#allocation28_spill] sm:$0xff]  ;;  %v12937_v11 = vpack.c.bf16 %v20288_v19, %v20287_v57 }
 0xb05   :  { %13128 = vmatprep.subr.bf16.mxu0 %v13127_v41  ;;  %v20243_v41 = vld [vmem:[#allocation107_spill] sm:$0xff] }
 0xb07   :  { %12874 = vmatpush3.bf16.msra.mxu1 %v20235_v15  ;;  %v20245_v15 = vld [vmem:[#allocation20_spill] sm:$0xff] }
 0xb08   :  { %13130 = vmatpush3.bf16.msra.mxu0 %v13129_v32  ;;  %12876 = vmatprep.subr.bf16.mxu1 %v20236_v1  ;;  %v20246_v32 = vld [vmem:[#allocation80_spill] sm:$0xff] }
 0xb0a   :  { %7616 = vmatmul.mubr.f32.vlgmr.msra.gmra.mrb[82].mxu1 %v20237_v38 }
 0xb0b   :  { %8754 = vmatmul.mubr.f32.vlgmr.msra.gmra.mrb[52].mxu0 %v20238_v29  ;;  %12878 = vmatpush3.bf16.msra.mxu1 %v20239_v44  ;;  %v20248_v29 = vld [vmem:[#allocation99_spill] sm:$0xff] }
 0xb0c   :  { %7720 = vmatprep.mubr.f32.mxu1 %v20240_v60  ;;  %12880 = vmatprep.subr.bf16.mxu1 %v20241_v37  ;;  %v20251_v60 = vld [vmem:[#allocation91_spill] sm:$0xff] }
 0xb0f   :  { %12882 = vmatpush3.bf16.msra.mxu1 %v20242_v16 }
 0xb10   :  { %12884 = vmatprep.subr.bf16.mxu1 %v20243_v41 }
 0xb13   :  { %12886 = vmatpush3.bf16.msra.mxu1 %v20244_v18 }
 0xb14   :  { %12888 = vmatprep.subr.bf16.mxu1 %v20245_v15 }
 0xb17   :  { %12890 = vmatpush3.bf16.msra.mxu1 %v20246_v32 }
 0xb18   :  { %12892 = vmatprep.subr.bf16.mxu1 %v20247_v13 }
 0xb1b   :  { %12894 = vmatpush3.bf16.msra.mxu1 %v20248_v29 }
 0xb1c   :  { %12896 = vmatprep.subr.bf16.mxu1 %v20249_v20 }
 0xb1f   :  { %12898 = vmatpush3.bf16.msra.mxu1 %v20250_v24 }
 0xb20   :  { %12900 = vmatprep.subr.bf16.mxu1 %v20251_v60 }
 0xb23   :  { %12902 = vmatpush3.bf16.msra.mxu1 %v20252_v36  ;;  %v12911_v36 = vpack.c.bf16 %v20260_v30, %v20259_v40  ;;  %v20268_v30 = vand.u32 4294901760, %v17518_v61  ;;  %v20275_v61 = vand.u32 4294901760, %v20210_v8  ;;  %v20282_v8 = vand.u32 4294901760, %v20223_v22 }
 0xb24   :  { %12904 = vmatprep.subr.bf16.mxu1 %v20253_v39  ;;  %v20261_v39 = vand.u32 4294901760, %v20237_v38  ;;  %v12929_v38 = vpack.c.bf16 %v20280_v48, %v20279_v0  ;;  %v8117_v22 = vsub.f32 %v17443_v58, %v20291_v46  ;;  %v20311_v48 = vld [vmem:[#allocation15_spill] sm:$0xff] }
 0xb25   :  { %v12917_v40 = vpack.c.bf16 %v20268_v30, %v20267_v31  ;;  %v12931_v34 = vpack.c.bf16 %v20282_v8, %v20281_v54  ;;  %v20304_v31 = vld [vmem:[#allocation14_spill] sm:$0xff] }
 0xb26   :  { %v8118_v62 = vand.u32 4294901760, %v8117_v22 }
 0xb27   :  { %12906 = vmatpush3.bf16.msra.mxu1 %v20256_v25 }
 0xb28   :  { %12908 = vmatprep.subr.bf16.mxu1 %v12907_v51  ;;  %v12921_v51 = vpack.c.bf16 %v20272_v7, %v20271_v21 }
 0xb2a   :  { %7724 = vmatmul.mubr.f32.vlgmr.msra.gmra.mrb[84].mxu1 %v20261_v39 }
 0xb2b   :  { %12910 = vmatpush3.bf16.msra.mxu1 %v12909_v47  ;;  %7890 = vmatprep.mubr.f32.mxu1 %v20262_v42  ;;  %v20269_v47 = vand.u32 4294901760, %v17531_v28  ;;  %v20276_v28 = vand.u32 4294901760, %v20209_v27  ;;  %v20283_v27 = vand.u32 4294901760, %v20228_v63 }
 0xb2c   :  { %12912 = vmatprep.subr.bf16.mxu1 %v12911_v36  ;;  %v12927_v36 = vpack.c.bf16 %v20278_v26, %v20277_v49  ;;  %v20309_v26 = vld [vmem:[#allocation64_spill] sm:$0xff] }
 0xb2d   :  { %v12919_v6 = vpack.c.bf16 %v20270_v14, %v20269_v47  ;;  %v12925_v39 = vpack.c.bf16 %v20276_v28, %v20275_v61  ;;  %v12933_v23 = vpack.c.bf16 %v20284_v59, %v20283_v27  ;;  %v20313_v27 = vld [vmem:[#allocation77_spill] sm:$0xff] }
 0xb2f   :  { %12914 = vmatpush3.bf16.msra.mxu1 %v12913_v5  ;;  %v12935_v5 = vpack.c.bf16 %v20286_v17, %v20285_v4 }
 0xb30   :  { %12916 = vmatprep.subr.bf16.mxu1 %v12915_v55  ;;  %v20303_v55 = vand.u32 4294901760, %v20302_v50 }
 0xb33   :  { %12918 = vmatpush3.bf16.msra.mxu1 %v12917_v40 }
 0xb34   :  { %12920 = vmatprep.subr.bf16.mxu1 %v12919_v6  ;;  %v20305_v6 = vld [vmem:[#allocation55_spill] sm:$0xff] }
 0xb35   :  { %v20306_v21 = vand.u32 4294901760, %v20305_v6 }
 0xb37   :  { %12922 = vmatpush3.bf16.msra.mxu1 %v12921_v51  ;;  %v8145_v7 = vsub.f32 %v20305_v6, %v20306_v21  ;;  %v20307_v51 = vld [vmem:[#allocation53_spill] sm:$0xff] }
 0xb38   :  { %12924 = vmatprep.subr.bf16.mxu1 %v12923_v56  ;;  %v20308_v45 = vand.u32 4294901760, %v20307_v51 }
 0xb39   :  { %v8146_v8 = vand.u32 4294901760, %v8145_v7  ;;  %v20334_v7 = vld [vmem:[#allocation106_spill] sm:$0xff] }
 0xb3a   :  { %v8152_v33 = vsub.f32 %v20307_v51, %v20308_v45  ;;  %v20335_v51 = vand.u32 4294901760, %v20334_v7 }
 0xb3b   :  { %12926 = vmatpush3.bf16.msra.mxu1 %v12925_v39 }
 0xb3c   :  { %12928 = vmatprep.subr.bf16.mxu1 %v12927_v36  ;;  %v20310_v36 = vand.u32 4294901760, %v20309_v26  ;;  %v8313_v45 = vsub.f32 %v20334_v7, %v20335_v51  ;;  %v20366_v7 = vld [vmem:[#allocation29_spill] sm:$0xff] }
 0xb3d   :  { %v20367_v51 = vld [vmem:[#allocation85_spill] sm:$0xff] }
 0xb3e   :  { %v8271_v0 = vsub.f32 %v20309_v26, %v20310_v36  ;;  %v20338_v36 = vld [vmem:[#allocation24_spill] sm:$0xff] }
 0xb3f   :  { %12930 = vmatpush3.bf16.msra.mxu1 %v12929_v38  ;;  %v20312_v38 = vand.u32 4294901760, %v20311_v48 }
 0xb40   :  { %12932 = vmatprep.subr.bf16.mxu1 %v12931_v34  ;;  %v8153_v34 = vand.u32 4294901760, %v8152_v33  ;;  %v20336_v33 = vld [vmem:[#allocation19_spill] sm:$0xff] }
 0xb41   :  { %v8278_v54 = vsub.f32 %v20311_v48, %v20312_v38  ;;  %v20340_v38 = vld [vmem:[#allocation90_spill] sm:$0xff] }
 0xb43   :  { %12934 = vmatpush3.bf16.msra.mxu1 %v12933_v23  ;;  %v20315_v23 = vld [vmem:[#allocation75_spill] sm:$0xff] }
 0xb44   :  { %12936 = vmatprep.subr.bf16.mxu1 %v12935_v5  ;;  %v20316_v4 = vand.u32 4294901760, %v20315_v23  ;;  %v20317_v5 = vld [vmem:[#allocation54_spill] sm:$0xff] }
 0xb46   :  { %v8166_v17 = vsub.f32 %v20315_v23, %v20316_v4  ;;  %v20344_v4 = vld [vmem:[#allocation59_spill] sm:$0xff] }
 0xb47   :  { %12938 = vmatpush3.bf16.msra.mxu1 %v12937_v11  ;;  %v8272_v11 = vand.u32 4294901760, %v8271_v0  ;;  %v20339_v0 = vand.u32 4294901760, %v20338_v36 }
 0xb48   :  { %12940 = vmatprep.subr.bf16.mxu1 %v20236_v1  ;;  %v20289_v1 = vand.u32 4294901760, %v20195_v43 }
 0xb49   :  { %v8201_v48 = vsub.f32 %v20338_v36, %v20339_v0 }
 0xb4a   :  { %7892 = vmatmul.mubr.f32.vlgmr.msra.gmra.mrb[86].mxu1 %v17856_v12  ;;  %v8229_v63 = vsub.f32 %v20195_v43, %v20289_v1  ;;  %v20293_v43 = vand.u32 4294901760, %v17463_v2  ;;  %v8279_v1 = vand.u32 4294901760, %v8278_v54  ;;  %v20341_v54 = vand.u32 4294901760, %v20340_v38 }
 0xb4b   :  { %12942 = vmatpush3.bf16.msra.mxu1 %v20239_v44  ;;  %7994 = vmatprep.mubr.f32.mxu1 %v20262_v42  ;;  %v20296_v44 = vld [vmem:[#allocation44_spill] sm:$0xff] }
 0xb4c   :  { %12944 = vmatprep.subr.bf16.mxu1 %v20241_v37  ;;  %v8236_v37 = vsub.f32 %v20196_v10, %v20290_v35  ;;  %v8243_v52 = vsub.f32 %v17463_v2, %v20293_v43  ;;  %v20294_v10 = vand.u32 4294901760, %v17468_v53 }
 0xb4e   :  { %v8250_v3 = vsub.f32 %v17468_v53, %v20294_v10  ;;  %v8264_v53 = vsub.f32 %v20302_v50, %v20303_v55  ;;  %v8244_v40 = vand.u32 4294901760, %v8243_v52  ;;  %v20324_v10 = vld [vmem:[#allocation70_spill] sm:$0xff] }
 0xb4f   :  { %12946 = vmatpush3.bf16.msra.mxu1 %v20242_v16  ;;  %v8237_v16 = vand.u32 4294901760, %v8236_v37  ;;  %v20320_v37 = vld [vmem:[#allocation23_spill] sm:$0xff] }
 0xb50   :  { %12948 = vmatprep.subr.bf16.mxu1 %v20243_v41  ;;  %v8251_v47 = vand.u32 4294901760, %v8250_v3  ;;  %v8265_v39 = vand.u32 4294901760, %v8264_v53  ;;  %v20321_v46 = vand.u32 4294901760, %v20320_v37  ;;  %v20325_v3 = vand.u32 4294901760, %v20324_v10  ;;  %v20332_v53 = vld [vmem:[#allocation92_spill] sm:$0xff] }
 0xb52   :  { %v13007_v49 = vpack.c.bf16 %v8251_v47, %v8244_v40  ;;  %v8292_v22 = vsub.f32 %v20320_v37, %v20321_v46  ;;  %v20348_v37 = vld [vmem:[#allocation26_spill] sm:$0xff] }
 0xb53   :  { %12950 = vmatpush3.bf16.msra.mxu1 %v20244_v18  ;;  %v20292_v18 = vand.u32 4294901760, %v17448_v9  ;;  %v20349_v46 = vand.u32 4294901760, %v20348_v37 }
 0xb54   :  { %12952 = vmatprep.subr.bf16.mxu1 %v20245_v15  ;;  %v20298_v15 = vld [vmem:[#allocation39_spill] sm:$0xff] }
 0xb57   :  { %12954 = vmatpush3.bf16.msra.mxu1 %v20246_v32  ;;  %v20299_v32 = vand.u32 4294901760, %v20298_v15 }
 0xb58   :  { %12956 = vmatprep.subr.bf16.mxu1 %v20247_v13  ;;  %v8124_v13 = vsub.f32 %v17448_v9, %v20292_v18  ;;  %v20297_v9 = vand.u32 4294901760, %v20296_v44  ;;  %v13013_v18 = vpack.c.bf16 %v8153_v34, %v8146_v8  ;;  %v8208_v8 = vsub.f32 %v20340_v38, %v20341_v54 }
 0xb59   :  { %v8314_v34 = vand.u32 4294901760, %v8313_v45  ;;  %v20368_v45 = vld [vmem:[#allocation83_spill] sm:$0xff] }
 0xb5a   :  { %v8125_v58 = vand.u32 4294901760, %v8124_v13  ;;  %v8131_v41 = vsub.f32 %v20296_v44, %v20297_v9  ;;  %v20328_v9 = vld [vmem:[#allocation52_spill] sm:$0xff] }
 0xb5b   :  { %12958 = vmatpush3.bf16.msra.mxu1 %v20248_v29  ;;  %v20295_v29 = vld [vmem:[#allocation27_spill] sm:$0xff] }
 0xb5c   :  { %12960 = vmatprep.subr.bf16.mxu1 %v20249_v20  ;;  %v8230_v20 = vand.u32 4294901760, %v8229_v63  ;;  %v13005_v14 = vpack.c.bf16 %v8125_v58, %v8118_v62  ;;  %v8132_v56 = vand.u32 4294901760, %v8131_v41  ;;  %v20318_v63 = vld [vmem:[#allocation97_spill] sm:$0xff]  ;;  %v8180_v62 = vsub.f32 %v20324_v10, %v20325_v3  ;;  %v20326_v58 = vld [vmem:[#allocation48_spill] sm:$0xff] }
 0xb5d   :  { %v20329_v41 = vand.u32 4294901760, %v20328_v9 }
 0xb5e   :  { %v13003_v30 = vpack.c.bf16 %v8237_v16, %v8230_v20  ;;  %v8167_v20 = vand.u32 4294901760, %v8166_v17  ;;  %v20322_v16 = vld [vmem:[#allocation66_spill] sm:$0xff]  ;;  %v8181_v47 = vand.u32 4294901760, %v8180_v62  ;;  %v20345_v17 = vand.u32 4294901760, %v20344_v4 }
 0xb5f   :  { %12962 = vmatpush3.bf16.msra.mxu1 %v20250_v24  ;;  %v8138_v24 = vsub.f32 %v20298_v15, %v20299_v32  ;;  %v20323_v43 = vand.u32 4294901760, %v20322_v16  ;;  %v8306_v15 = vsub.f32 %v20328_v9, %v20329_v41  ;;  %v13015_v32 = vpack.c.bf16 %v8279_v1, %v8272_v11  ;;  %v20350_v62 = vld [vmem:[#allocation38_spill] sm:$0xff]  ;;  %v20355_v41 = vld [vmem:[#allocation87_spill] sm:$0xff] }
 0xb60   :  { %12964 = vmatprep.subr.bf16.mxu1 %v20251_v60  ;;  %v20300_v60 = vld [vmem:[#allocation49_spill] sm:$0xff]  ;;  %v8202_v11 = vand.u32 4294901760, %v8201_v48  ;;  %v8209_v1 = vand.u32 4294901760, %v8208_v8 }
 0xb61   :  { %v20301_v42 = vand.u32 4294901760, %v20300_v60  ;;  %v8139_v61 = vand.u32 4294901760, %v8138_v24  ;;  %v8173_v52 = vsub.f32 %v20322_v16, %v20323_v43  ;;  %v8307_v6 = vand.u32 4294901760, %v8306_v15  ;;  %v20356_v15 = vld [vmem:[#allocation103_spill] sm:$0xff] }
 0xb62   :  { %v13029_v16 = vpack.c.bf16 %v8209_v1, %v8202_v11 }
 0xb63   :  { %12966 = vmatpush3.bf16.msra.mxu1 %v20295_v29  ;;  %v8257_v2 = vsub.f32 %v20300_v60, %v20301_v42  ;;  %v13009_v57 = vpack.c.bf16 %v8139_v61, %v8132_v56  ;;  %v20327_v29 = vand.u32 4294901760, %v20326_v58  ;;  %v8293_v60 = vand.u32 4294901760, %v8292_v22 }
 0xb64   :  { %12968 = vmatprep.subr.bf16.mxu1 %v20304_v31  ;;  %v20333_v31 = vand.u32 4294901760, %v20332_v53  ;;  %v8174_v40 = vand.u32 4294901760, %v8173_v52  ;;  %v20337_v56 = vand.u32 4294901760, %v20336_v33  ;;  %v8222_v22 = vsub.f32 %v20348_v37, %v20349_v46 }
 0xb65   :  { %v8258_v28 = vand.u32 4294901760, %v8257_v2  ;;  %v8299_v44 = vsub.f32 %v20326_v58, %v20327_v29  ;;  %v20330_v2 = vld [vmem:[#allocation86_spill] sm:$0xff]  ;;  %v20351_v58 = vld [vmem:[#allocation32_spill] sm:$0xff] }
 0xb66   :  { %v20331_v50 = vand.u32 4294901760, %v20330_v2  ;;  %v8320_v61 = vsub.f32 %v20336_v33, %v20337_v56  ;;  %v8223_v52 = vand.u32 4294901760, %v8222_v22  ;;  %v20352_v29 = vld [vmem:[#allocation76_spill] sm:$0xff]  ;;  %v20369_v33 = vld [vmem:[#allocation61_spill] sm:$0xff] }
 0xb67   :  { %12970 = vmatpush3.bf16.msra.mxu1 %v20256_v25  ;;  %v20314_v25 = vand.u32 4294901760, %v20313_v27  ;;  %v13011_v19 = vpack.c.bf16 %v8265_v39, %v8258_v28  ;;  %v20370_v56 = vand.u32 4294901760, %v20369_v33 }
 0xb68   :  { %13004 = vmatprep.subr.bf16.mxu1 %v13003_v30  ;;  %v8187_v55 = vsub.f32 %v20330_v2, %v20331_v50  ;;  %v8194_v30 = vsub.f32 %v20332_v53, %v20333_v31  ;;  %v20361_v2 = vld [vmem:[#allocation89_spill] sm:$0xff]  ;;  %v20362_v50 = vld [vmem:[#allocation62_spill] sm:$0xff] }
 0xb69   :  { %v8159_v59 = vsub.f32 %v20313_v27, %v20314_v25  ;;  %v8321_v27 = vand.u32 4294901760, %v8320_v61  ;;  %v20342_v25 = vld [vmem:[#allocation51_spill] sm:$0xff] }
 0xb6a   :  { %7996 = vmatmul.mubr.f32.vlgmr.msra.gmra.mrb[88].mxu1 %v17856_v12  ;;  %v20319_v12 = vand.u32 4294901760, %v20318_v63  ;;  %v8188_v28 = vand.u32 4294901760, %v8187_v55  ;;  %v8195_v39 = vand.u32 4294901760, %v8194_v30  ;;  %v20363_v55 = vld [vmem:[#allocation73_spill] sm:$0xff] }
 0xb6b   :  { %13006 = vmatpush3.bf16.msra.mxu1 %v13005_v14  ;;  %8338 = vmatprep.mubr.f32.mxu1 %v20317_v5  ;;  %v8160_v13 = vand.u32 4294901760, %v8159_v59  ;;  %v8300_v14 = vand.u32 4294901760, %v8299_v44  ;;  %v20343_v59 = vand.u32 4294901760, %v20342_v25  ;;  %v20353_v44 = vld [vmem:[#allocation65_spill] sm:$0xff] }
 0xb6c   :  { %13008 = vmatprep.subr.bf16.mxu1 %v13007_v49  ;;  %v8285_v35 = vsub.f32 %v20318_v63, %v20319_v12  ;;  %v13021_v49 = vpack.c.bf16 %v8181_v47, %v8174_v40  ;;  %v20346_v63 = vld [vmem:[#allocation88_spill] sm:$0xff]  ;;  %v20354_v9 = vand.u32 4294901760, %v20353_v44 }
 0xb6d   :  { %v13017_v42 = vpack.c.bf16 %v8167_v20, %v8160_v13  ;;  %v13023_v26 = vpack.c.bf16 %v8307_v6, %v8300_v14  ;;  %v8327_v23 = vsub.f32 %v20342_v25, %v20343_v59  ;;  %v20347_v12 = vand.u32 4294901760, %v20346_v63  ;;  %v20364_v14 = vld [vmem:[#allocation84_spill] sm:$0xff] }
 0xb6e   :  { %v8286_v24 = vand.u32 4294901760, %v8285_v35 }
 0xb6f   :  { %13010 = vmatpush3.bf16.msra.mxu1 %v13009_v57  ;;  %v8334_v57 = vsub.f32 %v20344_v4, %v20345_v17  ;;  %v8215_v35 = vsub.f32 %v20346_v63, %v20347_v12  ;;  %v8328_v13 = vand.u32 4294901760, %v8327_v23 }
 0xb70   :  { %13012 = vmatprep.subr.bf16.mxu1 %v13011_v19  ;;  %v13019_v21 = vpack.c.bf16 %v8293_v60, %v8286_v24  ;;  %v13025_v19 = vpack.c.bf16 %v8195_v39, %v8188_v28  ;;  %v20358_v24 = vld [vmem:[#allocation25_spill] sm:$0xff] }
 0xb71   :  { %v8335_v20 = vand.u32 4294901760, %v8334_v57  ;;  %v8216_v43 = vand.u32 4294901760, %v8215_v35  ;;  %v20359_v60 = vld [vmem:[#allocation105_spill] sm:$0xff] }
 0xb73   :  { %13014 = vmatpush3.bf16.msra.mxu1 %v13013_v18  ;;  %v13027_v18 = vpack.c.bf16 %v8321_v27, %v8314_v34  ;;  %v13031_v10 = vpack.c.bf16 %v8335_v20, %v8328_v13  ;;  %v13033_v3 = vpack.c.bf16 %v8223_v52, %v8216_v43 }
 0xb74   :  { %13016 = vmatprep.subr.bf16.mxu1 %v13015_v32  ;;  %v20357_v32 = vld [vmem:[#allocation109_spill] sm:$0xff] }
 0xb77   :  { %13018 = vmatpush3.bf16.msra.mxu1 %v13017_v42  ;;  %v20360_v42 = vld [vmem:[#allocation79_spill] sm:$0xff] }
 0xb78   :  { %13020 = vmatprep.subr.bf16.mxu1 %v13019_v21  ;;  %v20365_v21 = vld [vmem:[#allocation102_spill] sm:$0xff] }
 0xb7b   :  { %13022 = vmatpush3.bf16.msra.mxu1 %v13021_v49 }
 0xb7c   :  { %13024 = vmatprep.subr.bf16.mxu1 %v13023_v26 }
 0xb7f   :  { %13026 = vmatpush3.bf16.msra.mxu1 %v13025_v19 }
 0xb80   :  { %13028 = vmatprep.subr.bf16.mxu1 %v13027_v18 }
 0xb83   :  { %13030 = vmatpush3.bf16.msra.mxu1 %v13029_v16 }
 0xb84   :  { %13032 = vmatprep.subr.bf16.mxu1 %v13031_v10 }
 0xb87   :  { %13034 = vmatpush3.bf16.msra.mxu1 %v13033_v3 }
 0xb88   :  { %13068 = vmatprep.subr.bf16.mxu1 %v20350_v62 }
 0xb8a   :  { %8340 = vmatmul.mubr.f32.vlgmr.msra.gmra.mrb[90].mxu1 %v20351_v58 }
 0xb8b   :  { %13070 = vmatpush3.bf16.msra.mxu1 %v20352_v29  ;;  %8582 = vmatprep.mubr.f32.mxu1 %v20354_v9 }
 0xb8c   :  { %13072 = vmatprep.subr.bf16.mxu1 %v20355_v41 }
 0xb8f   :  { %13074 = vmatpush3.bf16.msra.mxu1 %v20356_v15 }
 0xb90   :  { %13076 = vmatprep.subr.bf16.mxu1 %v20357_v32 }
 0xb93   :  { %13078 = vmatpush3.bf16.msra.mxu1 %v20358_v24 }
 0xb94   :  { %13080 = vmatprep.subr.bf16.mxu1 %v20359_v60 }
 0xb97   :  { %13082 = vmatpush3.bf16.msra.mxu1 %v20360_v42 }
 0xb98   :  { %13084 = vmatprep.subr.bf16.mxu1 %v20361_v2 }
 0xb9b   :  { %13086 = vmatpush3.bf16.msra.mxu1 %v20362_v50 }
 0xb9c   :  { %13088 = vmatprep.subr.bf16.mxu1 %v20363_v55 }
 0xb9d   :  { %v10369_v53 = vpop.f32.mrb[78].mxu1 }
 0xb9e   :  { %v10579_v31 = vpop.f32.mrb[48].mxu0  ;;  %v10370_v30 = vpop.f32.mrb[79].mxu1 }
 0xb9f   :  { %v10371_v40 = vadd.f32 %v10370_v30, %v10369_v53  ;;  %v10580_v47 = vpop.f32.mrb[49].mxu0  ;;  %13090 = vmatpush3.bf16.msra.mxu1 %v20364_v14 }
 0xba0   :  { %v10581_v6 = vadd.f32 %v10580_v47, %v10579_v31  ;;  %13092 = vmatprep.subr.bf16.mxu1 %v20365_v21 }
 0xba3   :  { %13094 = vmatpush3.bf16.msra.mxu1 %v20366_v7 }
 0xba4   :  { %13096 = vmatprep.subr.bf16.mxu1 %v20367_v51 }
 0xba7   :  { %13098 = vmatpush3.bf16.msra.mxu1 %v20368_v45 }
 0xba8   :  { %13132 = vmatprep.subr.bf16.mxu1 %v20350_v62 }
 0xbaa   :  { %8586 = vmatmul.mubr.f32.vlgmr.msra.gmra.mrb[92].mxu1 %v20370_v56 }
 0xbab   :  { %13134 = vmatpush3.bf16.msra.mxu1 %v20352_v29  ;;  %8856 = vmatprep.mubr.f32.mxu1 %v20317_v5 }
 0xbac   :  { %13136 = vmatprep.subr.bf16.mxu1 %v20355_v41  ;;  %v8890_v41 = vld [vmem:[#allocation9 + $0x898] ss:$0 sm:$0xff] }
 0xbaf   :  { %13138 = vmatpush3.bf16.msra.mxu1 %v20356_v15 }
 0xbb0   :  { %13140 = vmatprep.subr.bf16.mxu1 %v20357_v32 }
 0xbb3   :  { %13142 = vmatpush3.bf16.msra.mxu1 %v20358_v24 }
 0xbb4   :  { %13144 = vmatprep.subr.bf16.mxu1 %v20359_v60 }
 0xbb7   :  { %13146 = vmatpush3.bf16.msra.mxu1 %v20360_v42 }
 0xbb8   :  { %13148 = vmatprep.subr.bf16.mxu1 %v20361_v2 }
 0xbbb   :  { %13150 = vmatpush3.bf16.msra.mxu1 %v20362_v50 }
 0xbbc   :  { %13152 = vmatprep.subr.bf16.mxu1 %v20363_v55 }
 0xbbd   :  { %v10404_v61 = vpop.f32.mrb[80].mxu1 }
 0xbbe   :  { %v10649_v5 = vpop.f32.mrb[50].mxu0  ;;  %v10405_v28 = vpop.f32.mrb[81].mxu1 }
 0xbbf   :  { %v10406_v39 = vadd.f32 %v10405_v28, %v10404_v61  ;;  %v10650_v49 = vpop.f32.mrb[51].mxu0  ;;  %13154 = vmatpush3.bf16.msra.mxu1 %v20364_v14 }
 0xbc0   :  { %v10651_v26 = vadd.f32 %v10650_v49, %v10649_v5  ;;  %13156 = vmatprep.subr.bf16.mxu1 %v20365_v21 }
 0xbc1   :  { %v7480_v36 = vadd.f32 %v10406_v39, %v10371_v40 }
 0xbc3   :  { %13158 = vmatpush3.bf16.msra.mxu1 %v20366_v7 }
 0xbc4   :  { %13160 = vmatprep.subr.bf16.mxu1 %v20367_v51 }
 0xbc7   :  { %13162 = vmatpush3.bf16.msra.mxu1 %v20368_v45 }
 0xbca   :  { %8858 = vmatmul.mubr.f32.vlgmr.msra.gmra.mrb[94].mxu1 %v20351_v58 }
 0xbdd   :  { %v10439_v0 = vpop.f32.mrb[82].mxu1 }
 0xbde   :  { %v10719_v48 = vpop.f32.mrb[52].mxu0  ;;  %v10440_v38 = vpop.f32.mrb[83].mxu1 }
 0xbdf   :  { %v10441_v54 = vadd.f32 %v10440_v38, %v10439_v0  ;;  %v10720_v8 = vpop.f32.mrb[53].mxu0 }
 0xbe0   :  { %v10721_v34 = vadd.f32 %v10720_v8, %v10719_v48 }
 0xbe1   :  { %v7618_v27 = vadd.f32 %v10441_v54, %v7480_v36 }
 0xbfd   :  { %v10474_v25 = vpop.f32.mrb[84].mxu1 }
 0xbfe   :  { %v10475_v59 = vpop.f32.mrb[85].mxu1 }
 0xbff   :  { %v10476_v23 = vadd.f32 %v10475_v59, %v10474_v25 }
 0xc01   :  { %v7726_v4 = vadd.f32 %v10476_v23, %v7618_v27 }
 0xc1d   :  { %v10509_v17 = vpop.f32.mrb[86].mxu1 }
 0xc1e   :  { %v10510_v57 = vpop.f32.mrb[87].mxu1 }
 0xc1f   :  { %v10511_v19 = vadd.f32 %v10510_v57, %v10509_v17 }
 0xc21   :  { %v7894_v11 = vadd.f32 %v10511_v19, %v7726_v4 }
 0xc3d   :  { %v10544_v1 = vpop.f32.mrb[88].mxu1 }
 0xc3e   :  { %v10545_v63 = vpop.f32.mrb[89].mxu1 }
 0xc3f   :  { %v10546_v12 = vadd.f32 %v10545_v63, %v10544_v1 }
 0xc41   :  { %v7998_v35 = vadd.f32 %v10546_v12, %v7894_v11 }
 0xc43   :  { %v8110_v37 = vadd.f32 %v10581_v6, %v7998_v35 }
 0xc5d   :  { %v10614_v46 = vpop.f32.mrb[90].mxu1 }
 0xc5e   :  { %v10615_v22 = vpop.f32.mrb[91].mxu1 }
 0xc5f   :  { %v10616_v18 = vadd.f32 %v10615_v22, %v10614_v46 }
 0xc61   :  { %v8342_v13 = vadd.f32 %v10616_v18, %v8110_v37 }
 0xc63   :  { %v8480_v20 = vadd.f32 %v10651_v26, %v8342_v13 }
 0xc7d   :  { %v10684_v16 = vpop.f32.mrb[92].mxu1 }
 0xc7e   :  { %v10685_v43 = vpop.f32.mrb[93].mxu1 }
 0xc7f   :  { %v10686_v52 = vadd.f32 %v10685_v43, %v10684_v16 }
 0xc81   :  { %v8588_v10 = vadd.f32 %v10686_v52, %v8480_v20 }
 0xc83   :  { %v8756_v3 = vadd.f32 %v10721_v34, %v8588_v10 }
 0xc9d   :  { %v10754_v62 = vpop.f32.mrb[94].mxu1 }
 0xc9e   :  { %v10755_v58 = vpop.f32.mrb[95].mxu1 }
 0xc9f   :  { %v10756_v29 = vadd.f32 %v10755_v58, %v10754_v62 }
 0xca1   :  { %v8860_v44 = vadd.f32 %v10756_v29, %v8756_v3 }
 0xca3   :  { %v8864_v9 = vmul.f32 0.2, %v8860_v44  ;;  %vm8863_vm8 = vcmp.ge.f32.partialorder %v8860_v44, 0.0 }
 0xca5   :  { %v8865_v15 = vsel %vm8863_vm8, %v8860_v44, %v8864_v9 }
 0xca6   :  { %v8871_v32 = vmul.f32 %v8890_v41, %v8865_v15 }
 0xca8   :  { %v8873_v24 = vsel %vm8872_vm9, %v8871_v32, 0.0 }
 0xca9   :  { %8874 = vadd.xlane.f32.xlu0 %v8873_v24 }
 0xd36   :  { %v8875_v60 = vpop.xlane.xlu0 %8874 }
 0xd37   :  { %v8876_v42 = vsub.f32 0.0, %v8875_v60 }
 0xd39   :  { %v8877_v2 = vmul.f32 1.442695, %v8876_v42 }
 0xd3b   :  { %13206 = vpow2.f32 %v8877_v2 }
 0xd45   :  { %v13207_v50 = vpop.eup %13206 }
 0xd46   :  { %v8879_v55 = vadd.f32 1.0, %v13207_v50 }
 0xd48   :  { %13208 = vrcp.f32 %v8879_v55 }
 0xd52   :  { %v13209_v53 = vpop.eup %13208 }
 0xd53   :  { %8883 = vst.msk [vmem:[%s18334_s2] sm:$0x3] %vm8882_vm10, %v13209_v53 }
 0xd54   :  { %8888 = vsyncpa [#allocation8], 1 }
 0xd55   :  { %8889 = vsyncpa [#allocation10], 1 }

</bundles_post_ra>
